<compile_context>
chip_gen: v5e
topology: v5e:2x2
jax: 0.10.0
libtpu: 0.0.40
codegen_flags: <defaults>
</compile_context>

<pallas_src>
import functools

import jax
import jax.numpy as jnp
from jax.experimental import pallas as pl
from jax.experimental.pallas import tpu as pltpu


_SELU_ALPHA = 1.6732632423543772
_SELU_SCALE = 1.0507009873554805


def _selu(y):
    return _SELU_SCALE * jnp.where(y > 0, y, _SELU_ALPHA * (jnp.exp(y) - 1.0))


def _round8(n):
    return ((n + 7) // 8) * 8


def _clamp_vmem(nbytes):
    # Explicit VMEM budget: 2x headroom for compiler temporaries, clamped to
    # the smallest per-TensorCore VMEM (v7x: 64 MiB).
    return int(min(64 * 2 ** 20, max(16 * 2 ** 20, 2 * nbytes)))


# ----------------------------------------------------------------------------
# Pallas kernels
# ----------------------------------------------------------------------------
def _bigru_kernel(*refs, with_outputs, with_pre):
    """Fused bidirectional GRU, both directions interleaved in one body.

    x_ref   : (T*Bp, Din)  time-major flattened inputs
    len_ref : (Bp, 1)      int32 valid lengths
    pw/pb   : optional fused Linear+SELU pre-projection (Din, D), (1, D)
    wih_ref : (2, D, 3H)   packed per-direction input weights, gates [r|z|n]
    whh_ref : (2, H, 3H)   packed recurrent weights
    bgi_ref : (2, 1, 3H)   b_ih (+ b_hh folded for r, z gates)
    bhn_ref : (2, 1, H)    b_hn (must stay inside r * (.))
    out_ref : (T, Bp, 2H)  [fwd | bwd] (only when with_outputs)
    hfin_ref: (Bp, 2H)     [fwd | bwd] final hidden
    gi_scr  : VMEM (2, T*Bp, 3H) hoisted input projections
    """
    it = iter(refs)
    x_ref = next(it)
    len_ref = next(it)
    pw_ref = next(it) if with_pre else None
    pb_ref = next(it) if with_pre else None
    wih_ref = next(it)
    whh_ref = next(it)
    bgi_ref = next(it)
    bhn_ref = next(it)
    out_ref = next(it) if with_outputs else None
    hfin_ref = next(it)
    gi_scr = next(it)

    B = len_ref.shape[0]
    T = x_ref.shape[0] // B
    H = hfin_ref.shape[-1] // 2

    # ---- prologue --------------------------------------------------------
    x2d = x_ref[...]
    if with_pre:
        # fused context encoder: Linear + SELU feeding the GRU.
        x2d = _selu(jnp.dot(x2d, pw_ref[...],
                            preferred_element_type=jnp.float32) + pb_ref[...])
    # hoisted input projection: ONE packed matmul per direction, biases folded
    gi_scr[0] = jnp.dot(x2d, wih_ref[0],
                        preferred_element_type=jnp.float32) + bgi_ref[0]
    gi_scr[1] = jnp.dot(x2d, wih_ref[1],
                        preferred_element_type=jnp.float32) + bgi_ref[1]

    whh_f = whh_ref[0]
    whh_b = whh_ref[1]
    # loop-invariant broadcasts hoisted once (JAX does not CSE them in loops)
    bhn_f = jnp.broadcast_to(bhn_ref[0], (B, H))
    bhn_b = jnp.broadcast_to(bhn_ref[1], (B, H))
    lens = jnp.broadcast_to(len_ref[...], (B, H))          # int32

    def cell(gi, gh, h, bhn):
        r = jax.nn.sigmoid(gi[:, 0:H] + gh[:, 0:H])
        z = jax.nn.sigmoid(gi[:, H:2 * H] + gh[:, H:2 * H])
        n = jnp.tanh(gi[:, 2 * H:3 * H] + r * (gh[:, 2 * H:3 * H] + bhn))
        return (1.0 - z) * n + z * h

    def step(s, carry):
        hf, hb = carry
        tb = T - 1 - s
        rf = pl.multiple_of(s * B, B)
        rb = pl.multiple_of(tb * B, B)
        gif = gi_scr[0, pl.ds(rf, B), :]                   # (B, 3H)
        gib = gi_scr[1, pl.ds(rb, B), :]
        # one packed (B,H)x(H,3H) matmul per direction on the serial chain
        ghf = jnp.dot(hf, whh_f, preferred_element_type=jnp.float32)
        ghb = jnp.dot(hb, whh_b, preferred_element_type=jnp.float32)
        hf_new = cell(gif, ghf, hf, bhn_f)
        hb_new = cell(gib, ghb, hb, bhn_b)
        # packed-sequence semantics: padded steps keep the previous hidden
        hf_new = jnp.where(s < lens, hf_new, hf)
        hb_new = jnp.where(tb < lens, hb_new, hb)
        if out_ref is not None:
            out_ref[s, :, 0:H] = hf_new
            out_ref[tb, :, H:2 * H] = hb_new
        return hf_new, hb_new

    h0 = jnp.zeros((B, H), jnp.float32)
    hf, hb = jax.lax.fori_loop(0, T, step, (h0, h0), unroll=min(T, 8))
    hfin_ref[:, 0:H] = hf
    hfin_ref[:, H:2 * H] = hb


def _bilstm_kernel(x_ref, len_ref, h0_ref, wih_ref, whh_ref, bgi_ref,
                   out_ref, hfin_ref, gi_scr):
    """Fused bidirectional LSTM (interleaved directions), gates packed [i|f|g|o].

    h0_ref : (Bp, 2H) [fwd | bwd] initial hidden; cell state starts at zero.
    """
    B = len_ref.shape[0]
    T = x_ref.shape[0] // B
    H = whh_ref.shape[1]

    x2d = x_ref[...]
    gi_scr[0] = jnp.dot(x2d, wih_ref[0],
                        preferred_element_type=jnp.float32) + bgi_ref[0]
    gi_scr[1] = jnp.dot(x2d, wih_ref[1],
                        preferred_element_type=jnp.float32) + bgi_ref[1]

    whh_f = whh_ref[0]
    whh_b = whh_ref[1]
    lens = jnp.broadcast_to(len_ref[...], (B, H))
    h0 = h0_ref[...]
    hf0 = h0[:, 0:H]
    hb0 = h0[:, H:2 * H]
    c0 = jnp.zeros((B, H), jnp.float32)

    def cell(gi, gh, c):
        i = jax.nn.sigmoid(gi[:, 0:H] + gh[:, 0:H])
        f = jax.nn.sigmoid(gi[:, H:2 * H] + gh[:, H:2 * H])
        g = jnp.tanh(gi[:, 2 * H:3 * H] + gh[:, 2 * H:3 * H])
        o = jax.nn.sigmoid(gi[:, 3 * H:4 * H] + gh[:, 3 * H:4 * H])
        c_new = f * c + i * g
        h_new = o * jnp.tanh(c_new)
        return h_new, c_new

    def step(s, carry):
        hf, cf, hb, cb = carry
        tb = T - 1 - s
        rf = pl.multiple_of(s * B, B)
        rb = pl.multiple_of(tb * B, B)
        gif = gi_scr[0, pl.ds(rf, B), :]
        gib = gi_scr[1, pl.ds(rb, B), :]
        ghf = jnp.dot(hf, whh_f, preferred_element_type=jnp.float32)
        ghb = jnp.dot(hb, whh_b, preferred_element_type=jnp.float32)
        hf_new, cf_new = cell(gif, ghf, cf)
        hb_new, cb_new = cell(gib, ghb, cb)
        mf = s < lens
        mb = tb < lens
        hf_new = jnp.where(mf, hf_new, hf)
        cf_new = jnp.where(mf, cf_new, cf)
        hb_new = jnp.where(mb, hb_new, hb)
        cb_new = jnp.where(mb, cb_new, cb)
        out_ref[s, :, 0:H] = hf_new
        out_ref[tb, :, H:2 * H] = hb_new
        return hf_new, cf_new, hb_new, cb_new

    hf, _, hb, _ = jax.lax.fori_loop(0, T, step, (hf0, c0, hb0, c0),
                                     unroll=min(T, 8))
    hfin_ref[:, 0:H] = hf
    hfin_ref[:, H:2 * H] = hb


def _heads_kernel(o2_ref, s_ref, ws_ref, bs_ref, wi_ref, bi_ref,
                  slot_ref, intent_ref):
    # TODO(synk): on v7x, bf16 operands with f32 accumulation would roughly
    # double MXU throughput here; kept f32 for strict parity with the module.
    slot_ref[...] = (jnp.dot(o2_ref[...], ws_ref[...],
                             preferred_element_type=jnp.float32) + bs_ref[...])
    intent_ref[...] = (jnp.dot(s_ref[...], wi_ref[...],
                               preferred_element_type=jnp.float32) + bi_ref[...])


# ----------------------------------------------------------------------------
# Wrappers around pallas_call
# ----------------------------------------------------------------------------
def _pad_batch(x_tbd, lens, bp):
    T, B, _ = x_tbd.shape
    if bp == B:
        return x_tbd, lens
    pad = bp - B
    x_tbd = jnp.pad(x_tbd, ((0, 0), (0, pad), (0, 0)))
    lens = jnp.pad(lens, ((0, pad), (0, 0)))   # padded rows: length 0
    return x_tbd, lens


def bigru(x_tbd, lens, weights, *, with_outputs, pre=None):
    """x_tbd: (T, B, Din) f32 time-major; lens: (B, 1) int32.
    Returns (outputs (T, B, 2H) or None, final hidden (B, 2H) = [fwd|bwd])."""
    T, B, _ = x_tbd.shape
    wih, whh, bgi, bhn = weights
    H = whh.shape[1]
    Bp = _round8(B)
    x_tbd, lens = _pad_batch(x_tbd, lens, Bp)
    x2d = x_tbd.reshape(T * Bp, x_tbd.shape[-1])

    inputs = [x2d, lens]
    if pre is not None:
        inputs += [pre[0], pre[1]]
    inputs += [wih, whh, bgi, bhn]

    if with_outputs:
        out_shape = (jax.ShapeDtypeStruct((T, Bp, 2 * H), jnp.float32),
                     jax.ShapeDtypeStruct((Bp, 2 * H), jnp.float32))
    else:
        out_shape = jax.ShapeDtypeStruct((Bp, 2 * H), jnp.float32)

    est = 4 * (x2d.size + 2 * T * Bp * 3 * H + Bp * 2 * H
               + (T * Bp * 2 * H if with_outputs else 0)
               + sum(int(w.size) for w in (wih, whh, bgi, bhn)))
    if pre is not None:
        est += 4 * (int(pre[0].size) + int(pre[1].size)
                    + T * Bp * pre[0].shape[1])

    res = pl.pallas_call(
        functools.partial(_bigru_kernel, with_outputs=with_outputs,
                          with_pre=pre is not None),
        out_shape=out_shape,
        scratch_shapes=[pltpu.VMEM((2, T * Bp, 3 * H), jnp.float32)],
        compiler_params=pltpu.CompilerParams(
            vmem_limit_bytes=_clamp_vmem(est)),
    )(*inputs)

    if with_outputs:
        out, hfin = res
        return out[:, :B], hfin[:B]
    return None, res[:B]


def bilstm(x_tbd, lens, h0, weights):
    """x_tbd: (T, B, Din) time-major, lens: (B, 1) int32, h0: (B, 2H)."""
    T, B, _ = x_tbd.shape
    wih, whh, bgi = weights
    H = whh.shape[1]
    Bp = _round8(B)
    x_tbd, lens = _pad_batch(x_tbd, lens, Bp)
    if Bp != B:
        h0 = jnp.pad(h0, ((0, Bp - B), (0, 0)))
    x2d = x_tbd.reshape(T * Bp, x_tbd.shape[-1])

    est = 4 * (x2d.size + int(h0.size) + 2 * T * Bp * 4 * H
               + T * Bp * 2 * H + Bp * 2 * H
               + sum(int(w.size) for w in (wih, whh, bgi)))

    out, hfin = pl.pallas_call(
        _bilstm_kernel,
        out_shape=(jax.ShapeDtypeStruct((T, Bp, 2 * H), jnp.float32),
                   jax.ShapeDtypeStruct((Bp, 2 * H), jnp.float32)),
        scratch_shapes=[pltpu.VMEM((2, T * Bp, 4 * H), jnp.float32)],
        compiler_params=pltpu.CompilerParams(
            vmem_limit_bytes=_clamp_vmem(est)),
    )(x2d, lens, h0, wih, whh, bgi)
    return out[:, :B], hfin[:B]


def _pad_lanes(a, mult=128):
    padn = (-a.shape[-1]) % mult
    if padn == 0:
        return a
    return jnp.pad(a, [(0, 0)] * (a.ndim - 1) + [(0, padn)])


def heads(o2_flat, s, slot_w, slot_b, intent_w, intent_b):
    """Fused slot + intent heads; output lanes padded to 128 for dense stores."""
    ns, ni = slot_w.shape[1], intent_w.shape[1]
    ws, bs = _pad_lanes(slot_w), _pad_lanes(slot_b)
    wi, bi = _pad_lanes(intent_w), _pad_lanes(intent_b)
    slot, intent = pl.pallas_call(
        _heads_kernel,
        out_shape=(jax.ShapeDtypeStruct((o2_flat.shape[0], ws.shape[1]),
                                        jnp.float32),
                   jax.ShapeDtypeStruct((s.shape[0], wi.shape[1]),
                                        jnp.float32)),
    )(o2_flat, s, ws, bs, wi, bi)
    return slot[:, :ns], intent[:, :ni]


# ----------------------------------------------------------------------------
# Parameter construction (deterministic, mirrors the PyTorch __init__ shapes)
# ----------------------------------------------------------------------------
def _xavier(key, shape):
    fan_out, fan_in = shape
    bound = (6.0 / (fan_in + fan_out)) ** 0.5
    return jax.random.uniform(key, shape, jnp.float32, -bound, bound)


def _make_gru_dir(key, in_dim, hid):
    k_i, k_h = jax.random.split(key)
    w_ih = _xavier(k_i, (3 * hid, in_dim))     # torch (3H, in) layout [r;z;n]
    w_hh = _xavier(k_h, (3 * hid, hid))
    b_ih = jnp.zeros((3 * hid,), jnp.float32)  # biases zeroed by the init loop
    b_hh = jnp.zeros((3 * hid,), jnp.float32)
    # packed along lanes [r|z|n]; fold b_ih (+ b_hh for r,z) into the hoisted
    # input projection; b_hn kept apart (must stay inside r * (.)).
    bgi = (b_ih + jnp.concatenate(
        [b_hh[:2 * hid], jnp.zeros((hid,), jnp.float32)]))[None, :]
    bhn = b_hh[2 * hid:][None, :]
    return w_ih.T, w_hh.T, bgi, bhn


def _make_bigru_params(key, in_dim, hid):
    kf, kb = jax.random.split(key)
    f = _make_gru_dir(kf, in_dim, hid)
    b = _make_gru_dir(kb, in_dim, hid)
    return tuple(jnp.stack([x, y], axis=0) for x, y in zip(f, b))


def _make_lstm_dir(key, in_dim, hid):
    k_i, k_h = jax.random.split(key)
    w_ih = _xavier(k_i, (4 * hid, in_dim))     # gate order [i|f|g|o]
    w_hh = _xavier(k_h, (4 * hid, hid))
    bgi = jnp.zeros((1, 4 * hid), jnp.float32)  # b_ih + b_hh (all gates fold)
    return w_ih.T, w_hh.T, bgi


def _make_bilstm_params(key, in_dim, hid):
    kf, kb = jax.random.split(key)
    f = _make_lstm_dir(kf, in_dim, hid)
    b = _make_lstm_dir(kb, in_dim, hid)
    return tuple(jnp.stack([x, y], axis=0) for x, y in zip(f, b))


def make_params(key, vocab_size, embed_size, hidden_size, slot_size,
                intent_size):
    keys = jax.random.split(key, 10)
    embed = _xavier(keys[0], (vocab_size, embed_size))
    embed = embed.at[0].set(0.0)               # padding_idx row
    H = hidden_size
    return {
        "embed": embed,
        "bigru_m": _make_bigru_params(keys[1], embed_size, H),
        "bigru_c": _make_bigru_params(keys[2], embed_size, H),
        "session": _make_bigru_params(keys[3], 2 * H, 2 * H),
        "dec1": _make_bigru_params(keys[4], embed_size, 2 * H),
        "dec2": _make_bilstm_params(keys[5], 4 * H, 2 * H),
        "ctx_w": _xavier(keys[6], (2 * H, 4 * H)).T,      # (4H, 2H)
        "ctx_b": jnp.zeros((1, 2 * H), jnp.float32),
        "intent_w": _xavier(keys[7], (intent_size, 4 * H)).T,
        "intent_b": jnp.zeros((1, intent_size), jnp.float32),
        "slot_w": _xavier(keys[8], (slot_size, 4 * H)).T,
        "slot_b": jnp.zeros((1, slot_size), jnp.float32),
    }


# ----------------------------------------------------------------------------
# SDEN forward (slm=False path).  Dropout is identity (eval mode).
# ----------------------------------------------------------------------------
def sden_forward(params, history, current):
    """history: (B, T_hist, L_h) int32, current: (B, L_c) int32, right-padded."""
    B, T_hist, L_h = history.shape
    _, L_c = current.shape
    emb = params["embed"]
    Hh = params["bigru_m"][1].shape[1]              # hidden_size

    def time_major(x_btd):
        return jnp.transpose(x_btd, (1, 0, 2))

    def seq_lengths(tokens):
        l = jnp.sum(tokens != 0, axis=-1)
        # pack(..., lens=[l if l > 0 else 1]): clamp empty sequences to 1
        return jnp.maximum(l, 1).astype(jnp.int32)[:, None]

    # --- memory encoder (bigru_m) over every history utterance --------------
    hist_flat = history.reshape(B * T_hist, L_h)
    h_emb = emb[hist_flat].astype(jnp.float32)          # (B*T_hist, L_h, E)
    _, hid_m = bigru(time_major(h_emb), seq_lengths(hist_flat),
                     params["bigru_m"], with_outputs=False)
    M = hid_m.reshape(B, T_hist, 2 * Hh)                # already [fwd|bwd]

    # --- current utterance encoder (bigru_c) --------------------------------
    c_emb = emb[current].astype(jnp.float32)            # (B, L_c, E)
    _, hid_c = bigru(time_major(c_emb), seq_lengths(current),
                     params["bigru_c"], with_outputs=False)
    C = jnp.broadcast_to(hid_c[:, None, :], (B, T_hist, 2 * Hh))

    # --- context encoder (Linear 4Hh->2Hh + SELU) fused into session encoder
    CONCAT = jnp.concatenate([M, C], axis=-1)           # (B, T_hist, 4Hh)
    full_hist = jnp.full((B, 1), T_hist, jnp.int32)
    _, Hsess = bigru(time_major(CONCAT), full_hist, params["session"],
                     with_outputs=False,
                     pre=(params["ctx_w"], params["ctx_b"]))  # (B, 4Hh)

    # --- decoder_1 (biGRU over current embeddings, no packing) --------------
    full_cur = jnp.full((B, 1), L_c, jnp.int32)
    O1, _ = bigru(time_major(c_emb), full_cur, params["dec1"],
                  with_outputs=True)                    # (L_c, B, 4Hh)

    # --- decoder_2 (biLSTM, initial hidden from session encoder) ------------
    O2, S = bilstm(O1, full_cur, Hsess, params["dec2"])
    # O2: (L_c, B, 4Hh) time-major, S: (B, 4Hh)

    # --- output heads on the time-major slab; relayout the slot-wide result -
    slot_tm, intent_prob = heads(O2.reshape(L_c * B, 4 * Hh), S,
                                 params["slot_w"], params["slot_b"],
                                 params["intent_w"], params["intent_b"])
    slot_prob = jnp.transpose(slot_tm.reshape(L_c, B, -1),
                              (1, 0, 2)).reshape(B * L_c, -1)
    return slot_prob, intent_prob


# ----------------------------------------------------------------------------
if __name__ == "__main__":
    vocab_size, embed_size, hidden_size = 50, 16, 16
    slot_size, intent_size = 9, 5
    B, T_hist, L_h, L_c = 2, 3, 8, 8

    key = jax.random.PRNGKey(0)
    k_param, k_hist, k_cur = jax.random.split(key, 3)
    params = make_params(k_param, vocab_size, embed_size, hidden_size,
                         slot_size, intent_size)

    # right-padded token ids (pad_idx = 0)
    history = jax.random.randint(k_hist, (B, T_hist, L_h), 1, vocab_size)
    hist_lens = jnp.array([[8, 5, 3], [6, 8, 4]])
    history = jnp.where(jnp.arange(L_h)[None, None, :] < hist_lens[:, :, None],
                        history, 0).astype(jnp.int32)

    current = jax.random.randint(k_cur, (B, L_c), 1, vocab_size)
    cur_lens = jnp.array([8, 5])
    current = jnp.where(jnp.arange(L_c)[None, :] < cur_lens[:, None],
                        current, 0).astype(jnp.int32)

    fwd = jax.jit(sden_forward)
    slot_prob, intent_prob = fwd(params, history, current)
    jax.block_until_ready((slot_prob, intent_prob))

    assert slot_prob.shape == (B * L_c, slot_size)
    assert intent_prob.shape == (B, intent_size)
    assert bool(jnp.all(jnp.isfinite(slot_prob)))
    assert bool(jnp.all(jnp.isfinite(intent_prob)))
    print("KERNEL_OK")
</pallas_src>

<mosaic_0001>
module attributes {stable_mosaic.version = 11 : i64} {
  func.func @_bigru_kernel(%arg0: memref<64x16xf32, #tpu.memory_space<vmem>>, %arg1: memref<8x1xi32, #tpu.memory_space<vmem>>, %arg2: memref<2x16x48xf32, #tpu.memory_space<vmem>>, %arg3: memref<2x16x48xf32, #tpu.memory_space<vmem>>, %arg4: memref<2x1x48xf32, #tpu.memory_space<vmem>>, %arg5: memref<2x1x16xf32, #tpu.memory_space<vmem>>, %arg6: memref<8x32xf32, #tpu.memory_space<vmem>>, %arg7: memref<2x64x48xf32, #tpu.memory_space<vmem>>) attributes {dimension_semantics = [], scalar_prefetch = 0 : i64, scratch_operands = 1 : i64, tpu.core_type = #tpu.core_type<tc>} {
    %c0 = arith.constant 0 : index
    %c0_0 = arith.constant 0 : index
    %0 = vector.load %arg0[%c0, %c0_0] : memref<64x16xf32, #tpu.memory_space<vmem>>, vector<64x16xf32>
    %c0_1 = arith.constant 0 : index
    %c0_2 = arith.constant 0 : index
    %c0_3 = arith.constant 0 : index
    %1 = vector.load %arg2[%c0_1, %c0_2, %c0_3] : memref<2x16x48xf32, #tpu.memory_space<vmem>>, vector<1x16x48xf32>
    %2 = vector.shape_cast %1 : vector<1x16x48xf32> to vector<16x48xf32>
    %cst = arith.constant dense<0.000000e+00> : vector<64x48xf32>
    %3 = tpu.matmul %0, %2, %cst {dimension_numbers = #tpu.dot_dimension_numbers<[1], [0], [0], [1], [0, 0, 1, 1], [], []>} : vector<64x16xf32>, vector<16x48xf32>, vector<64x48xf32> -> vector<64x48xf32>
    %c0_4 = arith.constant 0 : index
    %c0_5 = arith.constant 0 : index
    %c0_6 = arith.constant 0 : index
    %4 = vector.load %arg4[%c0_4, %c0_5, %c0_6] : memref<2x1x48xf32, #tpu.memory_space<vmem>>, vector<1x1x48xf32>
    %5 = vector.shape_cast %4 : vector<1x1x48xf32> to vector<1x48xf32>
    %6 = vector.broadcast %5 : vector<1x48xf32> to vector<64x48xf32>
    %7 = arith.addf %3, %6 : vector<64x48xf32>
    %c0_7 = arith.constant 0 : index
    %c0_8 = arith.constant 0 : index
    %c0_9 = arith.constant 0 : index
    %8 = vector.load %arg7[%c0_7, %c0_8, %c0_9] : memref<2x64x48xf32, #tpu.memory_space<vmem>>, vector<1x64x48xf32>
    %9 = vector.shape_cast %8 : vector<1x64x48xf32> to vector<64x48xf32>
    %10 = vector.shape_cast %7 : vector<64x48xf32> to vector<1x64x48xf32>
    tpu.vector_store %arg7[%c0_7, %c0_8, %c0_9], %10 {strides = array<i32>} : memref<2x64x48xf32, #tpu.memory_space<vmem>>, vector<1x64x48xf32>,
    %c1 = arith.constant 1 : index
    %c0_10 = arith.constant 0 : index
    %c0_11 = arith.constant 0 : index
    %11 = vector.load %arg2[%c1, %c0_10, %c0_11] : memref<2x16x48xf32, #tpu.memory_space<vmem>>, vector<1x16x48xf32>
    %12 = vector.shape_cast %11 : vector<1x16x48xf32> to vector<16x48xf32>
    %cst_12 = arith.constant dense<0.000000e+00> : vector<64x48xf32>
    %13 = tpu.matmul %0, %12, %cst_12 {dimension_numbers = #tpu.dot_dimension_numbers<[1], [0], [0], [1], [0, 0, 1, 1], [], []>} : vector<64x16xf32>, vector<16x48xf32>, vector<64x48xf32> -> vector<64x48xf32>
    %c1_13 = arith.constant 1 : index
    %c0_14 = arith.constant 0 : index
    %c0_15 = arith.constant 0 : index
    %14 = vector.load %arg4[%c1_13, %c0_14, %c0_15] : memref<2x1x48xf32, #tpu.memory_space<vmem>>, vector<1x1x48xf32>
    %15 = vector.shape_cast %14 : vector<1x1x48xf32> to vector<1x48xf32>
    %16 = vector.broadcast %15 : vector<1x48xf32> to vector<64x48xf32>
    %17 = arith.addf %13, %16 : vector<64x48xf32>
    %c1_16 = arith.constant 1 : index
    %c0_17 = arith.constant 0 : index
    %c0_18 = arith.constant 0 : index
    %18 = vector.load %arg7[%c1_16, %c0_17, %c0_18] : memref<2x64x48xf32, #tpu.memory_space<vmem>>, vector<1x64x48xf32>
    %19 = vector.shape_cast %18 : vector<1x64x48xf32> to vector<64x48xf32>
    %20 = vector.shape_cast %17 : vector<64x48xf32> to vector<1x64x48xf32>
    tpu.vector_store %arg7[%c1_16, %c0_17, %c0_18], %20 {strides = array<i32>} : memref<2x64x48xf32, #tpu.memory_space<vmem>>, vector<1x64x48xf32>,
    %c0_19 = arith.constant 0 : index
    %c0_20 = arith.constant 0 : index
    %c0_21 = arith.constant 0 : index
    %21 = vector.load %arg3[%c0_19, %c0_20, %c0_21] : memref<2x16x48xf32, #tpu.memory_space<vmem>>, vector<1x16x48xf32>
    %22 = vector.shape_cast %21 : vector<1x16x48xf32> to vector<16x48xf32>
    %c1_22 = arith.constant 1 : index
    %c0_23 = arith.constant 0 : index
    %c0_24 = arith.constant 0 : index
    %23 = vector.load %arg3[%c1_22, %c0_23, %c0_24] : memref<2x16x48xf32, #tpu.memory_space<vmem>>, vector<1x16x48xf32>
    %24 = vector.shape_cast %23 : vector<1x16x48xf32> to vector<16x48xf32>
    %c0_25 = arith.constant 0 : index
    %c0_26 = arith.constant 0 : index
    %c0_27 = arith.constant 0 : index
    %25 = vector.load %arg5[%c0_25, %c0_26, %c0_27] : memref<2x1x16xf32, #tpu.memory_space<vmem>>, vector<1x1x16xf32>
    %26 = vector.shape_cast %25 : vector<1x1x16xf32> to vector<1x16xf32>
    %27 = vector.shape_cast %26 : vector<1x16xf32> to vector<1x16xf32>
    %28 = vector.broadcast %27 : vector<1x16xf32> to vector<8x16xf32>
    %c1_28 = arith.constant 1 : index
    %c0_29 = arith.constant 0 : index
    %c0_30 = arith.constant 0 : index
    %29 = vector.load %arg5[%c1_28, %c0_29, %c0_30] : memref<2x1x16xf32, #tpu.memory_space<vmem>>, vector<1x1x16xf32>
    %30 = vector.shape_cast %29 : vector<1x1x16xf32> to vector<1x16xf32>
    %31 = vector.shape_cast %30 : vector<1x16xf32> to vector<1x16xf32>
    %32 = vector.broadcast %31 : vector<1x16xf32> to vector<8x16xf32>
    %c0_31 = arith.constant 0 : index
    %c0_32 = arith.constant 0 : index
    %33 = vector.load %arg1[%c0_31, %c0_32] : memref<8x1xi32, #tpu.memory_space<vmem>>, vector<8x1xi32>
    %34 = vector.shape_cast %33 : vector<8x1xi32> to vector<8x1xi32>
    %35 = vector.broadcast %34 : vector<8x1xi32> to vector<8x16xi32>
    %cst_33 = arith.constant 0.000000e+00 : f32
    %36 = vector.broadcast %cst_33 : f32 to vector<8x16xf32>
    %c0_i32 = arith.constant 0 : i32
    %c7_i32 = arith.constant 7 : i32
    %37 = arith.subi %c7_i32, %c0_i32 : i32
    %c8_i32 = arith.constant 8 : i32
    %38 = arith.muli %c0_i32, %c8_i32 : i32
    %39 = tpu.assume_multiple %38, 8 : i32
    %c8_i32_34 = arith.constant 8 : i32
    %40 = arith.muli %37, %c8_i32_34 : i32
    %41 = tpu.assume_multiple %40, 8 : i32
    %c0_35 = arith.constant 0 : index
    %42 = arith.index_cast %39 : i32 to index
    %c0_36 = arith.constant 0 : index
    %43 = vector.load %arg7[%c0_35, %42, %c0_36] : memref<2x64x48xf32, #tpu.memory_space<vmem>>, vector<1x8x48xf32>
    %44 = vector.shape_cast %43 : vector<1x8x48xf32> to vector<8x48xf32>
    %c1_37 = arith.constant 1 : index
    %45 = arith.index_cast %41 : i32 to index
    %c0_38 = arith.constant 0 : index
    %46 = vector.load %arg7[%c1_37, %45, %c0_38] : memref<2x64x48xf32, #tpu.memory_space<vmem>>, vector<1x8x48xf32>
    %47 = vector.shape_cast %46 : vector<1x8x48xf32> to vector<8x48xf32>
    %cst_39 = arith.constant dense<0.000000e+00> : vector<8x48xf32>
    %48 = tpu.matmul %36, %22, %cst_39 {dimension_numbers = #tpu.dot_dimension_numbers<[1], [0], [0], [1], [0, 0, 1, 1], [], []>} : vector<8x16xf32>, vector<16x48xf32>, vector<8x48xf32> -> vector<8x48xf32>
    %cst_40 = arith.constant dense<0.000000e+00> : vector<8x48xf32>
    %49 = tpu.matmul %36, %24, %cst_40 {dimension_numbers = #tpu.dot_dimension_numbers<[1], [0], [0], [1], [0, 0, 1, 1], [], []>} : vector<8x16xf32>, vector<16x48xf32>, vector<8x48xf32> -> vector<8x48xf32>
    %50 = vector.extract_strided_slice %44 {offsets = [0, 0], sizes = [8, 16], strides = [1, 1]} : vector<8x48xf32> to vector<8x16xf32>
    %51 = vector.extract_strided_slice %48 {offsets = [0, 0], sizes = [8, 16], strides = [1, 1]} : vector<8x48xf32> to vector<8x16xf32>
    %52 = arith.addf %50, %51 : vector<8x16xf32>
    %53 = arith.negf %52 : vector<8x16xf32>
    %54 = math.exp %53 : vector<8x16xf32>
    %cst_41 = arith.constant 1.000000e+00 : f32
    %55 = vector.broadcast %cst_41 : f32 to vector<8x16xf32>
    %56 = arith.addf %55, %54 : vector<8x16xf32>
    %57 = arith.divf %55, %56 : vector<8x16xf32>
    %58 = vector.extract_strided_slice %44 {offsets = [0, 16], sizes = [8, 16], strides = [1, 1]} : vector<8x48xf32> to vector<8x16xf32>
    %59 = vector.extract_strided_slice %48 {offsets = [0, 16], sizes = [8, 16], strides = [1, 1]} : vector<8x48xf32> to vector<8x16xf32>
    %60 = arith.addf %58, %59 : vector<8x16xf32>
    %61 = arith.negf %60 : vector<8x16xf32>
    %62 = math.exp %61 : vector<8x16xf32>
    %cst_42 = arith.constant 1.000000e+00 : f32
    %63 = vector.broadcast %cst_42 : f32 to vector<8x16xf32>
    %64 = arith.addf %63, %62 : vector<8x16xf32>
    %65 = arith.divf %63, %64 : vector<8x16xf32>
    %66 = vector.extract_strided_slice %44 {offsets = [0, 32], sizes = [8, 16], strides = [1, 1]} : vector<8x48xf32> to vector<8x16xf32>
    %67 = vector.extract_strided_slice %48 {offsets = [0, 32], sizes = [8, 16], strides = [1, 1]} : vector<8x48xf32> to vector<8x16xf32>
    %68 = arith.addf %67, %28 : vector<8x16xf32>
    %69 = arith.mulf %57, %68 : vector<8x16xf32>
    %70 = arith.addf %66, %69 : vector<8x16xf32>
    %71 = math.tanh %70 : vector<8x16xf32>
    %cst_43 = arith.constant 1.000000e+00 : f32
    %72 = vector.broadcast %cst_43 : f32 to vector<8x16xf32>
    %73 = arith.subf %72, %65 : vector<8x16xf32>
    %74 = arith.mulf %73, %71 : vector<8x16xf32>
    %75 = arith.mulf %65, %36 : vector<8x16xf32>
    %76 = arith.addf %74, %75 : vector<8x16xf32>
    %77 = vector.extract_strided_slice %47 {offsets = [0, 0], sizes = [8, 16], strides = [1, 1]} : vector<8x48xf32> to vector<8x16xf32>
    %78 = vector.extract_strided_slice %49 {offsets = [0, 0], sizes = [8, 16], strides = [1, 1]} : vector<8x48xf32> to vector<8x16xf32>
    %79 = arith.addf %77, %78 : vector<8x16xf32>
    %80 = arith.negf %79 : vector<8x16xf32>
    %81 = math.exp %80 : vector<8x16xf32>
    %cst_44 = arith.constant 1.000000e+00 : f32
    %82 = vector.broadcast %cst_44 : f32 to vector<8x16xf32>
    %83 = arith.addf %82, %81 : vector<8x16xf32>
    %84 = arith.divf %82, %83 : vector<8x16xf32>
    %85 = vector.extract_strided_slice %47 {offsets = [0, 16], sizes = [8, 16], strides = [1, 1]} : vector<8x48xf32> to vector<8x16xf32>
    %86 = vector.extract_strided_slice %49 {offsets = [0, 16], sizes = [8, 16], strides = [1, 1]} : vector<8x48xf32> to vector<8x16xf32>
    %87 = arith.addf %85, %86 : vector<8x16xf32>
    %88 = arith.negf %87 : vector<8x16xf32>
    %89 = math.exp %88 : vector<8x16xf32>
    %cst_45 = arith.constant 1.000000e+00 : f32
    %90 = vector.broadcast %cst_45 : f32 to vector<8x16xf32>
    %91 = arith.addf %90, %89 : vector<8x16xf32>
    %92 = arith.divf %90, %91 : vector<8x16xf32>
    %93 = vector.extract_strided_slice %47 {offsets = [0, 32], sizes = [8, 16], strides = [1, 1]} : vector<8x48xf32> to vector<8x16xf32>
    %94 = vector.extract_strided_slice %49 {offsets = [0, 32], sizes = [8, 16], strides = [1, 1]} : vector<8x48xf32> to vector<8x16xf32>
    %95 = arith.addf %94, %32 : vector<8x16xf32>
    %96 = arith.mulf %84, %95 : vector<8x16xf32>
    %97 = arith.addf %93, %96 : vector<8x16xf32>
    %98 = math.tanh %97 : vector<8x16xf32>
    %cst_46 = arith.constant 1.000000e+00 : f32
    %99 = vector.broadcast %cst_46 : f32 to vector<8x16xf32>
    %100 = arith.subf %99, %92 : vector<8x16xf32>
    %101 = arith.mulf %100, %98 : vector<8x16xf32>
    %102 = arith.mulf %92, %36 : vector<8x16xf32>
    %103 = arith.addf %101, %102 : vector<8x16xf32>
    %104 = vector.broadcast %c0_i32 : i32 to vector<8x16xi32>
    %105 = arith.cmpi slt, %104, %35 : vector<8x16xi32>
    %106 = arith.select %105, %76, %36 : vector<8x16xi1>, vector<8x16xf32>
    %107 = vector.broadcast %37 : i32 to vector<8x16xi32>
    %108 = arith.cmpi slt, %107, %35 : vector<8x16xi32>
    %109 = arith.select %108, %103, %36 : vector<8x16xi1>, vector<8x16xf32>
    %c1_i32 = arith.constant 1 : i32
    %c7_i32_47 = arith.constant 7 : i32
    %110 = arith.subi %c7_i32_47, %c1_i32 : i32
    %c8_i32_48 = arith.constant 8 : i32
    %111 = arith.muli %c1_i32, %c8_i32_48 : i32
    %112 = tpu.assume_multiple %111, 8 : i32
    %c8_i32_49 = arith.constant 8 : i32
    %113 = arith.muli %110, %c8_i32_49 : i32
    %114 = tpu.assume_multiple %113, 8 : i32
    %c0_50 = arith.constant 0 : index
    %115 = arith.index_cast %112 : i32 to index
    %c0_51 = arith.constant 0 : index
    %116 = vector.load %arg7[%c0_50, %115, %c0_51] : memref<2x64x48xf32, #tpu.memory_space<vmem>>, vector<1x8x48xf32>
    %117 = vector.shape_cast %116 : vector<1x8x48xf32> to vector<8x48xf32>
    %c1_52 = arith.constant 1 : index
    %118 = arith.index_cast %114 : i32 to index
    %c0_53 = arith.constant 0 : index
    %119 = vector.load %arg7[%c1_52, %118, %c0_53] : memref<2x64x48xf32, #tpu.memory_space<vmem>>, vector<1x8x48xf32>
    %120 = vector.shape_cast %119 : vector<1x8x48xf32> to vector<8x48xf32>
    %cst_54 = arith.constant dense<0.000000e+00> : vector<8x48xf32>
    %121 = tpu.matmul %106, %22, %cst_54 {dimension_numbers = #tpu.dot_dimension_numbers<[1], [0], [0], [1], [0, 0, 1, 1], [], []>} : vector<8x16xf32>, vector<16x48xf32>, vector<8x48xf32> -> vector<8x48xf32>
    %cst_55 = arith.constant dense<0.000000e+00> : vector<8x48xf32>
    %122 = tpu.matmul %109, %24, %cst_55 {dimension_numbers = #tpu.dot_dimension_numbers<[1], [0], [0], [1], [0, 0, 1, 1], [], []>} : vector<8x16xf32>, vector<16x48xf32>, vector<8x48xf32> -> vector<8x48xf32>
    %123 = vector.extract_strided_slice %117 {offsets = [0, 0], sizes = [8, 16], strides = [1, 1]} : vector<8x48xf32> to vector<8x16xf32>
    %124 = vector.extract_strided_slice %121 {offsets = [0, 0], sizes = [8, 16], strides = [1, 1]} : vector<8x48xf32> to vector<8x16xf32>
    %125 = arith.addf %123, %124 : vector<8x16xf32>
    %126 = arith.negf %125 : vector<8x16xf32>
    %127 = math.exp %126 : vector<8x16xf32>
    %cst_56 = arith.constant 1.000000e+00 : f32
    %128 = vector.broadcast %cst_56 : f32 to vector<8x16xf32>
    %129 = arith.addf %128, %127 : vector<8x16xf32>
    %130 = arith.divf %128, %129 : vector<8x16xf32>
    %131 = vector.extract_strided_slice %117 {offsets = [0, 16], sizes = [8, 16], strides = [1, 1]} : vector<8x48xf32> to vector<8x16xf32>
    %132 = vector.extract_strided_slice %121 {offsets = [0, 16], sizes = [8, 16], strides = [1, 1]} : vector<8x48xf32> to vector<8x16xf32>
    %133 = arith.addf %131, %132 : vector<8x16xf32>
    %134 = arith.negf %133 : vector<8x16xf32>
    %135 = math.exp %134 : vector<8x16xf32>
    %cst_57 = arith.constant 1.000000e+00 : f32
    %136 = vector.broadcast %cst_57 : f32 to vector<8x16xf32>
    %137 = arith.addf %136, %135 : vector<8x16xf32>
    %138 = arith.divf %136, %137 : vector<8x16xf32>
    %139 = vector.extract_strided_slice %117 {offsets = [0, 32], sizes = [8, 16], strides = [1, 1]} : vector<8x48xf32> to vector<8x16xf32>
    %140 = vector.extract_strided_slice %121 {offsets = [0, 32], sizes = [8, 16], strides = [1, 1]} : vector<8x48xf32> to vector<8x16xf32>
    %141 = arith.addf %140, %28 : vector<8x16xf32>
    %142 = arith.mulf %130, %141 : vector<8x16xf32>
    %143 = arith.addf %139, %142 : vector<8x16xf32>
    %144 = math.tanh %143 : vector<8x16xf32>
    %cst_58 = arith.constant 1.000000e+00 : f32
    %145 = vector.broadcast %cst_58 : f32 to vector<8x16xf32>
    %146 = arith.subf %145, %138 : vector<8x16xf32>
    %147 = arith.mulf %146, %144 : vector<8x16xf32>
    %148 = arith.mulf %138, %106 : vector<8x16xf32>
    %149 = arith.addf %147, %148 : vector<8x16xf32>
    %150 = vector.extract_strided_slice %120 {offsets = [0, 0], sizes = [8, 16], strides = [1, 1]} : vector<8x48xf32> to vector<8x16xf32>
    %151 = vector.extract_strided_slice %122 {offsets = [0, 0], sizes = [8, 16], strides = [1, 1]} : vector<8x48xf32> to vector<8x16xf32>
    %152 = arith.addf %150, %151 : vector<8x16xf32>
    %153 = arith.negf %152 : vector<8x16xf32>
    %154 = math.exp %153 : vector<8x16xf32>
    %cst_59 = arith.constant 1.000000e+00 : f32
    %155 = vector.broadcast %cst_59 : f32 to vector<8x16xf32>
    %156 = arith.addf %155, %154 : vector<8x16xf32>
    %157 = arith.divf %155, %156 : vector<8x16xf32>
    %158 = vector.extract_strided_slice %120 {offsets = [0, 16], sizes = [8, 16], strides = [1, 1]} : vector<8x48xf32> to vector<8x16xf32>
    %159 = vector.extract_strided_slice %122 {offsets = [0, 16], sizes = [8, 16], strides = [1, 1]} : vector<8x48xf32> to vector<8x16xf32>
    %160 = arith.addf %158, %159 : vector<8x16xf32>
    %161 = arith.negf %160 : vector<8x16xf32>
    %162 = math.exp %161 : vector<8x16xf32>
    %cst_60 = arith.constant 1.000000e+00 : f32
    %163 = vector.broadcast %cst_60 : f32 to vector<8x16xf32>
    %164 = arith.addf %163, %162 : vector<8x16xf32>
    %165 = arith.divf %163, %164 : vector<8x16xf32>
    %166 = vector.extract_strided_slice %120 {offsets = [0, 32], sizes = [8, 16], strides = [1, 1]} : vector<8x48xf32> to vector<8x16xf32>
    %167 = vector.extract_strided_slice %122 {offsets = [0, 32], sizes = [8, 16], strides = [1, 1]} : vector<8x48xf32> to vector<8x16xf32>
    %168 = arith.addf %167, %32 : vector<8x16xf32>
    %169 = arith.mulf %157, %168 : vector<8x16xf32>
    %170 = arith.addf %166, %169 : vector<8x16xf32>
    %171 = math.tanh %170 : vector<8x16xf32>
    %cst_61 = arith.constant 1.000000e+00 : f32
    %172 = vector.broadcast %cst_61 : f32 to vector<8x16xf32>
    %173 = arith.subf %172, %165 : vector<8x16xf32>
    %174 = arith.mulf %173, %171 : vector<8x16xf32>
    %175 = arith.mulf %165, %109 : vector<8x16xf32>
    %176 = arith.addf %174, %175 : vector<8x16xf32>
    %177 = vector.broadcast %c1_i32 : i32 to vector<8x16xi32>
    %178 = arith.cmpi slt, %177, %35 : vector<8x16xi32>
    %179 = arith.select %178, %149, %106 : vector<8x16xi1>, vector<8x16xf32>
    %180 = vector.broadcast %110 : i32 to vector<8x16xi32>
    %181 = arith.cmpi slt, %180, %35 : vector<8x16xi32>
    %182 = arith.select %181, %176, %109 : vector<8x16xi1>, vector<8x16xf32>
    %c2_i32 = arith.constant 2 : i32
    %c7_i32_62 = arith.constant 7 : i32
    %183 = arith.subi %c7_i32_62, %c2_i32 : i32
    %c8_i32_63 = arith.constant 8 : i32
    %184 = arith.muli %c2_i32, %c8_i32_63 : i32
    %185 = tpu.assume_multiple %184, 8 : i32
    %c8_i32_64 = arith.constant 8 : i32
    %186 = arith.muli %183, %c8_i32_64 : i32
    %187 = tpu.assume_multiple %186, 8 : i32
    %c0_65 = arith.constant 0 : index
    %188 = arith.index_cast %185 : i32 to index
    %c0_66 = arith.constant 0 : index
    %189 = vector.load %arg7[%c0_65, %188, %c0_66] : memref<2x64x48xf32, #tpu.memory_space<vmem>>, vector<1x8x48xf32>
    %190 = vector.shape_cast %189 : vector<1x8x48xf32> to vector<8x48xf32>
    %c1_67 = arith.constant 1 : index
    %191 = arith.index_cast %187 : i32 to index
    %c0_68 = arith.constant 0 : index
    %192 = vector.load %arg7[%c1_67, %191, %c0_68] : memref<2x64x48xf32, #tpu.memory_space<vmem>>, vector<1x8x48xf32>
    %193 = vector.shape_cast %192 : vector<1x8x48xf32> to vector<8x48xf32>
    %cst_69 = arith.constant dense<0.000000e+00> : vector<8x48xf32>
    %194 = tpu.matmul %179, %22, %cst_69 {dimension_numbers = #tpu.dot_dimension_numbers<[1], [0], [0], [1], [0, 0, 1, 1], [], []>} : vector<8x16xf32>, vector<16x48xf32>, vector<8x48xf32> -> vector<8x48xf32>
    %cst_70 = arith.constant dense<0.000000e+00> : vector<8x48xf32>
    %195 = tpu.matmul %182, %24, %cst_70 {dimension_numbers = #tpu.dot_dimension_numbers<[1], [0], [0], [1], [0, 0, 1, 1], [], []>} : vector<8x16xf32>, vector<16x48xf32>, vector<8x48xf32> -> vector<8x48xf32>
    %196 = vector.extract_strided_slice %190 {offsets = [0, 0], sizes = [8, 16], strides = [1, 1]} : vector<8x48xf32> to vector<8x16xf32>
    %197 = vector.extract_strided_slice %194 {offsets = [0, 0], sizes = [8, 16], strides = [1, 1]} : vector<8x48xf32> to vector<8x16xf32>
    %198 = arith.addf %196, %197 : vector<8x16xf32>
    %199 = arith.negf %198 : vector<8x16xf32>
    %200 = math.exp %199 : vector<8x16xf32>
    %cst_71 = arith.constant 1.000000e+00 : f32
    %201 = vector.broadcast %cst_71 : f32 to vector<8x16xf32>
    %202 = arith.addf %201, %200 : vector<8x16xf32>
    %203 = arith.divf %201, %202 : vector<8x16xf32>
    %204 = vector.extract_strided_slice %190 {offsets = [0, 16], sizes = [8, 16], strides = [1, 1]} : vector<8x48xf32> to vector<8x16xf32>
    %205 = vector.extract_strided_slice %194 {offsets = [0, 16], sizes = [8, 16], strides = [1, 1]} : vector<8x48xf32> to vector<8x16xf32>
    %206 = arith.addf %204, %205 : vector<8x16xf32>
    %207 = arith.negf %206 : vector<8x16xf32>
    %208 = math.exp %207 : vector<8x16xf32>
    %cst_72 = arith.constant 1.000000e+00 : f32
    %209 = vector.broadcast %cst_72 : f32 to vector<8x16xf32>
    %210 = arith.addf %209, %208 : vector<8x16xf32>
    %211 = arith.divf %209, %210 : vector<8x16xf32>
    %212 = vector.extract_strided_slice %190 {offsets = [0, 32], sizes = [8, 16], strides = [1, 1]} : vector<8x48xf32> to vector<8x16xf32>
    %213 = vector.extract_strided_slice %194 {offsets = [0, 32], sizes = [8, 16], strides = [1, 1]} : vector<8x48xf32> to vector<8x16xf32>
    %214 = arith.addf %213, %28 : vector<8x16xf32>
    %215 = arith.mulf %203, %214 : vector<8x16xf32>
    %216 = arith.addf %212, %215 : vector<8x16xf32>
    %217 = math.tanh %216 : vector<8x16xf32>
    %cst_73 = arith.constant 1.000000e+00 : f32
    %218 = vector.broadcast %cst_73 : f32 to vector<8x16xf32>
    %219 = arith.subf %218, %211 : vector<8x16xf32>
    %220 = arith.mulf %219, %217 : vector<8x16xf32>
    %221 = arith.mulf %211, %179 : vector<8x16xf32>
    %222 = arith.addf %220, %221 : vector<8x16xf32>
    %223 = vector.extract_strided_slice %193 {offsets = [0, 0], sizes = [8, 16], strides = [1, 1]} : vector<8x48xf32> to vector<8x16xf32>
    %224 = vector.extract_strided_slice %195 {offsets = [0, 0], sizes = [8, 16], strides = [1, 1]} : vector<8x48xf32> to vector<8x16xf32>
    %225 = arith.addf %223, %224 : vector<8x16xf32>
    %226 = arith.negf %225 : vector<8x16xf32>
    %227 = math.exp %226 : vector<8x16xf32>
    %cst_74 = arith.constant 1.000000e+00 : f32
    %228 = vector.broadcast %cst_74 : f32 to vector<8x16xf32>
    %229 = arith.addf %228, %227 : vector<8x16xf32>
    %230 = arith.divf %228, %229 : vector<8x16xf32>
    %231 = vector.extract_strided_slice %193 {offsets = [0, 16], sizes = [8, 16], strides = [1, 1]} : vector<8x48xf32> to vector<8x16xf32>
    %232 = vector.extract_strided_slice %195 {offsets = [0, 16], sizes = [8, 16], strides = [1, 1]} : vector<8x48xf32> to vector<8x16xf32>
    %233 = arith.addf %231, %232 : vector<8x16xf32>
    %234 = arith.negf %233 : vector<8x16xf32>
    %235 = math.exp %234 : vector<8x16xf32>
    %cst_75 = arith.constant 1.000000e+00 : f32
    %236 = vector.broadcast %cst_75 : f32 to vector<8x16xf32>
    %237 = arith.addf %236, %235 : vector<8x16xf32>
    %238 = arith.divf %236, %237 : vector<8x16xf32>
    %239 = vector.extract_strided_slice %193 {offsets = [0, 32], sizes = [8, 16], strides = [1, 1]} : vector<8x48xf32> to vector<8x16xf32>
    %240 = vector.extract_strided_slice %195 {offsets = [0, 32], sizes = [8, 16], strides = [1, 1]} : vector<8x48xf32> to vector<8x16xf32>
    %241 = arith.addf %240, %32 : vector<8x16xf32>
    %242 = arith.mulf %230, %241 : vector<8x16xf32>
    %243 = arith.addf %239, %242 : vector<8x16xf32>
    %244 = math.tanh %243 : vector<8x16xf32>
    %cst_76 = arith.constant 1.000000e+00 : f32
    %245 = vector.broadcast %cst_76 : f32 to vector<8x16xf32>
    %246 = arith.subf %245, %238 : vector<8x16xf32>
    %247 = arith.mulf %246, %244 : vector<8x16xf32>
    %248 = arith.mulf %238, %182 : vector<8x16xf32>
    %249 = arith.addf %247, %248 : vector<8x16xf32>
    %250 = vector.broadcast %c2_i32 : i32 to vector<8x16xi32>
    %251 = arith.cmpi slt, %250, %35 : vector<8x16xi32>
    %252 = arith.select %251, %222, %179 : vector<8x16xi1>, vector<8x16xf32>
    %253 = vector.broadcast %183 : i32 to vector<8x16xi32>
    %254 = arith.cmpi slt, %253, %35 : vector<8x16xi32>
    %255 = arith.select %254, %249, %182 : vector<8x16xi1>, vector<8x16xf32>
    %c3_i32 = arith.constant 3 : i32
    %c7_i32_77 = arith.constant 7 : i32
    %256 = arith.subi %c7_i32_77, %c3_i32 : i32
    %c8_i32_78 = arith.constant 8 : i32
    %257 = arith.muli %c3_i32, %c8_i32_78 : i32
    %258 = tpu.assume_multiple %257, 8 : i32
    %c8_i32_79 = arith.constant 8 : i32
    %259 = arith.muli %256, %c8_i32_79 : i32
    %260 = tpu.assume_multiple %259, 8 : i32
    %c0_80 = arith.constant 0 : index
    %261 = arith.index_cast %258 : i32 to index
    %c0_81 = arith.constant 0 : index
    %262 = vector.load %arg7[%c0_80, %261, %c0_81] : memref<2x64x48xf32, #tpu.memory_space<vmem>>, vector<1x8x48xf32>
    %263 = vector.shape_cast %262 : vector<1x8x48xf32> to vector<8x48xf32>
    %c1_82 = arith.constant 1 : index
    %264 = arith.index_cast %260 : i32 to index
    %c0_83 = arith.constant 0 : index
    %265 = vector.load %arg7[%c1_82, %264, %c0_83] : memref<2x64x48xf32, #tpu.memory_space<vmem>>, vector<1x8x48xf32>
    %266 = vector.shape_cast %265 : vector<1x8x48xf32> to vector<8x48xf32>
    %cst_84 = arith.constant dense<0.000000e+00> : vector<8x48xf32>
    %267 = tpu.matmul %252, %22, %cst_84 {dimension_numbers = #tpu.dot_dimension_numbers<[1], [0], [0], [1], [0, 0, 1, 1], [], []>} : vector<8x16xf32>, vector<16x48xf32>, vector<8x48xf32> -> vector<8x48xf32>
    %cst_85 = arith.constant dense<0.000000e+00> : vector<8x48xf32>
    %268 = tpu.matmul %255, %24, %cst_85 {dimension_numbers = #tpu.dot_dimension_numbers<[1], [0], [0], [1], [0, 0, 1, 1], [], []>} : vector<8x16xf32>, vector<16x48xf32>, vector<8x48xf32> -> vector<8x48xf32>
    %269 = vector.extract_strided_slice %263 {offsets = [0, 0], sizes = [8, 16], strides = [1, 1]} : vector<8x48xf32> to vector<8x16xf32>
    %270 = vector.extract_strided_slice %267 {offsets = [0, 0], sizes = [8, 16], strides = [1, 1]} : vector<8x48xf32> to vector<8x16xf32>
    %271 = arith.addf %269, %270 : vector<8x16xf32>
    %272 = arith.negf %271 : vector<8x16xf32>
    %273 = math.exp %272 : vector<8x16xf32>
    %cst_86 = arith.constant 1.000000e+00 : f32
    %274 = vector.broadcast %cst_86 : f32 to vector<8x16xf32>
    %275 = arith.addf %274, %273 : vector<8x16xf32>
    %276 = arith.divf %274, %275 : vector<8x16xf32>
    %277 = vector.extract_strided_slice %263 {offsets = [0, 16], sizes = [8, 16], strides = [1, 1]} : vector<8x48xf32> to vector<8x16xf32>
    %278 = vector.extract_strided_slice %267 {offsets = [0, 16], sizes = [8, 16], strides = [1, 1]} : vector<8x48xf32> to vector<8x16xf32>
    %279 = arith.addf %277, %278 : vector<8x16xf32>
    %280 = arith.negf %279 : vector<8x16xf32>
    %281 = math.exp %280 : vector<8x16xf32>
    %cst_87 = arith.constant 1.000000e+00 : f32
    %282 = vector.broadcast %cst_87 : f32 to vector<8x16xf32>
    %283 = arith.addf %282, %281 : vector<8x16xf32>
    %284 = arith.divf %282, %283 : vector<8x16xf32>
    %285 = vector.extract_strided_slice %263 {offsets = [0, 32], sizes = [8, 16], strides = [1, 1]} : vector<8x48xf32> to vector<8x16xf32>
    %286 = vector.extract_strided_slice %267 {offsets = [0, 32], sizes = [8, 16], strides = [1, 1]} : vector<8x48xf32> to vector<8x16xf32>
    %287 = arith.addf %286, %28 : vector<8x16xf32>
    %288 = arith.mulf %276, %287 : vector<8x16xf32>
    %289 = arith.addf %285, %288 : vector<8x16xf32>
    %290 = math.tanh %289 : vector<8x16xf32>
    %cst_88 = arith.constant 1.000000e+00 : f32
    %291 = vector.broadcast %cst_88 : f32 to vector<8x16xf32>
    %292 = arith.subf %291, %284 : vector<8x16xf32>
    %293 = arith.mulf %292, %290 : vector<8x16xf32>
    %294 = arith.mulf %284, %252 : vector<8x16xf32>
    %295 = arith.addf %293, %294 : vector<8x16xf32>
    %296 = vector.extract_strided_slice %266 {offsets = [0, 0], sizes = [8, 16], strides = [1, 1]} : vector<8x48xf32> to vector<8x16xf32>
    %297 = vector.extract_strided_slice %268 {offsets = [0, 0], sizes = [8, 16], strides = [1, 1]} : vector<8x48xf32> to vector<8x16xf32>
    %298 = arith.addf %296, %297 : vector<8x16xf32>
    %299 = arith.negf %298 : vector<8x16xf32>
    %300 = math.exp %299 : vector<8x16xf32>
    %cst_89 = arith.constant 1.000000e+00 : f32
    %301 = vector.broadcast %cst_89 : f32 to vector<8x16xf32>
    %302 = arith.addf %301, %300 : vector<8x16xf32>
    %303 = arith.divf %301, %302 : vector<8x16xf32>
    %304 = vector.extract_strided_slice %266 {offsets = [0, 16], sizes = [8, 16], strides = [1, 1]} : vector<8x48xf32> to vector<8x16xf32>
    %305 = vector.extract_strided_slice %268 {offsets = [0, 16], sizes = [8, 16], strides = [1, 1]} : vector<8x48xf32> to vector<8x16xf32>
    %306 = arith.addf %304, %305 : vector<8x16xf32>
    %307 = arith.negf %306 : vector<8x16xf32>
    %308 = math.exp %307 : vector<8x16xf32>
    %cst_90 = arith.constant 1.000000e+00 : f32
    %309 = vector.broadcast %cst_90 : f32 to vector<8x16xf32>
    %310 = arith.addf %309, %308 : vector<8x16xf32>
    %311 = arith.divf %309, %310 : vector<8x16xf32>
    %312 = vector.extract_strided_slice %266 {offsets = [0, 32], sizes = [8, 16], strides = [1, 1]} : vector<8x48xf32> to vector<8x16xf32>
    %313 = vector.extract_strided_slice %268 {offsets = [0, 32], sizes = [8, 16], strides = [1, 1]} : vector<8x48xf32> to vector<8x16xf32>
    %314 = arith.addf %313, %32 : vector<8x16xf32>
    %315 = arith.mulf %303, %314 : vector<8x16xf32>
    %316 = arith.addf %312, %315 : vector<8x16xf32>
    %317 = math.tanh %316 : vector<8x16xf32>
    %cst_91 = arith.constant 1.000000e+00 : f32
    %318 = vector.broadcast %cst_91 : f32 to vector<8x16xf32>
    %319 = arith.subf %318, %311 : vector<8x16xf32>
    %320 = arith.mulf %319, %317 : vector<8x16xf32>
    %321 = arith.mulf %311, %255 : vector<8x16xf32>
    %322 = arith.addf %320, %321 : vector<8x16xf32>
    %323 = vector.broadcast %c3_i32 : i32 to vector<8x16xi32>
    %324 = arith.cmpi slt, %323, %35 : vector<8x16xi32>
    %325 = arith.select %324, %295, %252 : vector<8x16xi1>, vector<8x16xf32>
    %326 = vector.broadcast %256 : i32 to vector<8x16xi32>
    %327 = arith.cmpi slt, %326, %35 : vector<8x16xi32>
    %328 = arith.select %327, %322, %255 : vector<8x16xi1>, vector<8x16xf32>
    %c4_i32 = arith.constant 4 : i32
    %c7_i32_92 = arith.constant 7 : i32
    %329 = arith.subi %c7_i32_92, %c4_i32 : i32
    %c8_i32_93 = arith.constant 8 : i32
    %330 = arith.muli %c4_i32, %c8_i32_93 : i32
    %331 = tpu.assume_multiple %330, 8 : i32
    %c8_i32_94 = arith.constant 8 : i32
    %332 = arith.muli %329, %c8_i32_94 : i32
    %333 = tpu.assume_multiple %332, 8 : i32
    %c0_95 = arith.constant 0 : index
    %334 = arith.index_cast %331 : i32 to index
    %c0_96 = arith.constant 0 : index
    %335 = vector.load %arg7[%c0_95, %334, %c0_96] : memref<2x64x48xf32, #tpu.memory_space<vmem>>, vector<1x8x48xf32>
    %336 = vector.shape_cast %335 : vector<1x8x48xf32> to vector<8x48xf32>
    %c1_97 = arith.constant 1 : index
    %337 = arith.index_cast %333 : i32 to index
    %c0_98 = arith.constant 0 : index
    %338 = vector.load %arg7[%c1_97, %337, %c0_98] : memref<2x64x48xf32, #tpu.memory_space<vmem>>, vector<1x8x48xf32>
    %339 = vector.shape_cast %338 : vector<1x8x48xf32> to vector<8x48xf32>
    %cst_99 = arith.constant dense<0.000000e+00> : vector<8x48xf32>
    %340 = tpu.matmul %325, %22, %cst_99 {dimension_numbers = #tpu.dot_dimension_numbers<[1], [0], [0], [1], [0, 0, 1, 1], [], []>} : vector<8x16xf32>, vector<16x48xf32>, vector<8x48xf32> -> vector<8x48xf32>
    %cst_100 = arith.constant dense<0.000000e+00> : vector<8x48xf32>
    %341 = tpu.matmul %328, %24, %cst_100 {dimension_numbers = #tpu.dot_dimension_numbers<[1], [0], [0], [1], [0, 0, 1, 1], [], []>} : vector<8x16xf32>, vector<16x48xf32>, vector<8x48xf32> -> vector<8x48xf32>
    %342 = vector.extract_strided_slice %336 {offsets = [0, 0], sizes = [8, 16], strides = [1, 1]} : vector<8x48xf32> to vector<8x16xf32>
    %343 = vector.extract_strided_slice %340 {offsets = [0, 0], sizes = [8, 16], strides = [1, 1]} : vector<8x48xf32> to vector<8x16xf32>
    %344 = arith.addf %342, %343 : vector<8x16xf32>
    %345 = arith.negf %344 : vector<8x16xf32>
    %346 = math.exp %345 : vector<8x16xf32>
    %cst_101 = arith.constant 1.000000e+00 : f32
    %347 = vector.broadcast %cst_101 : f32 to vector<8x16xf32>
    %348 = arith.addf %347, %346 : vector<8x16xf32>
    %349 = arith.divf %347, %348 : vector<8x16xf32>
    %350 = vector.extract_strided_slice %336 {offsets = [0, 16], sizes = [8, 16], strides = [1, 1]} : vector<8x48xf32> to vector<8x16xf32>
    %351 = vector.extract_strided_slice %340 {offsets = [0, 16], sizes = [8, 16], strides = [1, 1]} : vector<8x48xf32> to vector<8x16xf32>
    %352 = arith.addf %350, %351 : vector<8x16xf32>
    %353 = arith.negf %352 : vector<8x16xf32>
    %354 = math.exp %353 : vector<8x16xf32>
    %cst_102 = arith.constant 1.000000e+00 : f32
    %355 = vector.broadcast %cst_102 : f32 to vector<8x16xf32>
    %356 = arith.addf %355, %354 : vector<8x16xf32>
    %357 = arith.divf %355, %356 : vector<8x16xf32>
    %358 = vector.extract_strided_slice %336 {offsets = [0, 32], sizes = [8, 16], strides = [1, 1]} : vector<8x48xf32> to vector<8x16xf32>
    %359 = vector.extract_strided_slice %340 {offsets = [0, 32], sizes = [8, 16], strides = [1, 1]} : vector<8x48xf32> to vector<8x16xf32>
    %360 = arith.addf %359, %28 : vector<8x16xf32>
    %361 = arith.mulf %349, %360 : vector<8x16xf32>
    %362 = arith.addf %358, %361 : vector<8x16xf32>
    %363 = math.tanh %362 : vector<8x16xf32>
    %cst_103 = arith.constant 1.000000e+00 : f32
    %364 = vector.broadcast %cst_103 : f32 to vector<8x16xf32>
    %365 = arith.subf %364, %357 : vector<8x16xf32>
    %366 = arith.mulf %365, %363 : vector<8x16xf32>
    %367 = arith.mulf %357, %325 : vector<8x16xf32>
    %368 = arith.addf %366, %367 : vector<8x16xf32>
    %369 = vector.extract_strided_slice %339 {offsets = [0, 0], sizes = [8, 16], strides = [1, 1]} : vector<8x48xf32> to vector<8x16xf32>
    %370 = vector.extract_strided_slice %341 {offsets = [0, 0], sizes = [8, 16], strides = [1, 1]} : vector<8x48xf32> to vector<8x16xf32>
    %371 = arith.addf %369, %370 : vector<8x16xf32>
    %372 = arith.negf %371 : vector<8x16xf32>
    %373 = math.exp %372 : vector<8x16xf32>
    %cst_104 = arith.constant 1.000000e+00 : f32
    %374 = vector.broadcast %cst_104 : f32 to vector<8x16xf32>
    %375 = arith.addf %374, %373 : vector<8x16xf32>
    %376 = arith.divf %374, %375 : vector<8x16xf32>
    %377 = vector.extract_strided_slice %339 {offsets = [0, 16], sizes = [8, 16], strides = [1, 1]} : vector<8x48xf32> to vector<8x16xf32>
    %378 = vector.extract_strided_slice %341 {offsets = [0, 16], sizes = [8, 16], strides = [1, 1]} : vector<8x48xf32> to vector<8x16xf32>
    %379 = arith.addf %377, %378 : vector<8x16xf32>
    %380 = arith.negf %379 : vector<8x16xf32>
    %381 = math.exp %380 : vector<8x16xf32>
    %cst_105 = arith.constant 1.000000e+00 : f32
    %382 = vector.broadcast %cst_105 : f32 to vector<8x16xf32>
    %383 = arith.addf %382, %381 : vector<8x16xf32>
    %384 = arith.divf %382, %383 : vector<8x16xf32>
    %385 = vector.extract_strided_slice %339 {offsets = [0, 32], sizes = [8, 16], strides = [1, 1]} : vector<8x48xf32> to vector<8x16xf32>
    %386 = vector.extract_strided_slice %341 {offsets = [0, 32], sizes = [8, 16], strides = [1, 1]} : vector<8x48xf32> to vector<8x16xf32>
    %387 = arith.addf %386, %32 : vector<8x16xf32>
    %388 = arith.mulf %376, %387 : vector<8x16xf32>
    %389 = arith.addf %385, %388 : vector<8x16xf32>
    %390 = math.tanh %389 : vector<8x16xf32>
    %cst_106 = arith.constant 1.000000e+00 : f32
    %391 = vector.broadcast %cst_106 : f32 to vector<8x16xf32>
    %392 = arith.subf %391, %384 : vector<8x16xf32>
    %393 = arith.mulf %392, %390 : vector<8x16xf32>
    %394 = arith.mulf %384, %328 : vector<8x16xf32>
    %395 = arith.addf %393, %394 : vector<8x16xf32>
    %396 = vector.broadcast %c4_i32 : i32 to vector<8x16xi32>
    %397 = arith.cmpi slt, %396, %35 : vector<8x16xi32>
    %398 = arith.select %397, %368, %325 : vector<8x16xi1>, vector<8x16xf32>
    %399 = vector.broadcast %329 : i32 to vector<8x16xi32>
    %400 = arith.cmpi slt, %399, %35 : vector<8x16xi32>
    %401 = arith.select %400, %395, %328 : vector<8x16xi1>, vector<8x16xf32>
    %c5_i32 = arith.constant 5 : i32
    %c7_i32_107 = arith.constant 7 : i32
    %402 = arith.subi %c7_i32_107, %c5_i32 : i32
    %c8_i32_108 = arith.constant 8 : i32
    %403 = arith.muli %c5_i32, %c8_i32_108 : i32
    %404 = tpu.assume_multiple %403, 8 : i32
    %c8_i32_109 = arith.constant 8 : i32
    %405 = arith.muli %402, %c8_i32_109 : i32
    %406 = tpu.assume_multiple %405, 8 : i32
    %c0_110 = arith.constant 0 : index
    %407 = arith.index_cast %404 : i32 to index
    %c0_111 = arith.constant 0 : index
    %408 = vector.load %arg7[%c0_110, %407, %c0_111] : memref<2x64x48xf32, #tpu.memory_space<vmem>>, vector<1x8x48xf32>
    %409 = vector.shape_cast %408 : vector<1x8x48xf32> to vector<8x48xf32>
    %c1_112 = arith.constant 1 : index
    %410 = arith.index_cast %406 : i32 to index
    %c0_113 = arith.constant 0 : index
    %411 = vector.load %arg7[%c1_112, %410, %c0_113] : memref<2x64x48xf32, #tpu.memory_space<vmem>>, vector<1x8x48xf32>
    %412 = vector.shape_cast %411 : vector<1x8x48xf32> to vector<8x48xf32>
    %cst_114 = arith.constant dense<0.000000e+00> : vector<8x48xf32>
    %413 = tpu.matmul %398, %22, %cst_114 {dimension_numbers = #tpu.dot_dimension_numbers<[1], [0], [0], [1], [0, 0, 1, 1], [], []>} : vector<8x16xf32>, vector<16x48xf32>, vector<8x48xf32> -> vector<8x48xf32>
    %cst_115 = arith.constant dense<0.000000e+00> : vector<8x48xf32>
    %414 = tpu.matmul %401, %24, %cst_115 {dimension_numbers = #tpu.dot_dimension_numbers<[1], [0], [0], [1], [0, 0, 1, 1], [], []>} : vector<8x16xf32>, vector<16x48xf32>, vector<8x48xf32> -> vector<8x48xf32>
    %415 = vector.extract_strided_slice %409 {offsets = [0, 0], sizes = [8, 16], strides = [1, 1]} : vector<8x48xf32> to vector<8x16xf32>
    %416 = vector.extract_strided_slice %413 {offsets = [0, 0], sizes = [8, 16], strides = [1, 1]} : vector<8x48xf32> to vector<8x16xf32>
    %417 = arith.addf %415, %416 : vector<8x16xf32>
    %418 = arith.negf %417 : vector<8x16xf32>
    %419 = math.exp %418 : vector<8x16xf32>
    %cst_116 = arith.constant 1.000000e+00 : f32
    %420 = vector.broadcast %cst_116 : f32 to vector<8x16xf32>
    %421 = arith.addf %420, %419 : vector<8x16xf32>
    %422 = arith.divf %420, %421 : vector<8x16xf32>
    %423 = vector.extract_strided_slice %409 {offsets = [0, 16], sizes = [8, 16], strides = [1, 1]} : vector<8x48xf32> to vector<8x16xf32>
    %424 = vector.extract_strided_slice %413 {offsets = [0, 16], sizes = [8, 16], strides = [1, 1]} : vector<8x48xf32> to vector<8x16xf32>
    %425 = arith.addf %423, %424 : vector<8x16xf32>
    %426 = arith.negf %425 : vector<8x16xf32>
    %427 = math.exp %426 : vector<8x16xf32>
    %cst_117 = arith.constant 1.000000e+00 : f32
    %428 = vector.broadcast %cst_117 : f32 to vector<8x16xf32>
    %429 = arith.addf %428, %427 : vector<8x16xf32>
    %430 = arith.divf %428, %429 : vector<8x16xf32>
    %431 = vector.extract_strided_slice %409 {offsets = [0, 32], sizes = [8, 16], strides = [1, 1]} : vector<8x48xf32> to vector<8x16xf32>
    %432 = vector.extract_strided_slice %413 {offsets = [0, 32], sizes = [8, 16], strides = [1, 1]} : vector<8x48xf32> to vector<8x16xf32>
    %433 = arith.addf %432, %28 : vector<8x16xf32>
    %434 = arith.mulf %422, %433 : vector<8x16xf32>
    %435 = arith.addf %431, %434 : vector<8x16xf32>
    %436 = math.tanh %435 : vector<8x16xf32>
    %cst_118 = arith.constant 1.000000e+00 : f32
    %437 = vector.broadcast %cst_118 : f32 to vector<8x16xf32>
    %438 = arith.subf %437, %430 : vector<8x16xf32>
    %439 = arith.mulf %438, %436 : vector<8x16xf32>
    %440 = arith.mulf %430, %398 : vector<8x16xf32>
    %441 = arith.addf %439, %440 : vector<8x16xf32>
    %442 = vector.extract_strided_slice %412 {offsets = [0, 0], sizes = [8, 16], strides = [1, 1]} : vector<8x48xf32> to vector<8x16xf32>
    %443 = vector.extract_strided_slice %414 {offsets = [0, 0], sizes = [8, 16], strides = [1, 1]} : vector<8x48xf32> to vector<8x16xf32>
    %444 = arith.addf %442, %443 : vector<8x16xf32>
    %445 = arith.negf %444 : vector<8x16xf32>
    %446 = math.exp %445 : vector<8x16xf32>
    %cst_119 = arith.constant 1.000000e+00 : f32
    %447 = vector.broadcast %cst_119 : f32 to vector<8x16xf32>
    %448 = arith.addf %447, %446 : vector<8x16xf32>
    %449 = arith.divf %447, %448 : vector<8x16xf32>
    %450 = vector.extract_strided_slice %412 {offsets = [0, 16], sizes = [8, 16], strides = [1, 1]} : vector<8x48xf32> to vector<8x16xf32>
    %451 = vector.extract_strided_slice %414 {offsets = [0, 16], sizes = [8, 16], strides = [1, 1]} : vector<8x48xf32> to vector<8x16xf32>
    %452 = arith.addf %450, %451 : vector<8x16xf32>
    %453 = arith.negf %452 : vector<8x16xf32>
    %454 = math.exp %453 : vector<8x16xf32>
    %cst_120 = arith.constant 1.000000e+00 : f32
    %455 = vector.broadcast %cst_120 : f32 to vector<8x16xf32>
    %456 = arith.addf %455, %454 : vector<8x16xf32>
    %457 = arith.divf %455, %456 : vector<8x16xf32>
    %458 = vector.extract_strided_slice %412 {offsets = [0, 32], sizes = [8, 16], strides = [1, 1]} : vector<8x48xf32> to vector<8x16xf32>
    %459 = vector.extract_strided_slice %414 {offsets = [0, 32], sizes = [8, 16], strides = [1, 1]} : vector<8x48xf32> to vector<8x16xf32>
    %460 = arith.addf %459, %32 : vector<8x16xf32>
    %461 = arith.mulf %449, %460 : vector<8x16xf32>
    %462 = arith.addf %458, %461 : vector<8x16xf32>
    %463 = math.tanh %462 : vector<8x16xf32>
    %cst_121 = arith.constant 1.000000e+00 : f32
    %464 = vector.broadcast %cst_121 : f32 to vector<8x16xf32>
    %465 = arith.subf %464, %457 : vector<8x16xf32>
    %466 = arith.mulf %465, %463 : vector<8x16xf32>
    %467 = arith.mulf %457, %401 : vector<8x16xf32>
    %468 = arith.addf %466, %467 : vector<8x16xf32>
    %469 = vector.broadcast %c5_i32 : i32 to vector<8x16xi32>
    %470 = arith.cmpi slt, %469, %35 : vector<8x16xi32>
    %471 = arith.select %470, %441, %398 : vector<8x16xi1>, vector<8x16xf32>
    %472 = vector.broadcast %402 : i32 to vector<8x16xi32>
    %473 = arith.cmpi slt, %472, %35 : vector<8x16xi32>
    %474 = arith.select %473, %468, %401 : vector<8x16xi1>, vector<8x16xf32>
    %c6_i32 = arith.constant 6 : i32
    %c7_i32_122 = arith.constant 7 : i32
    %475 = arith.subi %c7_i32_122, %c6_i32 : i32
    %c8_i32_123 = arith.constant 8 : i32
    %476 = arith.muli %c6_i32, %c8_i32_123 : i32
    %477 = tpu.assume_multiple %476, 8 : i32
    %c8_i32_124 = arith.constant 8 : i32
    %478 = arith.muli %475, %c8_i32_124 : i32
    %479 = tpu.assume_multiple %478, 8 : i32
    %c0_125 = arith.constant 0 : index
    %480 = arith.index_cast %477 : i32 to index
    %c0_126 = arith.constant 0 : index
    %481 = vector.load %arg7[%c0_125, %480, %c0_126] : memref<2x64x48xf32, #tpu.memory_space<vmem>>, vector<1x8x48xf32>
    %482 = vector.shape_cast %481 : vector<1x8x48xf32> to vector<8x48xf32>
    %c1_127 = arith.constant 1 : index
    %483 = arith.index_cast %479 : i32 to index
    %c0_128 = arith.constant 0 : index
    %484 = vector.load %arg7[%c1_127, %483, %c0_128] : memref<2x64x48xf32, #tpu.memory_space<vmem>>, vector<1x8x48xf32>
    %485 = vector.shape_cast %484 : vector<1x8x48xf32> to vector<8x48xf32>
    %cst_129 = arith.constant dense<0.000000e+00> : vector<8x48xf32>
    %486 = tpu.matmul %471, %22, %cst_129 {dimension_numbers = #tpu.dot_dimension_numbers<[1], [0], [0], [1], [0, 0, 1, 1], [], []>} : vector<8x16xf32>, vector<16x48xf32>, vector<8x48xf32> -> vector<8x48xf32>
    %cst_130 = arith.constant dense<0.000000e+00> : vector<8x48xf32>
    %487 = tpu.matmul %474, %24, %cst_130 {dimension_numbers = #tpu.dot_dimension_numbers<[1], [0], [0], [1], [0, 0, 1, 1], [], []>} : vector<8x16xf32>, vector<16x48xf32>, vector<8x48xf32> -> vector<8x48xf32>
    %488 = vector.extract_strided_slice %482 {offsets = [0, 0], sizes = [8, 16], strides = [1, 1]} : vector<8x48xf32> to vector<8x16xf32>
    %489 = vector.extract_strided_slice %486 {offsets = [0, 0], sizes = [8, 16], strides = [1, 1]} : vector<8x48xf32> to vector<8x16xf32>
    %490 = arith.addf %488, %489 : vector<8x16xf32>
    %491 = arith.negf %490 : vector<8x16xf32>
    %492 = math.exp %491 : vector<8x16xf32>
    %cst_131 = arith.constant 1.000000e+00 : f32
    %493 = vector.broadcast %cst_131 : f32 to vector<8x16xf32>
    %494 = arith.addf %493, %492 : vector<8x16xf32>
    %495 = arith.divf %493, %494 : vector<8x16xf32>
    %496 = vector.extract_strided_slice %482 {offsets = [0, 16], sizes = [8, 16], strides = [1, 1]} : vector<8x48xf32> to vector<8x16xf32>
    %497 = vector.extract_strided_slice %486 {offsets = [0, 16], sizes = [8, 16], strides = [1, 1]} : vector<8x48xf32> to vector<8x16xf32>
    %498 = arith.addf %496, %497 : vector<8x16xf32>
    %499 = arith.negf %498 : vector<8x16xf32>
    %500 = math.exp %499 : vector<8x16xf32>
    %cst_132 = arith.constant 1.000000e+00 : f32
    %501 = vector.broadcast %cst_132 : f32 to vector<8x16xf32>
    %502 = arith.addf %501, %500 : vector<8x16xf32>
    %503 = arith.divf %501, %502 : vector<8x16xf32>
    %504 = vector.extract_strided_slice %482 {offsets = [0, 32], sizes = [8, 16], strides = [1, 1]} : vector<8x48xf32> to vector<8x16xf32>
    %505 = vector.extract_strided_slice %486 {offsets = [0, 32], sizes = [8, 16], strides = [1, 1]} : vector<8x48xf32> to vector<8x16xf32>
    %506 = arith.addf %505, %28 : vector<8x16xf32>
    %507 = arith.mulf %495, %506 : vector<8x16xf32>
    %508 = arith.addf %504, %507 : vector<8x16xf32>
    %509 = math.tanh %508 : vector<8x16xf32>
    %cst_133 = arith.constant 1.000000e+00 : f32
    %510 = vector.broadcast %cst_133 : f32 to vector<8x16xf32>
    %511 = arith.subf %510, %503 : vector<8x16xf32>
    %512 = arith.mulf %511, %509 : vector<8x16xf32>
    %513 = arith.mulf %503, %471 : vector<8x16xf32>
    %514 = arith.addf %512, %513 : vector<8x16xf32>
    %515 = vector.extract_strided_slice %485 {offsets = [0, 0], sizes = [8, 16], strides = [1, 1]} : vector<8x48xf32> to vector<8x16xf32>
    %516 = vector.extract_strided_slice %487 {offsets = [0, 0], sizes = [8, 16], strides = [1, 1]} : vector<8x48xf32> to vector<8x16xf32>
    %517 = arith.addf %515, %516 : vector<8x16xf32>
    %518 = arith.negf %517 : vector<8x16xf32>
    %519 = math.exp %518 : vector<8x16xf32>
    %cst_134 = arith.constant 1.000000e+00 : f32
    %520 = vector.broadcast %cst_134 : f32 to vector<8x16xf32>
    %521 = arith.addf %520, %519 : vector<8x16xf32>
    %522 = arith.divf %520, %521 : vector<8x16xf32>
    %523 = vector.extract_strided_slice %485 {offsets = [0, 16], sizes = [8, 16], strides = [1, 1]} : vector<8x48xf32> to vector<8x16xf32>
    %524 = vector.extract_strided_slice %487 {offsets = [0, 16], sizes = [8, 16], strides = [1, 1]} : vector<8x48xf32> to vector<8x16xf32>
    %525 = arith.addf %523, %524 : vector<8x16xf32>
    %526 = arith.negf %525 : vector<8x16xf32>
    %527 = math.exp %526 : vector<8x16xf32>
    %cst_135 = arith.constant 1.000000e+00 : f32
    %528 = vector.broadcast %cst_135 : f32 to vector<8x16xf32>
    %529 = arith.addf %528, %527 : vector<8x16xf32>
    %530 = arith.divf %528, %529 : vector<8x16xf32>
    %531 = vector.extract_strided_slice %485 {offsets = [0, 32], sizes = [8, 16], strides = [1, 1]} : vector<8x48xf32> to vector<8x16xf32>
    %532 = vector.extract_strided_slice %487 {offsets = [0, 32], sizes = [8, 16], strides = [1, 1]} : vector<8x48xf32> to vector<8x16xf32>
    %533 = arith.addf %532, %32 : vector<8x16xf32>
    %534 = arith.mulf %522, %533 : vector<8x16xf32>
    %535 = arith.addf %531, %534 : vector<8x16xf32>
    %536 = math.tanh %535 : vector<8x16xf32>
    %cst_136 = arith.constant 1.000000e+00 : f32
    %537 = vector.broadcast %cst_136 : f32 to vector<8x16xf32>
    %538 = arith.subf %537, %530 : vector<8x16xf32>
    %539 = arith.mulf %538, %536 : vector<8x16xf32>
    %540 = arith.mulf %530, %474 : vector<8x16xf32>
    %541 = arith.addf %539, %540 : vector<8x16xf32>
    %542 = vector.broadcast %c6_i32 : i32 to vector<8x16xi32>
    %543 = arith.cmpi slt, %542, %35 : vector<8x16xi32>
    %544 = arith.select %543, %514, %471 : vector<8x16xi1>, vector<8x16xf32>
    %545 = vector.broadcast %475 : i32 to vector<8x16xi32>
    %546 = arith.cmpi slt, %545, %35 : vector<8x16xi32>
    %547 = arith.select %546, %541, %474 : vector<8x16xi1>, vector<8x16xf32>
    %c7_i32_137 = arith.constant 7 : i32
    %c7_i32_138 = arith.constant 7 : i32
    %548 = arith.subi %c7_i32_138, %c7_i32_137 : i32
    %c8_i32_139 = arith.constant 8 : i32
    %549 = arith.muli %c7_i32_137, %c8_i32_139 : i32
    %550 = tpu.assume_multiple %549, 8 : i32
    %c8_i32_140 = arith.constant 8 : i32
    %551 = arith.muli %548, %c8_i32_140 : i32
    %552 = tpu.assume_multiple %551, 8 : i32
    %c0_141 = arith.constant 0 : index
    %553 = arith.index_cast %550 : i32 to index
    %c0_142 = arith.constant 0 : index
    %554 = vector.load %arg7[%c0_141, %553, %c0_142] : memref<2x64x48xf32, #tpu.memory_space<vmem>>, vector<1x8x48xf32>
    %555 = vector.shape_cast %554 : vector<1x8x48xf32> to vector<8x48xf32>
    %c1_143 = arith.constant 1 : index
    %556 = arith.index_cast %552 : i32 to index
    %c0_144 = arith.constant 0 : index
    %557 = vector.load %arg7[%c1_143, %556, %c0_144] : memref<2x64x48xf32, #tpu.memory_space<vmem>>, vector<1x8x48xf32>
    %558 = vector.shape_cast %557 : vector<1x8x48xf32> to vector<8x48xf32>
    %cst_145 = arith.constant dense<0.000000e+00> : vector<8x48xf32>
    %559 = tpu.matmul %544, %22, %cst_145 {dimension_numbers = #tpu.dot_dimension_numbers<[1], [0], [0], [1], [0, 0, 1, 1], [], []>} : vector<8x16xf32>, vector<16x48xf32>, vector<8x48xf32> -> vector<8x48xf32>
    %cst_146 = arith.constant dense<0.000000e+00> : vector<8x48xf32>
    %560 = tpu.matmul %547, %24, %cst_146 {dimension_numbers = #tpu.dot_dimension_numbers<[1], [0], [0], [1], [0, 0, 1, 1], [], []>} : vector<8x16xf32>, vector<16x48xf32>, vector<8x48xf32> -> vector<8x48xf32>
    %561 = vector.extract_strided_slice %555 {offsets = [0, 0], sizes = [8, 16], strides = [1, 1]} : vector<8x48xf32> to vector<8x16xf32>
    %562 = vector.extract_strided_slice %559 {offsets = [0, 0], sizes = [8, 16], strides = [1, 1]} : vector<8x48xf32> to vector<8x16xf32>
    %563 = arith.addf %561, %562 : vector<8x16xf32>
    %564 = arith.negf %563 : vector<8x16xf32>
    %565 = math.exp %564 : vector<8x16xf32>
    %cst_147 = arith.constant 1.000000e+00 : f32
    %566 = vector.broadcast %cst_147 : f32 to vector<8x16xf32>
    %567 = arith.addf %566, %565 : vector<8x16xf32>
    %568 = arith.divf %566, %567 : vector<8x16xf32>
    %569 = vector.extract_strided_slice %555 {offsets = [0, 16], sizes = [8, 16], strides = [1, 1]} : vector<8x48xf32> to vector<8x16xf32>
    %570 = vector.extract_strided_slice %559 {offsets = [0, 16], sizes = [8, 16], strides = [1, 1]} : vector<8x48xf32> to vector<8x16xf32>
    %571 = arith.addf %569, %570 : vector<8x16xf32>
    %572 = arith.negf %571 : vector<8x16xf32>
    %573 = math.exp %572 : vector<8x16xf32>
    %cst_148 = arith.constant 1.000000e+00 : f32
    %574 = vector.broadcast %cst_148 : f32 to vector<8x16xf32>
    %575 = arith.addf %574, %573 : vector<8x16xf32>
    %576 = arith.divf %574, %575 : vector<8x16xf32>
    %577 = vector.extract_strided_slice %555 {offsets = [0, 32], sizes = [8, 16], strides = [1, 1]} : vector<8x48xf32> to vector<8x16xf32>
    %578 = vector.extract_strided_slice %559 {offsets = [0, 32], sizes = [8, 16], strides = [1, 1]} : vector<8x48xf32> to vector<8x16xf32>
    %579 = arith.addf %578, %28 : vector<8x16xf32>
    %580 = arith.mulf %568, %579 : vector<8x16xf32>
    %581 = arith.addf %577, %580 : vector<8x16xf32>
    %582 = math.tanh %581 : vector<8x16xf32>
    %cst_149 = arith.constant 1.000000e+00 : f32
    %583 = vector.broadcast %cst_149 : f32 to vector<8x16xf32>
    %584 = arith.subf %583, %576 : vector<8x16xf32>
    %585 = arith.mulf %584, %582 : vector<8x16xf32>
    %586 = arith.mulf %576, %544 : vector<8x16xf32>
    %587 = arith.addf %585, %586 : vector<8x16xf32>
    %588 = vector.extract_strided_slice %558 {offsets = [0, 0], sizes = [8, 16], strides = [1, 1]} : vector<8x48xf32> to vector<8x16xf32>
    %589 = vector.extract_strided_slice %560 {offsets = [0, 0], sizes = [8, 16], strides = [1, 1]} : vector<8x48xf32> to vector<8x16xf32>
    %590 = arith.addf %588, %589 : vector<8x16xf32>
    %591 = arith.negf %590 : vector<8x16xf32>
    %592 = math.exp %591 : vector<8x16xf32>
    %cst_150 = arith.constant 1.000000e+00 : f32
    %593 = vector.broadcast %cst_150 : f32 to vector<8x16xf32>
    %594 = arith.addf %593, %592 : vector<8x16xf32>
    %595 = arith.divf %593, %594 : vector<8x16xf32>
    %596 = vector.extract_strided_slice %558 {offsets = [0, 16], sizes = [8, 16], strides = [1, 1]} : vector<8x48xf32> to vector<8x16xf32>
    %597 = vector.extract_strided_slice %560 {offsets = [0, 16], sizes = [8, 16], strides = [1, 1]} : vector<8x48xf32> to vector<8x16xf32>
    %598 = arith.addf %596, %597 : vector<8x16xf32>
    %599 = arith.negf %598 : vector<8x16xf32>
    %600 = math.exp %599 : vector<8x16xf32>
    %cst_151 = arith.constant 1.000000e+00 : f32
    %601 = vector.broadcast %cst_151 : f32 to vector<8x16xf32>
    %602 = arith.addf %601, %600 : vector<8x16xf32>
    %603 = arith.divf %601, %602 : vector<8x16xf32>
    %604 = vector.extract_strided_slice %558 {offsets = [0, 32], sizes = [8, 16], strides = [1, 1]} : vector<8x48xf32> to vector<8x16xf32>
    %605 = vector.extract_strided_slice %560 {offsets = [0, 32], sizes = [8, 16], strides = [1, 1]} : vector<8x48xf32> to vector<8x16xf32>
    %606 = arith.addf %605, %32 : vector<8x16xf32>
    %607 = arith.mulf %595, %606 : vector<8x16xf32>
    %608 = arith.addf %604, %607 : vector<8x16xf32>
    %609 = math.tanh %608 : vector<8x16xf32>
    %cst_152 = arith.constant 1.000000e+00 : f32
    %610 = vector.broadcast %cst_152 : f32 to vector<8x16xf32>
    %611 = arith.subf %610, %603 : vector<8x16xf32>
    %612 = arith.mulf %611, %609 : vector<8x16xf32>
    %613 = arith.mulf %603, %547 : vector<8x16xf32>
    %614 = arith.addf %612, %613 : vector<8x16xf32>
    %615 = vector.broadcast %c7_i32_137 : i32 to vector<8x16xi32>
    %616 = arith.cmpi slt, %615, %35 : vector<8x16xi32>
    %617 = arith.select %616, %587, %544 : vector<8x16xi1>, vector<8x16xf32>
    %618 = vector.broadcast %548 : i32 to vector<8x16xi32>
    %619 = arith.cmpi slt, %618, %35 : vector<8x16xi32>
    %620 = arith.select %619, %614, %547 : vector<8x16xi1>, vector<8x16xf32>
    %c8_i32_153 = arith.constant 8 : i32
    %c0_154 = arith.constant 0 : index
    %c0_155 = arith.constant 0 : index
    %621 = vector.load %arg6[%c0_154, %c0_155] : memref<8x32xf32, #tpu.memory_space<vmem>>, vector<8x16xf32>
    tpu.vector_store %arg6[%c0_154, %c0_155], %617 {strides = array<i32>} : memref<8x32xf32, #tpu.memory_space<vmem>>, vector<8x16xf32>,
    %c0_156 = arith.constant 0 : index
    %c16 = arith.constant 16 : index
    %622 = vector.load %arg6[%c0_156, %c16] : memref<8x32xf32, #tpu.memory_space<vmem>>, vector<8x16xf32>
    tpu.vector_store %arg6[%c0_156, %c16], %620 {strides = array<i32>} : memref<8x32xf32, #tpu.memory_space<vmem>>, vector<8x16xf32>,
    return
  }
}

module attributes {stable_mosaic.version = 11 : i64} {
  func.func @_bigru_kernel(%arg0: memref<24x64xf32, #tpu.memory_space<vmem>>, %arg1: memref<8x1xi32, #tpu.memory_space<vmem>>, %arg2: memref<64x32xf32, #tpu.memory_space<vmem>>, %arg3: memref<1x32xf32, #tpu.memory_space<vmem>>, %arg4: memref<2x32x96xf32, #tpu.memory_space<vmem>>, %arg5: memref<2x32x96xf32, #tpu.memory_space<vmem>>, %arg6: memref<2x1x96xf32, #tpu.memory_space<vmem>>, %arg7: memref<2x1x32xf32, #tpu.memory_space<vmem>>, %arg8: memref<8x64xf32, #tpu.memory_space<vmem>>, %arg9: memref<2x24x96xf32, #tpu.memory_space<vmem>>) attributes {dimension_semantics = [], scalar_prefetch = 0 : i64, scratch_operands = 1 : i64, tpu.core_type = #tpu.core_type<tc>} {
    %c0 = arith.constant 0 : index
    %c0_0 = arith.constant 0 : index
    %0 = vector.load %arg0[%c0, %c0_0] : memref<24x64xf32, #tpu.memory_space<vmem>>, vector<24x64xf32>
    %c0_1 = arith.constant 0 : index
    %c0_2 = arith.constant 0 : index
    %1 = vector.load %arg2[%c0_1, %c0_2] : memref<64x32xf32, #tpu.memory_space<vmem>>, vector<64x32xf32>
    %cst = arith.constant dense<0.000000e+00> : vector<24x32xf32>
    %2 = tpu.matmul %0, %1, %cst {dimension_numbers = #tpu.dot_dimension_numbers<[1], [0], [0], [1], [0, 0, 1, 1], [], []>} : vector<24x64xf32>, vector<64x32xf32>, vector<24x32xf32> -> vector<24x32xf32>
    %c0_3 = arith.constant 0 : index
    %c0_4 = arith.constant 0 : index
    %3 = vector.load %arg3[%c0_3, %c0_4] : memref<1x32xf32, #tpu.memory_space<vmem>>, vector<1x32xf32>
    %4 = vector.broadcast %3 : vector<1x32xf32> to vector<24x32xf32>
    %5 = arith.addf %2, %4 : vector<24x32xf32>
    %cst_5 = arith.constant 0.000000e+00 : f32
    %6 = vector.broadcast %cst_5 : f32 to vector<24x32xf32>
    %7 = arith.cmpf ogt, %5, %6 : vector<24x32xf32>
    %8 = math.exp %5 : vector<24x32xf32>
    %cst_6 = arith.constant 1.000000e+00 : f32
    %9 = vector.broadcast %cst_6 : f32 to vector<24x32xf32>
    %10 = arith.subf %8, %9 : vector<24x32xf32>
    %cst_7 = arith.constant 1.67326319 : f32
    %11 = vector.broadcast %cst_7 : f32 to vector<24x32xf32>
    %12 = arith.mulf %11, %10 : vector<24x32xf32>
    %13 = arith.select %7, %5, %12 : vector<24x32xi1>, vector<24x32xf32>
    %cst_8 = arith.constant 1.05070102 : f32
    %14 = vector.broadcast %cst_8 : f32 to vector<24x32xf32>
    %15 = arith.mulf %14, %13 : vector<24x32xf32>
    %c0_9 = arith.constant 0 : index
    %c0_10 = arith.constant 0 : index
    %c0_11 = arith.constant 0 : index
    %16 = vector.load %arg4[%c0_9, %c0_10, %c0_11] : memref<2x32x96xf32, #tpu.memory_space<vmem>>, vector<1x32x96xf32>
    %17 = vector.shape_cast %16 : vector<1x32x96xf32> to vector<32x96xf32>
    %cst_12 = arith.constant dense<0.000000e+00> : vector<24x96xf32>
    %18 = tpu.matmul %15, %17, %cst_12 {dimension_numbers = #tpu.dot_dimension_numbers<[1], [0], [0], [1], [0, 0, 1, 1], [], []>} : vector<24x32xf32>, vector<32x96xf32>, vector<24x96xf32> -> vector<24x96xf32>
    %c0_13 = arith.constant 0 : index
    %c0_14 = arith.constant 0 : index
    %c0_15 = arith.constant 0 : index
    %19 = vector.load %arg6[%c0_13, %c0_14, %c0_15] : memref<2x1x96xf32, #tpu.memory_space<vmem>>, vector<1x1x96xf32>
    %20 = vector.shape_cast %19 : vector<1x1x96xf32> to vector<1x96xf32>
    %21 = vector.broadcast %20 : vector<1x96xf32> to vector<24x96xf32>
    %22 = arith.addf %18, %21 : vector<24x96xf32>
    %c0_16 = arith.constant 0 : index
    %c0_17 = arith.constant 0 : index
    %c0_18 = arith.constant 0 : index
    %23 = vector.load %arg9[%c0_16, %c0_17, %c0_18] : memref<2x24x96xf32, #tpu.memory_space<vmem>>, vector<1x24x96xf32>
    %24 = vector.shape_cast %23 : vector<1x24x96xf32> to vector<24x96xf32>
    %25 = vector.shape_cast %22 : vector<24x96xf32> to vector<1x24x96xf32>
    tpu.vector_store %arg9[%c0_16, %c0_17, %c0_18], %25 {strides = array<i32>} : memref<2x24x96xf32, #tpu.memory_space<vmem>>, vector<1x24x96xf32>,
    %c1 = arith.constant 1 : index
    %c0_19 = arith.constant 0 : index
    %c0_20 = arith.constant 0 : index
    %26 = vector.load %arg4[%c1, %c0_19, %c0_20] : memref<2x32x96xf32, #tpu.memory_space<vmem>>, vector<1x32x96xf32>
    %27 = vector.shape_cast %26 : vector<1x32x96xf32> to vector<32x96xf32>
    %cst_21 = arith.constant dense<0.000000e+00> : vector<24x96xf32>
    %28 = tpu.matmul %15, %27, %cst_21 {dimension_numbers = #tpu.dot_dimension_numbers<[1], [0], [0], [1], [0, 0, 1, 1], [], []>} : vector<24x32xf32>, vector<32x96xf32>, vector<24x96xf32> -> vector<24x96xf32>
    %c1_22 = arith.constant 1 : index
    %c0_23 = arith.constant 0 : index
    %c0_24 = arith.constant 0 : index
    %29 = vector.load %arg6[%c1_22, %c0_23, %c0_24] : memref<2x1x96xf32, #tpu.memory_space<vmem>>, vector<1x1x96xf32>
    %30 = vector.shape_cast %29 : vector<1x1x96xf32> to vector<1x96xf32>
    %31 = vector.broadcast %30 : vector<1x96xf32> to vector<24x96xf32>
    %32 = arith.addf %28, %31 : vector<24x96xf32>
    %c1_25 = arith.constant 1 : index
    %c0_26 = arith.constant 0 : index
    %c0_27 = arith.constant 0 : index
    %33 = vector.load %arg9[%c1_25, %c0_26, %c0_27] : memref<2x24x96xf32, #tpu.memory_space<vmem>>, vector<1x24x96xf32>
    %34 = vector.shape_cast %33 : vector<1x24x96xf32> to vector<24x96xf32>
    %35 = vector.shape_cast %32 : vector<24x96xf32> to vector<1x24x96xf32>
    tpu.vector_store %arg9[%c1_25, %c0_26, %c0_27], %35 {strides = array<i32>} : memref<2x24x96xf32, #tpu.memory_space<vmem>>, vector<1x24x96xf32>,
    %c0_28 = arith.constant 0 : index
    %c0_29 = arith.constant 0 : index
    %c0_30 = arith.constant 0 : index
    %36 = vector.load %arg5[%c0_28, %c0_29, %c0_30] : memref<2x32x96xf32, #tpu.memory_space<vmem>>, vector<1x32x96xf32>
    %37 = vector.shape_cast %36 : vector<1x32x96xf32> to vector<32x96xf32>
    %c1_31 = arith.constant 1 : index
    %c0_32 = arith.constant 0 : index
    %c0_33 = arith.constant 0 : index
    %38 = vector.load %arg5[%c1_31, %c0_32, %c0_33] : memref<2x32x96xf32, #tpu.memory_space<vmem>>, vector<1x32x96xf32>
    %39 = vector.shape_cast %38 : vector<1x32x96xf32> to vector<32x96xf32>
    %c0_34 = arith.constant 0 : index
    %c0_35 = arith.constant 0 : index
    %c0_36 = arith.constant 0 : index
    %40 = vector.load %arg7[%c0_34, %c0_35, %c0_36] : memref<2x1x32xf32, #tpu.memory_space<vmem>>, vector<1x1x32xf32>
    %41 = vector.shape_cast %40 : vector<1x1x32xf32> to vector<1x32xf32>
    %42 = vector.shape_cast %41 : vector<1x32xf32> to vector<1x32xf32>
    %43 = vector.broadcast %42 : vector<1x32xf32> to vector<8x32xf32>
    %c1_37 = arith.constant 1 : index
    %c0_38 = arith.constant 0 : index
    %c0_39 = arith.constant 0 : index
    %44 = vector.load %arg7[%c1_37, %c0_38, %c0_39] : memref<2x1x32xf32, #tpu.memory_space<vmem>>, vector<1x1x32xf32>
    %45 = vector.shape_cast %44 : vector<1x1x32xf32> to vector<1x32xf32>
    %46 = vector.shape_cast %45 : vector<1x32xf32> to vector<1x32xf32>
    %47 = vector.broadcast %46 : vector<1x32xf32> to vector<8x32xf32>
    %c0_40 = arith.constant 0 : index
    %c0_41 = arith.constant 0 : index
    %48 = vector.load %arg1[%c0_40, %c0_41] : memref<8x1xi32, #tpu.memory_space<vmem>>, vector<8x1xi32>
    %49 = vector.shape_cast %48 : vector<8x1xi32> to vector<8x1xi32>
    %50 = vector.broadcast %49 : vector<8x1xi32> to vector<8x32xi32>
    %cst_42 = arith.constant 0.000000e+00 : f32
    %51 = vector.broadcast %cst_42 : f32 to vector<8x32xf32>
    %c0_i32 = arith.constant 0 : i32
    %c2_i32 = arith.constant 2 : i32
    %52 = arith.subi %c2_i32, %c0_i32 : i32
    %c8_i32 = arith.constant 8 : i32
    %53 = arith.muli %c0_i32, %c8_i32 : i32
    %54 = tpu.assume_multiple %53, 8 : i32
    %c8_i32_43 = arith.constant 8 : i32
    %55 = arith.muli %52, %c8_i32_43 : i32
    %56 = tpu.assume_multiple %55, 8 : i32
    %c0_44 = arith.constant 0 : index
    %57 = arith.index_cast %54 : i32 to index
    %c0_45 = arith.constant 0 : index
    %58 = vector.load %arg9[%c0_44, %57, %c0_45] : memref<2x24x96xf32, #tpu.memory_space<vmem>>, vector<1x8x96xf32>
    %59 = vector.shape_cast %58 : vector<1x8x96xf32> to vector<8x96xf32>
    %c1_46 = arith.constant 1 : index
    %60 = arith.index_cast %56 : i32 to index
    %c0_47 = arith.constant 0 : index
    %61 = vector.load %arg9[%c1_46, %60, %c0_47] : memref<2x24x96xf32, #tpu.memory_space<vmem>>, vector<1x8x96xf32>
    %62 = vector.shape_cast %61 : vector<1x8x96xf32> to vector<8x96xf32>
    %cst_48 = arith.constant dense<0.000000e+00> : vector<8x96xf32>
    %63 = tpu.matmul %51, %37, %cst_48 {dimension_numbers = #tpu.dot_dimension_numbers<[1], [0], [0], [1], [0, 0, 1, 1], [], []>} : vector<8x32xf32>, vector<32x96xf32>, vector<8x96xf32> -> vector<8x96xf32>
    %cst_49 = arith.constant dense<0.000000e+00> : vector<8x96xf32>
    %64 = tpu.matmul %51, %39, %cst_49 {dimension_numbers = #tpu.dot_dimension_numbers<[1], [0], [0], [1], [0, 0, 1, 1], [], []>} : vector<8x32xf32>, vector<32x96xf32>, vector<8x96xf32> -> vector<8x96xf32>
    %65 = vector.extract_strided_slice %59 {offsets = [0, 0], sizes = [8, 32], strides = [1, 1]} : vector<8x96xf32> to vector<8x32xf32>
    %66 = vector.extract_strided_slice %63 {offsets = [0, 0], sizes = [8, 32], strides = [1, 1]} : vector<8x96xf32> to vector<8x32xf32>
    %67 = arith.addf %65, %66 : vector<8x32xf32>
    %68 = arith.negf %67 : vector<8x32xf32>
    %69 = math.exp %68 : vector<8x32xf32>
    %cst_50 = arith.constant 1.000000e+00 : f32
    %70 = vector.broadcast %cst_50 : f32 to vector<8x32xf32>
    %71 = arith.addf %70, %69 : vector<8x32xf32>
    %72 = arith.divf %70, %71 : vector<8x32xf32>
    %73 = vector.extract_strided_slice %59 {offsets = [0, 32], sizes = [8, 32], strides = [1, 1]} : vector<8x96xf32> to vector<8x32xf32>
    %74 = vector.extract_strided_slice %63 {offsets = [0, 32], sizes = [8, 32], strides = [1, 1]} : vector<8x96xf32> to vector<8x32xf32>
    %75 = arith.addf %73, %74 : vector<8x32xf32>
    %76 = arith.negf %75 : vector<8x32xf32>
    %77 = math.exp %76 : vector<8x32xf32>
    %cst_51 = arith.constant 1.000000e+00 : f32
    %78 = vector.broadcast %cst_51 : f32 to vector<8x32xf32>
    %79 = arith.addf %78, %77 : vector<8x32xf32>
    %80 = arith.divf %78, %79 : vector<8x32xf32>
    %81 = vector.extract_strided_slice %59 {offsets = [0, 64], sizes = [8, 32], strides = [1, 1]} : vector<8x96xf32> to vector<8x32xf32>
    %82 = vector.extract_strided_slice %63 {offsets = [0, 64], sizes = [8, 32], strides = [1, 1]} : vector<8x96xf32> to vector<8x32xf32>
    %83 = arith.addf %82, %43 : vector<8x32xf32>
    %84 = arith.mulf %72, %83 : vector<8x32xf32>
    %85 = arith.addf %81, %84 : vector<8x32xf32>
    %86 = math.tanh %85 : vector<8x32xf32>
    %cst_52 = arith.constant 1.000000e+00 : f32
    %87 = vector.broadcast %cst_52 : f32 to vector<8x32xf32>
    %88 = arith.subf %87, %80 : vector<8x32xf32>
    %89 = arith.mulf %88, %86 : vector<8x32xf32>
    %90 = arith.mulf %80, %51 : vector<8x32xf32>
    %91 = arith.addf %89, %90 : vector<8x32xf32>
    %92 = vector.extract_strided_slice %62 {offsets = [0, 0], sizes = [8, 32], strides = [1, 1]} : vector<8x96xf32> to vector<8x32xf32>
    %93 = vector.extract_strided_slice %64 {offsets = [0, 0], sizes = [8, 32], strides = [1, 1]} : vector<8x96xf32> to vector<8x32xf32>
    %94 = arith.addf %92, %93 : vector<8x32xf32>
    %95 = arith.negf %94 : vector<8x32xf32>
    %96 = math.exp %95 : vector<8x32xf32>
    %cst_53 = arith.constant 1.000000e+00 : f32
    %97 = vector.broadcast %cst_53 : f32 to vector<8x32xf32>
    %98 = arith.addf %97, %96 : vector<8x32xf32>
    %99 = arith.divf %97, %98 : vector<8x32xf32>
    %100 = vector.extract_strided_slice %62 {offsets = [0, 32], sizes = [8, 32], strides = [1, 1]} : vector<8x96xf32> to vector<8x32xf32>
    %101 = vector.extract_strided_slice %64 {offsets = [0, 32], sizes = [8, 32], strides = [1, 1]} : vector<8x96xf32> to vector<8x32xf32>
    %102 = arith.addf %100, %101 : vector<8x32xf32>
    %103 = arith.negf %102 : vector<8x32xf32>
    %104 = math.exp %103 : vector<8x32xf32>
    %cst_54 = arith.constant 1.000000e+00 : f32
    %105 = vector.broadcast %cst_54 : f32 to vector<8x32xf32>
    %106 = arith.addf %105, %104 : vector<8x32xf32>
    %107 = arith.divf %105, %106 : vector<8x32xf32>
    %108 = vector.extract_strided_slice %62 {offsets = [0, 64], sizes = [8, 32], strides = [1, 1]} : vector<8x96xf32> to vector<8x32xf32>
    %109 = vector.extract_strided_slice %64 {offsets = [0, 64], sizes = [8, 32], strides = [1, 1]} : vector<8x96xf32> to vector<8x32xf32>
    %110 = arith.addf %109, %47 : vector<8x32xf32>
    %111 = arith.mulf %99, %110 : vector<8x32xf32>
    %112 = arith.addf %108, %111 : vector<8x32xf32>
    %113 = math.tanh %112 : vector<8x32xf32>
    %cst_55 = arith.constant 1.000000e+00 : f32
    %114 = vector.broadcast %cst_55 : f32 to vector<8x32xf32>
    %115 = arith.subf %114, %107 : vector<8x32xf32>
    %116 = arith.mulf %115, %113 : vector<8x32xf32>
    %117 = arith.mulf %107, %51 : vector<8x32xf32>
    %118 = arith.addf %116, %117 : vector<8x32xf32>
    %119 = vector.broadcast %c0_i32 : i32 to vector<8x32xi32>
    %120 = arith.cmpi slt, %119, %50 : vector<8x32xi32>
    %121 = arith.select %120, %91, %51 : vector<8x32xi1>, vector<8x32xf32>
    %122 = vector.broadcast %52 : i32 to vector<8x32xi32>
    %123 = arith.cmpi slt, %122, %50 : vector<8x32xi32>
    %124 = arith.select %123, %118, %51 : vector<8x32xi1>, vector<8x32xf32>
    %c1_i32 = arith.constant 1 : i32
    %c2_i32_56 = arith.constant 2 : i32
    %125 = arith.subi %c2_i32_56, %c1_i32 : i32
    %c8_i32_57 = arith.constant 8 : i32
    %126 = arith.muli %c1_i32, %c8_i32_57 : i32
    %127 = tpu.assume_multiple %126, 8 : i32
    %c8_i32_58 = arith.constant 8 : i32
    %128 = arith.muli %125, %c8_i32_58 : i32
    %129 = tpu.assume_multiple %128, 8 : i32
    %c0_59 = arith.constant 0 : index
    %130 = arith.index_cast %127 : i32 to index
    %c0_60 = arith.constant 0 : index
    %131 = vector.load %arg9[%c0_59, %130, %c0_60] : memref<2x24x96xf32, #tpu.memory_space<vmem>>, vector<1x8x96xf32>
    %132 = vector.shape_cast %131 : vector<1x8x96xf32> to vector<8x96xf32>
    %c1_61 = arith.constant 1 : index
    %133 = arith.index_cast %129 : i32 to index
    %c0_62 = arith.constant 0 : index
    %134 = vector.load %arg9[%c1_61, %133, %c0_62] : memref<2x24x96xf32, #tpu.memory_space<vmem>>, vector<1x8x96xf32>
    %135 = vector.shape_cast %134 : vector<1x8x96xf32> to vector<8x96xf32>
    %cst_63 = arith.constant dense<0.000000e+00> : vector<8x96xf32>
    %136 = tpu.matmul %121, %37, %cst_63 {dimension_numbers = #tpu.dot_dimension_numbers<[1], [0], [0], [1], [0, 0, 1, 1], [], []>} : vector<8x32xf32>, vector<32x96xf32>, vector<8x96xf32> -> vector<8x96xf32>
    %cst_64 = arith.constant dense<0.000000e+00> : vector<8x96xf32>
    %137 = tpu.matmul %124, %39, %cst_64 {dimension_numbers = #tpu.dot_dimension_numbers<[1], [0], [0], [1], [0, 0, 1, 1], [], []>} : vector<8x32xf32>, vector<32x96xf32>, vector<8x96xf32> -> vector<8x96xf32>
    %138 = vector.extract_strided_slice %132 {offsets = [0, 0], sizes = [8, 32], strides = [1, 1]} : vector<8x96xf32> to vector<8x32xf32>
    %139 = vector.extract_strided_slice %136 {offsets = [0, 0], sizes = [8, 32], strides = [1, 1]} : vector<8x96xf32> to vector<8x32xf32>
    %140 = arith.addf %138, %139 : vector<8x32xf32>
    %141 = arith.negf %140 : vector<8x32xf32>
    %142 = math.exp %141 : vector<8x32xf32>
    %cst_65 = arith.constant 1.000000e+00 : f32
    %143 = vector.broadcast %cst_65 : f32 to vector<8x32xf32>
    %144 = arith.addf %143, %142 : vector<8x32xf32>
    %145 = arith.divf %143, %144 : vector<8x32xf32>
    %146 = vector.extract_strided_slice %132 {offsets = [0, 32], sizes = [8, 32], strides = [1, 1]} : vector<8x96xf32> to vector<8x32xf32>
    %147 = vector.extract_strided_slice %136 {offsets = [0, 32], sizes = [8, 32], strides = [1, 1]} : vector<8x96xf32> to vector<8x32xf32>
    %148 = arith.addf %146, %147 : vector<8x32xf32>
    %149 = arith.negf %148 : vector<8x32xf32>
    %150 = math.exp %149 : vector<8x32xf32>
    %cst_66 = arith.constant 1.000000e+00 : f32
    %151 = vector.broadcast %cst_66 : f32 to vector<8x32xf32>
    %152 = arith.addf %151, %150 : vector<8x32xf32>
    %153 = arith.divf %151, %152 : vector<8x32xf32>
    %154 = vector.extract_strided_slice %132 {offsets = [0, 64], sizes = [8, 32], strides = [1, 1]} : vector<8x96xf32> to vector<8x32xf32>
    %155 = vector.extract_strided_slice %136 {offsets = [0, 64], sizes = [8, 32], strides = [1, 1]} : vector<8x96xf32> to vector<8x32xf32>
    %156 = arith.addf %155, %43 : vector<8x32xf32>
    %157 = arith.mulf %145, %156 : vector<8x32xf32>
    %158 = arith.addf %154, %157 : vector<8x32xf32>
    %159 = math.tanh %158 : vector<8x32xf32>
    %cst_67 = arith.constant 1.000000e+00 : f32
    %160 = vector.broadcast %cst_67 : f32 to vector<8x32xf32>
    %161 = arith.subf %160, %153 : vector<8x32xf32>
    %162 = arith.mulf %161, %159 : vector<8x32xf32>
    %163 = arith.mulf %153, %121 : vector<8x32xf32>
    %164 = arith.addf %162, %163 : vector<8x32xf32>
    %165 = vector.extract_strided_slice %135 {offsets = [0, 0], sizes = [8, 32], strides = [1, 1]} : vector<8x96xf32> to vector<8x32xf32>
    %166 = vector.extract_strided_slice %137 {offsets = [0, 0], sizes = [8, 32], strides = [1, 1]} : vector<8x96xf32> to vector<8x32xf32>
    %167 = arith.addf %165, %166 : vector<8x32xf32>
    %168 = arith.negf %167 : vector<8x32xf32>
    %169 = math.exp %168 : vector<8x32xf32>
    %cst_68 = arith.constant 1.000000e+00 : f32
    %170 = vector.broadcast %cst_68 : f32 to vector<8x32xf32>
    %171 = arith.addf %170, %169 : vector<8x32xf32>
    %172 = arith.divf %170, %171 : vector<8x32xf32>
    %173 = vector.extract_strided_slice %135 {offsets = [0, 32], sizes = [8, 32], strides = [1, 1]} : vector<8x96xf32> to vector<8x32xf32>
    %174 = vector.extract_strided_slice %137 {offsets = [0, 32], sizes = [8, 32], strides = [1, 1]} : vector<8x96xf32> to vector<8x32xf32>
    %175 = arith.addf %173, %174 : vector<8x32xf32>
    %176 = arith.negf %175 : vector<8x32xf32>
    %177 = math.exp %176 : vector<8x32xf32>
    %cst_69 = arith.constant 1.000000e+00 : f32
    %178 = vector.broadcast %cst_69 : f32 to vector<8x32xf32>
    %179 = arith.addf %178, %177 : vector<8x32xf32>
    %180 = arith.divf %178, %179 : vector<8x32xf32>
    %181 = vector.extract_strided_slice %135 {offsets = [0, 64], sizes = [8, 32], strides = [1, 1]} : vector<8x96xf32> to vector<8x32xf32>
    %182 = vector.extract_strided_slice %137 {offsets = [0, 64], sizes = [8, 32], strides = [1, 1]} : vector<8x96xf32> to vector<8x32xf32>
    %183 = arith.addf %182, %47 : vector<8x32xf32>
    %184 = arith.mulf %172, %183 : vector<8x32xf32>
    %185 = arith.addf %181, %184 : vector<8x32xf32>
    %186 = math.tanh %185 : vector<8x32xf32>
    %cst_70 = arith.constant 1.000000e+00 : f32
    %187 = vector.broadcast %cst_70 : f32 to vector<8x32xf32>
    %188 = arith.subf %187, %180 : vector<8x32xf32>
    %189 = arith.mulf %188, %186 : vector<8x32xf32>
    %190 = arith.mulf %180, %124 : vector<8x32xf32>
    %191 = arith.addf %189, %190 : vector<8x32xf32>
    %192 = vector.broadcast %c1_i32 : i32 to vector<8x32xi32>
    %193 = arith.cmpi slt, %192, %50 : vector<8x32xi32>
    %194 = arith.select %193, %164, %121 : vector<8x32xi1>, vector<8x32xf32>
    %195 = vector.broadcast %125 : i32 to vector<8x32xi32>
    %196 = arith.cmpi slt, %195, %50 : vector<8x32xi32>
    %197 = arith.select %196, %191, %124 : vector<8x32xi1>, vector<8x32xf32>
    %c2_i32_71 = arith.constant 2 : i32
    %c2_i32_72 = arith.constant 2 : i32
    %198 = arith.subi %c2_i32_72, %c2_i32_71 : i32
    %c8_i32_73 = arith.constant 8 : i32
    %199 = arith.muli %c2_i32_71, %c8_i32_73 : i32
    %200 = tpu.assume_multiple %199, 8 : i32
    %c8_i32_74 = arith.constant 8 : i32
    %201 = arith.muli %198, %c8_i32_74 : i32
    %202 = tpu.assume_multiple %201, 8 : i32
    %c0_75 = arith.constant 0 : index
    %203 = arith.index_cast %200 : i32 to index
    %c0_76 = arith.constant 0 : index
    %204 = vector.load %arg9[%c0_75, %203, %c0_76] : memref<2x24x96xf32, #tpu.memory_space<vmem>>, vector<1x8x96xf32>
    %205 = vector.shape_cast %204 : vector<1x8x96xf32> to vector<8x96xf32>
    %c1_77 = arith.constant 1 : index
    %206 = arith.index_cast %202 : i32 to index
    %c0_78 = arith.constant 0 : index
    %207 = vector.load %arg9[%c1_77, %206, %c0_78] : memref<2x24x96xf32, #tpu.memory_space<vmem>>, vector<1x8x96xf32>
    %208 = vector.shape_cast %207 : vector<1x8x96xf32> to vector<8x96xf32>
    %cst_79 = arith.constant dense<0.000000e+00> : vector<8x96xf32>
    %209 = tpu.matmul %194, %37, %cst_79 {dimension_numbers = #tpu.dot_dimension_numbers<[1], [0], [0], [1], [0, 0, 1, 1], [], []>} : vector<8x32xf32>, vector<32x96xf32>, vector<8x96xf32> -> vector<8x96xf32>
    %cst_80 = arith.constant dense<0.000000e+00> : vector<8x96xf32>
    %210 = tpu.matmul %197, %39, %cst_80 {dimension_numbers = #tpu.dot_dimension_numbers<[1], [0], [0], [1], [0, 0, 1, 1], [], []>} : vector<8x32xf32>, vector<32x96xf32>, vector<8x96xf32> -> vector<8x96xf32>
    %211 = vector.extract_strided_slice %205 {offsets = [0, 0], sizes = [8, 32], strides = [1, 1]} : vector<8x96xf32> to vector<8x32xf32>
    %212 = vector.extract_strided_slice %209 {offsets = [0, 0], sizes = [8, 32], strides = [1, 1]} : vector<8x96xf32> to vector<8x32xf32>
    %213 = arith.addf %211, %212 : vector<8x32xf32>
    %214 = arith.negf %213 : vector<8x32xf32>
    %215 = math.exp %214 : vector<8x32xf32>
    %cst_81 = arith.constant 1.000000e+00 : f32
    %216 = vector.broadcast %cst_81 : f32 to vector<8x32xf32>
    %217 = arith.addf %216, %215 : vector<8x32xf32>
    %218 = arith.divf %216, %217 : vector<8x32xf32>
    %219 = vector.extract_strided_slice %205 {offsets = [0, 32], sizes = [8, 32], strides = [1, 1]} : vector<8x96xf32> to vector<8x32xf32>
    %220 = vector.extract_strided_slice %209 {offsets = [0, 32], sizes = [8, 32], strides = [1, 1]} : vector<8x96xf32> to vector<8x32xf32>
    %221 = arith.addf %219, %220 : vector<8x32xf32>
    %222 = arith.negf %221 : vector<8x32xf32>
    %223 = math.exp %222 : vector<8x32xf32>
    %cst_82 = arith.constant 1.000000e+00 : f32
    %224 = vector.broadcast %cst_82 : f32 to vector<8x32xf32>
    %225 = arith.addf %224, %223 : vector<8x32xf32>
    %226 = arith.divf %224, %225 : vector<8x32xf32>
    %227 = vector.extract_strided_slice %205 {offsets = [0, 64], sizes = [8, 32], strides = [1, 1]} : vector<8x96xf32> to vector<8x32xf32>
    %228 = vector.extract_strided_slice %209 {offsets = [0, 64], sizes = [8, 32], strides = [1, 1]} : vector<8x96xf32> to vector<8x32xf32>
    %229 = arith.addf %228, %43 : vector<8x32xf32>
    %230 = arith.mulf %218, %229 : vector<8x32xf32>
    %231 = arith.addf %227, %230 : vector<8x32xf32>
    %232 = math.tanh %231 : vector<8x32xf32>
    %cst_83 = arith.constant 1.000000e+00 : f32
    %233 = vector.broadcast %cst_83 : f32 to vector<8x32xf32>
    %234 = arith.subf %233, %226 : vector<8x32xf32>
    %235 = arith.mulf %234, %232 : vector<8x32xf32>
    %236 = arith.mulf %226, %194 : vector<8x32xf32>
    %237 = arith.addf %235, %236 : vector<8x32xf32>
    %238 = vector.extract_strided_slice %208 {offsets = [0, 0], sizes = [8, 32], strides = [1, 1]} : vector<8x96xf32> to vector<8x32xf32>
    %239 = vector.extract_strided_slice %210 {offsets = [0, 0], sizes = [8, 32], strides = [1, 1]} : vector<8x96xf32> to vector<8x32xf32>
    %240 = arith.addf %238, %239 : vector<8x32xf32>
    %241 = arith.negf %240 : vector<8x32xf32>
    %242 = math.exp %241 : vector<8x32xf32>
    %cst_84 = arith.constant 1.000000e+00 : f32
    %243 = vector.broadcast %cst_84 : f32 to vector<8x32xf32>
    %244 = arith.addf %243, %242 : vector<8x32xf32>
    %245 = arith.divf %243, %244 : vector<8x32xf32>
    %246 = vector.extract_strided_slice %208 {offsets = [0, 32], sizes = [8, 32], strides = [1, 1]} : vector<8x96xf32> to vector<8x32xf32>
    %247 = vector.extract_strided_slice %210 {offsets = [0, 32], sizes = [8, 32], strides = [1, 1]} : vector<8x96xf32> to vector<8x32xf32>
    %248 = arith.addf %246, %247 : vector<8x32xf32>
    %249 = arith.negf %248 : vector<8x32xf32>
    %250 = math.exp %249 : vector<8x32xf32>
    %cst_85 = arith.constant 1.000000e+00 : f32
    %251 = vector.broadcast %cst_85 : f32 to vector<8x32xf32>
    %252 = arith.addf %251, %250 : vector<8x32xf32>
    %253 = arith.divf %251, %252 : vector<8x32xf32>
    %254 = vector.extract_strided_slice %208 {offsets = [0, 64], sizes = [8, 32], strides = [1, 1]} : vector<8x96xf32> to vector<8x32xf32>
    %255 = vector.extract_strided_slice %210 {offsets = [0, 64], sizes = [8, 32], strides = [1, 1]} : vector<8x96xf32> to vector<8x32xf32>
    %256 = arith.addf %255, %47 : vector<8x32xf32>
    %257 = arith.mulf %245, %256 : vector<8x32xf32>
    %258 = arith.addf %254, %257 : vector<8x32xf32>
    %259 = math.tanh %258 : vector<8x32xf32>
    %cst_86 = arith.constant 1.000000e+00 : f32
    %260 = vector.broadcast %cst_86 : f32 to vector<8x32xf32>
    %261 = arith.subf %260, %253 : vector<8x32xf32>
    %262 = arith.mulf %261, %259 : vector<8x32xf32>
    %263 = arith.mulf %253, %197 : vector<8x32xf32>
    %264 = arith.addf %262, %263 : vector<8x32xf32>
    %265 = vector.broadcast %c2_i32_71 : i32 to vector<8x32xi32>
    %266 = arith.cmpi slt, %265, %50 : vector<8x32xi32>
    %267 = arith.select %266, %237, %194 : vector<8x32xi1>, vector<8x32xf32>
    %268 = vector.broadcast %198 : i32 to vector<8x32xi32>
    %269 = arith.cmpi slt, %268, %50 : vector<8x32xi32>
    %270 = arith.select %269, %264, %197 : vector<8x32xi1>, vector<8x32xf32>
    %c3_i32 = arith.constant 3 : i32
    %c0_87 = arith.constant 0 : index
    %c0_88 = arith.constant 0 : index
    %271 = vector.load %arg8[%c0_87, %c0_88] : memref<8x64xf32, #tpu.memory_space<vmem>>, vector<8x32xf32>
    tpu.vector_store %arg8[%c0_87, %c0_88], %267 {strides = array<i32>} : memref<8x64xf32, #tpu.memory_space<vmem>>, vector<8x32xf32>,
    %c0_89 = arith.constant 0 : index
    %c32 = arith.constant 32 : index
    %272 = vector.load %arg8[%c0_89, %c32] : memref<8x64xf32, #tpu.memory_space<vmem>>, vector<8x32xf32>
    tpu.vector_store %arg8[%c0_89, %c32], %270 {strides = array<i32>} : memref<8x64xf32, #tpu.memory_space<vmem>>, vector<8x32xf32>,
    return
  }
}

module attributes {stable_mosaic.version = 11 : i64} {
  func.func @_bigru_kernel(%arg0: memref<64x16xf32, #tpu.memory_space<vmem>>, %arg1: memref<8x1xi32, #tpu.memory_space<vmem>>, %arg2: memref<2x16x96xf32, #tpu.memory_space<vmem>>, %arg3: memref<2x32x96xf32, #tpu.memory_space<vmem>>, %arg4: memref<2x1x96xf32, #tpu.memory_space<vmem>>, %arg5: memref<2x1x32xf32, #tpu.memory_space<vmem>>, %arg6: memref<8x8x64xf32, #tpu.memory_space<vmem>>, %arg7: memref<8x64xf32, #tpu.memory_space<vmem>>, %arg8: memref<2x64x96xf32, #tpu.memory_space<vmem>>) attributes {dimension_semantics = [], scalar_prefetch = 0 : i64, scratch_operands = 1 : i64, tpu.core_type = #tpu.core_type<tc>} {
    %c0 = arith.constant 0 : index
    %c0_0 = arith.constant 0 : index
    %0 = vector.load %arg0[%c0, %c0_0] : memref<64x16xf32, #tpu.memory_space<vmem>>, vector<64x16xf32>
    %c0_1 = arith.constant 0 : index
    %c0_2 = arith.constant 0 : index
    %c0_3 = arith.constant 0 : index
    %1 = vector.load %arg2[%c0_1, %c0_2, %c0_3] : memref<2x16x96xf32, #tpu.memory_space<vmem>>, vector<1x16x96xf32>
    %2 = vector.shape_cast %1 : vector<1x16x96xf32> to vector<16x96xf32>
    %cst = arith.constant dense<0.000000e+00> : vector<64x96xf32>
    %3 = tpu.matmul %0, %2, %cst {dimension_numbers = #tpu.dot_dimension_numbers<[1], [0], [0], [1], [0, 0, 1, 1], [], []>} : vector<64x16xf32>, vector<16x96xf32>, vector<64x96xf32> -> vector<64x96xf32>
    %c0_4 = arith.constant 0 : index
    %c0_5 = arith.constant 0 : index
    %c0_6 = arith.constant 0 : index
    %4 = vector.load %arg4[%c0_4, %c0_5, %c0_6] : memref<2x1x96xf32, #tpu.memory_space<vmem>>, vector<1x1x96xf32>
    %5 = vector.shape_cast %4 : vector<1x1x96xf32> to vector<1x96xf32>
    %6 = vector.broadcast %5 : vector<1x96xf32> to vector<64x96xf32>
    %7 = arith.addf %3, %6 : vector<64x96xf32>
    %c0_7 = arith.constant 0 : index
    %c0_8 = arith.constant 0 : index
    %c0_9 = arith.constant 0 : index
    %8 = vector.load %arg8[%c0_7, %c0_8, %c0_9] : memref<2x64x96xf32, #tpu.memory_space<vmem>>, vector<1x64x96xf32>
    %9 = vector.shape_cast %8 : vector<1x64x96xf32> to vector<64x96xf32>
    %10 = vector.shape_cast %7 : vector<64x96xf32> to vector<1x64x96xf32>
    tpu.vector_store %arg8[%c0_7, %c0_8, %c0_9], %10 {strides = array<i32>} : memref<2x64x96xf32, #tpu.memory_space<vmem>>, vector<1x64x96xf32>,
    %c1 = arith.constant 1 : index
    %c0_10 = arith.constant 0 : index
    %c0_11 = arith.constant 0 : index
    %11 = vector.load %arg2[%c1, %c0_10, %c0_11] : memref<2x16x96xf32, #tpu.memory_space<vmem>>, vector<1x16x96xf32>
    %12 = vector.shape_cast %11 : vector<1x16x96xf32> to vector<16x96xf32>
    %cst_12 = arith.constant dense<0.000000e+00> : vector<64x96xf32>
    %13 = tpu.matmul %0, %12, %cst_12 {dimension_numbers = #tpu.dot_dimension_numbers<[1], [0], [0], [1], [0, 0, 1, 1], [], []>} : vector<64x16xf32>, vector<16x96xf32>, vector<64x96xf32> -> vector<64x96xf32>
    %c1_13 = arith.constant 1 : index
    %c0_14 = arith.constant 0 : index
    %c0_15 = arith.constant 0 : index
    %14 = vector.load %arg4[%c1_13, %c0_14, %c0_15] : memref<2x1x96xf32, #tpu.memory_space<vmem>>, vector<1x1x96xf32>
    %15 = vector.shape_cast %14 : vector<1x1x96xf32> to vector<1x96xf32>
    %16 = vector.broadcast %15 : vector<1x96xf32> to vector<64x96xf32>
    %17 = arith.addf %13, %16 : vector<64x96xf32>
    %c1_16 = arith.constant 1 : index
    %c0_17 = arith.constant 0 : index
    %c0_18 = arith.constant 0 : index
    %18 = vector.load %arg8[%c1_16, %c0_17, %c0_18] : memref<2x64x96xf32, #tpu.memory_space<vmem>>, vector<1x64x96xf32>
    %19 = vector.shape_cast %18 : vector<1x64x96xf32> to vector<64x96xf32>
    %20 = vector.shape_cast %17 : vector<64x96xf32> to vector<1x64x96xf32>
    tpu.vector_store %arg8[%c1_16, %c0_17, %c0_18], %20 {strides = array<i32>} : memref<2x64x96xf32, #tpu.memory_space<vmem>>, vector<1x64x96xf32>,
    %c0_19 = arith.constant 0 : index
    %c0_20 = arith.constant 0 : index
    %c0_21 = arith.constant 0 : index
    %21 = vector.load %arg3[%c0_19, %c0_20, %c0_21] : memref<2x32x96xf32, #tpu.memory_space<vmem>>, vector<1x32x96xf32>
    %22 = vector.shape_cast %21 : vector<1x32x96xf32> to vector<32x96xf32>
    %c1_22 = arith.constant 1 : index
    %c0_23 = arith.constant 0 : index
    %c0_24 = arith.constant 0 : index
    %23 = vector.load %arg3[%c1_22, %c0_23, %c0_24] : memref<2x32x96xf32, #tpu.memory_space<vmem>>, vector<1x32x96xf32>
    %24 = vector.shape_cast %23 : vector<1x32x96xf32> to vector<32x96xf32>
    %c0_25 = arith.constant 0 : index
    %c0_26 = arith.constant 0 : index
    %c0_27 = arith.constant 0 : index
    %25 = vector.load %arg5[%c0_25, %c0_26, %c0_27] : memref<2x1x32xf32, #tpu.memory_space<vmem>>, vector<1x1x32xf32>
    %26 = vector.shape_cast %25 : vector<1x1x32xf32> to vector<1x32xf32>
    %27 = vector.shape_cast %26 : vector<1x32xf32> to vector<1x32xf32>
    %28 = vector.broadcast %27 : vector<1x32xf32> to vector<8x32xf32>
    %c1_28 = arith.constant 1 : index
    %c0_29 = arith.constant 0 : index
    %c0_30 = arith.constant 0 : index
    %29 = vector.load %arg5[%c1_28, %c0_29, %c0_30] : memref<2x1x32xf32, #tpu.memory_space<vmem>>, vector<1x1x32xf32>
    %30 = vector.shape_cast %29 : vector<1x1x32xf32> to vector<1x32xf32>
    %31 = vector.shape_cast %30 : vector<1x32xf32> to vector<1x32xf32>
    %32 = vector.broadcast %31 : vector<1x32xf32> to vector<8x32xf32>
    %c0_31 = arith.constant 0 : index
    %c0_32 = arith.constant 0 : index
    %33 = vector.load %arg1[%c0_31, %c0_32] : memref<8x1xi32, #tpu.memory_space<vmem>>, vector<8x1xi32>
    %34 = vector.shape_cast %33 : vector<8x1xi32> to vector<8x1xi32>
    %35 = vector.broadcast %34 : vector<8x1xi32> to vector<8x32xi32>
    %cst_33 = arith.constant 0.000000e+00 : f32
    %36 = vector.broadcast %cst_33 : f32 to vector<8x32xf32>
    %c0_i32 = arith.constant 0 : i32
    %c7_i32 = arith.constant 7 : i32
    %37 = arith.subi %c7_i32, %c0_i32 : i32
    %c8_i32 = arith.constant 8 : i32
    %38 = arith.muli %c0_i32, %c8_i32 : i32
    %39 = tpu.assume_multiple %38, 8 : i32
    %c8_i32_34 = arith.constant 8 : i32
    %40 = arith.muli %37, %c8_i32_34 : i32
    %41 = tpu.assume_multiple %40, 8 : i32
    %c0_35 = arith.constant 0 : index
    %42 = arith.index_cast %39 : i32 to index
    %c0_36 = arith.constant 0 : index
    %43 = vector.load %arg8[%c0_35, %42, %c0_36] : memref<2x64x96xf32, #tpu.memory_space<vmem>>, vector<1x8x96xf32>
    %44 = vector.shape_cast %43 : vector<1x8x96xf32> to vector<8x96xf32>
    %c1_37 = arith.constant 1 : index
    %45 = arith.index_cast %41 : i32 to index
    %c0_38 = arith.constant 0 : index
    %46 = vector.load %arg8[%c1_37, %45, %c0_38] : memref<2x64x96xf32, #tpu.memory_space<vmem>>, vector<1x8x96xf32>
    %47 = vector.shape_cast %46 : vector<1x8x96xf32> to vector<8x96xf32>
    %cst_39 = arith.constant dense<0.000000e+00> : vector<8x96xf32>
    %48 = tpu.matmul %36, %22, %cst_39 {dimension_numbers = #tpu.dot_dimension_numbers<[1], [0], [0], [1], [0, 0, 1, 1], [], []>} : vector<8x32xf32>, vector<32x96xf32>, vector<8x96xf32> -> vector<8x96xf32>
    %cst_40 = arith.constant dense<0.000000e+00> : vector<8x96xf32>
    %49 = tpu.matmul %36, %24, %cst_40 {dimension_numbers = #tpu.dot_dimension_numbers<[1], [0], [0], [1], [0, 0, 1, 1], [], []>} : vector<8x32xf32>, vector<32x96xf32>, vector<8x96xf32> -> vector<8x96xf32>
    %50 = vector.extract_strided_slice %44 {offsets = [0, 0], sizes = [8, 32], strides = [1, 1]} : vector<8x96xf32> to vector<8x32xf32>
    %51 = vector.extract_strided_slice %48 {offsets = [0, 0], sizes = [8, 32], strides = [1, 1]} : vector<8x96xf32> to vector<8x32xf32>
    %52 = arith.addf %50, %51 : vector<8x32xf32>
    %53 = arith.negf %52 : vector<8x32xf32>
    %54 = math.exp %53 : vector<8x32xf32>
    %cst_41 = arith.constant 1.000000e+00 : f32
    %55 = vector.broadcast %cst_41 : f32 to vector<8x32xf32>
    %56 = arith.addf %55, %54 : vector<8x32xf32>
    %57 = arith.divf %55, %56 : vector<8x32xf32>
    %58 = vector.extract_strided_slice %44 {offsets = [0, 32], sizes = [8, 32], strides = [1, 1]} : vector<8x96xf32> to vector<8x32xf32>
    %59 = vector.extract_strided_slice %48 {offsets = [0, 32], sizes = [8, 32], strides = [1, 1]} : vector<8x96xf32> to vector<8x32xf32>
    %60 = arith.addf %58, %59 : vector<8x32xf32>
    %61 = arith.negf %60 : vector<8x32xf32>
    %62 = math.exp %61 : vector<8x32xf32>
    %cst_42 = arith.constant 1.000000e+00 : f32
    %63 = vector.broadcast %cst_42 : f32 to vector<8x32xf32>
    %64 = arith.addf %63, %62 : vector<8x32xf32>
    %65 = arith.divf %63, %64 : vector<8x32xf32>
    %66 = vector.extract_strided_slice %44 {offsets = [0, 64], sizes = [8, 32], strides = [1, 1]} : vector<8x96xf32> to vector<8x32xf32>
    %67 = vector.extract_strided_slice %48 {offsets = [0, 64], sizes = [8, 32], strides = [1, 1]} : vector<8x96xf32> to vector<8x32xf32>
    %68 = arith.addf %67, %28 : vector<8x32xf32>
    %69 = arith.mulf %57, %68 : vector<8x32xf32>
    %70 = arith.addf %66, %69 : vector<8x32xf32>
    %71 = math.tanh %70 : vector<8x32xf32>
    %cst_43 = arith.constant 1.000000e+00 : f32
    %72 = vector.broadcast %cst_43 : f32 to vector<8x32xf32>
    %73 = arith.subf %72, %65 : vector<8x32xf32>
    %74 = arith.mulf %73, %71 : vector<8x32xf32>
    %75 = arith.mulf %65, %36 : vector<8x32xf32>
    %76 = arith.addf %74, %75 : vector<8x32xf32>
    %77 = vector.extract_strided_slice %47 {offsets = [0, 0], sizes = [8, 32], strides = [1, 1]} : vector<8x96xf32> to vector<8x32xf32>
    %78 = vector.extract_strided_slice %49 {offsets = [0, 0], sizes = [8, 32], strides = [1, 1]} : vector<8x96xf32> to vector<8x32xf32>
    %79 = arith.addf %77, %78 : vector<8x32xf32>
    %80 = arith.negf %79 : vector<8x32xf32>
    %81 = math.exp %80 : vector<8x32xf32>
    %cst_44 = arith.constant 1.000000e+00 : f32
    %82 = vector.broadcast %cst_44 : f32 to vector<8x32xf32>
    %83 = arith.addf %82, %81 : vector<8x32xf32>
    %84 = arith.divf %82, %83 : vector<8x32xf32>
    %85 = vector.extract_strided_slice %47 {offsets = [0, 32], sizes = [8, 32], strides = [1, 1]} : vector<8x96xf32> to vector<8x32xf32>
    %86 = vector.extract_strided_slice %49 {offsets = [0, 32], sizes = [8, 32], strides = [1, 1]} : vector<8x96xf32> to vector<8x32xf32>
    %87 = arith.addf %85, %86 : vector<8x32xf32>
    %88 = arith.negf %87 : vector<8x32xf32>
    %89 = math.exp %88 : vector<8x32xf32>
    %cst_45 = arith.constant 1.000000e+00 : f32
    %90 = vector.broadcast %cst_45 : f32 to vector<8x32xf32>
    %91 = arith.addf %90, %89 : vector<8x32xf32>
    %92 = arith.divf %90, %91 : vector<8x32xf32>
    %93 = vector.extract_strided_slice %47 {offsets = [0, 64], sizes = [8, 32], strides = [1, 1]} : vector<8x96xf32> to vector<8x32xf32>
    %94 = vector.extract_strided_slice %49 {offsets = [0, 64], sizes = [8, 32], strides = [1, 1]} : vector<8x96xf32> to vector<8x32xf32>
    %95 = arith.addf %94, %32 : vector<8x32xf32>
    %96 = arith.mulf %84, %95 : vector<8x32xf32>
    %97 = arith.addf %93, %96 : vector<8x32xf32>
    %98 = math.tanh %97 : vector<8x32xf32>
    %cst_46 = arith.constant 1.000000e+00 : f32
    %99 = vector.broadcast %cst_46 : f32 to vector<8x32xf32>
    %100 = arith.subf %99, %92 : vector<8x32xf32>
    %101 = arith.mulf %100, %98 : vector<8x32xf32>
    %102 = arith.mulf %92, %36 : vector<8x32xf32>
    %103 = arith.addf %101, %102 : vector<8x32xf32>
    %104 = vector.broadcast %c0_i32 : i32 to vector<8x32xi32>
    %105 = arith.cmpi slt, %104, %35 : vector<8x32xi32>
    %106 = arith.select %105, %76, %36 : vector<8x32xi1>, vector<8x32xf32>
    %107 = vector.broadcast %37 : i32 to vector<8x32xi32>
    %108 = arith.cmpi slt, %107, %35 : vector<8x32xi32>
    %109 = arith.select %108, %103, %36 : vector<8x32xi1>, vector<8x32xf32>
    %110 = arith.index_cast %c0_i32 : i32 to index
    %c0_47 = arith.constant 0 : index
    %c0_48 = arith.constant 0 : index
    %111 = vector.load %arg6[%110, %c0_47, %c0_48] : memref<8x8x64xf32, #tpu.memory_space<vmem>>, vector<1x8x32xf32>
    %112 = vector.shape_cast %111 : vector<1x8x32xf32> to vector<8x32xf32>
    %113 = vector.shape_cast %106 : vector<8x32xf32> to vector<1x8x32xf32>
    tpu.vector_store %arg6[%110, %c0_47, %c0_48], %113 {strides = array<i32>} : memref<8x8x64xf32, #tpu.memory_space<vmem>>, vector<1x8x32xf32>,
    %114 = arith.index_cast %37 : i32 to index
    %c0_49 = arith.constant 0 : index
    %c32 = arith.constant 32 : index
    %115 = vector.load %arg6[%114, %c0_49, %c32] : memref<8x8x64xf32, #tpu.memory_space<vmem>>, vector<1x8x32xf32>
    %116 = vector.shape_cast %115 : vector<1x8x32xf32> to vector<8x32xf32>
    %117 = vector.shape_cast %109 : vector<8x32xf32> to vector<1x8x32xf32>
    tpu.vector_store %arg6[%114, %c0_49, %c32], %117 {strides = array<i32>} : memref<8x8x64xf32, #tpu.memory_space<vmem>>, vector<1x8x32xf32>,
    %c1_i32 = arith.constant 1 : i32
    %c7_i32_50 = arith.constant 7 : i32
    %118 = arith.subi %c7_i32_50, %c1_i32 : i32
    %c8_i32_51 = arith.constant 8 : i32
    %119 = arith.muli %c1_i32, %c8_i32_51 : i32
    %120 = tpu.assume_multiple %119, 8 : i32
    %c8_i32_52 = arith.constant 8 : i32
    %121 = arith.muli %118, %c8_i32_52 : i32
    %122 = tpu.assume_multiple %121, 8 : i32
    %c0_53 = arith.constant 0 : index
    %123 = arith.index_cast %120 : i32 to index
    %c0_54 = arith.constant 0 : index
    %124 = vector.load %arg8[%c0_53, %123, %c0_54] : memref<2x64x96xf32, #tpu.memory_space<vmem>>, vector<1x8x96xf32>
    %125 = vector.shape_cast %124 : vector<1x8x96xf32> to vector<8x96xf32>
    %c1_55 = arith.constant 1 : index
    %126 = arith.index_cast %122 : i32 to index
    %c0_56 = arith.constant 0 : index
    %127 = vector.load %arg8[%c1_55, %126, %c0_56] : memref<2x64x96xf32, #tpu.memory_space<vmem>>, vector<1x8x96xf32>
    %128 = vector.shape_cast %127 : vector<1x8x96xf32> to vector<8x96xf32>
    %cst_57 = arith.constant dense<0.000000e+00> : vector<8x96xf32>
    %129 = tpu.matmul %106, %22, %cst_57 {dimension_numbers = #tpu.dot_dimension_numbers<[1], [0], [0], [1], [0, 0, 1, 1], [], []>} : vector<8x32xf32>, vector<32x96xf32>, vector<8x96xf32> -> vector<8x96xf32>
    %cst_58 = arith.constant dense<0.000000e+00> : vector<8x96xf32>
    %130 = tpu.matmul %109, %24, %cst_58 {dimension_numbers = #tpu.dot_dimension_numbers<[1], [0], [0], [1], [0, 0, 1, 1], [], []>} : vector<8x32xf32>, vector<32x96xf32>, vector<8x96xf32> -> vector<8x96xf32>
    %131 = vector.extract_strided_slice %125 {offsets = [0, 0], sizes = [8, 32], strides = [1, 1]} : vector<8x96xf32> to vector<8x32xf32>
    %132 = vector.extract_strided_slice %129 {offsets = [0, 0], sizes = [8, 32], strides = [1, 1]} : vector<8x96xf32> to vector<8x32xf32>
    %133 = arith.addf %131, %132 : vector<8x32xf32>
    %134 = arith.negf %133 : vector<8x32xf32>
    %135 = math.exp %134 : vector<8x32xf32>
    %cst_59 = arith.constant 1.000000e+00 : f32
    %136 = vector.broadcast %cst_59 : f32 to vector<8x32xf32>
    %137 = arith.addf %136, %135 : vector<8x32xf32>
    %138 = arith.divf %136, %137 : vector<8x32xf32>
    %139 = vector.extract_strided_slice %125 {offsets = [0, 32], sizes = [8, 32], strides = [1, 1]} : vector<8x96xf32> to vector<8x32xf32>
    %140 = vector.extract_strided_slice %129 {offsets = [0, 32], sizes = [8, 32], strides = [1, 1]} : vector<8x96xf32> to vector<8x32xf32>
    %141 = arith.addf %139, %140 : vector<8x32xf32>
    %142 = arith.negf %141 : vector<8x32xf32>
    %143 = math.exp %142 : vector<8x32xf32>
    %cst_60 = arith.constant 1.000000e+00 : f32
    %144 = vector.broadcast %cst_60 : f32 to vector<8x32xf32>
    %145 = arith.addf %144, %143 : vector<8x32xf32>
    %146 = arith.divf %144, %145 : vector<8x32xf32>
    %147 = vector.extract_strided_slice %125 {offsets = [0, 64], sizes = [8, 32], strides = [1, 1]} : vector<8x96xf32> to vector<8x32xf32>
    %148 = vector.extract_strided_slice %129 {offsets = [0, 64], sizes = [8, 32], strides = [1, 1]} : vector<8x96xf32> to vector<8x32xf32>
    %149 = arith.addf %148, %28 : vector<8x32xf32>
    %150 = arith.mulf %138, %149 : vector<8x32xf32>
    %151 = arith.addf %147, %150 : vector<8x32xf32>
    %152 = math.tanh %151 : vector<8x32xf32>
    %cst_61 = arith.constant 1.000000e+00 : f32
    %153 = vector.broadcast %cst_61 : f32 to vector<8x32xf32>
    %154 = arith.subf %153, %146 : vector<8x32xf32>
    %155 = arith.mulf %154, %152 : vector<8x32xf32>
    %156 = arith.mulf %146, %106 : vector<8x32xf32>
    %157 = arith.addf %155, %156 : vector<8x32xf32>
    %158 = vector.extract_strided_slice %128 {offsets = [0, 0], sizes = [8, 32], strides = [1, 1]} : vector<8x96xf32> to vector<8x32xf32>
    %159 = vector.extract_strided_slice %130 {offsets = [0, 0], sizes = [8, 32], strides = [1, 1]} : vector<8x96xf32> to vector<8x32xf32>
    %160 = arith.addf %158, %159 : vector<8x32xf32>
    %161 = arith.negf %160 : vector<8x32xf32>
    %162 = math.exp %161 : vector<8x32xf32>
    %cst_62 = arith.constant 1.000000e+00 : f32
    %163 = vector.broadcast %cst_62 : f32 to vector<8x32xf32>
    %164 = arith.addf %163, %162 : vector<8x32xf32>
    %165 = arith.divf %163, %164 : vector<8x32xf32>
    %166 = vector.extract_strided_slice %128 {offsets = [0, 32], sizes = [8, 32], strides = [1, 1]} : vector<8x96xf32> to vector<8x32xf32>
    %167 = vector.extract_strided_slice %130 {offsets = [0, 32], sizes = [8, 32], strides = [1, 1]} : vector<8x96xf32> to vector<8x32xf32>
    %168 = arith.addf %166, %167 : vector<8x32xf32>
    %169 = arith.negf %168 : vector<8x32xf32>
    %170 = math.exp %169 : vector<8x32xf32>
    %cst_63 = arith.constant 1.000000e+00 : f32
    %171 = vector.broadcast %cst_63 : f32 to vector<8x32xf32>
    %172 = arith.addf %171, %170 : vector<8x32xf32>
    %173 = arith.divf %171, %172 : vector<8x32xf32>
    %174 = vector.extract_strided_slice %128 {offsets = [0, 64], sizes = [8, 32], strides = [1, 1]} : vector<8x96xf32> to vector<8x32xf32>
    %175 = vector.extract_strided_slice %130 {offsets = [0, 64], sizes = [8, 32], strides = [1, 1]} : vector<8x96xf32> to vector<8x32xf32>
    %176 = arith.addf %175, %32 : vector<8x32xf32>
    %177 = arith.mulf %165, %176 : vector<8x32xf32>
    %178 = arith.addf %174, %177 : vector<8x32xf32>
    %179 = math.tanh %178 : vector<8x32xf32>
    %cst_64 = arith.constant 1.000000e+00 : f32
    %180 = vector.broadcast %cst_64 : f32 to vector<8x32xf32>
    %181 = arith.subf %180, %173 : vector<8x32xf32>
    %182 = arith.mulf %181, %179 : vector<8x32xf32>
    %183 = arith.mulf %173, %109 : vector<8x32xf32>
    %184 = arith.addf %182, %183 : vector<8x32xf32>
    %185 = vector.broadcast %c1_i32 : i32 to vector<8x32xi32>
    %186 = arith.cmpi slt, %185, %35 : vector<8x32xi32>
    %187 = arith.select %186, %157, %106 : vector<8x32xi1>, vector<8x32xf32>
    %188 = vector.broadcast %118 : i32 to vector<8x32xi32>
    %189 = arith.cmpi slt, %188, %35 : vector<8x32xi32>
    %190 = arith.select %189, %184, %109 : vector<8x32xi1>, vector<8x32xf32>
    %191 = arith.index_cast %c1_i32 : i32 to index
    %c0_65 = arith.constant 0 : index
    %c0_66 = arith.constant 0 : index
    %192 = vector.load %arg6[%191, %c0_65, %c0_66] : memref<8x8x64xf32, #tpu.memory_space<vmem>>, vector<1x8x32xf32>
    %193 = vector.shape_cast %192 : vector<1x8x32xf32> to vector<8x32xf32>
    %194 = vector.shape_cast %187 : vector<8x32xf32> to vector<1x8x32xf32>
    tpu.vector_store %arg6[%191, %c0_65, %c0_66], %194 {strides = array<i32>} : memref<8x8x64xf32, #tpu.memory_space<vmem>>, vector<1x8x32xf32>,
    %195 = arith.index_cast %118 : i32 to index
    %c0_67 = arith.constant 0 : index
    %c32_68 = arith.constant 32 : index
    %196 = vector.load %arg6[%195, %c0_67, %c32_68] : memref<8x8x64xf32, #tpu.memory_space<vmem>>, vector<1x8x32xf32>
    %197 = vector.shape_cast %196 : vector<1x8x32xf32> to vector<8x32xf32>
    %198 = vector.shape_cast %190 : vector<8x32xf32> to vector<1x8x32xf32>
    tpu.vector_store %arg6[%195, %c0_67, %c32_68], %198 {strides = array<i32>} : memref<8x8x64xf32, #tpu.memory_space<vmem>>, vector<1x8x32xf32>,
    %c2_i32 = arith.constant 2 : i32
    %c7_i32_69 = arith.constant 7 : i32
    %199 = arith.subi %c7_i32_69, %c2_i32 : i32
    %c8_i32_70 = arith.constant 8 : i32
    %200 = arith.muli %c2_i32, %c8_i32_70 : i32
    %201 = tpu.assume_multiple %200, 8 : i32
    %c8_i32_71 = arith.constant 8 : i32
    %202 = arith.muli %199, %c8_i32_71 : i32
    %203 = tpu.assume_multiple %202, 8 : i32
    %c0_72 = arith.constant 0 : index
    %204 = arith.index_cast %201 : i32 to index
    %c0_73 = arith.constant 0 : index
    %205 = vector.load %arg8[%c0_72, %204, %c0_73] : memref<2x64x96xf32, #tpu.memory_space<vmem>>, vector<1x8x96xf32>
    %206 = vector.shape_cast %205 : vector<1x8x96xf32> to vector<8x96xf32>
    %c1_74 = arith.constant 1 : index
    %207 = arith.index_cast %203 : i32 to index
    %c0_75 = arith.constant 0 : index
    %208 = vector.load %arg8[%c1_74, %207, %c0_75] : memref<2x64x96xf32, #tpu.memory_space<vmem>>, vector<1x8x96xf32>
    %209 = vector.shape_cast %208 : vector<1x8x96xf32> to vector<8x96xf32>
    %cst_76 = arith.constant dense<0.000000e+00> : vector<8x96xf32>
    %210 = tpu.matmul %187, %22, %cst_76 {dimension_numbers = #tpu.dot_dimension_numbers<[1], [0], [0], [1], [0, 0, 1, 1], [], []>} : vector<8x32xf32>, vector<32x96xf32>, vector<8x96xf32> -> vector<8x96xf32>
    %cst_77 = arith.constant dense<0.000000e+00> : vector<8x96xf32>
    %211 = tpu.matmul %190, %24, %cst_77 {dimension_numbers = #tpu.dot_dimension_numbers<[1], [0], [0], [1], [0, 0, 1, 1], [], []>} : vector<8x32xf32>, vector<32x96xf32>, vector<8x96xf32> -> vector<8x96xf32>
    %212 = vector.extract_strided_slice %206 {offsets = [0, 0], sizes = [8, 32], strides = [1, 1]} : vector<8x96xf32> to vector<8x32xf32>
    %213 = vector.extract_strided_slice %210 {offsets = [0, 0], sizes = [8, 32], strides = [1, 1]} : vector<8x96xf32> to vector<8x32xf32>
    %214 = arith.addf %212, %213 : vector<8x32xf32>
    %215 = arith.negf %214 : vector<8x32xf32>
    %216 = math.exp %215 : vector<8x32xf32>
    %cst_78 = arith.constant 1.000000e+00 : f32
    %217 = vector.broadcast %cst_78 : f32 to vector<8x32xf32>
    %218 = arith.addf %217, %216 : vector<8x32xf32>
    %219 = arith.divf %217, %218 : vector<8x32xf32>
    %220 = vector.extract_strided_slice %206 {offsets = [0, 32], sizes = [8, 32], strides = [1, 1]} : vector<8x96xf32> to vector<8x32xf32>
    %221 = vector.extract_strided_slice %210 {offsets = [0, 32], sizes = [8, 32], strides = [1, 1]} : vector<8x96xf32> to vector<8x32xf32>
    %222 = arith.addf %220, %221 : vector<8x32xf32>
    %223 = arith.negf %222 : vector<8x32xf32>
    %224 = math.exp %223 : vector<8x32xf32>
    %cst_79 = arith.constant 1.000000e+00 : f32
    %225 = vector.broadcast %cst_79 : f32 to vector<8x32xf32>
    %226 = arith.addf %225, %224 : vector<8x32xf32>
    %227 = arith.divf %225, %226 : vector<8x32xf32>
    %228 = vector.extract_strided_slice %206 {offsets = [0, 64], sizes = [8, 32], strides = [1, 1]} : vector<8x96xf32> to vector<8x32xf32>
    %229 = vector.extract_strided_slice %210 {offsets = [0, 64], sizes = [8, 32], strides = [1, 1]} : vector<8x96xf32> to vector<8x32xf32>
    %230 = arith.addf %229, %28 : vector<8x32xf32>
    %231 = arith.mulf %219, %230 : vector<8x32xf32>
    %232 = arith.addf %228, %231 : vector<8x32xf32>
    %233 = math.tanh %232 : vector<8x32xf32>
    %cst_80 = arith.constant 1.000000e+00 : f32
    %234 = vector.broadcast %cst_80 : f32 to vector<8x32xf32>
    %235 = arith.subf %234, %227 : vector<8x32xf32>
    %236 = arith.mulf %235, %233 : vector<8x32xf32>
    %237 = arith.mulf %227, %187 : vector<8x32xf32>
    %238 = arith.addf %236, %237 : vector<8x32xf32>
    %239 = vector.extract_strided_slice %209 {offsets = [0, 0], sizes = [8, 32], strides = [1, 1]} : vector<8x96xf32> to vector<8x32xf32>
    %240 = vector.extract_strided_slice %211 {offsets = [0, 0], sizes = [8, 32], strides = [1, 1]} : vector<8x96xf32> to vector<8x32xf32>
    %241 = arith.addf %239, %240 : vector<8x32xf32>
    %242 = arith.negf %241 : vector<8x32xf32>
    %243 = math.exp %242 : vector<8x32xf32>
    %cst_81 = arith.constant 1.000000e+00 : f32
    %244 = vector.broadcast %cst_81 : f32 to vector<8x32xf32>
    %245 = arith.addf %244, %243 : vector<8x32xf32>
    %246 = arith.divf %244, %245 : vector<8x32xf32>
    %247 = vector.extract_strided_slice %209 {offsets = [0, 32], sizes = [8, 32], strides = [1, 1]} : vector<8x96xf32> to vector<8x32xf32>
    %248 = vector.extract_strided_slice %211 {offsets = [0, 32], sizes = [8, 32], strides = [1, 1]} : vector<8x96xf32> to vector<8x32xf32>
    %249 = arith.addf %247, %248 : vector<8x32xf32>
    %250 = arith.negf %249 : vector<8x32xf32>
    %251 = math.exp %250 : vector<8x32xf32>
    %cst_82 = arith.constant 1.000000e+00 : f32
    %252 = vector.broadcast %cst_82 : f32 to vector<8x32xf32>
    %253 = arith.addf %252, %251 : vector<8x32xf32>
    %254 = arith.divf %252, %253 : vector<8x32xf32>
    %255 = vector.extract_strided_slice %209 {offsets = [0, 64], sizes = [8, 32], strides = [1, 1]} : vector<8x96xf32> to vector<8x32xf32>
    %256 = vector.extract_strided_slice %211 {offsets = [0, 64], sizes = [8, 32], strides = [1, 1]} : vector<8x96xf32> to vector<8x32xf32>
    %257 = arith.addf %256, %32 : vector<8x32xf32>
    %258 = arith.mulf %246, %257 : vector<8x32xf32>
    %259 = arith.addf %255, %258 : vector<8x32xf32>
    %260 = math.tanh %259 : vector<8x32xf32>
    %cst_83 = arith.constant 1.000000e+00 : f32
    %261 = vector.broadcast %cst_83 : f32 to vector<8x32xf32>
    %262 = arith.subf %261, %254 : vector<8x32xf32>
    %263 = arith.mulf %262, %260 : vector<8x32xf32>
    %264 = arith.mulf %254, %190 : vector<8x32xf32>
    %265 = arith.addf %263, %264 : vector<8x32xf32>
    %266 = vector.broadcast %c2_i32 : i32 to vector<8x32xi32>
    %267 = arith.cmpi slt, %266, %35 : vector<8x32xi32>
    %268 = arith.select %267, %238, %187 : vector<8x32xi1>, vector<8x32xf32>
    %269 = vector.broadcast %199 : i32 to vector<8x32xi32>
    %270 = arith.cmpi slt, %269, %35 : vector<8x32xi32>
    %271 = arith.select %270, %265, %190 : vector<8x32xi1>, vector<8x32xf32>
    %272 = arith.index_cast %c2_i32 : i32 to index
    %c0_84 = arith.constant 0 : index
    %c0_85 = arith.constant 0 : index
    %273 = vector.load %arg6[%272, %c0_84, %c0_85] : memref<8x8x64xf32, #tpu.memory_space<vmem>>, vector<1x8x32xf32>
    %274 = vector.shape_cast %273 : vector<1x8x32xf32> to vector<8x32xf32>
    %275 = vector.shape_cast %268 : vector<8x32xf32> to vector<1x8x32xf32>
    tpu.vector_store %arg6[%272, %c0_84, %c0_85], %275 {strides = array<i32>} : memref<8x8x64xf32, #tpu.memory_space<vmem>>, vector<1x8x32xf32>,
    %276 = arith.index_cast %199 : i32 to index
    %c0_86 = arith.constant 0 : index
    %c32_87 = arith.constant 32 : index
    %277 = vector.load %arg6[%276, %c0_86, %c32_87] : memref<8x8x64xf32, #tpu.memory_space<vmem>>, vector<1x8x32xf32>
    %278 = vector.shape_cast %277 : vector<1x8x32xf32> to vector<8x32xf32>
    %279 = vector.shape_cast %271 : vector<8x32xf32> to vector<1x8x32xf32>
    tpu.vector_store %arg6[%276, %c0_86, %c32_87], %279 {strides = array<i32>} : memref<8x8x64xf32, #tpu.memory_space<vmem>>, vector<1x8x32xf32>,
    %c3_i32 = arith.constant 3 : i32
    %c7_i32_88 = arith.constant 7 : i32
    %280 = arith.subi %c7_i32_88, %c3_i32 : i32
    %c8_i32_89 = arith.constant 8 : i32
    %281 = arith.muli %c3_i32, %c8_i32_89 : i32
    %282 = tpu.assume_multiple %281, 8 : i32
    %c8_i32_90 = arith.constant 8 : i32
    %283 = arith.muli %280, %c8_i32_90 : i32
    %284 = tpu.assume_multiple %283, 8 : i32
    %c0_91 = arith.constant 0 : index
    %285 = arith.index_cast %282 : i32 to index
    %c0_92 = arith.constant 0 : index
    %286 = vector.load %arg8[%c0_91, %285, %c0_92] : memref<2x64x96xf32, #tpu.memory_space<vmem>>, vector<1x8x96xf32>
    %287 = vector.shape_cast %286 : vector<1x8x96xf32> to vector<8x96xf32>
    %c1_93 = arith.constant 1 : index
    %288 = arith.index_cast %284 : i32 to index
    %c0_94 = arith.constant 0 : index
    %289 = vector.load %arg8[%c1_93, %288, %c0_94] : memref<2x64x96xf32, #tpu.memory_space<vmem>>, vector<1x8x96xf32>
    %290 = vector.shape_cast %289 : vector<1x8x96xf32> to vector<8x96xf32>
    %cst_95 = arith.constant dense<0.000000e+00> : vector<8x96xf32>
    %291 = tpu.matmul %268, %22, %cst_95 {dimension_numbers = #tpu.dot_dimension_numbers<[1], [0], [0], [1], [0, 0, 1, 1], [], []>} : vector<8x32xf32>, vector<32x96xf32>, vector<8x96xf32> -> vector<8x96xf32>
    %cst_96 = arith.constant dense<0.000000e+00> : vector<8x96xf32>
    %292 = tpu.matmul %271, %24, %cst_96 {dimension_numbers = #tpu.dot_dimension_numbers<[1], [0], [0], [1], [0, 0, 1, 1], [], []>} : vector<8x32xf32>, vector<32x96xf32>, vector<8x96xf32> -> vector<8x96xf32>
    %293 = vector.extract_strided_slice %287 {offsets = [0, 0], sizes = [8, 32], strides = [1, 1]} : vector<8x96xf32> to vector<8x32xf32>
    %294 = vector.extract_strided_slice %291 {offsets = [0, 0], sizes = [8, 32], strides = [1, 1]} : vector<8x96xf32> to vector<8x32xf32>
    %295 = arith.addf %293, %294 : vector<8x32xf32>
    %296 = arith.negf %295 : vector<8x32xf32>
    %297 = math.exp %296 : vector<8x32xf32>
    %cst_97 = arith.constant 1.000000e+00 : f32
    %298 = vector.broadcast %cst_97 : f32 to vector<8x32xf32>
    %299 = arith.addf %298, %297 : vector<8x32xf32>
    %300 = arith.divf %298, %299 : vector<8x32xf32>
    %301 = vector.extract_strided_slice %287 {offsets = [0, 32], sizes = [8, 32], strides = [1, 1]} : vector<8x96xf32> to vector<8x32xf32>
    %302 = vector.extract_strided_slice %291 {offsets = [0, 32], sizes = [8, 32], strides = [1, 1]} : vector<8x96xf32> to vector<8x32xf32>
    %303 = arith.addf %301, %302 : vector<8x32xf32>
    %304 = arith.negf %303 : vector<8x32xf32>
    %305 = math.exp %304 : vector<8x32xf32>
    %cst_98 = arith.constant 1.000000e+00 : f32
    %306 = vector.broadcast %cst_98 : f32 to vector<8x32xf32>
    %307 = arith.addf %306, %305 : vector<8x32xf32>
    %308 = arith.divf %306, %307 : vector<8x32xf32>
    %309 = vector.extract_strided_slice %287 {offsets = [0, 64], sizes = [8, 32], strides = [1, 1]} : vector<8x96xf32> to vector<8x32xf32>
    %310 = vector.extract_strided_slice %291 {offsets = [0, 64], sizes = [8, 32], strides = [1, 1]} : vector<8x96xf32> to vector<8x32xf32>
    %311 = arith.addf %310, %28 : vector<8x32xf32>
    %312 = arith.mulf %300, %311 : vector<8x32xf32>
    %313 = arith.addf %309, %312 : vector<8x32xf32>
    %314 = math.tanh %313 : vector<8x32xf32>
    %cst_99 = arith.constant 1.000000e+00 : f32
    %315 = vector.broadcast %cst_99 : f32 to vector<8x32xf32>
    %316 = arith.subf %315, %308 : vector<8x32xf32>
    %317 = arith.mulf %316, %314 : vector<8x32xf32>
    %318 = arith.mulf %308, %268 : vector<8x32xf32>
    %319 = arith.addf %317, %318 : vector<8x32xf32>
    %320 = vector.extract_strided_slice %290 {offsets = [0, 0], sizes = [8, 32], strides = [1, 1]} : vector<8x96xf32> to vector<8x32xf32>
    %321 = vector.extract_strided_slice %292 {offsets = [0, 0], sizes = [8, 32], strides = [1, 1]} : vector<8x96xf32> to vector<8x32xf32>
    %322 = arith.addf %320, %321 : vector<8x32xf32>
    %323 = arith.negf %322 : vector<8x32xf32>
    %324 = math.exp %323 : vector<8x32xf32>
    %cst_100 = arith.constant 1.000000e+00 : f32
    %325 = vector.broadcast %cst_100 : f32 to vector<8x32xf32>
    %326 = arith.addf %325, %324 : vector<8x32xf32>
    %327 = arith.divf %325, %326 : vector<8x32xf32>
    %328 = vector.extract_strided_slice %290 {offsets = [0, 32], sizes = [8, 32], strides = [1, 1]} : vector<8x96xf32> to vector<8x32xf32>
    %329 = vector.extract_strided_slice %292 {offsets = [0, 32], sizes = [8, 32], strides = [1, 1]} : vector<8x96xf32> to vector<8x32xf32>
    %330 = arith.addf %328, %329 : vector<8x32xf32>
    %331 = arith.negf %330 : vector<8x32xf32>
    %332 = math.exp %331 : vector<8x32xf32>
    %cst_101 = arith.constant 1.000000e+00 : f32
    %333 = vector.broadcast %cst_101 : f32 to vector<8x32xf32>
    %334 = arith.addf %333, %332 : vector<8x32xf32>
    %335 = arith.divf %333, %334 : vector<8x32xf32>
    %336 = vector.extract_strided_slice %290 {offsets = [0, 64], sizes = [8, 32], strides = [1, 1]} : vector<8x96xf32> to vector<8x32xf32>
    %337 = vector.extract_strided_slice %292 {offsets = [0, 64], sizes = [8, 32], strides = [1, 1]} : vector<8x96xf32> to vector<8x32xf32>
    %338 = arith.addf %337, %32 : vector<8x32xf32>
    %339 = arith.mulf %327, %338 : vector<8x32xf32>
    %340 = arith.addf %336, %339 : vector<8x32xf32>
    %341 = math.tanh %340 : vector<8x32xf32>
    %cst_102 = arith.constant 1.000000e+00 : f32
    %342 = vector.broadcast %cst_102 : f32 to vector<8x32xf32>
    %343 = arith.subf %342, %335 : vector<8x32xf32>
    %344 = arith.mulf %343, %341 : vector<8x32xf32>
    %345 = arith.mulf %335, %271 : vector<8x32xf32>
    %346 = arith.addf %344, %345 : vector<8x32xf32>
    %347 = vector.broadcast %c3_i32 : i32 to vector<8x32xi32>
    %348 = arith.cmpi slt, %347, %35 : vector<8x32xi32>
    %349 = arith.select %348, %319, %268 : vector<8x32xi1>, vector<8x32xf32>
    %350 = vector.broadcast %280 : i32 to vector<8x32xi32>
    %351 = arith.cmpi slt, %350, %35 : vector<8x32xi32>
    %352 = arith.select %351, %346, %271 : vector<8x32xi1>, vector<8x32xf32>
    %353 = arith.index_cast %c3_i32 : i32 to index
    %c0_103 = arith.constant 0 : index
    %c0_104 = arith.constant 0 : index
    %354 = vector.load %arg6[%353, %c0_103, %c0_104] : memref<8x8x64xf32, #tpu.memory_space<vmem>>, vector<1x8x32xf32>
    %355 = vector.shape_cast %354 : vector<1x8x32xf32> to vector<8x32xf32>
    %356 = vector.shape_cast %349 : vector<8x32xf32> to vector<1x8x32xf32>
    tpu.vector_store %arg6[%353, %c0_103, %c0_104], %356 {strides = array<i32>} : memref<8x8x64xf32, #tpu.memory_space<vmem>>, vector<1x8x32xf32>,
    %357 = arith.index_cast %280 : i32 to index
    %c0_105 = arith.constant 0 : index
    %c32_106 = arith.constant 32 : index
    %358 = vector.load %arg6[%357, %c0_105, %c32_106] : memref<8x8x64xf32, #tpu.memory_space<vmem>>, vector<1x8x32xf32>
    %359 = vector.shape_cast %358 : vector<1x8x32xf32> to vector<8x32xf32>
    %360 = vector.shape_cast %352 : vector<8x32xf32> to vector<1x8x32xf32>
    tpu.vector_store %arg6[%357, %c0_105, %c32_106], %360 {strides = array<i32>} : memref<8x8x64xf32, #tpu.memory_space<vmem>>, vector<1x8x32xf32>,
    %c4_i32 = arith.constant 4 : i32
    %c7_i32_107 = arith.constant 7 : i32
    %361 = arith.subi %c7_i32_107, %c4_i32 : i32
    %c8_i32_108 = arith.constant 8 : i32
    %362 = arith.muli %c4_i32, %c8_i32_108 : i32
    %363 = tpu.assume_multiple %362, 8 : i32
    %c8_i32_109 = arith.constant 8 : i32
    %364 = arith.muli %361, %c8_i32_109 : i32
    %365 = tpu.assume_multiple %364, 8 : i32
    %c0_110 = arith.constant 0 : index
    %366 = arith.index_cast %363 : i32 to index
    %c0_111 = arith.constant 0 : index
    %367 = vector.load %arg8[%c0_110, %366, %c0_111] : memref<2x64x96xf32, #tpu.memory_space<vmem>>, vector<1x8x96xf32>
    %368 = vector.shape_cast %367 : vector<1x8x96xf32> to vector<8x96xf32>
    %c1_112 = arith.constant 1 : index
    %369 = arith.index_cast %365 : i32 to index
    %c0_113 = arith.constant 0 : index
    %370 = vector.load %arg8[%c1_112, %369, %c0_113] : memref<2x64x96xf32, #tpu.memory_space<vmem>>, vector<1x8x96xf32>
    %371 = vector.shape_cast %370 : vector<1x8x96xf32> to vector<8x96xf32>
    %cst_114 = arith.constant dense<0.000000e+00> : vector<8x96xf32>
    %372 = tpu.matmul %349, %22, %cst_114 {dimension_numbers = #tpu.dot_dimension_numbers<[1], [0], [0], [1], [0, 0, 1, 1], [], []>} : vector<8x32xf32>, vector<32x96xf32>, vector<8x96xf32> -> vector<8x96xf32>
    %cst_115 = arith.constant dense<0.000000e+00> : vector<8x96xf32>
    %373 = tpu.matmul %352, %24, %cst_115 {dimension_numbers = #tpu.dot_dimension_numbers<[1], [0], [0], [1], [0, 0, 1, 1], [], []>} : vector<8x32xf32>, vector<32x96xf32>, vector<8x96xf32> -> vector<8x96xf32>
    %374 = vector.extract_strided_slice %368 {offsets = [0, 0], sizes = [8, 32], strides = [1, 1]} : vector<8x96xf32> to vector<8x32xf32>
    %375 = vector.extract_strided_slice %372 {offsets = [0, 0], sizes = [8, 32], strides = [1, 1]} : vector<8x96xf32> to vector<8x32xf32>
    %376 = arith.addf %374, %375 : vector<8x32xf32>
    %377 = arith.negf %376 : vector<8x32xf32>
    %378 = math.exp %377 : vector<8x32xf32>
    %cst_116 = arith.constant 1.000000e+00 : f32
    %379 = vector.broadcast %cst_116 : f32 to vector<8x32xf32>
    %380 = arith.addf %379, %378 : vector<8x32xf32>
    %381 = arith.divf %379, %380 : vector<8x32xf32>
    %382 = vector.extract_strided_slice %368 {offsets = [0, 32], sizes = [8, 32], strides = [1, 1]} : vector<8x96xf32> to vector<8x32xf32>
    %383 = vector.extract_strided_slice %372 {offsets = [0, 32], sizes = [8, 32], strides = [1, 1]} : vector<8x96xf32> to vector<8x32xf32>
    %384 = arith.addf %382, %383 : vector<8x32xf32>
    %385 = arith.negf %384 : vector<8x32xf32>
    %386 = math.exp %385 : vector<8x32xf32>
    %cst_117 = arith.constant 1.000000e+00 : f32
    %387 = vector.broadcast %cst_117 : f32 to vector<8x32xf32>
    %388 = arith.addf %387, %386 : vector<8x32xf32>
    %389 = arith.divf %387, %388 : vector<8x32xf32>
    %390 = vector.extract_strided_slice %368 {offsets = [0, 64], sizes = [8, 32], strides = [1, 1]} : vector<8x96xf32> to vector<8x32xf32>
    %391 = vector.extract_strided_slice %372 {offsets = [0, 64], sizes = [8, 32], strides = [1, 1]} : vector<8x96xf32> to vector<8x32xf32>
    %392 = arith.addf %391, %28 : vector<8x32xf32>
    %393 = arith.mulf %381, %392 : vector<8x32xf32>
    %394 = arith.addf %390, %393 : vector<8x32xf32>
    %395 = math.tanh %394 : vector<8x32xf32>
    %cst_118 = arith.constant 1.000000e+00 : f32
    %396 = vector.broadcast %cst_118 : f32 to vector<8x32xf32>
    %397 = arith.subf %396, %389 : vector<8x32xf32>
    %398 = arith.mulf %397, %395 : vector<8x32xf32>
    %399 = arith.mulf %389, %349 : vector<8x32xf32>
    %400 = arith.addf %398, %399 : vector<8x32xf32>
    %401 = vector.extract_strided_slice %371 {offsets = [0, 0], sizes = [8, 32], strides = [1, 1]} : vector<8x96xf32> to vector<8x32xf32>
    %402 = vector.extract_strided_slice %373 {offsets = [0, 0], sizes = [8, 32], strides = [1, 1]} : vector<8x96xf32> to vector<8x32xf32>
    %403 = arith.addf %401, %402 : vector<8x32xf32>
    %404 = arith.negf %403 : vector<8x32xf32>
    %405 = math.exp %404 : vector<8x32xf32>
    %cst_119 = arith.constant 1.000000e+00 : f32
    %406 = vector.broadcast %cst_119 : f32 to vector<8x32xf32>
    %407 = arith.addf %406, %405 : vector<8x32xf32>
    %408 = arith.divf %406, %407 : vector<8x32xf32>
    %409 = vector.extract_strided_slice %371 {offsets = [0, 32], sizes = [8, 32], strides = [1, 1]} : vector<8x96xf32> to vector<8x32xf32>
    %410 = vector.extract_strided_slice %373 {offsets = [0, 32], sizes = [8, 32], strides = [1, 1]} : vector<8x96xf32> to vector<8x32xf32>
    %411 = arith.addf %409, %410 : vector<8x32xf32>
    %412 = arith.negf %411 : vector<8x32xf32>
    %413 = math.exp %412 : vector<8x32xf32>
    %cst_120 = arith.constant 1.000000e+00 : f32
    %414 = vector.broadcast %cst_120 : f32 to vector<8x32xf32>
    %415 = arith.addf %414, %413 : vector<8x32xf32>
    %416 = arith.divf %414, %415 : vector<8x32xf32>
    %417 = vector.extract_strided_slice %371 {offsets = [0, 64], sizes = [8, 32], strides = [1, 1]} : vector<8x96xf32> to vector<8x32xf32>
    %418 = vector.extract_strided_slice %373 {offsets = [0, 64], sizes = [8, 32], strides = [1, 1]} : vector<8x96xf32> to vector<8x32xf32>
    %419 = arith.addf %418, %32 : vector<8x32xf32>
    %420 = arith.mulf %408, %419 : vector<8x32xf32>
    %421 = arith.addf %417, %420 : vector<8x32xf32>
    %422 = math.tanh %421 : vector<8x32xf32>
    %cst_121 = arith.constant 1.000000e+00 : f32
    %423 = vector.broadcast %cst_121 : f32 to vector<8x32xf32>
    %424 = arith.subf %423, %416 : vector<8x32xf32>
    %425 = arith.mulf %424, %422 : vector<8x32xf32>
    %426 = arith.mulf %416, %352 : vector<8x32xf32>
    %427 = arith.addf %425, %426 : vector<8x32xf32>
    %428 = vector.broadcast %c4_i32 : i32 to vector<8x32xi32>
    %429 = arith.cmpi slt, %428, %35 : vector<8x32xi32>
    %430 = arith.select %429, %400, %349 : vector<8x32xi1>, vector<8x32xf32>
    %431 = vector.broadcast %361 : i32 to vector<8x32xi32>
    %432 = arith.cmpi slt, %431, %35 : vector<8x32xi32>
    %433 = arith.select %432, %427, %352 : vector<8x32xi1>, vector<8x32xf32>
    %434 = arith.index_cast %c4_i32 : i32 to index
    %c0_122 = arith.constant 0 : index
    %c0_123 = arith.constant 0 : index
    %435 = vector.load %arg6[%434, %c0_122, %c0_123] : memref<8x8x64xf32, #tpu.memory_space<vmem>>, vector<1x8x32xf32>
    %436 = vector.shape_cast %435 : vector<1x8x32xf32> to vector<8x32xf32>
    %437 = vector.shape_cast %430 : vector<8x32xf32> to vector<1x8x32xf32>
    tpu.vector_store %arg6[%434, %c0_122, %c0_123], %437 {strides = array<i32>} : memref<8x8x64xf32, #tpu.memory_space<vmem>>, vector<1x8x32xf32>,
    %438 = arith.index_cast %361 : i32 to index
    %c0_124 = arith.constant 0 : index
    %c32_125 = arith.constant 32 : index
    %439 = vector.load %arg6[%438, %c0_124, %c32_125] : memref<8x8x64xf32, #tpu.memory_space<vmem>>, vector<1x8x32xf32>
    %440 = vector.shape_cast %439 : vector<1x8x32xf32> to vector<8x32xf32>
    %441 = vector.shape_cast %433 : vector<8x32xf32> to vector<1x8x32xf32>
    tpu.vector_store %arg6[%438, %c0_124, %c32_125], %441 {strides = array<i32>} : memref<8x8x64xf32, #tpu.memory_space<vmem>>, vector<1x8x32xf32>,
    %c5_i32 = arith.constant 5 : i32
    %c7_i32_126 = arith.constant 7 : i32
    %442 = arith.subi %c7_i32_126, %c5_i32 : i32
    %c8_i32_127 = arith.constant 8 : i32
    %443 = arith.muli %c5_i32, %c8_i32_127 : i32
    %444 = tpu.assume_multiple %443, 8 : i32
    %c8_i32_128 = arith.constant 8 : i32
    %445 = arith.muli %442, %c8_i32_128 : i32
    %446 = tpu.assume_multiple %445, 8 : i32
    %c0_129 = arith.constant 0 : index
    %447 = arith.index_cast %444 : i32 to index
    %c0_130 = arith.constant 0 : index
    %448 = vector.load %arg8[%c0_129, %447, %c0_130] : memref<2x64x96xf32, #tpu.memory_space<vmem>>, vector<1x8x96xf32>
    %449 = vector.shape_cast %448 : vector<1x8x96xf32> to vector<8x96xf32>
    %c1_131 = arith.constant 1 : index
    %450 = arith.index_cast %446 : i32 to index
    %c0_132 = arith.constant 0 : index
    %451 = vector.load %arg8[%c1_131, %450, %c0_132] : memref<2x64x96xf32, #tpu.memory_space<vmem>>, vector<1x8x96xf32>
    %452 = vector.shape_cast %451 : vector<1x8x96xf32> to vector<8x96xf32>
    %cst_133 = arith.constant dense<0.000000e+00> : vector<8x96xf32>
    %453 = tpu.matmul %430, %22, %cst_133 {dimension_numbers = #tpu.dot_dimension_numbers<[1], [0], [0], [1], [0, 0, 1, 1], [], []>} : vector<8x32xf32>, vector<32x96xf32>, vector<8x96xf32> -> vector<8x96xf32>
    %cst_134 = arith.constant dense<0.000000e+00> : vector<8x96xf32>
    %454 = tpu.matmul %433, %24, %cst_134 {dimension_numbers = #tpu.dot_dimension_numbers<[1], [0], [0], [1], [0, 0, 1, 1], [], []>} : vector<8x32xf32>, vector<32x96xf32>, vector<8x96xf32> -> vector<8x96xf32>
    %455 = vector.extract_strided_slice %449 {offsets = [0, 0], sizes = [8, 32], strides = [1, 1]} : vector<8x96xf32> to vector<8x32xf32>
    %456 = vector.extract_strided_slice %453 {offsets = [0, 0], sizes = [8, 32], strides = [1, 1]} : vector<8x96xf32> to vector<8x32xf32>
    %457 = arith.addf %455, %456 : vector<8x32xf32>
    %458 = arith.negf %457 : vector<8x32xf32>
    %459 = math.exp %458 : vector<8x32xf32>
    %cst_135 = arith.constant 1.000000e+00 : f32
    %460 = vector.broadcast %cst_135 : f32 to vector<8x32xf32>
    %461 = arith.addf %460, %459 : vector<8x32xf32>
    %462 = arith.divf %460, %461 : vector<8x32xf32>
    %463 = vector.extract_strided_slice %449 {offsets = [0, 32], sizes = [8, 32], strides = [1, 1]} : vector<8x96xf32> to vector<8x32xf32>
    %464 = vector.extract_strided_slice %453 {offsets = [0, 32], sizes = [8, 32], strides = [1, 1]} : vector<8x96xf32> to vector<8x32xf32>
    %465 = arith.addf %463, %464 : vector<8x32xf32>
    %466 = arith.negf %465 : vector<8x32xf32>
    %467 = math.exp %466 : vector<8x32xf32>
    %cst_136 = arith.constant 1.000000e+00 : f32
    %468 = vector.broadcast %cst_136 : f32 to vector<8x32xf32>
    %469 = arith.addf %468, %467 : vector<8x32xf32>
    %470 = arith.divf %468, %469 : vector<8x32xf32>
    %471 = vector.extract_strided_slice %449 {offsets = [0, 64], sizes = [8, 32], strides = [1, 1]} : vector<8x96xf32> to vector<8x32xf32>
    %472 = vector.extract_strided_slice %453 {offsets = [0, 64], sizes = [8, 32], strides = [1, 1]} : vector<8x96xf32> to vector<8x32xf32>
    %473 = arith.addf %472, %28 : vector<8x32xf32>
    %474 = arith.mulf %462, %473 : vector<8x32xf32>
    %475 = arith.addf %471, %474 : vector<8x32xf32>
    %476 = math.tanh %475 : vector<8x32xf32>
    %cst_137 = arith.constant 1.000000e+00 : f32
    %477 = vector.broadcast %cst_137 : f32 to vector<8x32xf32>
    %478 = arith.subf %477, %470 : vector<8x32xf32>
    %479 = arith.mulf %478, %476 : vector<8x32xf32>
    %480 = arith.mulf %470, %430 : vector<8x32xf32>
    %481 = arith.addf %479, %480 : vector<8x32xf32>
    %482 = vector.extract_strided_slice %452 {offsets = [0, 0], sizes = [8, 32], strides = [1, 1]} : vector<8x96xf32> to vector<8x32xf32>
    %483 = vector.extract_strided_slice %454 {offsets = [0, 0], sizes = [8, 32], strides = [1, 1]} : vector<8x96xf32> to vector<8x32xf32>
    %484 = arith.addf %482, %483 : vector<8x32xf32>
    %485 = arith.negf %484 : vector<8x32xf32>
    %486 = math.exp %485 : vector<8x32xf32>
    %cst_138 = arith.constant 1.000000e+00 : f32
    %487 = vector.broadcast %cst_138 : f32 to vector<8x32xf32>
    %488 = arith.addf %487, %486 : vector<8x32xf32>
    %489 = arith.divf %487, %488 : vector<8x32xf32>
    %490 = vector.extract_strided_slice %452 {offsets = [0, 32], sizes = [8, 32], strides = [1, 1]} : vector<8x96xf32> to vector<8x32xf32>
    %491 = vector.extract_strided_slice %454 {offsets = [0, 32], sizes = [8, 32], strides = [1, 1]} : vector<8x96xf32> to vector<8x32xf32>
    %492 = arith.addf %490, %491 : vector<8x32xf32>
    %493 = arith.negf %492 : vector<8x32xf32>
    %494 = math.exp %493 : vector<8x32xf32>
    %cst_139 = arith.constant 1.000000e+00 : f32
    %495 = vector.broadcast %cst_139 : f32 to vector<8x32xf32>
    %496 = arith.addf %495, %494 : vector<8x32xf32>
    %497 = arith.divf %495, %496 : vector<8x32xf32>
    %498 = vector.extract_strided_slice %452 {offsets = [0, 64], sizes = [8, 32], strides = [1, 1]} : vector<8x96xf32> to vector<8x32xf32>
    %499 = vector.extract_strided_slice %454 {offsets = [0, 64], sizes = [8, 32], strides = [1, 1]} : vector<8x96xf32> to vector<8x32xf32>
    %500 = arith.addf %499, %32 : vector<8x32xf32>
    %501 = arith.mulf %489, %500 : vector<8x32xf32>
    %502 = arith.addf %498, %501 : vector<8x32xf32>
    %503 = math.tanh %502 : vector<8x32xf32>
    %cst_140 = arith.constant 1.000000e+00 : f32
    %504 = vector.broadcast %cst_140 : f32 to vector<8x32xf32>
    %505 = arith.subf %504, %497 : vector<8x32xf32>
    %506 = arith.mulf %505, %503 : vector<8x32xf32>
    %507 = arith.mulf %497, %433 : vector<8x32xf32>
    %508 = arith.addf %506, %507 : vector<8x32xf32>
    %509 = vector.broadcast %c5_i32 : i32 to vector<8x32xi32>
    %510 = arith.cmpi slt, %509, %35 : vector<8x32xi32>
    %511 = arith.select %510, %481, %430 : vector<8x32xi1>, vector<8x32xf32>
    %512 = vector.broadcast %442 : i32 to vector<8x32xi32>
    %513 = arith.cmpi slt, %512, %35 : vector<8x32xi32>
    %514 = arith.select %513, %508, %433 : vector<8x32xi1>, vector<8x32xf32>
    %515 = arith.index_cast %c5_i32 : i32 to index
    %c0_141 = arith.constant 0 : index
    %c0_142 = arith.constant 0 : index
    %516 = vector.load %arg6[%515, %c0_141, %c0_142] : memref<8x8x64xf32, #tpu.memory_space<vmem>>, vector<1x8x32xf32>
    %517 = vector.shape_cast %516 : vector<1x8x32xf32> to vector<8x32xf32>
    %518 = vector.shape_cast %511 : vector<8x32xf32> to vector<1x8x32xf32>
    tpu.vector_store %arg6[%515, %c0_141, %c0_142], %518 {strides = array<i32>} : memref<8x8x64xf32, #tpu.memory_space<vmem>>, vector<1x8x32xf32>,
    %519 = arith.index_cast %442 : i32 to index
    %c0_143 = arith.constant 0 : index
    %c32_144 = arith.constant 32 : index
    %520 = vector.load %arg6[%519, %c0_143, %c32_144] : memref<8x8x64xf32, #tpu.memory_space<vmem>>, vector<1x8x32xf32>
    %521 = vector.shape_cast %520 : vector<1x8x32xf32> to vector<8x32xf32>
    %522 = vector.shape_cast %514 : vector<8x32xf32> to vector<1x8x32xf32>
    tpu.vector_store %arg6[%519, %c0_143, %c32_144], %522 {strides = array<i32>} : memref<8x8x64xf32, #tpu.memory_space<vmem>>, vector<1x8x32xf32>,
    %c6_i32 = arith.constant 6 : i32
    %c7_i32_145 = arith.constant 7 : i32
    %523 = arith.subi %c7_i32_145, %c6_i32 : i32
    %c8_i32_146 = arith.constant 8 : i32
    %524 = arith.muli %c6_i32, %c8_i32_146 : i32
    %525 = tpu.assume_multiple %524, 8 : i32
    %c8_i32_147 = arith.constant 8 : i32
    %526 = arith.muli %523, %c8_i32_147 : i32
    %527 = tpu.assume_multiple %526, 8 : i32
    %c0_148 = arith.constant 0 : index
    %528 = arith.index_cast %525 : i32 to index
    %c0_149 = arith.constant 0 : index
    %529 = vector.load %arg8[%c0_148, %528, %c0_149] : memref<2x64x96xf32, #tpu.memory_space<vmem>>, vector<1x8x96xf32>
    %530 = vector.shape_cast %529 : vector<1x8x96xf32> to vector<8x96xf32>
    %c1_150 = arith.constant 1 : index
    %531 = arith.index_cast %527 : i32 to index
    %c0_151 = arith.constant 0 : index
    %532 = vector.load %arg8[%c1_150, %531, %c0_151] : memref<2x64x96xf32, #tpu.memory_space<vmem>>, vector<1x8x96xf32>
    %533 = vector.shape_cast %532 : vector<1x8x96xf32> to vector<8x96xf32>
    %cst_152 = arith.constant dense<0.000000e+00> : vector<8x96xf32>
    %534 = tpu.matmul %511, %22, %cst_152 {dimension_numbers = #tpu.dot_dimension_numbers<[1], [0], [0], [1], [0, 0, 1, 1], [], []>} : vector<8x32xf32>, vector<32x96xf32>, vector<8x96xf32> -> vector<8x96xf32>
    %cst_153 = arith.constant dense<0.000000e+00> : vector<8x96xf32>
    %535 = tpu.matmul %514, %24, %cst_153 {dimension_numbers = #tpu.dot_dimension_numbers<[1], [0], [0], [1], [0, 0, 1, 1], [], []>} : vector<8x32xf32>, vector<32x96xf32>, vector<8x96xf32> -> vector<8x96xf32>
    %536 = vector.extract_strided_slice %530 {offsets = [0, 0], sizes = [8, 32], strides = [1, 1]} : vector<8x96xf32> to vector<8x32xf32>
    %537 = vector.extract_strided_slice %534 {offsets = [0, 0], sizes = [8, 32], strides = [1, 1]} : vector<8x96xf32> to vector<8x32xf32>
    %538 = arith.addf %536, %537 : vector<8x32xf32>
    %539 = arith.negf %538 : vector<8x32xf32>
    %540 = math.exp %539 : vector<8x32xf32>
    %cst_154 = arith.constant 1.000000e+00 : f32
    %541 = vector.broadcast %cst_154 : f32 to vector<8x32xf32>
    %542 = arith.addf %541, %540 : vector<8x32xf32>
    %543 = arith.divf %541, %542 : vector<8x32xf32>
    %544 = vector.extract_strided_slice %530 {offsets = [0, 32], sizes = [8, 32], strides = [1, 1]} : vector<8x96xf32> to vector<8x32xf32>
    %545 = vector.extract_strided_slice %534 {offsets = [0, 32], sizes = [8, 32], strides = [1, 1]} : vector<8x96xf32> to vector<8x32xf32>
    %546 = arith.addf %544, %545 : vector<8x32xf32>
    %547 = arith.negf %546 : vector<8x32xf32>
    %548 = math.exp %547 : vector<8x32xf32>
    %cst_155 = arith.constant 1.000000e+00 : f32
    %549 = vector.broadcast %cst_155 : f32 to vector<8x32xf32>
    %550 = arith.addf %549, %548 : vector<8x32xf32>
    %551 = arith.divf %549, %550 : vector<8x32xf32>
    %552 = vector.extract_strided_slice %530 {offsets = [0, 64], sizes = [8, 32], strides = [1, 1]} : vector<8x96xf32> to vector<8x32xf32>
    %553 = vector.extract_strided_slice %534 {offsets = [0, 64], sizes = [8, 32], strides = [1, 1]} : vector<8x96xf32> to vector<8x32xf32>
    %554 = arith.addf %553, %28 : vector<8x32xf32>
    %555 = arith.mulf %543, %554 : vector<8x32xf32>
    %556 = arith.addf %552, %555 : vector<8x32xf32>
    %557 = math.tanh %556 : vector<8x32xf32>
    %cst_156 = arith.constant 1.000000e+00 : f32
    %558 = vector.broadcast %cst_156 : f32 to vector<8x32xf32>
    %559 = arith.subf %558, %551 : vector<8x32xf32>
    %560 = arith.mulf %559, %557 : vector<8x32xf32>
    %561 = arith.mulf %551, %511 : vector<8x32xf32>
    %562 = arith.addf %560, %561 : vector<8x32xf32>
    %563 = vector.extract_strided_slice %533 {offsets = [0, 0], sizes = [8, 32], strides = [1, 1]} : vector<8x96xf32> to vector<8x32xf32>
    %564 = vector.extract_strided_slice %535 {offsets = [0, 0], sizes = [8, 32], strides = [1, 1]} : vector<8x96xf32> to vector<8x32xf32>
    %565 = arith.addf %563, %564 : vector<8x32xf32>
    %566 = arith.negf %565 : vector<8x32xf32>
    %567 = math.exp %566 : vector<8x32xf32>
    %cst_157 = arith.constant 1.000000e+00 : f32
    %568 = vector.broadcast %cst_157 : f32 to vector<8x32xf32>
    %569 = arith.addf %568, %567 : vector<8x32xf32>
    %570 = arith.divf %568, %569 : vector<8x32xf32>
    %571 = vector.extract_strided_slice %533 {offsets = [0, 32], sizes = [8, 32], strides = [1, 1]} : vector<8x96xf32> to vector<8x32xf32>
    %572 = vector.extract_strided_slice %535 {offsets = [0, 32], sizes = [8, 32], strides = [1, 1]} : vector<8x96xf32> to vector<8x32xf32>
    %573 = arith.addf %571, %572 : vector<8x32xf32>
    %574 = arith.negf %573 : vector<8x32xf32>
    %575 = math.exp %574 : vector<8x32xf32>
    %cst_158 = arith.constant 1.000000e+00 : f32
    %576 = vector.broadcast %cst_158 : f32 to vector<8x32xf32>
    %577 = arith.addf %576, %575 : vector<8x32xf32>
    %578 = arith.divf %576, %577 : vector<8x32xf32>
    %579 = vector.extract_strided_slice %533 {offsets = [0, 64], sizes = [8, 32], strides = [1, 1]} : vector<8x96xf32> to vector<8x32xf32>
    %580 = vector.extract_strided_slice %535 {offsets = [0, 64], sizes = [8, 32], strides = [1, 1]} : vector<8x96xf32> to vector<8x32xf32>
    %581 = arith.addf %580, %32 : vector<8x32xf32>
    %582 = arith.mulf %570, %581 : vector<8x32xf32>
    %583 = arith.addf %579, %582 : vector<8x32xf32>
    %584 = math.tanh %583 : vector<8x32xf32>
    %cst_159 = arith.constant 1.000000e+00 : f32
    %585 = vector.broadcast %cst_159 : f32 to vector<8x32xf32>
    %586 = arith.subf %585, %578 : vector<8x32xf32>
    %587 = arith.mulf %586, %584 : vector<8x32xf32>
    %588 = arith.mulf %578, %514 : vector<8x32xf32>
    %589 = arith.addf %587, %588 : vector<8x32xf32>
    %590 = vector.broadcast %c6_i32 : i32 to vector<8x32xi32>
    %591 = arith.cmpi slt, %590, %35 : vector<8x32xi32>
    %592 = arith.select %591, %562, %511 : vector<8x32xi1>, vector<8x32xf32>
    %593 = vector.broadcast %523 : i32 to vector<8x32xi32>
    %594 = arith.cmpi slt, %593, %35 : vector<8x32xi32>
    %595 = arith.select %594, %589, %514 : vector<8x32xi1>, vector<8x32xf32>
    %596 = arith.index_cast %c6_i32 : i32 to index
    %c0_160 = arith.constant 0 : index
    %c0_161 = arith.constant 0 : index
    %597 = vector.load %arg6[%596, %c0_160, %c0_161] : memref<8x8x64xf32, #tpu.memory_space<vmem>>, vector<1x8x32xf32>
    %598 = vector.shape_cast %597 : vector<1x8x32xf32> to vector<8x32xf32>
    %599 = vector.shape_cast %592 : vector<8x32xf32> to vector<1x8x32xf32>
    tpu.vector_store %arg6[%596, %c0_160, %c0_161], %599 {strides = array<i32>} : memref<8x8x64xf32, #tpu.memory_space<vmem>>, vector<1x8x32xf32>,
    %600 = arith.index_cast %523 : i32 to index
    %c0_162 = arith.constant 0 : index
    %c32_163 = arith.constant 32 : index
    %601 = vector.load %arg6[%600, %c0_162, %c32_163] : memref<8x8x64xf32, #tpu.memory_space<vmem>>, vector<1x8x32xf32>
    %602 = vector.shape_cast %601 : vector<1x8x32xf32> to vector<8x32xf32>
    %603 = vector.shape_cast %595 : vector<8x32xf32> to vector<1x8x32xf32>
    tpu.vector_store %arg6[%600, %c0_162, %c32_163], %603 {strides = array<i32>} : memref<8x8x64xf32, #tpu.memory_space<vmem>>, vector<1x8x32xf32>,
    %c7_i32_164 = arith.constant 7 : i32
    %c7_i32_165 = arith.constant 7 : i32
    %604 = arith.subi %c7_i32_165, %c7_i32_164 : i32
    %c8_i32_166 = arith.constant 8 : i32
    %605 = arith.muli %c7_i32_164, %c8_i32_166 : i32
    %606 = tpu.assume_multiple %605, 8 : i32
    %c8_i32_167 = arith.constant 8 : i32
    %607 = arith.muli %604, %c8_i32_167 : i32
    %608 = tpu.assume_multiple %607, 8 : i32
    %c0_168 = arith.constant 0 : index
    %609 = arith.index_cast %606 : i32 to index
    %c0_169 = arith.constant 0 : index
    %610 = vector.load %arg8[%c0_168, %609, %c0_169] : memref<2x64x96xf32, #tpu.memory_space<vmem>>, vector<1x8x96xf32>
    %611 = vector.shape_cast %610 : vector<1x8x96xf32> to vector<8x96xf32>
    %c1_170 = arith.constant 1 : index
    %612 = arith.index_cast %608 : i32 to index
    %c0_171 = arith.constant 0 : index
    %613 = vector.load %arg8[%c1_170, %612, %c0_171] : memref<2x64x96xf32, #tpu.memory_space<vmem>>, vector<1x8x96xf32>
    %614 = vector.shape_cast %613 : vector<1x8x96xf32> to vector<8x96xf32>
    %cst_172 = arith.constant dense<0.000000e+00> : vector<8x96xf32>
    %615 = tpu.matmul %592, %22, %cst_172 {dimension_numbers = #tpu.dot_dimension_numbers<[1], [0], [0], [1], [0, 0, 1, 1], [], []>} : vector<8x32xf32>, vector<32x96xf32>, vector<8x96xf32> -> vector<8x96xf32>
    %cst_173 = arith.constant dense<0.000000e+00> : vector<8x96xf32>
    %616 = tpu.matmul %595, %24, %cst_173 {dimension_numbers = #tpu.dot_dimension_numbers<[1], [0], [0], [1], [0, 0, 1, 1], [], []>} : vector<8x32xf32>, vector<32x96xf32>, vector<8x96xf32> -> vector<8x96xf32>
    %617 = vector.extract_strided_slice %611 {offsets = [0, 0], sizes = [8, 32], strides = [1, 1]} : vector<8x96xf32> to vector<8x32xf32>
    %618 = vector.extract_strided_slice %615 {offsets = [0, 0], sizes = [8, 32], strides = [1, 1]} : vector<8x96xf32> to vector<8x32xf32>
    %619 = arith.addf %617, %618 : vector<8x32xf32>
    %620 = arith.negf %619 : vector<8x32xf32>
    %621 = math.exp %620 : vector<8x32xf32>
    %cst_174 = arith.constant 1.000000e+00 : f32
    %622 = vector.broadcast %cst_174 : f32 to vector<8x32xf32>
    %623 = arith.addf %622, %621 : vector<8x32xf32>
    %624 = arith.divf %622, %623 : vector<8x32xf32>
    %625 = vector.extract_strided_slice %611 {offsets = [0, 32], sizes = [8, 32], strides = [1, 1]} : vector<8x96xf32> to vector<8x32xf32>
    %626 = vector.extract_strided_slice %615 {offsets = [0, 32], sizes = [8, 32], strides = [1, 1]} : vector<8x96xf32> to vector<8x32xf32>
    %627 = arith.addf %625, %626 : vector<8x32xf32>
    %628 = arith.negf %627 : vector<8x32xf32>
    %629 = math.exp %628 : vector<8x32xf32>
    %cst_175 = arith.constant 1.000000e+00 : f32
    %630 = vector.broadcast %cst_175 : f32 to vector<8x32xf32>
    %631 = arith.addf %630, %629 : vector<8x32xf32>
    %632 = arith.divf %630, %631 : vector<8x32xf32>
    %633 = vector.extract_strided_slice %611 {offsets = [0, 64], sizes = [8, 32], strides = [1, 1]} : vector<8x96xf32> to vector<8x32xf32>
    %634 = vector.extract_strided_slice %615 {offsets = [0, 64], sizes = [8, 32], strides = [1, 1]} : vector<8x96xf32> to vector<8x32xf32>
    %635 = arith.addf %634, %28 : vector<8x32xf32>
    %636 = arith.mulf %624, %635 : vector<8x32xf32>
    %637 = arith.addf %633, %636 : vector<8x32xf32>
    %638 = math.tanh %637 : vector<8x32xf32>
    %cst_176 = arith.constant 1.000000e+00 : f32
    %639 = vector.broadcast %cst_176 : f32 to vector<8x32xf32>
    %640 = arith.subf %639, %632 : vector<8x32xf32>
    %641 = arith.mulf %640, %638 : vector<8x32xf32>
    %642 = arith.mulf %632, %592 : vector<8x32xf32>
    %643 = arith.addf %641, %642 : vector<8x32xf32>
    %644 = vector.extract_strided_slice %614 {offsets = [0, 0], sizes = [8, 32], strides = [1, 1]} : vector<8x96xf32> to vector<8x32xf32>
    %645 = vector.extract_strided_slice %616 {offsets = [0, 0], sizes = [8, 32], strides = [1, 1]} : vector<8x96xf32> to vector<8x32xf32>
    %646 = arith.addf %644, %645 : vector<8x32xf32>
    %647 = arith.negf %646 : vector<8x32xf32>
    %648 = math.exp %647 : vector<8x32xf32>
    %cst_177 = arith.constant 1.000000e+00 : f32
    %649 = vector.broadcast %cst_177 : f32 to vector<8x32xf32>
    %650 = arith.addf %649, %648 : vector<8x32xf32>
    %651 = arith.divf %649, %650 : vector<8x32xf32>
    %652 = vector.extract_strided_slice %614 {offsets = [0, 32], sizes = [8, 32], strides = [1, 1]} : vector<8x96xf32> to vector<8x32xf32>
    %653 = vector.extract_strided_slice %616 {offsets = [0, 32], sizes = [8, 32], strides = [1, 1]} : vector<8x96xf32> to vector<8x32xf32>
    %654 = arith.addf %652, %653 : vector<8x32xf32>
    %655 = arith.negf %654 : vector<8x32xf32>
    %656 = math.exp %655 : vector<8x32xf32>
    %cst_178 = arith.constant 1.000000e+00 : f32
    %657 = vector.broadcast %cst_178 : f32 to vector<8x32xf32>
    %658 = arith.addf %657, %656 : vector<8x32xf32>
    %659 = arith.divf %657, %658 : vector<8x32xf32>
    %660 = vector.extract_strided_slice %614 {offsets = [0, 64], sizes = [8, 32], strides = [1, 1]} : vector<8x96xf32> to vector<8x32xf32>
    %661 = vector.extract_strided_slice %616 {offsets = [0, 64], sizes = [8, 32], strides = [1, 1]} : vector<8x96xf32> to vector<8x32xf32>
    %662 = arith.addf %661, %32 : vector<8x32xf32>
    %663 = arith.mulf %651, %662 : vector<8x32xf32>
    %664 = arith.addf %660, %663 : vector<8x32xf32>
    %665 = math.tanh %664 : vector<8x32xf32>
    %cst_179 = arith.constant 1.000000e+00 : f32
    %666 = vector.broadcast %cst_179 : f32 to vector<8x32xf32>
    %667 = arith.subf %666, %659 : vector<8x32xf32>
    %668 = arith.mulf %667, %665 : vector<8x32xf32>
    %669 = arith.mulf %659, %595 : vector<8x32xf32>
    %670 = arith.addf %668, %669 : vector<8x32xf32>
    %671 = vector.broadcast %c7_i32_164 : i32 to vector<8x32xi32>
    %672 = arith.cmpi slt, %671, %35 : vector<8x32xi32>
    %673 = arith.select %672, %643, %592 : vector<8x32xi1>, vector<8x32xf32>
    %674 = vector.broadcast %604 : i32 to vector<8x32xi32>
    %675 = arith.cmpi slt, %674, %35 : vector<8x32xi32>
    %676 = arith.select %675, %670, %595 : vector<8x32xi1>, vector<8x32xf32>
    %677 = arith.index_cast %c7_i32_164 : i32 to index
    %c0_180 = arith.constant 0 : index
    %c0_181 = arith.constant 0 : index
    %678 = vector.load %arg6[%677, %c0_180, %c0_181] : memref<8x8x64xf32, #tpu.memory_space<vmem>>, vector<1x8x32xf32>
    %679 = vector.shape_cast %678 : vector<1x8x32xf32> to vector<8x32xf32>
    %680 = vector.shape_cast %673 : vector<8x32xf32> to vector<1x8x32xf32>
    tpu.vector_store %arg6[%677, %c0_180, %c0_181], %680 {strides = array<i32>} : memref<8x8x64xf32, #tpu.memory_space<vmem>>, vector<1x8x32xf32>,
    %681 = arith.index_cast %604 : i32 to index
    %c0_182 = arith.constant 0 : index
    %c32_183 = arith.constant 32 : index
    %682 = vector.load %arg6[%681, %c0_182, %c32_183] : memref<8x8x64xf32, #tpu.memory_space<vmem>>, vector<1x8x32xf32>
    %683 = vector.shape_cast %682 : vector<1x8x32xf32> to vector<8x32xf32>
    %684 = vector.shape_cast %676 : vector<8x32xf32> to vector<1x8x32xf32>
    tpu.vector_store %arg6[%681, %c0_182, %c32_183], %684 {strides = array<i32>} : memref<8x8x64xf32, #tpu.memory_space<vmem>>, vector<1x8x32xf32>,
    %c8_i32_184 = arith.constant 8 : i32
    %c0_185 = arith.constant 0 : index
    %c0_186 = arith.constant 0 : index
    %685 = vector.load %arg7[%c0_185, %c0_186] : memref<8x64xf32, #tpu.memory_space<vmem>>, vector<8x32xf32>
    tpu.vector_store %arg7[%c0_185, %c0_186], %673 {strides = array<i32>} : memref<8x64xf32, #tpu.memory_space<vmem>>, vector<8x32xf32>,
    %c0_187 = arith.constant 0 : index
    %c32_188 = arith.constant 32 : index
    %686 = vector.load %arg7[%c0_187, %c32_188] : memref<8x64xf32, #tpu.memory_space<vmem>>, vector<8x32xf32>
    tpu.vector_store %arg7[%c0_187, %c32_188], %676 {strides = array<i32>} : memref<8x64xf32, #tpu.memory_space<vmem>>, vector<8x32xf32>,
    return
  }
}

module attributes {stable_mosaic.version = 11 : i64} {
  func.func @_bilstm_kernel(%arg0: memref<64x64xf32, #tpu.memory_space<vmem>>, %arg1: memref<8x1xi32, #tpu.memory_space<vmem>>, %arg2: memref<8x64xf32, #tpu.memory_space<vmem>>, %arg3: memref<2x64x128xf32, #tpu.memory_space<vmem>>, %arg4: memref<2x32x128xf32, #tpu.memory_space<vmem>>, %arg5: memref<2x1x128xf32, #tpu.memory_space<vmem>>, %arg6: memref<8x8x64xf32, #tpu.memory_space<vmem>>, %arg7: memref<8x64xf32, #tpu.memory_space<vmem>>, %arg8: memref<2x64x128xf32, #tpu.memory_space<vmem>>) attributes {dimension_semantics = [], scalar_prefetch = 0 : i64, scratch_operands = 1 : i64, tpu.core_type = #tpu.core_type<tc>} {
    %c0 = arith.constant 0 : index
    %c0_0 = arith.constant 0 : index
    %0 = vector.load %arg0[%c0, %c0_0] : memref<64x64xf32, #tpu.memory_space<vmem>>, vector<64x64xf32>
    %c0_1 = arith.constant 0 : index
    %c0_2 = arith.constant 0 : index
    %c0_3 = arith.constant 0 : index
    %1 = vector.load %arg3[%c0_1, %c0_2, %c0_3] : memref<2x64x128xf32, #tpu.memory_space<vmem>>, vector<1x64x128xf32>
    %2 = vector.shape_cast %1 : vector<1x64x128xf32> to vector<64x128xf32>
    %cst = arith.constant dense<0.000000e+00> : vector<64x128xf32>
    %3 = tpu.matmul %0, %2, %cst {dimension_numbers = #tpu.dot_dimension_numbers<[1], [0], [0], [1], [0, 0, 1, 1], [], []>} : vector<64x64xf32>, vector<64x128xf32>, vector<64x128xf32> -> vector<64x128xf32>
    %c0_4 = arith.constant 0 : index
    %c0_5 = arith.constant 0 : index
    %c0_6 = arith.constant 0 : index
    %4 = vector.load %arg5[%c0_4, %c0_5, %c0_6] : memref<2x1x128xf32, #tpu.memory_space<vmem>>, vector<1x1x128xf32>
    %5 = vector.shape_cast %4 : vector<1x1x128xf32> to vector<1x128xf32>
    %6 = vector.broadcast %5 : vector<1x128xf32> to vector<64x128xf32>
    %7 = arith.addf %3, %6 : vector<64x128xf32>
    %c0_7 = arith.constant 0 : index
    %c0_8 = arith.constant 0 : index
    %c0_9 = arith.constant 0 : index
    %8 = vector.load %arg8[%c0_7, %c0_8, %c0_9] : memref<2x64x128xf32, #tpu.memory_space<vmem>>, vector<1x64x128xf32>
    %9 = vector.shape_cast %8 : vector<1x64x128xf32> to vector<64x128xf32>
    %10 = vector.shape_cast %7 : vector<64x128xf32> to vector<1x64x128xf32>
    tpu.vector_store %arg8[%c0_7, %c0_8, %c0_9], %10 {strides = array<i32>} : memref<2x64x128xf32, #tpu.memory_space<vmem>>, vector<1x64x128xf32>,
    %c1 = arith.constant 1 : index
    %c0_10 = arith.constant 0 : index
    %c0_11 = arith.constant 0 : index
    %11 = vector.load %arg3[%c1, %c0_10, %c0_11] : memref<2x64x128xf32, #tpu.memory_space<vmem>>, vector<1x64x128xf32>
    %12 = vector.shape_cast %11 : vector<1x64x128xf32> to vector<64x128xf32>
    %cst_12 = arith.constant dense<0.000000e+00> : vector<64x128xf32>
    %13 = tpu.matmul %0, %12, %cst_12 {dimension_numbers = #tpu.dot_dimension_numbers<[1], [0], [0], [1], [0, 0, 1, 1], [], []>} : vector<64x64xf32>, vector<64x128xf32>, vector<64x128xf32> -> vector<64x128xf32>
    %c1_13 = arith.constant 1 : index
    %c0_14 = arith.constant 0 : index
    %c0_15 = arith.constant 0 : index
    %14 = vector.load %arg5[%c1_13, %c0_14, %c0_15] : memref<2x1x128xf32, #tpu.memory_space<vmem>>, vector<1x1x128xf32>
    %15 = vector.shape_cast %14 : vector<1x1x128xf32> to vector<1x128xf32>
    %16 = vector.broadcast %15 : vector<1x128xf32> to vector<64x128xf32>
    %17 = arith.addf %13, %16 : vector<64x128xf32>
    %c1_16 = arith.constant 1 : index
    %c0_17 = arith.constant 0 : index
    %c0_18 = arith.constant 0 : index
    %18 = vector.load %arg8[%c1_16, %c0_17, %c0_18] : memref<2x64x128xf32, #tpu.memory_space<vmem>>, vector<1x64x128xf32>
    %19 = vector.shape_cast %18 : vector<1x64x128xf32> to vector<64x128xf32>
    %20 = vector.shape_cast %17 : vector<64x128xf32> to vector<1x64x128xf32>
    tpu.vector_store %arg8[%c1_16, %c0_17, %c0_18], %20 {strides = array<i32>} : memref<2x64x128xf32, #tpu.memory_space<vmem>>, vector<1x64x128xf32>,
    %c0_19 = arith.constant 0 : index
    %c0_20 = arith.constant 0 : index
    %c0_21 = arith.constant 0 : index
    %21 = vector.load %arg4[%c0_19, %c0_20, %c0_21] : memref<2x32x128xf32, #tpu.memory_space<vmem>>, vector<1x32x128xf32>
    %22 = vector.shape_cast %21 : vector<1x32x128xf32> to vector<32x128xf32>
    %c1_22 = arith.constant 1 : index
    %c0_23 = arith.constant 0 : index
    %c0_24 = arith.constant 0 : index
    %23 = vector.load %arg4[%c1_22, %c0_23, %c0_24] : memref<2x32x128xf32, #tpu.memory_space<vmem>>, vector<1x32x128xf32>
    %24 = vector.shape_cast %23 : vector<1x32x128xf32> to vector<32x128xf32>
    %c0_25 = arith.constant 0 : index
    %c0_26 = arith.constant 0 : index
    %25 = vector.load %arg1[%c0_25, %c0_26] : memref<8x1xi32, #tpu.memory_space<vmem>>, vector<8x1xi32>
    %26 = vector.shape_cast %25 : vector<8x1xi32> to vector<8x1xi32>
    %27 = vector.broadcast %26 : vector<8x1xi32> to vector<8x32xi32>
    %c0_27 = arith.constant 0 : index
    %c0_28 = arith.constant 0 : index
    %28 = vector.load %arg2[%c0_27, %c0_28] : memref<8x64xf32, #tpu.memory_space<vmem>>, vector<8x64xf32>
    %29 = vector.extract_strided_slice %28 {offsets = [0, 0], sizes = [8, 32], strides = [1, 1]} : vector<8x64xf32> to vector<8x32xf32>
    %30 = vector.extract_strided_slice %28 {offsets = [0, 32], sizes = [8, 32], strides = [1, 1]} : vector<8x64xf32> to vector<8x32xf32>
    %cst_29 = arith.constant 0.000000e+00 : f32
    %31 = vector.broadcast %cst_29 : f32 to vector<8x32xf32>
    %c0_i32 = arith.constant 0 : i32
    %c7_i32 = arith.constant 7 : i32
    %32 = arith.subi %c7_i32, %c0_i32 : i32
    %c8_i32 = arith.constant 8 : i32
    %33 = arith.muli %c0_i32, %c8_i32 : i32
    %34 = tpu.assume_multiple %33, 8 : i32
    %c8_i32_30 = arith.constant 8 : i32
    %35 = arith.muli %32, %c8_i32_30 : i32
    %36 = tpu.assume_multiple %35, 8 : i32
    %c0_31 = arith.constant 0 : index
    %37 = arith.index_cast %34 : i32 to index
    %c0_32 = arith.constant 0 : index
    %38 = vector.load %arg8[%c0_31, %37, %c0_32] : memref<2x64x128xf32, #tpu.memory_space<vmem>>, vector<1x8x128xf32>
    %39 = vector.shape_cast %38 : vector<1x8x128xf32> to vector<8x128xf32>
    %c1_33 = arith.constant 1 : index
    %40 = arith.index_cast %36 : i32 to index
    %c0_34 = arith.constant 0 : index
    %41 = vector.load %arg8[%c1_33, %40, %c0_34] : memref<2x64x128xf32, #tpu.memory_space<vmem>>, vector<1x8x128xf32>
    %42 = vector.shape_cast %41 : vector<1x8x128xf32> to vector<8x128xf32>
    %cst_35 = arith.constant dense<0.000000e+00> : vector<8x128xf32>
    %43 = tpu.matmul %29, %22, %cst_35 {dimension_numbers = #tpu.dot_dimension_numbers<[1], [0], [0], [1], [0, 0, 1, 1], [], []>} : vector<8x32xf32>, vector<32x128xf32>, vector<8x128xf32> -> vector<8x128xf32>
    %cst_36 = arith.constant dense<0.000000e+00> : vector<8x128xf32>
    %44 = tpu.matmul %30, %24, %cst_36 {dimension_numbers = #tpu.dot_dimension_numbers<[1], [0], [0], [1], [0, 0, 1, 1], [], []>} : vector<8x32xf32>, vector<32x128xf32>, vector<8x128xf32> -> vector<8x128xf32>
    %45 = vector.extract_strided_slice %39 {offsets = [0, 0], sizes = [8, 32], strides = [1, 1]} : vector<8x128xf32> to vector<8x32xf32>
    %46 = vector.extract_strided_slice %43 {offsets = [0, 0], sizes = [8, 32], strides = [1, 1]} : vector<8x128xf32> to vector<8x32xf32>
    %47 = arith.addf %45, %46 : vector<8x32xf32>
    %48 = arith.negf %47 : vector<8x32xf32>
    %49 = math.exp %48 : vector<8x32xf32>
    %cst_37 = arith.constant 1.000000e+00 : f32
    %50 = vector.broadcast %cst_37 : f32 to vector<8x32xf32>
    %51 = arith.addf %50, %49 : vector<8x32xf32>
    %52 = arith.divf %50, %51 : vector<8x32xf32>
    %53 = vector.extract_strided_slice %39 {offsets = [0, 32], sizes = [8, 32], strides = [1, 1]} : vector<8x128xf32> to vector<8x32xf32>
    %54 = vector.extract_strided_slice %43 {offsets = [0, 32], sizes = [8, 32], strides = [1, 1]} : vector<8x128xf32> to vector<8x32xf32>
    %55 = arith.addf %53, %54 : vector<8x32xf32>
    %56 = arith.negf %55 : vector<8x32xf32>
    %57 = math.exp %56 : vector<8x32xf32>
    %cst_38 = arith.constant 1.000000e+00 : f32
    %58 = vector.broadcast %cst_38 : f32 to vector<8x32xf32>
    %59 = arith.addf %58, %57 : vector<8x32xf32>
    %60 = arith.divf %58, %59 : vector<8x32xf32>
    %61 = vector.extract_strided_slice %39 {offsets = [0, 64], sizes = [8, 32], strides = [1, 1]} : vector<8x128xf32> to vector<8x32xf32>
    %62 = vector.extract_strided_slice %43 {offsets = [0, 64], sizes = [8, 32], strides = [1, 1]} : vector<8x128xf32> to vector<8x32xf32>
    %63 = arith.addf %61, %62 : vector<8x32xf32>
    %64 = math.tanh %63 : vector<8x32xf32>
    %65 = vector.extract_strided_slice %39 {offsets = [0, 96], sizes = [8, 32], strides = [1, 1]} : vector<8x128xf32> to vector<8x32xf32>
    %66 = vector.extract_strided_slice %43 {offsets = [0, 96], sizes = [8, 32], strides = [1, 1]} : vector<8x128xf32> to vector<8x32xf32>
    %67 = arith.addf %65, %66 : vector<8x32xf32>
    %68 = arith.negf %67 : vector<8x32xf32>
    %69 = math.exp %68 : vector<8x32xf32>
    %cst_39 = arith.constant 1.000000e+00 : f32
    %70 = vector.broadcast %cst_39 : f32 to vector<8x32xf32>
    %71 = arith.addf %70, %69 : vector<8x32xf32>
    %72 = arith.divf %70, %71 : vector<8x32xf32>
    %73 = arith.mulf %60, %31 : vector<8x32xf32>
    %74 = arith.mulf %52, %64 : vector<8x32xf32>
    %75 = arith.addf %73, %74 : vector<8x32xf32>
    %76 = math.tanh %75 : vector<8x32xf32>
    %77 = arith.mulf %72, %76 : vector<8x32xf32>
    %78 = vector.extract_strided_slice %42 {offsets = [0, 0], sizes = [8, 32], strides = [1, 1]} : vector<8x128xf32> to vector<8x32xf32>
    %79 = vector.extract_strided_slice %44 {offsets = [0, 0], sizes = [8, 32], strides = [1, 1]} : vector<8x128xf32> to vector<8x32xf32>
    %80 = arith.addf %78, %79 : vector<8x32xf32>
    %81 = arith.negf %80 : vector<8x32xf32>
    %82 = math.exp %81 : vector<8x32xf32>
    %cst_40 = arith.constant 1.000000e+00 : f32
    %83 = vector.broadcast %cst_40 : f32 to vector<8x32xf32>
    %84 = arith.addf %83, %82 : vector<8x32xf32>
    %85 = arith.divf %83, %84 : vector<8x32xf32>
    %86 = vector.extract_strided_slice %42 {offsets = [0, 32], sizes = [8, 32], strides = [1, 1]} : vector<8x128xf32> to vector<8x32xf32>
    %87 = vector.extract_strided_slice %44 {offsets = [0, 32], sizes = [8, 32], strides = [1, 1]} : vector<8x128xf32> to vector<8x32xf32>
    %88 = arith.addf %86, %87 : vector<8x32xf32>
    %89 = arith.negf %88 : vector<8x32xf32>
    %90 = math.exp %89 : vector<8x32xf32>
    %cst_41 = arith.constant 1.000000e+00 : f32
    %91 = vector.broadcast %cst_41 : f32 to vector<8x32xf32>
    %92 = arith.addf %91, %90 : vector<8x32xf32>
    %93 = arith.divf %91, %92 : vector<8x32xf32>
    %94 = vector.extract_strided_slice %42 {offsets = [0, 64], sizes = [8, 32], strides = [1, 1]} : vector<8x128xf32> to vector<8x32xf32>
    %95 = vector.extract_strided_slice %44 {offsets = [0, 64], sizes = [8, 32], strides = [1, 1]} : vector<8x128xf32> to vector<8x32xf32>
    %96 = arith.addf %94, %95 : vector<8x32xf32>
    %97 = math.tanh %96 : vector<8x32xf32>
    %98 = vector.extract_strided_slice %42 {offsets = [0, 96], sizes = [8, 32], strides = [1, 1]} : vector<8x128xf32> to vector<8x32xf32>
    %99 = vector.extract_strided_slice %44 {offsets = [0, 96], sizes = [8, 32], strides = [1, 1]} : vector<8x128xf32> to vector<8x32xf32>
    %100 = arith.addf %98, %99 : vector<8x32xf32>
    %101 = arith.negf %100 : vector<8x32xf32>
    %102 = math.exp %101 : vector<8x32xf32>
    %cst_42 = arith.constant 1.000000e+00 : f32
    %103 = vector.broadcast %cst_42 : f32 to vector<8x32xf32>
    %104 = arith.addf %103, %102 : vector<8x32xf32>
    %105 = arith.divf %103, %104 : vector<8x32xf32>
    %106 = arith.mulf %93, %31 : vector<8x32xf32>
    %107 = arith.mulf %85, %97 : vector<8x32xf32>
    %108 = arith.addf %106, %107 : vector<8x32xf32>
    %109 = math.tanh %108 : vector<8x32xf32>
    %110 = arith.mulf %105, %109 : vector<8x32xf32>
    %111 = vector.broadcast %c0_i32 : i32 to vector<8x32xi32>
    %112 = arith.cmpi slt, %111, %27 : vector<8x32xi32>
    %113 = vector.broadcast %32 : i32 to vector<8x32xi32>
    %114 = arith.cmpi slt, %113, %27 : vector<8x32xi32>
    %115 = arith.select %112, %77, %29 : vector<8x32xi1>, vector<8x32xf32>
    %116 = arith.select %112, %75, %31 : vector<8x32xi1>, vector<8x32xf32>
    %117 = arith.select %114, %110, %30 : vector<8x32xi1>, vector<8x32xf32>
    %118 = arith.select %114, %108, %31 : vector<8x32xi1>, vector<8x32xf32>
    %119 = arith.index_cast %c0_i32 : i32 to index
    %c0_43 = arith.constant 0 : index
    %c0_44 = arith.constant 0 : index
    %120 = vector.load %arg6[%119, %c0_43, %c0_44] : memref<8x8x64xf32, #tpu.memory_space<vmem>>, vector<1x8x32xf32>
    %121 = vector.shape_cast %120 : vector<1x8x32xf32> to vector<8x32xf32>
    %122 = vector.shape_cast %115 : vector<8x32xf32> to vector<1x8x32xf32>
    tpu.vector_store %arg6[%119, %c0_43, %c0_44], %122 {strides = array<i32>} : memref<8x8x64xf32, #tpu.memory_space<vmem>>, vector<1x8x32xf32>,
    %123 = arith.index_cast %32 : i32 to index
    %c0_45 = arith.constant 0 : index
    %c32 = arith.constant 32 : index
    %124 = vector.load %arg6[%123, %c0_45, %c32] : memref<8x8x64xf32, #tpu.memory_space<vmem>>, vector<1x8x32xf32>
    %125 = vector.shape_cast %124 : vector<1x8x32xf32> to vector<8x32xf32>
    %126 = vector.shape_cast %117 : vector<8x32xf32> to vector<1x8x32xf32>
    tpu.vector_store %arg6[%123, %c0_45, %c32], %126 {strides = array<i32>} : memref<8x8x64xf32, #tpu.memory_space<vmem>>, vector<1x8x32xf32>,
    %c1_i32 = arith.constant 1 : i32
    %c7_i32_46 = arith.constant 7 : i32
    %127 = arith.subi %c7_i32_46, %c1_i32 : i32
    %c8_i32_47 = arith.constant 8 : i32
    %128 = arith.muli %c1_i32, %c8_i32_47 : i32
    %129 = tpu.assume_multiple %128, 8 : i32
    %c8_i32_48 = arith.constant 8 : i32
    %130 = arith.muli %127, %c8_i32_48 : i32
    %131 = tpu.assume_multiple %130, 8 : i32
    %c0_49 = arith.constant 0 : index
    %132 = arith.index_cast %129 : i32 to index
    %c0_50 = arith.constant 0 : index
    %133 = vector.load %arg8[%c0_49, %132, %c0_50] : memref<2x64x128xf32, #tpu.memory_space<vmem>>, vector<1x8x128xf32>
    %134 = vector.shape_cast %133 : vector<1x8x128xf32> to vector<8x128xf32>
    %c1_51 = arith.constant 1 : index
    %135 = arith.index_cast %131 : i32 to index
    %c0_52 = arith.constant 0 : index
    %136 = vector.load %arg8[%c1_51, %135, %c0_52] : memref<2x64x128xf32, #tpu.memory_space<vmem>>, vector<1x8x128xf32>
    %137 = vector.shape_cast %136 : vector<1x8x128xf32> to vector<8x128xf32>
    %cst_53 = arith.constant dense<0.000000e+00> : vector<8x128xf32>
    %138 = tpu.matmul %115, %22, %cst_53 {dimension_numbers = #tpu.dot_dimension_numbers<[1], [0], [0], [1], [0, 0, 1, 1], [], []>} : vector<8x32xf32>, vector<32x128xf32>, vector<8x128xf32> -> vector<8x128xf32>
    %cst_54 = arith.constant dense<0.000000e+00> : vector<8x128xf32>
    %139 = tpu.matmul %117, %24, %cst_54 {dimension_numbers = #tpu.dot_dimension_numbers<[1], [0], [0], [1], [0, 0, 1, 1], [], []>} : vector<8x32xf32>, vector<32x128xf32>, vector<8x128xf32> -> vector<8x128xf32>
    %140 = vector.extract_strided_slice %134 {offsets = [0, 0], sizes = [8, 32], strides = [1, 1]} : vector<8x128xf32> to vector<8x32xf32>
    %141 = vector.extract_strided_slice %138 {offsets = [0, 0], sizes = [8, 32], strides = [1, 1]} : vector<8x128xf32> to vector<8x32xf32>
    %142 = arith.addf %140, %141 : vector<8x32xf32>
    %143 = arith.negf %142 : vector<8x32xf32>
    %144 = math.exp %143 : vector<8x32xf32>
    %cst_55 = arith.constant 1.000000e+00 : f32
    %145 = vector.broadcast %cst_55 : f32 to vector<8x32xf32>
    %146 = arith.addf %145, %144 : vector<8x32xf32>
    %147 = arith.divf %145, %146 : vector<8x32xf32>
    %148 = vector.extract_strided_slice %134 {offsets = [0, 32], sizes = [8, 32], strides = [1, 1]} : vector<8x128xf32> to vector<8x32xf32>
    %149 = vector.extract_strided_slice %138 {offsets = [0, 32], sizes = [8, 32], strides = [1, 1]} : vector<8x128xf32> to vector<8x32xf32>
    %150 = arith.addf %148, %149 : vector<8x32xf32>
    %151 = arith.negf %150 : vector<8x32xf32>
    %152 = math.exp %151 : vector<8x32xf32>
    %cst_56 = arith.constant 1.000000e+00 : f32
    %153 = vector.broadcast %cst_56 : f32 to vector<8x32xf32>
    %154 = arith.addf %153, %152 : vector<8x32xf32>
    %155 = arith.divf %153, %154 : vector<8x32xf32>
    %156 = vector.extract_strided_slice %134 {offsets = [0, 64], sizes = [8, 32], strides = [1, 1]} : vector<8x128xf32> to vector<8x32xf32>
    %157 = vector.extract_strided_slice %138 {offsets = [0, 64], sizes = [8, 32], strides = [1, 1]} : vector<8x128xf32> to vector<8x32xf32>
    %158 = arith.addf %156, %157 : vector<8x32xf32>
    %159 = math.tanh %158 : vector<8x32xf32>
    %160 = vector.extract_strided_slice %134 {offsets = [0, 96], sizes = [8, 32], strides = [1, 1]} : vector<8x128xf32> to vector<8x32xf32>
    %161 = vector.extract_strided_slice %138 {offsets = [0, 96], sizes = [8, 32], strides = [1, 1]} : vector<8x128xf32> to vector<8x32xf32>
    %162 = arith.addf %160, %161 : vector<8x32xf32>
    %163 = arith.negf %162 : vector<8x32xf32>
    %164 = math.exp %163 : vector<8x32xf32>
    %cst_57 = arith.constant 1.000000e+00 : f32
    %165 = vector.broadcast %cst_57 : f32 to vector<8x32xf32>
    %166 = arith.addf %165, %164 : vector<8x32xf32>
    %167 = arith.divf %165, %166 : vector<8x32xf32>
    %168 = arith.mulf %155, %116 : vector<8x32xf32>
    %169 = arith.mulf %147, %159 : vector<8x32xf32>
    %170 = arith.addf %168, %169 : vector<8x32xf32>
    %171 = math.tanh %170 : vector<8x32xf32>
    %172 = arith.mulf %167, %171 : vector<8x32xf32>
    %173 = vector.extract_strided_slice %137 {offsets = [0, 0], sizes = [8, 32], strides = [1, 1]} : vector<8x128xf32> to vector<8x32xf32>
    %174 = vector.extract_strided_slice %139 {offsets = [0, 0], sizes = [8, 32], strides = [1, 1]} : vector<8x128xf32> to vector<8x32xf32>
    %175 = arith.addf %173, %174 : vector<8x32xf32>
    %176 = arith.negf %175 : vector<8x32xf32>
    %177 = math.exp %176 : vector<8x32xf32>
    %cst_58 = arith.constant 1.000000e+00 : f32
    %178 = vector.broadcast %cst_58 : f32 to vector<8x32xf32>
    %179 = arith.addf %178, %177 : vector<8x32xf32>
    %180 = arith.divf %178, %179 : vector<8x32xf32>
    %181 = vector.extract_strided_slice %137 {offsets = [0, 32], sizes = [8, 32], strides = [1, 1]} : vector<8x128xf32> to vector<8x32xf32>
    %182 = vector.extract_strided_slice %139 {offsets = [0, 32], sizes = [8, 32], strides = [1, 1]} : vector<8x128xf32> to vector<8x32xf32>
    %183 = arith.addf %181, %182 : vector<8x32xf32>
    %184 = arith.negf %183 : vector<8x32xf32>
    %185 = math.exp %184 : vector<8x32xf32>
    %cst_59 = arith.constant 1.000000e+00 : f32
    %186 = vector.broadcast %cst_59 : f32 to vector<8x32xf32>
    %187 = arith.addf %186, %185 : vector<8x32xf32>
    %188 = arith.divf %186, %187 : vector<8x32xf32>
    %189 = vector.extract_strided_slice %137 {offsets = [0, 64], sizes = [8, 32], strides = [1, 1]} : vector<8x128xf32> to vector<8x32xf32>
    %190 = vector.extract_strided_slice %139 {offsets = [0, 64], sizes = [8, 32], strides = [1, 1]} : vector<8x128xf32> to vector<8x32xf32>
    %191 = arith.addf %189, %190 : vector<8x32xf32>
    %192 = math.tanh %191 : vector<8x32xf32>
    %193 = vector.extract_strided_slice %137 {offsets = [0, 96], sizes = [8, 32], strides = [1, 1]} : vector<8x128xf32> to vector<8x32xf32>
    %194 = vector.extract_strided_slice %139 {offsets = [0, 96], sizes = [8, 32], strides = [1, 1]} : vector<8x128xf32> to vector<8x32xf32>
    %195 = arith.addf %193, %194 : vector<8x32xf32>
    %196 = arith.negf %195 : vector<8x32xf32>
    %197 = math.exp %196 : vector<8x32xf32>
    %cst_60 = arith.constant 1.000000e+00 : f32
    %198 = vector.broadcast %cst_60 : f32 to vector<8x32xf32>
    %199 = arith.addf %198, %197 : vector<8x32xf32>
    %200 = arith.divf %198, %199 : vector<8x32xf32>
    %201 = arith.mulf %188, %118 : vector<8x32xf32>
    %202 = arith.mulf %180, %192 : vector<8x32xf32>
    %203 = arith.addf %201, %202 : vector<8x32xf32>
    %204 = math.tanh %203 : vector<8x32xf32>
    %205 = arith.mulf %200, %204 : vector<8x32xf32>
    %206 = vector.broadcast %c1_i32 : i32 to vector<8x32xi32>
    %207 = arith.cmpi slt, %206, %27 : vector<8x32xi32>
    %208 = vector.broadcast %127 : i32 to vector<8x32xi32>
    %209 = arith.cmpi slt, %208, %27 : vector<8x32xi32>
    %210 = arith.select %207, %172, %115 : vector<8x32xi1>, vector<8x32xf32>
    %211 = arith.select %207, %170, %116 : vector<8x32xi1>, vector<8x32xf32>
    %212 = arith.select %209, %205, %117 : vector<8x32xi1>, vector<8x32xf32>
    %213 = arith.select %209, %203, %118 : vector<8x32xi1>, vector<8x32xf32>
    %214 = arith.index_cast %c1_i32 : i32 to index
    %c0_61 = arith.constant 0 : index
    %c0_62 = arith.constant 0 : index
    %215 = vector.load %arg6[%214, %c0_61, %c0_62] : memref<8x8x64xf32, #tpu.memory_space<vmem>>, vector<1x8x32xf32>
    %216 = vector.shape_cast %215 : vector<1x8x32xf32> to vector<8x32xf32>
    %217 = vector.shape_cast %210 : vector<8x32xf32> to vector<1x8x32xf32>
    tpu.vector_store %arg6[%214, %c0_61, %c0_62], %217 {strides = array<i32>} : memref<8x8x64xf32, #tpu.memory_space<vmem>>, vector<1x8x32xf32>,
    %218 = arith.index_cast %127 : i32 to index
    %c0_63 = arith.constant 0 : index
    %c32_64 = arith.constant 32 : index
    %219 = vector.load %arg6[%218, %c0_63, %c32_64] : memref<8x8x64xf32, #tpu.memory_space<vmem>>, vector<1x8x32xf32>
    %220 = vector.shape_cast %219 : vector<1x8x32xf32> to vector<8x32xf32>
    %221 = vector.shape_cast %212 : vector<8x32xf32> to vector<1x8x32xf32>
    tpu.vector_store %arg6[%218, %c0_63, %c32_64], %221 {strides = array<i32>} : memref<8x8x64xf32, #tpu.memory_space<vmem>>, vector<1x8x32xf32>,
    %c2_i32 = arith.constant 2 : i32
    %c7_i32_65 = arith.constant 7 : i32
    %222 = arith.subi %c7_i32_65, %c2_i32 : i32
    %c8_i32_66 = arith.constant 8 : i32
    %223 = arith.muli %c2_i32, %c8_i32_66 : i32
    %224 = tpu.assume_multiple %223, 8 : i32
    %c8_i32_67 = arith.constant 8 : i32
    %225 = arith.muli %222, %c8_i32_67 : i32
    %226 = tpu.assume_multiple %225, 8 : i32
    %c0_68 = arith.constant 0 : index
    %227 = arith.index_cast %224 : i32 to index
    %c0_69 = arith.constant 0 : index
    %228 = vector.load %arg8[%c0_68, %227, %c0_69] : memref<2x64x128xf32, #tpu.memory_space<vmem>>, vector<1x8x128xf32>
    %229 = vector.shape_cast %228 : vector<1x8x128xf32> to vector<8x128xf32>
    %c1_70 = arith.constant 1 : index
    %230 = arith.index_cast %226 : i32 to index
    %c0_71 = arith.constant 0 : index
    %231 = vector.load %arg8[%c1_70, %230, %c0_71] : memref<2x64x128xf32, #tpu.memory_space<vmem>>, vector<1x8x128xf32>
    %232 = vector.shape_cast %231 : vector<1x8x128xf32> to vector<8x128xf32>
    %cst_72 = arith.constant dense<0.000000e+00> : vector<8x128xf32>
    %233 = tpu.matmul %210, %22, %cst_72 {dimension_numbers = #tpu.dot_dimension_numbers<[1], [0], [0], [1], [0, 0, 1, 1], [], []>} : vector<8x32xf32>, vector<32x128xf32>, vector<8x128xf32> -> vector<8x128xf32>
    %cst_73 = arith.constant dense<0.000000e+00> : vector<8x128xf32>
    %234 = tpu.matmul %212, %24, %cst_73 {dimension_numbers = #tpu.dot_dimension_numbers<[1], [0], [0], [1], [0, 0, 1, 1], [], []>} : vector<8x32xf32>, vector<32x128xf32>, vector<8x128xf32> -> vector<8x128xf32>
    %235 = vector.extract_strided_slice %229 {offsets = [0, 0], sizes = [8, 32], strides = [1, 1]} : vector<8x128xf32> to vector<8x32xf32>
    %236 = vector.extract_strided_slice %233 {offsets = [0, 0], sizes = [8, 32], strides = [1, 1]} : vector<8x128xf32> to vector<8x32xf32>
    %237 = arith.addf %235, %236 : vector<8x32xf32>
    %238 = arith.negf %237 : vector<8x32xf32>
    %239 = math.exp %238 : vector<8x32xf32>
    %cst_74 = arith.constant 1.000000e+00 : f32
    %240 = vector.broadcast %cst_74 : f32 to vector<8x32xf32>
    %241 = arith.addf %240, %239 : vector<8x32xf32>
    %242 = arith.divf %240, %241 : vector<8x32xf32>
    %243 = vector.extract_strided_slice %229 {offsets = [0, 32], sizes = [8, 32], strides = [1, 1]} : vector<8x128xf32> to vector<8x32xf32>
    %244 = vector.extract_strided_slice %233 {offsets = [0, 32], sizes = [8, 32], strides = [1, 1]} : vector<8x128xf32> to vector<8x32xf32>
    %245 = arith.addf %243, %244 : vector<8x32xf32>
    %246 = arith.negf %245 : vector<8x32xf32>
    %247 = math.exp %246 : vector<8x32xf32>
    %cst_75 = arith.constant 1.000000e+00 : f32
    %248 = vector.broadcast %cst_75 : f32 to vector<8x32xf32>
    %249 = arith.addf %248, %247 : vector<8x32xf32>
    %250 = arith.divf %248, %249 : vector<8x32xf32>
    %251 = vector.extract_strided_slice %229 {offsets = [0, 64], sizes = [8, 32], strides = [1, 1]} : vector<8x128xf32> to vector<8x32xf32>
    %252 = vector.extract_strided_slice %233 {offsets = [0, 64], sizes = [8, 32], strides = [1, 1]} : vector<8x128xf32> to vector<8x32xf32>
    %253 = arith.addf %251, %252 : vector<8x32xf32>
    %254 = math.tanh %253 : vector<8x32xf32>
    %255 = vector.extract_strided_slice %229 {offsets = [0, 96], sizes = [8, 32], strides = [1, 1]} : vector<8x128xf32> to vector<8x32xf32>
    %256 = vector.extract_strided_slice %233 {offsets = [0, 96], sizes = [8, 32], strides = [1, 1]} : vector<8x128xf32> to vector<8x32xf32>
    %257 = arith.addf %255, %256 : vector<8x32xf32>
    %258 = arith.negf %257 : vector<8x32xf32>
    %259 = math.exp %258 : vector<8x32xf32>
    %cst_76 = arith.constant 1.000000e+00 : f32
    %260 = vector.broadcast %cst_76 : f32 to vector<8x32xf32>
    %261 = arith.addf %260, %259 : vector<8x32xf32>
    %262 = arith.divf %260, %261 : vector<8x32xf32>
    %263 = arith.mulf %250, %211 : vector<8x32xf32>
    %264 = arith.mulf %242, %254 : vector<8x32xf32>
    %265 = arith.addf %263, %264 : vector<8x32xf32>
    %266 = math.tanh %265 : vector<8x32xf32>
    %267 = arith.mulf %262, %266 : vector<8x32xf32>
    %268 = vector.extract_strided_slice %232 {offsets = [0, 0], sizes = [8, 32], strides = [1, 1]} : vector<8x128xf32> to vector<8x32xf32>
    %269 = vector.extract_strided_slice %234 {offsets = [0, 0], sizes = [8, 32], strides = [1, 1]} : vector<8x128xf32> to vector<8x32xf32>
    %270 = arith.addf %268, %269 : vector<8x32xf32>
    %271 = arith.negf %270 : vector<8x32xf32>
    %272 = math.exp %271 : vector<8x32xf32>
    %cst_77 = arith.constant 1.000000e+00 : f32
    %273 = vector.broadcast %cst_77 : f32 to vector<8x32xf32>
    %274 = arith.addf %273, %272 : vector<8x32xf32>
    %275 = arith.divf %273, %274 : vector<8x32xf32>
    %276 = vector.extract_strided_slice %232 {offsets = [0, 32], sizes = [8, 32], strides = [1, 1]} : vector<8x128xf32> to vector<8x32xf32>
    %277 = vector.extract_strided_slice %234 {offsets = [0, 32], sizes = [8, 32], strides = [1, 1]} : vector<8x128xf32> to vector<8x32xf32>
    %278 = arith.addf %276, %277 : vector<8x32xf32>
    %279 = arith.negf %278 : vector<8x32xf32>
    %280 = math.exp %279 : vector<8x32xf32>
    %cst_78 = arith.constant 1.000000e+00 : f32
    %281 = vector.broadcast %cst_78 : f32 to vector<8x32xf32>
    %282 = arith.addf %281, %280 : vector<8x32xf32>
    %283 = arith.divf %281, %282 : vector<8x32xf32>
    %284 = vector.extract_strided_slice %232 {offsets = [0, 64], sizes = [8, 32], strides = [1, 1]} : vector<8x128xf32> to vector<8x32xf32>
    %285 = vector.extract_strided_slice %234 {offsets = [0, 64], sizes = [8, 32], strides = [1, 1]} : vector<8x128xf32> to vector<8x32xf32>
    %286 = arith.addf %284, %285 : vector<8x32xf32>
    %287 = math.tanh %286 : vector<8x32xf32>
    %288 = vector.extract_strided_slice %232 {offsets = [0, 96], sizes = [8, 32], strides = [1, 1]} : vector<8x128xf32> to vector<8x32xf32>
    %289 = vector.extract_strided_slice %234 {offsets = [0, 96], sizes = [8, 32], strides = [1, 1]} : vector<8x128xf32> to vector<8x32xf32>
    %290 = arith.addf %288, %289 : vector<8x32xf32>
    %291 = arith.negf %290 : vector<8x32xf32>
    %292 = math.exp %291 : vector<8x32xf32>
    %cst_79 = arith.constant 1.000000e+00 : f32
    %293 = vector.broadcast %cst_79 : f32 to vector<8x32xf32>
    %294 = arith.addf %293, %292 : vector<8x32xf32>
    %295 = arith.divf %293, %294 : vector<8x32xf32>
    %296 = arith.mulf %283, %213 : vector<8x32xf32>
    %297 = arith.mulf %275, %287 : vector<8x32xf32>
    %298 = arith.addf %296, %297 : vector<8x32xf32>
    %299 = math.tanh %298 : vector<8x32xf32>
    %300 = arith.mulf %295, %299 : vector<8x32xf32>
    %301 = vector.broadcast %c2_i32 : i32 to vector<8x32xi32>
    %302 = arith.cmpi slt, %301, %27 : vector<8x32xi32>
    %303 = vector.broadcast %222 : i32 to vector<8x32xi32>
    %304 = arith.cmpi slt, %303, %27 : vector<8x32xi32>
    %305 = arith.select %302, %267, %210 : vector<8x32xi1>, vector<8x32xf32>
    %306 = arith.select %302, %265, %211 : vector<8x32xi1>, vector<8x32xf32>
    %307 = arith.select %304, %300, %212 : vector<8x32xi1>, vector<8x32xf32>
    %308 = arith.select %304, %298, %213 : vector<8x32xi1>, vector<8x32xf32>
    %309 = arith.index_cast %c2_i32 : i32 to index
    %c0_80 = arith.constant 0 : index
    %c0_81 = arith.constant 0 : index
    %310 = vector.load %arg6[%309, %c0_80, %c0_81] : memref<8x8x64xf32, #tpu.memory_space<vmem>>, vector<1x8x32xf32>
    %311 = vector.shape_cast %310 : vector<1x8x32xf32> to vector<8x32xf32>
    %312 = vector.shape_cast %305 : vector<8x32xf32> to vector<1x8x32xf32>
    tpu.vector_store %arg6[%309, %c0_80, %c0_81], %312 {strides = array<i32>} : memref<8x8x64xf32, #tpu.memory_space<vmem>>, vector<1x8x32xf32>,
    %313 = arith.index_cast %222 : i32 to index
    %c0_82 = arith.constant 0 : index
    %c32_83 = arith.constant 32 : index
    %314 = vector.load %arg6[%313, %c0_82, %c32_83] : memref<8x8x64xf32, #tpu.memory_space<vmem>>, vector<1x8x32xf32>
    %315 = vector.shape_cast %314 : vector<1x8x32xf32> to vector<8x32xf32>
    %316 = vector.shape_cast %307 : vector<8x32xf32> to vector<1x8x32xf32>
    tpu.vector_store %arg6[%313, %c0_82, %c32_83], %316 {strides = array<i32>} : memref<8x8x64xf32, #tpu.memory_space<vmem>>, vector<1x8x32xf32>,
    %c3_i32 = arith.constant 3 : i32
    %c7_i32_84 = arith.constant 7 : i32
    %317 = arith.subi %c7_i32_84, %c3_i32 : i32
    %c8_i32_85 = arith.constant 8 : i32
    %318 = arith.muli %c3_i32, %c8_i32_85 : i32
    %319 = tpu.assume_multiple %318, 8 : i32
    %c8_i32_86 = arith.constant 8 : i32
    %320 = arith.muli %317, %c8_i32_86 : i32
    %321 = tpu.assume_multiple %320, 8 : i32
    %c0_87 = arith.constant 0 : index
    %322 = arith.index_cast %319 : i32 to index
    %c0_88 = arith.constant 0 : index
    %323 = vector.load %arg8[%c0_87, %322, %c0_88] : memref<2x64x128xf32, #tpu.memory_space<vmem>>, vector<1x8x128xf32>
    %324 = vector.shape_cast %323 : vector<1x8x128xf32> to vector<8x128xf32>
    %c1_89 = arith.constant 1 : index
    %325 = arith.index_cast %321 : i32 to index
    %c0_90 = arith.constant 0 : index
    %326 = vector.load %arg8[%c1_89, %325, %c0_90] : memref<2x64x128xf32, #tpu.memory_space<vmem>>, vector<1x8x128xf32>
    %327 = vector.shape_cast %326 : vector<1x8x128xf32> to vector<8x128xf32>
    %cst_91 = arith.constant dense<0.000000e+00> : vector<8x128xf32>
    %328 = tpu.matmul %305, %22, %cst_91 {dimension_numbers = #tpu.dot_dimension_numbers<[1], [0], [0], [1], [0, 0, 1, 1], [], []>} : vector<8x32xf32>, vector<32x128xf32>, vector<8x128xf32> -> vector<8x128xf32>
    %cst_92 = arith.constant dense<0.000000e+00> : vector<8x128xf32>
    %329 = tpu.matmul %307, %24, %cst_92 {dimension_numbers = #tpu.dot_dimension_numbers<[1], [0], [0], [1], [0, 0, 1, 1], [], []>} : vector<8x32xf32>, vector<32x128xf32>, vector<8x128xf32> -> vector<8x128xf32>
    %330 = vector.extract_strided_slice %324 {offsets = [0, 0], sizes = [8, 32], strides = [1, 1]} : vector<8x128xf32> to vector<8x32xf32>
    %331 = vector.extract_strided_slice %328 {offsets = [0, 0], sizes = [8, 32], strides = [1, 1]} : vector<8x128xf32> to vector<8x32xf32>
    %332 = arith.addf %330, %331 : vector<8x32xf32>
    %333 = arith.negf %332 : vector<8x32xf32>
    %334 = math.exp %333 : vector<8x32xf32>
    %cst_93 = arith.constant 1.000000e+00 : f32
    %335 = vector.broadcast %cst_93 : f32 to vector<8x32xf32>
    %336 = arith.addf %335, %334 : vector<8x32xf32>
    %337 = arith.divf %335, %336 : vector<8x32xf32>
    %338 = vector.extract_strided_slice %324 {offsets = [0, 32], sizes = [8, 32], strides = [1, 1]} : vector<8x128xf32> to vector<8x32xf32>
    %339 = vector.extract_strided_slice %328 {offsets = [0, 32], sizes = [8, 32], strides = [1, 1]} : vector<8x128xf32> to vector<8x32xf32>
    %340 = arith.addf %338, %339 : vector<8x32xf32>
    %341 = arith.negf %340 : vector<8x32xf32>
    %342 = math.exp %341 : vector<8x32xf32>
    %cst_94 = arith.constant 1.000000e+00 : f32
    %343 = vector.broadcast %cst_94 : f32 to vector<8x32xf32>
    %344 = arith.addf %343, %342 : vector<8x32xf32>
    %345 = arith.divf %343, %344 : vector<8x32xf32>
    %346 = vector.extract_strided_slice %324 {offsets = [0, 64], sizes = [8, 32], strides = [1, 1]} : vector<8x128xf32> to vector<8x32xf32>
    %347 = vector.extract_strided_slice %328 {offsets = [0, 64], sizes = [8, 32], strides = [1, 1]} : vector<8x128xf32> to vector<8x32xf32>
    %348 = arith.addf %346, %347 : vector<8x32xf32>
    %349 = math.tanh %348 : vector<8x32xf32>
    %350 = vector.extract_strided_slice %324 {offsets = [0, 96], sizes = [8, 32], strides = [1, 1]} : vector<8x128xf32> to vector<8x32xf32>
    %351 = vector.extract_strided_slice %328 {offsets = [0, 96], sizes = [8, 32], strides = [1, 1]} : vector<8x128xf32> to vector<8x32xf32>
    %352 = arith.addf %350, %351 : vector<8x32xf32>
    %353 = arith.negf %352 : vector<8x32xf32>
    %354 = math.exp %353 : vector<8x32xf32>
    %cst_95 = arith.constant 1.000000e+00 : f32
    %355 = vector.broadcast %cst_95 : f32 to vector<8x32xf32>
    %356 = arith.addf %355, %354 : vector<8x32xf32>
    %357 = arith.divf %355, %356 : vector<8x32xf32>
    %358 = arith.mulf %345, %306 : vector<8x32xf32>
    %359 = arith.mulf %337, %349 : vector<8x32xf32>
    %360 = arith.addf %358, %359 : vector<8x32xf32>
    %361 = math.tanh %360 : vector<8x32xf32>
    %362 = arith.mulf %357, %361 : vector<8x32xf32>
    %363 = vector.extract_strided_slice %327 {offsets = [0, 0], sizes = [8, 32], strides = [1, 1]} : vector<8x128xf32> to vector<8x32xf32>
    %364 = vector.extract_strided_slice %329 {offsets = [0, 0], sizes = [8, 32], strides = [1, 1]} : vector<8x128xf32> to vector<8x32xf32>
    %365 = arith.addf %363, %364 : vector<8x32xf32>
    %366 = arith.negf %365 : vector<8x32xf32>
    %367 = math.exp %366 : vector<8x32xf32>
    %cst_96 = arith.constant 1.000000e+00 : f32
    %368 = vector.broadcast %cst_96 : f32 to vector<8x32xf32>
    %369 = arith.addf %368, %367 : vector<8x32xf32>
    %370 = arith.divf %368, %369 : vector<8x32xf32>
    %371 = vector.extract_strided_slice %327 {offsets = [0, 32], sizes = [8, 32], strides = [1, 1]} : vector<8x128xf32> to vector<8x32xf32>
    %372 = vector.extract_strided_slice %329 {offsets = [0, 32], sizes = [8, 32], strides = [1, 1]} : vector<8x128xf32> to vector<8x32xf32>
    %373 = arith.addf %371, %372 : vector<8x32xf32>
    %374 = arith.negf %373 : vector<8x32xf32>
    %375 = math.exp %374 : vector<8x32xf32>
    %cst_97 = arith.constant 1.000000e+00 : f32
    %376 = vector.broadcast %cst_97 : f32 to vector<8x32xf32>
    %377 = arith.addf %376, %375 : vector<8x32xf32>
    %378 = arith.divf %376, %377 : vector<8x32xf32>
    %379 = vector.extract_strided_slice %327 {offsets = [0, 64], sizes = [8, 32], strides = [1, 1]} : vector<8x128xf32> to vector<8x32xf32>
    %380 = vector.extract_strided_slice %329 {offsets = [0, 64], sizes = [8, 32], strides = [1, 1]} : vector<8x128xf32> to vector<8x32xf32>
    %381 = arith.addf %379, %380 : vector<8x32xf32>
    %382 = math.tanh %381 : vector<8x32xf32>
    %383 = vector.extract_strided_slice %327 {offsets = [0, 96], sizes = [8, 32], strides = [1, 1]} : vector<8x128xf32> to vector<8x32xf32>
    %384 = vector.extract_strided_slice %329 {offsets = [0, 96], sizes = [8, 32], strides = [1, 1]} : vector<8x128xf32> to vector<8x32xf32>
    %385 = arith.addf %383, %384 : vector<8x32xf32>
    %386 = arith.negf %385 : vector<8x32xf32>
    %387 = math.exp %386 : vector<8x32xf32>
    %cst_98 = arith.constant 1.000000e+00 : f32
    %388 = vector.broadcast %cst_98 : f32 to vector<8x32xf32>
    %389 = arith.addf %388, %387 : vector<8x32xf32>
    %390 = arith.divf %388, %389 : vector<8x32xf32>
    %391 = arith.mulf %378, %308 : vector<8x32xf32>
    %392 = arith.mulf %370, %382 : vector<8x32xf32>
    %393 = arith.addf %391, %392 : vector<8x32xf32>
    %394 = math.tanh %393 : vector<8x32xf32>
    %395 = arith.mulf %390, %394 : vector<8x32xf32>
    %396 = vector.broadcast %c3_i32 : i32 to vector<8x32xi32>
    %397 = arith.cmpi slt, %396, %27 : vector<8x32xi32>
    %398 = vector.broadcast %317 : i32 to vector<8x32xi32>
    %399 = arith.cmpi slt, %398, %27 : vector<8x32xi32>
    %400 = arith.select %397, %362, %305 : vector<8x32xi1>, vector<8x32xf32>
    %401 = arith.select %397, %360, %306 : vector<8x32xi1>, vector<8x32xf32>
    %402 = arith.select %399, %395, %307 : vector<8x32xi1>, vector<8x32xf32>
    %403 = arith.select %399, %393, %308 : vector<8x32xi1>, vector<8x32xf32>
    %404 = arith.index_cast %c3_i32 : i32 to index
    %c0_99 = arith.constant 0 : index
    %c0_100 = arith.constant 0 : index
    %405 = vector.load %arg6[%404, %c0_99, %c0_100] : memref<8x8x64xf32, #tpu.memory_space<vmem>>, vector<1x8x32xf32>
    %406 = vector.shape_cast %405 : vector<1x8x32xf32> to vector<8x32xf32>
    %407 = vector.shape_cast %400 : vector<8x32xf32> to vector<1x8x32xf32>
    tpu.vector_store %arg6[%404, %c0_99, %c0_100], %407 {strides = array<i32>} : memref<8x8x64xf32, #tpu.memory_space<vmem>>, vector<1x8x32xf32>,
    %408 = arith.index_cast %317 : i32 to index
    %c0_101 = arith.constant 0 : index
    %c32_102 = arith.constant 32 : index
    %409 = vector.load %arg6[%408, %c0_101, %c32_102] : memref<8x8x64xf32, #tpu.memory_space<vmem>>, vector<1x8x32xf32>
    %410 = vector.shape_cast %409 : vector<1x8x32xf32> to vector<8x32xf32>
    %411 = vector.shape_cast %402 : vector<8x32xf32> to vector<1x8x32xf32>
    tpu.vector_store %arg6[%408, %c0_101, %c32_102], %411 {strides = array<i32>} : memref<8x8x64xf32, #tpu.memory_space<vmem>>, vector<1x8x32xf32>,
    %c4_i32 = arith.constant 4 : i32
    %c7_i32_103 = arith.constant 7 : i32
    %412 = arith.subi %c7_i32_103, %c4_i32 : i32
    %c8_i32_104 = arith.constant 8 : i32
    %413 = arith.muli %c4_i32, %c8_i32_104 : i32
    %414 = tpu.assume_multiple %413, 8 : i32
    %c8_i32_105 = arith.constant 8 : i32
    %415 = arith.muli %412, %c8_i32_105 : i32
    %416 = tpu.assume_multiple %415, 8 : i32
    %c0_106 = arith.constant 0 : index
    %417 = arith.index_cast %414 : i32 to index
    %c0_107 = arith.constant 0 : index
    %418 = vector.load %arg8[%c0_106, %417, %c0_107] : memref<2x64x128xf32, #tpu.memory_space<vmem>>, vector<1x8x128xf32>
    %419 = vector.shape_cast %418 : vector<1x8x128xf32> to vector<8x128xf32>
    %c1_108 = arith.constant 1 : index
    %420 = arith.index_cast %416 : i32 to index
    %c0_109 = arith.constant 0 : index
    %421 = vector.load %arg8[%c1_108, %420, %c0_109] : memref<2x64x128xf32, #tpu.memory_space<vmem>>, vector<1x8x128xf32>
    %422 = vector.shape_cast %421 : vector<1x8x128xf32> to vector<8x128xf32>
    %cst_110 = arith.constant dense<0.000000e+00> : vector<8x128xf32>
    %423 = tpu.matmul %400, %22, %cst_110 {dimension_numbers = #tpu.dot_dimension_numbers<[1], [0], [0], [1], [0, 0, 1, 1], [], []>} : vector<8x32xf32>, vector<32x128xf32>, vector<8x128xf32> -> vector<8x128xf32>
    %cst_111 = arith.constant dense<0.000000e+00> : vector<8x128xf32>
    %424 = tpu.matmul %402, %24, %cst_111 {dimension_numbers = #tpu.dot_dimension_numbers<[1], [0], [0], [1], [0, 0, 1, 1], [], []>} : vector<8x32xf32>, vector<32x128xf32>, vector<8x128xf32> -> vector<8x128xf32>
    %425 = vector.extract_strided_slice %419 {offsets = [0, 0], sizes = [8, 32], strides = [1, 1]} : vector<8x128xf32> to vector<8x32xf32>
    %426 = vector.extract_strided_slice %423 {offsets = [0, 0], sizes = [8, 32], strides = [1, 1]} : vector<8x128xf32> to vector<8x32xf32>
    %427 = arith.addf %425, %426 : vector<8x32xf32>
    %428 = arith.negf %427 : vector<8x32xf32>
    %429 = math.exp %428 : vector<8x32xf32>
    %cst_112 = arith.constant 1.000000e+00 : f32
    %430 = vector.broadcast %cst_112 : f32 to vector<8x32xf32>
    %431 = arith.addf %430, %429 : vector<8x32xf32>
    %432 = arith.divf %430, %431 : vector<8x32xf32>
    %433 = vector.extract_strided_slice %419 {offsets = [0, 32], sizes = [8, 32], strides = [1, 1]} : vector<8x128xf32> to vector<8x32xf32>
    %434 = vector.extract_strided_slice %423 {offsets = [0, 32], sizes = [8, 32], strides = [1, 1]} : vector<8x128xf32> to vector<8x32xf32>
    %435 = arith.addf %433, %434 : vector<8x32xf32>
    %436 = arith.negf %435 : vector<8x32xf32>
    %437 = math.exp %436 : vector<8x32xf32>
    %cst_113 = arith.constant 1.000000e+00 : f32
    %438 = vector.broadcast %cst_113 : f32 to vector<8x32xf32>
    %439 = arith.addf %438, %437 : vector<8x32xf32>
    %440 = arith.divf %438, %439 : vector<8x32xf32>
    %441 = vector.extract_strided_slice %419 {offsets = [0, 64], sizes = [8, 32], strides = [1, 1]} : vector<8x128xf32> to vector<8x32xf32>
    %442 = vector.extract_strided_slice %423 {offsets = [0, 64], sizes = [8, 32], strides = [1, 1]} : vector<8x128xf32> to vector<8x32xf32>
    %443 = arith.addf %441, %442 : vector<8x32xf32>
    %444 = math.tanh %443 : vector<8x32xf32>
    %445 = vector.extract_strided_slice %419 {offsets = [0, 96], sizes = [8, 32], strides = [1, 1]} : vector<8x128xf32> to vector<8x32xf32>
    %446 = vector.extract_strided_slice %423 {offsets = [0, 96], sizes = [8, 32], strides = [1, 1]} : vector<8x128xf32> to vector<8x32xf32>
    %447 = arith.addf %445, %446 : vector<8x32xf32>
    %448 = arith.negf %447 : vector<8x32xf32>
    %449 = math.exp %448 : vector<8x32xf32>
    %cst_114 = arith.constant 1.000000e+00 : f32
    %450 = vector.broadcast %cst_114 : f32 to vector<8x32xf32>
    %451 = arith.addf %450, %449 : vector<8x32xf32>
    %452 = arith.divf %450, %451 : vector<8x32xf32>
    %453 = arith.mulf %440, %401 : vector<8x32xf32>
    %454 = arith.mulf %432, %444 : vector<8x32xf32>
    %455 = arith.addf %453, %454 : vector<8x32xf32>
    %456 = math.tanh %455 : vector<8x32xf32>
    %457 = arith.mulf %452, %456 : vector<8x32xf32>
    %458 = vector.extract_strided_slice %422 {offsets = [0, 0], sizes = [8, 32], strides = [1, 1]} : vector<8x128xf32> to vector<8x32xf32>
    %459 = vector.extract_strided_slice %424 {offsets = [0, 0], sizes = [8, 32], strides = [1, 1]} : vector<8x128xf32> to vector<8x32xf32>
    %460 = arith.addf %458, %459 : vector<8x32xf32>
    %461 = arith.negf %460 : vector<8x32xf32>
    %462 = math.exp %461 : vector<8x32xf32>
    %cst_115 = arith.constant 1.000000e+00 : f32
    %463 = vector.broadcast %cst_115 : f32 to vector<8x32xf32>
    %464 = arith.addf %463, %462 : vector<8x32xf32>
    %465 = arith.divf %463, %464 : vector<8x32xf32>
    %466 = vector.extract_strided_slice %422 {offsets = [0, 32], sizes = [8, 32], strides = [1, 1]} : vector<8x128xf32> to vector<8x32xf32>
    %467 = vector.extract_strided_slice %424 {offsets = [0, 32], sizes = [8, 32], strides = [1, 1]} : vector<8x128xf32> to vector<8x32xf32>
    %468 = arith.addf %466, %467 : vector<8x32xf32>
    %469 = arith.negf %468 : vector<8x32xf32>
    %470 = math.exp %469 : vector<8x32xf32>
    %cst_116 = arith.constant 1.000000e+00 : f32
    %471 = vector.broadcast %cst_116 : f32 to vector<8x32xf32>
    %472 = arith.addf %471, %470 : vector<8x32xf32>
    %473 = arith.divf %471, %472 : vector<8x32xf32>
    %474 = vector.extract_strided_slice %422 {offsets = [0, 64], sizes = [8, 32], strides = [1, 1]} : vector<8x128xf32> to vector<8x32xf32>
    %475 = vector.extract_strided_slice %424 {offsets = [0, 64], sizes = [8, 32], strides = [1, 1]} : vector<8x128xf32> to vector<8x32xf32>
    %476 = arith.addf %474, %475 : vector<8x32xf32>
    %477 = math.tanh %476 : vector<8x32xf32>
    %478 = vector.extract_strided_slice %422 {offsets = [0, 96], sizes = [8, 32], strides = [1, 1]} : vector<8x128xf32> to vector<8x32xf32>
    %479 = vector.extract_strided_slice %424 {offsets = [0, 96], sizes = [8, 32], strides = [1, 1]} : vector<8x128xf32> to vector<8x32xf32>
    %480 = arith.addf %478, %479 : vector<8x32xf32>
    %481 = arith.negf %480 : vector<8x32xf32>
    %482 = math.exp %481 : vector<8x32xf32>
    %cst_117 = arith.constant 1.000000e+00 : f32
    %483 = vector.broadcast %cst_117 : f32 to vector<8x32xf32>
    %484 = arith.addf %483, %482 : vector<8x32xf32>
    %485 = arith.divf %483, %484 : vector<8x32xf32>
    %486 = arith.mulf %473, %403 : vector<8x32xf32>
    %487 = arith.mulf %465, %477 : vector<8x32xf32>
    %488 = arith.addf %486, %487 : vector<8x32xf32>
    %489 = math.tanh %488 : vector<8x32xf32>
    %490 = arith.mulf %485, %489 : vector<8x32xf32>
    %491 = vector.broadcast %c4_i32 : i32 to vector<8x32xi32>
    %492 = arith.cmpi slt, %491, %27 : vector<8x32xi32>
    %493 = vector.broadcast %412 : i32 to vector<8x32xi32>
    %494 = arith.cmpi slt, %493, %27 : vector<8x32xi32>
    %495 = arith.select %492, %457, %400 : vector<8x32xi1>, vector<8x32xf32>
    %496 = arith.select %492, %455, %401 : vector<8x32xi1>, vector<8x32xf32>
    %497 = arith.select %494, %490, %402 : vector<8x32xi1>, vector<8x32xf32>
    %498 = arith.select %494, %488, %403 : vector<8x32xi1>, vector<8x32xf32>
    %499 = arith.index_cast %c4_i32 : i32 to index
    %c0_118 = arith.constant 0 : index
    %c0_119 = arith.constant 0 : index
    %500 = vector.load %arg6[%499, %c0_118, %c0_119] : memref<8x8x64xf32, #tpu.memory_space<vmem>>, vector<1x8x32xf32>
    %501 = vector.shape_cast %500 : vector<1x8x32xf32> to vector<8x32xf32>
    %502 = vector.shape_cast %495 : vector<8x32xf32> to vector<1x8x32xf32>
    tpu.vector_store %arg6[%499, %c0_118, %c0_119], %502 {strides = array<i32>} : memref<8x8x64xf32, #tpu.memory_space<vmem>>, vector<1x8x32xf32>,
    %503 = arith.index_cast %412 : i32 to index
    %c0_120 = arith.constant 0 : index
    %c32_121 = arith.constant 32 : index
    %504 = vector.load %arg6[%503, %c0_120, %c32_121] : memref<8x8x64xf32, #tpu.memory_space<vmem>>, vector<1x8x32xf32>
    %505 = vector.shape_cast %504 : vector<1x8x32xf32> to vector<8x32xf32>
    %506 = vector.shape_cast %497 : vector<8x32xf32> to vector<1x8x32xf32>
    tpu.vector_store %arg6[%503, %c0_120, %c32_121], %506 {strides = array<i32>} : memref<8x8x64xf32, #tpu.memory_space<vmem>>, vector<1x8x32xf32>,
    %c5_i32 = arith.constant 5 : i32
    %c7_i32_122 = arith.constant 7 : i32
    %507 = arith.subi %c7_i32_122, %c5_i32 : i32
    %c8_i32_123 = arith.constant 8 : i32
    %508 = arith.muli %c5_i32, %c8_i32_123 : i32
    %509 = tpu.assume_multiple %508, 8 : i32
    %c8_i32_124 = arith.constant 8 : i32
    %510 = arith.muli %507, %c8_i32_124 : i32
    %511 = tpu.assume_multiple %510, 8 : i32
    %c0_125 = arith.constant 0 : index
    %512 = arith.index_cast %509 : i32 to index
    %c0_126 = arith.constant 0 : index
    %513 = vector.load %arg8[%c0_125, %512, %c0_126] : memref<2x64x128xf32, #tpu.memory_space<vmem>>, vector<1x8x128xf32>
    %514 = vector.shape_cast %513 : vector<1x8x128xf32> to vector<8x128xf32>
    %c1_127 = arith.constant 1 : index
    %515 = arith.index_cast %511 : i32 to index
    %c0_128 = arith.constant 0 : index
    %516 = vector.load %arg8[%c1_127, %515, %c0_128] : memref<2x64x128xf32, #tpu.memory_space<vmem>>, vector<1x8x128xf32>
    %517 = vector.shape_cast %516 : vector<1x8x128xf32> to vector<8x128xf32>
    %cst_129 = arith.constant dense<0.000000e+00> : vector<8x128xf32>
    %518 = tpu.matmul %495, %22, %cst_129 {dimension_numbers = #tpu.dot_dimension_numbers<[1], [0], [0], [1], [0, 0, 1, 1], [], []>} : vector<8x32xf32>, vector<32x128xf32>, vector<8x128xf32> -> vector<8x128xf32>
    %cst_130 = arith.constant dense<0.000000e+00> : vector<8x128xf32>
    %519 = tpu.matmul %497, %24, %cst_130 {dimension_numbers = #tpu.dot_dimension_numbers<[1], [0], [0], [1], [0, 0, 1, 1], [], []>} : vector<8x32xf32>, vector<32x128xf32>, vector<8x128xf32> -> vector<8x128xf32>
    %520 = vector.extract_strided_slice %514 {offsets = [0, 0], sizes = [8, 32], strides = [1, 1]} : vector<8x128xf32> to vector<8x32xf32>
    %521 = vector.extract_strided_slice %518 {offsets = [0, 0], sizes = [8, 32], strides = [1, 1]} : vector<8x128xf32> to vector<8x32xf32>
    %522 = arith.addf %520, %521 : vector<8x32xf32>
    %523 = arith.negf %522 : vector<8x32xf32>
    %524 = math.exp %523 : vector<8x32xf32>
    %cst_131 = arith.constant 1.000000e+00 : f32
    %525 = vector.broadcast %cst_131 : f32 to vector<8x32xf32>
    %526 = arith.addf %525, %524 : vector<8x32xf32>
    %527 = arith.divf %525, %526 : vector<8x32xf32>
    %528 = vector.extract_strided_slice %514 {offsets = [0, 32], sizes = [8, 32], strides = [1, 1]} : vector<8x128xf32> to vector<8x32xf32>
    %529 = vector.extract_strided_slice %518 {offsets = [0, 32], sizes = [8, 32], strides = [1, 1]} : vector<8x128xf32> to vector<8x32xf32>
    %530 = arith.addf %528, %529 : vector<8x32xf32>
    %531 = arith.negf %530 : vector<8x32xf32>
    %532 = math.exp %531 : vector<8x32xf32>
    %cst_132 = arith.constant 1.000000e+00 : f32
    %533 = vector.broadcast %cst_132 : f32 to vector<8x32xf32>
    %534 = arith.addf %533, %532 : vector<8x32xf32>
    %535 = arith.divf %533, %534 : vector<8x32xf32>
    %536 = vector.extract_strided_slice %514 {offsets = [0, 64], sizes = [8, 32], strides = [1, 1]} : vector<8x128xf32> to vector<8x32xf32>
    %537 = vector.extract_strided_slice %518 {offsets = [0, 64], sizes = [8, 32], strides = [1, 1]} : vector<8x128xf32> to vector<8x32xf32>
    %538 = arith.addf %536, %537 : vector<8x32xf32>
    %539 = math.tanh %538 : vector<8x32xf32>
    %540 = vector.extract_strided_slice %514 {offsets = [0, 96], sizes = [8, 32], strides = [1, 1]} : vector<8x128xf32> to vector<8x32xf32>
    %541 = vector.extract_strided_slice %518 {offsets = [0, 96], sizes = [8, 32], strides = [1, 1]} : vector<8x128xf32> to vector<8x32xf32>
    %542 = arith.addf %540, %541 : vector<8x32xf32>
    %543 = arith.negf %542 : vector<8x32xf32>
    %544 = math.exp %543 : vector<8x32xf32>
    %cst_133 = arith.constant 1.000000e+00 : f32
    %545 = vector.broadcast %cst_133 : f32 to vector<8x32xf32>
    %546 = arith.addf %545, %544 : vector<8x32xf32>
    %547 = arith.divf %545, %546 : vector<8x32xf32>
    %548 = arith.mulf %535, %496 : vector<8x32xf32>
    %549 = arith.mulf %527, %539 : vector<8x32xf32>
    %550 = arith.addf %548, %549 : vector<8x32xf32>
    %551 = math.tanh %550 : vector<8x32xf32>
    %552 = arith.mulf %547, %551 : vector<8x32xf32>
    %553 = vector.extract_strided_slice %517 {offsets = [0, 0], sizes = [8, 32], strides = [1, 1]} : vector<8x128xf32> to vector<8x32xf32>
    %554 = vector.extract_strided_slice %519 {offsets = [0, 0], sizes = [8, 32], strides = [1, 1]} : vector<8x128xf32> to vector<8x32xf32>
    %555 = arith.addf %553, %554 : vector<8x32xf32>
    %556 = arith.negf %555 : vector<8x32xf32>
    %557 = math.exp %556 : vector<8x32xf32>
    %cst_134 = arith.constant 1.000000e+00 : f32
    %558 = vector.broadcast %cst_134 : f32 to vector<8x32xf32>
    %559 = arith.addf %558, %557 : vector<8x32xf32>
    %560 = arith.divf %558, %559 : vector<8x32xf32>
    %561 = vector.extract_strided_slice %517 {offsets = [0, 32], sizes = [8, 32], strides = [1, 1]} : vector<8x128xf32> to vector<8x32xf32>
    %562 = vector.extract_strided_slice %519 {offsets = [0, 32], sizes = [8, 32], strides = [1, 1]} : vector<8x128xf32> to vector<8x32xf32>
    %563 = arith.addf %561, %562 : vector<8x32xf32>
    %564 = arith.negf %563 : vector<8x32xf32>
    %565 = math.exp %564 : vector<8x32xf32>
    %cst_135 = arith.constant 1.000000e+00 : f32
    %566 = vector.broadcast %cst_135 : f32 to vector<8x32xf32>
    %567 = arith.addf %566, %565 : vector<8x32xf32>
    %568 = arith.divf %566, %567 : vector<8x32xf32>
    %569 = vector.extract_strided_slice %517 {offsets = [0, 64], sizes = [8, 32], strides = [1, 1]} : vector<8x128xf32> to vector<8x32xf32>
    %570 = vector.extract_strided_slice %519 {offsets = [0, 64], sizes = [8, 32], strides = [1, 1]} : vector<8x128xf32> to vector<8x32xf32>
    %571 = arith.addf %569, %570 : vector<8x32xf32>
    %572 = math.tanh %571 : vector<8x32xf32>
    %573 = vector.extract_strided_slice %517 {offsets = [0, 96], sizes = [8, 32], strides = [1, 1]} : vector<8x128xf32> to vector<8x32xf32>
    %574 = vector.extract_strided_slice %519 {offsets = [0, 96], sizes = [8, 32], strides = [1, 1]} : vector<8x128xf32> to vector<8x32xf32>
    %575 = arith.addf %573, %574 : vector<8x32xf32>
    %576 = arith.negf %575 : vector<8x32xf32>
    %577 = math.exp %576 : vector<8x32xf32>
    %cst_136 = arith.constant 1.000000e+00 : f32
    %578 = vector.broadcast %cst_136 : f32 to vector<8x32xf32>
    %579 = arith.addf %578, %577 : vector<8x32xf32>
    %580 = arith.divf %578, %579 : vector<8x32xf32>
    %581 = arith.mulf %568, %498 : vector<8x32xf32>
    %582 = arith.mulf %560, %572 : vector<8x32xf32>
    %583 = arith.addf %581, %582 : vector<8x32xf32>
    %584 = math.tanh %583 : vector<8x32xf32>
    %585 = arith.mulf %580, %584 : vector<8x32xf32>
    %586 = vector.broadcast %c5_i32 : i32 to vector<8x32xi32>
    %587 = arith.cmpi slt, %586, %27 : vector<8x32xi32>
    %588 = vector.broadcast %507 : i32 to vector<8x32xi32>
    %589 = arith.cmpi slt, %588, %27 : vector<8x32xi32>
    %590 = arith.select %587, %552, %495 : vector<8x32xi1>, vector<8x32xf32>
    %591 = arith.select %587, %550, %496 : vector<8x32xi1>, vector<8x32xf32>
    %592 = arith.select %589, %585, %497 : vector<8x32xi1>, vector<8x32xf32>
    %593 = arith.select %589, %583, %498 : vector<8x32xi1>, vector<8x32xf32>
    %594 = arith.index_cast %c5_i32 : i32 to index
    %c0_137 = arith.constant 0 : index
    %c0_138 = arith.constant 0 : index
    %595 = vector.load %arg6[%594, %c0_137, %c0_138] : memref<8x8x64xf32, #tpu.memory_space<vmem>>, vector<1x8x32xf32>
    %596 = vector.shape_cast %595 : vector<1x8x32xf32> to vector<8x32xf32>
    %597 = vector.shape_cast %590 : vector<8x32xf32> to vector<1x8x32xf32>
    tpu.vector_store %arg6[%594, %c0_137, %c0_138], %597 {strides = array<i32>} : memref<8x8x64xf32, #tpu.memory_space<vmem>>, vector<1x8x32xf32>,
    %598 = arith.index_cast %507 : i32 to index
    %c0_139 = arith.constant 0 : index
    %c32_140 = arith.constant 32 : index
    %599 = vector.load %arg6[%598, %c0_139, %c32_140] : memref<8x8x64xf32, #tpu.memory_space<vmem>>, vector<1x8x32xf32>
    %600 = vector.shape_cast %599 : vector<1x8x32xf32> to vector<8x32xf32>
    %601 = vector.shape_cast %592 : vector<8x32xf32> to vector<1x8x32xf32>
    tpu.vector_store %arg6[%598, %c0_139, %c32_140], %601 {strides = array<i32>} : memref<8x8x64xf32, #tpu.memory_space<vmem>>, vector<1x8x32xf32>,
    %c6_i32 = arith.constant 6 : i32
    %c7_i32_141 = arith.constant 7 : i32
    %602 = arith.subi %c7_i32_141, %c6_i32 : i32
    %c8_i32_142 = arith.constant 8 : i32
    %603 = arith.muli %c6_i32, %c8_i32_142 : i32
    %604 = tpu.assume_multiple %603, 8 : i32
    %c8_i32_143 = arith.constant 8 : i32
    %605 = arith.muli %602, %c8_i32_143 : i32
    %606 = tpu.assume_multiple %605, 8 : i32
    %c0_144 = arith.constant 0 : index
    %607 = arith.index_cast %604 : i32 to index
    %c0_145 = arith.constant 0 : index
    %608 = vector.load %arg8[%c0_144, %607, %c0_145] : memref<2x64x128xf32, #tpu.memory_space<vmem>>, vector<1x8x128xf32>
    %609 = vector.shape_cast %608 : vector<1x8x128xf32> to vector<8x128xf32>
    %c1_146 = arith.constant 1 : index
    %610 = arith.index_cast %606 : i32 to index
    %c0_147 = arith.constant 0 : index
    %611 = vector.load %arg8[%c1_146, %610, %c0_147] : memref<2x64x128xf32, #tpu.memory_space<vmem>>, vector<1x8x128xf32>
    %612 = vector.shape_cast %611 : vector<1x8x128xf32> to vector<8x128xf32>
    %cst_148 = arith.constant dense<0.000000e+00> : vector<8x128xf32>
    %613 = tpu.matmul %590, %22, %cst_148 {dimension_numbers = #tpu.dot_dimension_numbers<[1], [0], [0], [1], [0, 0, 1, 1], [], []>} : vector<8x32xf32>, vector<32x128xf32>, vector<8x128xf32> -> vector<8x128xf32>
    %cst_149 = arith.constant dense<0.000000e+00> : vector<8x128xf32>
    %614 = tpu.matmul %592, %24, %cst_149 {dimension_numbers = #tpu.dot_dimension_numbers<[1], [0], [0], [1], [0, 0, 1, 1], [], []>} : vector<8x32xf32>, vector<32x128xf32>, vector<8x128xf32> -> vector<8x128xf32>
    %615 = vector.extract_strided_slice %609 {offsets = [0, 0], sizes = [8, 32], strides = [1, 1]} : vector<8x128xf32> to vector<8x32xf32>
    %616 = vector.extract_strided_slice %613 {offsets = [0, 0], sizes = [8, 32], strides = [1, 1]} : vector<8x128xf32> to vector<8x32xf32>
    %617 = arith.addf %615, %616 : vector<8x32xf32>
    %618 = arith.negf %617 : vector<8x32xf32>
    %619 = math.exp %618 : vector<8x32xf32>
    %cst_150 = arith.constant 1.000000e+00 : f32
    %620 = vector.broadcast %cst_150 : f32 to vector<8x32xf32>
    %621 = arith.addf %620, %619 : vector<8x32xf32>
    %622 = arith.divf %620, %621 : vector<8x32xf32>
    %623 = vector.extract_strided_slice %609 {offsets = [0, 32], sizes = [8, 32], strides = [1, 1]} : vector<8x128xf32> to vector<8x32xf32>
    %624 = vector.extract_strided_slice %613 {offsets = [0, 32], sizes = [8, 32], strides = [1, 1]} : vector<8x128xf32> to vector<8x32xf32>
    %625 = arith.addf %623, %624 : vector<8x32xf32>
    %626 = arith.negf %625 : vector<8x32xf32>
    %627 = math.exp %626 : vector<8x32xf32>
    %cst_151 = arith.constant 1.000000e+00 : f32
    %628 = vector.broadcast %cst_151 : f32 to vector<8x32xf32>
    %629 = arith.addf %628, %627 : vector<8x32xf32>
    %630 = arith.divf %628, %629 : vector<8x32xf32>
    %631 = vector.extract_strided_slice %609 {offsets = [0, 64], sizes = [8, 32], strides = [1, 1]} : vector<8x128xf32> to vector<8x32xf32>
    %632 = vector.extract_strided_slice %613 {offsets = [0, 64], sizes = [8, 32], strides = [1, 1]} : vector<8x128xf32> to vector<8x32xf32>
    %633 = arith.addf %631, %632 : vector<8x32xf32>
    %634 = math.tanh %633 : vector<8x32xf32>
    %635 = vector.extract_strided_slice %609 {offsets = [0, 96], sizes = [8, 32], strides = [1, 1]} : vector<8x128xf32> to vector<8x32xf32>
    %636 = vector.extract_strided_slice %613 {offsets = [0, 96], sizes = [8, 32], strides = [1, 1]} : vector<8x128xf32> to vector<8x32xf32>
    %637 = arith.addf %635, %636 : vector<8x32xf32>
    %638 = arith.negf %637 : vector<8x32xf32>
    %639 = math.exp %638 : vector<8x32xf32>
    %cst_152 = arith.constant 1.000000e+00 : f32
    %640 = vector.broadcast %cst_152 : f32 to vector<8x32xf32>
    %641 = arith.addf %640, %639 : vector<8x32xf32>
    %642 = arith.divf %640, %641 : vector<8x32xf32>
    %643 = arith.mulf %630, %591 : vector<8x32xf32>
    %644 = arith.mulf %622, %634 : vector<8x32xf32>
    %645 = arith.addf %643, %644 : vector<8x32xf32>
    %646 = math.tanh %645 : vector<8x32xf32>
    %647 = arith.mulf %642, %646 : vector<8x32xf32>
    %648 = vector.extract_strided_slice %612 {offsets = [0, 0], sizes = [8, 32], strides = [1, 1]} : vector<8x128xf32> to vector<8x32xf32>
    %649 = vector.extract_strided_slice %614 {offsets = [0, 0], sizes = [8, 32], strides = [1, 1]} : vector<8x128xf32> to vector<8x32xf32>
    %650 = arith.addf %648, %649 : vector<8x32xf32>
    %651 = arith.negf %650 : vector<8x32xf32>
    %652 = math.exp %651 : vector<8x32xf32>
    %cst_153 = arith.constant 1.000000e+00 : f32
    %653 = vector.broadcast %cst_153 : f32 to vector<8x32xf32>
    %654 = arith.addf %653, %652 : vector<8x32xf32>
    %655 = arith.divf %653, %654 : vector<8x32xf32>
    %656 = vector.extract_strided_slice %612 {offsets = [0, 32], sizes = [8, 32], strides = [1, 1]} : vector<8x128xf32> to vector<8x32xf32>
    %657 = vector.extract_strided_slice %614 {offsets = [0, 32], sizes = [8, 32], strides = [1, 1]} : vector<8x128xf32> to vector<8x32xf32>
    %658 = arith.addf %656, %657 : vector<8x32xf32>
    %659 = arith.negf %658 : vector<8x32xf32>
    %660 = math.exp %659 : vector<8x32xf32>
    %cst_154 = arith.constant 1.000000e+00 : f32
    %661 = vector.broadcast %cst_154 : f32 to vector<8x32xf32>
    %662 = arith.addf %661, %660 : vector<8x32xf32>
    %663 = arith.divf %661, %662 : vector<8x32xf32>
    %664 = vector.extract_strided_slice %612 {offsets = [0, 64], sizes = [8, 32], strides = [1, 1]} : vector<8x128xf32> to vector<8x32xf32>
    %665 = vector.extract_strided_slice %614 {offsets = [0, 64], sizes = [8, 32], strides = [1, 1]} : vector<8x128xf32> to vector<8x32xf32>
    %666 = arith.addf %664, %665 : vector<8x32xf32>
    %667 = math.tanh %666 : vector<8x32xf32>
    %668 = vector.extract_strided_slice %612 {offsets = [0, 96], sizes = [8, 32], strides = [1, 1]} : vector<8x128xf32> to vector<8x32xf32>
    %669 = vector.extract_strided_slice %614 {offsets = [0, 96], sizes = [8, 32], strides = [1, 1]} : vector<8x128xf32> to vector<8x32xf32>
    %670 = arith.addf %668, %669 : vector<8x32xf32>
    %671 = arith.negf %670 : vector<8x32xf32>
    %672 = math.exp %671 : vector<8x32xf32>
    %cst_155 = arith.constant 1.000000e+00 : f32
    %673 = vector.broadcast %cst_155 : f32 to vector<8x32xf32>
    %674 = arith.addf %673, %672 : vector<8x32xf32>
    %675 = arith.divf %673, %674 : vector<8x32xf32>
    %676 = arith.mulf %663, %593 : vector<8x32xf32>
    %677 = arith.mulf %655, %667 : vector<8x32xf32>
    %678 = arith.addf %676, %677 : vector<8x32xf32>
    %679 = math.tanh %678 : vector<8x32xf32>
    %680 = arith.mulf %675, %679 : vector<8x32xf32>
    %681 = vector.broadcast %c6_i32 : i32 to vector<8x32xi32>
    %682 = arith.cmpi slt, %681, %27 : vector<8x32xi32>
    %683 = vector.broadcast %602 : i32 to vector<8x32xi32>
    %684 = arith.cmpi slt, %683, %27 : vector<8x32xi32>
    %685 = arith.select %682, %647, %590 : vector<8x32xi1>, vector<8x32xf32>
    %686 = arith.select %682, %645, %591 : vector<8x32xi1>, vector<8x32xf32>
    %687 = arith.select %684, %680, %592 : vector<8x32xi1>, vector<8x32xf32>
    %688 = arith.select %684, %678, %593 : vector<8x32xi1>, vector<8x32xf32>
    %689 = arith.index_cast %c6_i32 : i32 to index
    %c0_156 = arith.constant 0 : index
    %c0_157 = arith.constant 0 : index
    %690 = vector.load %arg6[%689, %c0_156, %c0_157] : memref<8x8x64xf32, #tpu.memory_space<vmem>>, vector<1x8x32xf32>
    %691 = vector.shape_cast %690 : vector<1x8x32xf32> to vector<8x32xf32>
    %692 = vector.shape_cast %685 : vector<8x32xf32> to vector<1x8x32xf32>
    tpu.vector_store %arg6[%689, %c0_156, %c0_157], %692 {strides = array<i32>} : memref<8x8x64xf32, #tpu.memory_space<vmem>>, vector<1x8x32xf32>,
    %693 = arith.index_cast %602 : i32 to index
    %c0_158 = arith.constant 0 : index
    %c32_159 = arith.constant 32 : index
    %694 = vector.load %arg6[%693, %c0_158, %c32_159] : memref<8x8x64xf32, #tpu.memory_space<vmem>>, vector<1x8x32xf32>
    %695 = vector.shape_cast %694 : vector<1x8x32xf32> to vector<8x32xf32>
    %696 = vector.shape_cast %687 : vector<8x32xf32> to vector<1x8x32xf32>
    tpu.vector_store %arg6[%693, %c0_158, %c32_159], %696 {strides = array<i32>} : memref<8x8x64xf32, #tpu.memory_space<vmem>>, vector<1x8x32xf32>,
    %c7_i32_160 = arith.constant 7 : i32
    %c7_i32_161 = arith.constant 7 : i32
    %697 = arith.subi %c7_i32_161, %c7_i32_160 : i32
    %c8_i32_162 = arith.constant 8 : i32
    %698 = arith.muli %c7_i32_160, %c8_i32_162 : i32
    %699 = tpu.assume_multiple %698, 8 : i32
    %c8_i32_163 = arith.constant 8 : i32
    %700 = arith.muli %697, %c8_i32_163 : i32
    %701 = tpu.assume_multiple %700, 8 : i32
    %c0_164 = arith.constant 0 : index
    %702 = arith.index_cast %699 : i32 to index
    %c0_165 = arith.constant 0 : index
    %703 = vector.load %arg8[%c0_164, %702, %c0_165] : memref<2x64x128xf32, #tpu.memory_space<vmem>>, vector<1x8x128xf32>
    %704 = vector.shape_cast %703 : vector<1x8x128xf32> to vector<8x128xf32>
    %c1_166 = arith.constant 1 : index
    %705 = arith.index_cast %701 : i32 to index
    %c0_167 = arith.constant 0 : index
    %706 = vector.load %arg8[%c1_166, %705, %c0_167] : memref<2x64x128xf32, #tpu.memory_space<vmem>>, vector<1x8x128xf32>
    %707 = vector.shape_cast %706 : vector<1x8x128xf32> to vector<8x128xf32>
    %cst_168 = arith.constant dense<0.000000e+00> : vector<8x128xf32>
    %708 = tpu.matmul %685, %22, %cst_168 {dimension_numbers = #tpu.dot_dimension_numbers<[1], [0], [0], [1], [0, 0, 1, 1], [], []>} : vector<8x32xf32>, vector<32x128xf32>, vector<8x128xf32> -> vector<8x128xf32>
    %cst_169 = arith.constant dense<0.000000e+00> : vector<8x128xf32>
    %709 = tpu.matmul %687, %24, %cst_169 {dimension_numbers = #tpu.dot_dimension_numbers<[1], [0], [0], [1], [0, 0, 1, 1], [], []>} : vector<8x32xf32>, vector<32x128xf32>, vector<8x128xf32> -> vector<8x128xf32>
    %710 = vector.extract_strided_slice %704 {offsets = [0, 0], sizes = [8, 32], strides = [1, 1]} : vector<8x128xf32> to vector<8x32xf32>
    %711 = vector.extract_strided_slice %708 {offsets = [0, 0], sizes = [8, 32], strides = [1, 1]} : vector<8x128xf32> to vector<8x32xf32>
    %712 = arith.addf %710, %711 : vector<8x32xf32>
    %713 = arith.negf %712 : vector<8x32xf32>
    %714 = math.exp %713 : vector<8x32xf32>
    %cst_170 = arith.constant 1.000000e+00 : f32
    %715 = vector.broadcast %cst_170 : f32 to vector<8x32xf32>
    %716 = arith.addf %715, %714 : vector<8x32xf32>
    %717 = arith.divf %715, %716 : vector<8x32xf32>
    %718 = vector.extract_strided_slice %704 {offsets = [0, 32], sizes = [8, 32], strides = [1, 1]} : vector<8x128xf32> to vector<8x32xf32>
    %719 = vector.extract_strided_slice %708 {offsets = [0, 32], sizes = [8, 32], strides = [1, 1]} : vector<8x128xf32> to vector<8x32xf32>
    %720 = arith.addf %718, %719 : vector<8x32xf32>
    %721 = arith.negf %720 : vector<8x32xf32>
    %722 = math.exp %721 : vector<8x32xf32>
    %cst_171 = arith.constant 1.000000e+00 : f32
    %723 = vector.broadcast %cst_171 : f32 to vector<8x32xf32>
    %724 = arith.addf %723, %722 : vector<8x32xf32>
    %725 = arith.divf %723, %724 : vector<8x32xf32>
    %726 = vector.extract_strided_slice %704 {offsets = [0, 64], sizes = [8, 32], strides = [1, 1]} : vector<8x128xf32> to vector<8x32xf32>
    %727 = vector.extract_strided_slice %708 {offsets = [0, 64], sizes = [8, 32], strides = [1, 1]} : vector<8x128xf32> to vector<8x32xf32>
    %728 = arith.addf %726, %727 : vector<8x32xf32>
    %729 = math.tanh %728 : vector<8x32xf32>
    %730 = vector.extract_strided_slice %704 {offsets = [0, 96], sizes = [8, 32], strides = [1, 1]} : vector<8x128xf32> to vector<8x32xf32>
    %731 = vector.extract_strided_slice %708 {offsets = [0, 96], sizes = [8, 32], strides = [1, 1]} : vector<8x128xf32> to vector<8x32xf32>
    %732 = arith.addf %730, %731 : vector<8x32xf32>
    %733 = arith.negf %732 : vector<8x32xf32>
    %734 = math.exp %733 : vector<8x32xf32>
    %cst_172 = arith.constant 1.000000e+00 : f32
    %735 = vector.broadcast %cst_172 : f32 to vector<8x32xf32>
    %736 = arith.addf %735, %734 : vector<8x32xf32>
    %737 = arith.divf %735, %736 : vector<8x32xf32>
    %738 = arith.mulf %725, %686 : vector<8x32xf32>
    %739 = arith.mulf %717, %729 : vector<8x32xf32>
    %740 = arith.addf %738, %739 : vector<8x32xf32>
    %741 = math.tanh %740 : vector<8x32xf32>
    %742 = arith.mulf %737, %741 : vector<8x32xf32>
    %743 = vector.extract_strided_slice %707 {offsets = [0, 0], sizes = [8, 32], strides = [1, 1]} : vector<8x128xf32> to vector<8x32xf32>
    %744 = vector.extract_strided_slice %709 {offsets = [0, 0], sizes = [8, 32], strides = [1, 1]} : vector<8x128xf32> to vector<8x32xf32>
    %745 = arith.addf %743, %744 : vector<8x32xf32>
    %746 = arith.negf %745 : vector<8x32xf32>
    %747 = math.exp %746 : vector<8x32xf32>
    %cst_173 = arith.constant 1.000000e+00 : f32
    %748 = vector.broadcast %cst_173 : f32 to vector<8x32xf32>
    %749 = arith.addf %748, %747 : vector<8x32xf32>
    %750 = arith.divf %748, %749 : vector<8x32xf32>
    %751 = vector.extract_strided_slice %707 {offsets = [0, 32], sizes = [8, 32], strides = [1, 1]} : vector<8x128xf32> to vector<8x32xf32>
    %752 = vector.extract_strided_slice %709 {offsets = [0, 32], sizes = [8, 32], strides = [1, 1]} : vector<8x128xf32> to vector<8x32xf32>
    %753 = arith.addf %751, %752 : vector<8x32xf32>
    %754 = arith.negf %753 : vector<8x32xf32>
    %755 = math.exp %754 : vector<8x32xf32>
    %cst_174 = arith.constant 1.000000e+00 : f32
    %756 = vector.broadcast %cst_174 : f32 to vector<8x32xf32>
    %757 = arith.addf %756, %755 : vector<8x32xf32>
    %758 = arith.divf %756, %757 : vector<8x32xf32>
    %759 = vector.extract_strided_slice %707 {offsets = [0, 64], sizes = [8, 32], strides = [1, 1]} : vector<8x128xf32> to vector<8x32xf32>
    %760 = vector.extract_strided_slice %709 {offsets = [0, 64], sizes = [8, 32], strides = [1, 1]} : vector<8x128xf32> to vector<8x32xf32>
    %761 = arith.addf %759, %760 : vector<8x32xf32>
    %762 = math.tanh %761 : vector<8x32xf32>
    %763 = vector.extract_strided_slice %707 {offsets = [0, 96], sizes = [8, 32], strides = [1, 1]} : vector<8x128xf32> to vector<8x32xf32>
    %764 = vector.extract_strided_slice %709 {offsets = [0, 96], sizes = [8, 32], strides = [1, 1]} : vector<8x128xf32> to vector<8x32xf32>
    %765 = arith.addf %763, %764 : vector<8x32xf32>
    %766 = arith.negf %765 : vector<8x32xf32>
    %767 = math.exp %766 : vector<8x32xf32>
    %cst_175 = arith.constant 1.000000e+00 : f32
    %768 = vector.broadcast %cst_175 : f32 to vector<8x32xf32>
    %769 = arith.addf %768, %767 : vector<8x32xf32>
    %770 = arith.divf %768, %769 : vector<8x32xf32>
    %771 = arith.mulf %758, %688 : vector<8x32xf32>
    %772 = arith.mulf %750, %762 : vector<8x32xf32>
    %773 = arith.addf %771, %772 : vector<8x32xf32>
    %774 = math.tanh %773 : vector<8x32xf32>
    %775 = arith.mulf %770, %774 : vector<8x32xf32>
    %776 = vector.broadcast %c7_i32_160 : i32 to vector<8x32xi32>
    %777 = arith.cmpi slt, %776, %27 : vector<8x32xi32>
    %778 = vector.broadcast %697 : i32 to vector<8x32xi32>
    %779 = arith.cmpi slt, %778, %27 : vector<8x32xi32>
    %780 = arith.select %777, %742, %685 : vector<8x32xi1>, vector<8x32xf32>
    %781 = arith.select %777, %740, %686 : vector<8x32xi1>, vector<8x32xf32>
    %782 = arith.select %779, %775, %687 : vector<8x32xi1>, vector<8x32xf32>
    %783 = arith.select %779, %773, %688 : vector<8x32xi1>, vector<8x32xf32>
    %784 = arith.index_cast %c7_i32_160 : i32 to index
    %c0_176 = arith.constant 0 : index
    %c0_177 = arith.constant 0 : index
    %785 = vector.load %arg6[%784, %c0_176, %c0_177] : memref<8x8x64xf32, #tpu.memory_space<vmem>>, vector<1x8x32xf32>
    %786 = vector.shape_cast %785 : vector<1x8x32xf32> to vector<8x32xf32>
    %787 = vector.shape_cast %780 : vector<8x32xf32> to vector<1x8x32xf32>
    tpu.vector_store %arg6[%784, %c0_176, %c0_177], %787 {strides = array<i32>} : memref<8x8x64xf32, #tpu.memory_space<vmem>>, vector<1x8x32xf32>,
    %788 = arith.index_cast %697 : i32 to index
    %c0_178 = arith.constant 0 : index
    %c32_179 = arith.constant 32 : index
    %789 = vector.load %arg6[%788, %c0_178, %c32_179] : memref<8x8x64xf32, #tpu.memory_space<vmem>>, vector<1x8x32xf32>
    %790 = vector.shape_cast %789 : vector<1x8x32xf32> to vector<8x32xf32>
    %791 = vector.shape_cast %782 : vector<8x32xf32> to vector<1x8x32xf32>
    tpu.vector_store %arg6[%788, %c0_178, %c32_179], %791 {strides = array<i32>} : memref<8x8x64xf32, #tpu.memory_space<vmem>>, vector<1x8x32xf32>,
    %c8_i32_180 = arith.constant 8 : i32
    %c0_181 = arith.constant 0 : index
    %c0_182 = arith.constant 0 : index
    %792 = vector.load %arg7[%c0_181, %c0_182] : memref<8x64xf32, #tpu.memory_space<vmem>>, vector<8x32xf32>
    tpu.vector_store %arg7[%c0_181, %c0_182], %780 {strides = array<i32>} : memref<8x64xf32, #tpu.memory_space<vmem>>, vector<8x32xf32>,
    %c0_183 = arith.constant 0 : index
    %c32_184 = arith.constant 32 : index
    %793 = vector.load %arg7[%c0_183, %c32_184] : memref<8x64xf32, #tpu.memory_space<vmem>>, vector<8x32xf32>
    tpu.vector_store %arg7[%c0_183, %c32_184], %782 {strides = array<i32>} : memref<8x64xf32, #tpu.memory_space<vmem>>, vector<8x32xf32>,
    return
  }
}

module attributes {stable_mosaic.version = 11 : i64} {
  func.func @_heads_kernel(%arg0: memref<16x64xf32, #tpu.memory_space<vmem>>, %arg1: memref<2x64xf32, #tpu.memory_space<vmem>>, %arg2: memref<64x128xf32, #tpu.memory_space<vmem>>, %arg3: memref<1x128xf32, #tpu.memory_space<vmem>>, %arg4: memref<64x128xf32, #tpu.memory_space<vmem>>, %arg5: memref<1x128xf32, #tpu.memory_space<vmem>>, %arg6: memref<16x128xf32, #tpu.memory_space<vmem>>, %arg7: memref<2x128xf32, #tpu.memory_space<vmem>>) attributes {dimension_semantics = [], scalar_prefetch = 0 : i64, scratch_operands = 0 : i64, tpu.core_type = #tpu.core_type<tc>} {
    %c0 = arith.constant 0 : index
    %c0_0 = arith.constant 0 : index
    %0 = vector.load %arg0[%c0, %c0_0] : memref<16x64xf32, #tpu.memory_space<vmem>>, vector<16x64xf32>
    %c0_1 = arith.constant 0 : index
    %c0_2 = arith.constant 0 : index
    %1 = vector.load %arg2[%c0_1, %c0_2] : memref<64x128xf32, #tpu.memory_space<vmem>>, vector<64x128xf32>
    %cst = arith.constant dense<0.000000e+00> : vector<16x128xf32>
    %2 = tpu.matmul %0, %1, %cst {dimension_numbers = #tpu.dot_dimension_numbers<[1], [0], [0], [1], [0, 0, 1, 1], [], []>} : vector<16x64xf32>, vector<64x128xf32>, vector<16x128xf32> -> vector<16x128xf32>
    %c0_3 = arith.constant 0 : index
    %c0_4 = arith.constant 0 : index
    %3 = vector.load %arg3[%c0_3, %c0_4] : memref<1x128xf32, #tpu.memory_space<vmem>>, vector<1x128xf32>
    %4 = vector.broadcast %3 : vector<1x128xf32> to vector<16x128xf32>
    %5 = arith.addf %2, %4 : vector<16x128xf32>
    %c0_5 = arith.constant 0 : index
    %c0_6 = arith.constant 0 : index
    %6 = vector.load %arg6[%c0_5, %c0_6] : memref<16x128xf32, #tpu.memory_space<vmem>>, vector<16x128xf32>
    tpu.vector_store %arg6[%c0_5, %c0_6], %5 {strides = array<i32>} : memref<16x128xf32, #tpu.memory_space<vmem>>, vector<16x128xf32>,
    %c0_7 = arith.constant 0 : index
    %c0_8 = arith.constant 0 : index
    %7 = vector.load %arg1[%c0_7, %c0_8] : memref<2x64xf32, #tpu.memory_space<vmem>>, vector<2x64xf32>
    %c0_9 = arith.constant 0 : index
    %c0_10 = arith.constant 0 : index
    %8 = vector.load %arg4[%c0_9, %c0_10] : memref<64x128xf32, #tpu.memory_space<vmem>>, vector<64x128xf32>
    %cst_11 = arith.constant dense<0.000000e+00> : vector<2x128xf32>
    %9 = tpu.matmul %7, %8, %cst_11 {dimension_numbers = #tpu.dot_dimension_numbers<[1], [0], [0], [1], [0, 0, 1, 1], [], []>} : vector<2x64xf32>, vector<64x128xf32>, vector<2x128xf32> -> vector<2x128xf32>
    %c0_12 = arith.constant 0 : index
    %c0_13 = arith.constant 0 : index
    %10 = vector.load %arg5[%c0_12, %c0_13] : memref<1x128xf32, #tpu.memory_space<vmem>>, vector<1x128xf32>
    %11 = vector.broadcast %10 : vector<1x128xf32> to vector<2x128xf32>
    %12 = arith.addf %9, %11 : vector<2x128xf32>
    %c0_14 = arith.constant 0 : index
    %c0_15 = arith.constant 0 : index
    %13 = vector.load %arg7[%c0_14, %c0_15] : memref<2x128xf32, #tpu.memory_space<vmem>>, vector<2x128xf32>
    tpu.vector_store %arg7[%c0_14, %c0_15], %12 {strides = array<i32>} : memref<2x128xf32, #tpu.memory_space<vmem>>, vector<2x128xf32>,
    return
  }
}

</mosaic_0001>

<bundles_post_ra>
// kernel: sden_forward.8
= control target key start
LH: loop header
LB: loop body
LE: loop exit
PB: predicated region body
PF: predicated region fallthrough
CT: control target
= control target key end

     0   :  { %s720_s25 = smov 64   ;;  %v721_v14 = vmov 0.0   ;;  %vm44_vm0 = vcmask 523264   ;;  %vm109_vm2 = vcmask 261120   ;;  %vm145_vm5 = vcmask 785408   ;;  %s986_s2 = inlined_call_operand.vmem [shape: f32[64,32], index: 2, kind: input, shape index: {}]   ;;  %s987_s5 = inlined_call_operand.vmem [shape: f32[2,32,96], index: 5, kind: input, shape index: {}]   ;;  %s988_s7 = inlined_call_operand.vmem [shape: f32[2,1,32], index: 7, kind: input, shape index: {}]   ;;  %s989_s3 = inlined_call_operand.vmem [shape: f32[1,32], index: 3, kind: input, shape index: {}]   ;;  %s990_s0 = inlined_call_operand.vmem [shape: f32[24,64], index: 0, kind: input, shape index: {}]   ;;  %s991_s6 = inlined_call_operand.vmem [shape: f32[2,1,96], index: 6, kind: input, shape index: {}]   ;;  %s992_s4 = inlined_call_operand.vmem [shape: f32[2,32,96], index: 4, kind: input, shape index: {}]   ;;  %s993_s1 = inlined_call_operand.vmem [shape: s32[8,1], index: 1, kind: input, shape index: {}]   ;;  %s994_s8 = inlined_call_operand.vmem [shape: f32[8,64], index: 8, kind: output, shape index: {}]  }
   0x1   :  { %v39_v0 = vld [vmem:[%s986_s2 + $0x38] sm:$0xff]  ;;  %v38_v1 = vld [vmem:[%s986_s2 + $0x30] sm:$0xff]  ;;  %v37_v2 = vld [vmem:[%s986_s2 + $0x28] sm:$0xff] }
   0x2   :  { %62 = vmatpush.msra.mxu0 %v39_v0  ;;  %v781_v3 = vld [vmem:[%s987_s5 + $0x18] sm:$0xff]  ;;  %v36_v4 = vld [vmem:[%s986_s2 + $0x20] sm:$0xff]  ;;  %v790_v5 = vld [vmem:[%s987_s5 + $0x10] sm:$0xff] }
   0x3   :  { %228 = vmatpush.msra.mxu3 %v781_v3  ;;  %v795_v6 = vld [vmem:[%s987_s5 + $0x8] sm:$0xff]  ;;  %v673_v7 = vld [vmem:[%s988_s7] ss:$0 sm:$0xff]  ;;  %v35_v8 = vld [vmem:[%s986_s2 + $0x18] sm:$0xff] }
   0x4   :  { %63 = vmatpush.msra.mxu0 %v38_v1  ;;  %v807_v9 = vld [vmem:[%s987_s5] sm:$0xff]  ;;  %276 = vrot.lane.b32.xlu0 %v673_v7, %s720_s25  ;;  %v34_v11 = vld [vmem:[%s986_s2 + $0x10] sm:$0xff]  ;;  %v655_v12 = vld [vmem:[%s987_s5 + $0x38] sm:$0xff] }
   0x5   :  { %229 = vmatpush.msra.mxu3 %v790_v5  ;;  %v674_v10 = vld [vmem:[%s988_s7 + $0x1] ss:$0 sm:$0xff]  ;;  %v33_v13 = vld [vmem:[%s986_s2 + $0x8] sm:$0xff]  ;;  %v654_v15 = vld [vmem:[%s987_s5 + $0x30] sm:$0xff] }
   0x6   :  { %64 = vmatpush.msra.mxu0 %v37_v2  ;;  %319 = vrot.lane.b32.xlu1 %v674_v10, %s720_s25  ;;  %v32_v16 = vld [vmem:[%s986_s2] sm:$0xff]  ;;  %v653_v18 = vld [vmem:[%s987_s5 + $0x28] sm:$0xff]  ;;  %v31_v21 = vld [vmem:[%s990_s0 + $0x10] sm:$0xff]  ;;  %s723_s2 = smov 96  }
   0x7   :  { %230 = vmatpush.msra.mxu3 %v795_v6  ;;  %v29_v17 = vld [vmem:[%s990_s0] sm:$0xff]  ;;  %v30_v20 = vld [vmem:[%s990_s0 + $0x8] sm:$0xff]  ;;  %v104_v22 = vld [vmem:[%s992_s4 + $0x18] sm:$0xff] }
   0x8   :  { %65 = vmatpush.msra.mxu0 %v36_v4  ;;  %v652_v19 = vld [vmem:[%s987_s5 + $0x20] sm:$0xff]  ;;  %v647_v23 = vld [vmem:[%s992_s4 + $0x38] sm:$0xff]  ;;  %131 = vmatpush.msra.mxu1 %v104_v22  ;;  %v103_v24 = vld [vmem:[%s992_s4 + $0x10] sm:$0xff] }
   0x9   :  { %231 = vmatpush.msra.mxu3 %v807_v9  ;;  %171 = vmatpush.msra.mxu2 %v647_v23  ;;  %v646_v25 = vld [vmem:[%s992_s4 + $0x30] sm:$0xff]  ;;  %v102_v26 = vld [vmem:[%s992_s4 + $0x8] sm:$0xff]  ;;  %v101_v28 = vld [vmem:[%s992_s4] sm:$0xff] }
   0xa   :  { %66 = vmatpush.msra.mxu0 %v35_v8  ;;  %232 = vmatmul.f32.vlgmr.msra.gmra.mxu3 %v721_v14  ;;  %v645_v27 = vld [vmem:[%s992_s4 + $0x28] sm:$0xff]  ;;  %v644_v29 = vld [vmem:[%s992_s4 + $0x20] sm:$0xff] }
   0xb   :  { %248 = vmatpush.msrb.mxu3 %v655_v12  ;;  %132 = vmatpush.msra.mxu1 %v103_v24  ;;  %v675_v30 = vld [vmem:[%s989_s3] ss:$0 sm:$0xff]  ;;  %v677_v0 = vld [vmem:[%s991_s6 + $0x1] ss:$0 sm:$0xff] }
   0xc   :  { %67 = vmatpush.msra.mxu0 %v34_v11  ;;  %172 = vmatpush.msra.mxu2 %v646_v25  ;;  %v676_v61 = vld [vmem:[%s991_s6] ss:$0 sm:$0xff] }
   0xd   :  { %249 = vmatpush.msrb.mxu3 %v654_v15  ;;  %133 = vmatpush.msra.mxu1 %v102_v26 }
   0xe   :  { %68 = vmatpush.msra.mxu0 %v33_v13  ;;  %173 = vmatpush.msra.mxu2 %v645_v27 }
   0xf   :  { %250 = vmatpush.msrb.mxu3 %v653_v18  ;;  %134 = vmatpush.msra.mxu1 %v101_v28 }
  0x10   :  { %69 = vmatpush.msra.mxu0 %v32_v16  ;;  %174 = vmatpush.msra.mxu2 %v644_v29 }
  0x11   :  { %635 = vmatmul.msk.f32.vlgmr.msra.gmra.mxu0 %vm44_vm0, %v29_v17  ;;  %251 = vmatpush.msrb.mxu3 %v652_v19 }
  0x12   :  { %252 = vmatmul.f32.vlgmr.msrb.gmra.mxu3 %v721_v14  ;;  %393 = vmatpush.msrb.mxu1 %v655_v12 }
  0x13   :  { %368 = vmatpush.msra.mxu3 %v781_v3  ;;  %506 = vmatpush.msrb.mxu2 %v781_v3 }
  0x14   :  { %394 = vmatpush.msrb.mxu1 %v654_v15 }
  0x15   :  { %369 = vmatpush.msra.mxu3 %v790_v5  ;;  %507 = vmatpush.msrb.mxu2 %v790_v5 }
  0x16   :  { %395 = vmatpush.msrb.mxu1 %v653_v18 }
  0x17   :  { %370 = vmatpush.msra.mxu3 %v795_v6  ;;  %508 = vmatpush.msrb.mxu2 %v795_v6 }
  0x18   :  { %396 = vmatpush.msrb.mxu1 %v652_v19 }
  0x19   :  { %636 = vmatmul.msk.f32.gmra.mxu0 %vm44_vm0, %v30_v20  ;;  %371 = vmatpush.msra.mxu3 %v807_v9 }
  0x1a   :  { %509 = vmatpush.msrb.mxu2 %v807_v9 }
  0x1b   :  { %531 = vmatpush.msrb.mxu3 %v655_v12 }
  0x1d   :  { %532 = vmatpush.msrb.mxu3 %v654_v15 }
  0x1f   :  { %533 = vmatpush.msrb.mxu3 %v653_v18 }
  0x21   :  { %637 = vmatmul.msk.f32.gmra.mxu0 %vm44_vm0, %v31_v21  ;;  %534 = vmatpush.msrb.mxu3 %v652_v19 }
  0x76   :  { %v884_v34 = vpop.permute.xlu0 %276 }
  0x78   :  { %v888_v39 = vpop.permute.xlu1 %319 }
  0x8d   :  { %v233_v35 = vpop.f32.mrf.mxu3 }
  0x8e   :  { %v71_v31 = vpop.f32.mrf.mxu0  ;;  %v279_v36 = vadd.f32 %v884_v34, %v233_v35 }
  0x8f   :  { %v72_v32 = vadd.f32 %v675_v30, %v71_v31 }
  0x90   :  { %281 = vrot.lane.b32.xlu0 %v279_v36, %s720_s25 }
  0x91   :  { %v83_v33 = vmul.f32 1.442695, %v72_v32  ;;  %vm80_vm1 = vcmp.gt.f32.partialorder %v72_v32, 0.0 }
  0x93   :  { %678 = vpow2.f32 %v83_v33 }
  0x95   :  { %v253_v42 = vpop.f32.mrf.mxu3 }
  0x96   :  { %v74_v37 = vpop.f32.mrf.mxu0  ;;  %v322_v44 = vadd.f32 %v888_v39, %v253_v42 }
  0x97   :  { %v75_v38 = vadd.f32 %v675_v30, %v74_v37 }
  0x98   :  { %324 = vrot.lane.b32.xlu2 %v322_v44, %s720_s25 }
  0x99   :  { %v679_v40 = vpop.eup %678  ;;  %v85_v41 = vmul.f32 1.442695, %v75_v38  ;;  %vm81_vm3 = vcmp.gt.f32.partialorder %v75_v38, 0.0 }
  0x9a   :  { %v638_v43 = vadd.f32 -1.0, %v679_v40 }
  0x9b   :  { %680 = vpow2.f32 %v85_v41 }
  0x9c   :  { %v92_v45 = vmul.f32 1.6732632, %v638_v43 }
  0x9e   :  { %v77_v46 = vpop.f32.mrf.mxu0  ;;  %v95_v47 = vsel %vm80_vm1, %v72_v32, %v92_v45 }
  0x9f   :  { %v78_v48 = vadd.f32 %v675_v30, %v77_v46  ;;  %v98_v49 = vmul.f32 1.050701, %v95_v47  ;;  %v205_v47 = vld [vmem:[%s993_s1] sm:$0xff] }
  0xa1   :  { %v681_v50 = vpop.eup %680  ;;  %v87_v51 = vmul.f32 1.442695, %v78_v48  ;;  %641 = vmatmul.msk.f32.vlgmr.msra.gmra.mxu1 %vm109_vm2, %v98_v49  ;;  %649 = vmatmul.msk.f32.vlgmr.msra.gmra.mxu2 %vm109_vm2, %v98_v49  ;;  %vm82_vm4 = vcmp.gt.f32.partialorder %v78_v48, 0.0 }
  0xa2   :  { %v639_v52 = vadd.f32 -1.0, %v681_v50 }
  0xa3   :  { %682 = vpow2.f32 %v87_v51 }
  0xa4   :  { %v93_v53 = vmul.f32 1.6732632, %v639_v52 }
  0xa6   :  { %v96_v54 = vsel %vm81_vm3, %v75_v38, %v93_v53 }
  0xa7   :  { %v99_v55 = vmul.f32 1.050701, %v96_v54 }
  0xa9   :  { %v683_v56 = vpop.eup %682  ;;  %650 = vmatmul.msk.f32.gmra.mxu2 %vm109_vm2, %v99_v55  ;;  %642 = vmatmul.msk.f32.gmra.mxu1 %vm109_vm2, %v99_v55 }
  0xaa   :  { %v640_v57 = vadd.f32 -1.0, %v683_v56 }
  0xac   :  { %v94_v58 = vmul.f32 1.6732632, %v640_v57 }
  0xae   :  { %v97_v59 = vsel %vm82_vm4, %v78_v48, %v94_v58  ;;  %v722_v48 = vmov 0  }
  0xaf   :  { %v100_v60 = vmul.f32 1.050701, %v97_v59  ;;  %671 = vset.pattern.permute.xlu1 %v722_v48  ;;  %672 = vset.pattern.permute.xlu0 %v722_v48 }
  0xb1   :  { %651 = vmatmul.msk.f32.gmra.mxu2 %vm109_vm2, %v100_v60  ;;  %643 = vmatmul.msk.f32.gmra.mxu1 %vm109_vm2, %v100_v60 }
  0xf2   :  { %v325_v43 = vpop.permute.xlu2 %324 }
 0x102   :  { %v282_v24 = vpop.permute.xlu0 %281 }
 0x11e   :  { %v136_v62 = vpop.f32.mrf.mxu1 }
 0x11f   :  { %v137_v63 = vadd.f32 %v676_v61, %v136_v62 }
 0x121   :  { %146 = vst.msk [vmem:[#allocation2] sm:$0xff] %vm145_vm5, %v137_v63 }
 0x124   :  { %v176_v1 = vpop.f32.mrf.mxu2 }
 0x125   :  { %v177_v2 = vadd.f32 %v677_v0, %v176_v1 }
 0x126   :  { %v139_v17 = vpop.f32.mrf.mxu1 }
 0x127   :  { %186 = vst.msk [vmem:[#allocation2 + $0x18] sm:$0xff] %vm145_vm5, %v177_v2  ;;  %v140_v19 = vadd.f32 %v676_v61, %v139_v17 }
 0x128   :  { %v906_v3 = vld [vmem:[#allocation2] sm:$0xff] }
 0x129   :  { %v256_v4 = vadd.f32 %v233_v35, %v906_v3  ;;  %147 = vst.msk [vmem:[#allocation2 + $0x8] sm:$0xff] %vm145_vm5, %v140_v19 }
 0x12b   :  { %v657_v5 = vmul.f32 -1.442695, %v256_v4 }
 0x12c   :  { %v179_v6 = vpop.f32.mrf.mxu2 }
 0x12d   :  { %v180_v7 = vadd.f32 %v677_v0, %v179_v6  ;;  %684 = vpow2.f32 %v657_v5 }
 0x12e   :  { %v142_v29 = vpop.f32.mrf.mxu1 }
 0x12f   :  { %187 = vst.msk [vmem:[#allocation2 + $0x20] sm:$0xff] %vm145_vm5, %v180_v7  ;;  %v143_v30 = vadd.f32 %v676_v61, %v142_v29 }
 0x131   :  { %148 = vst.msk [vmem:[#allocation2 + $0x10] sm:$0xff] %vm145_vm5, %v143_v30 }
 0x133   :  { %v685_v8 = vpop.eup %684 }
 0x134   :  { %v182_v9 = vpop.f32.mrf.mxu2  ;;  %v260_v10 = vadd.f32 1.0, %v685_v8 }
 0x135   :  { %v183_v11 = vadd.f32 %v677_v0, %v182_v9 }
 0x136   :  { %686 = vrcp.f32 %v260_v10  ;;  %v272_v18 = vand.u32 2147483648, %v260_v10  ;;  %v270_v21 = vand.u32 2147483647, %v260_v10  ;;  %vm266_vm7 = vweird.f32 %v260_v10 }
 0x137   :  { %188 = vst.msk [vmem:[#allocation2 + $0x28] sm:$0xff] %vm145_vm5, %v183_v11 }
 0x138   :  { %v273_v25 = vor.u32 1.1754944e-38, %v272_v18  ;;  %vm271_vm9 = vcmp.eq.f32.partialorder %v270_v21, 8.507059e+37 }
 0x13c   :  { %v687_v12 = vpop.eup %686 }
 0x13d   :  { %v262_v13 = vmul.f32 %v687_v12, %v260_v10  ;;  %vm267_vm6 = vweird.f32 %v687_v12  ;;  %v347_v10 = vld [vmem:[#allocation2 + $0x8] sm:$0xff] }
 0x13e   :  { %v212_v14 = vld [vmem:[#allocation2 + $0x28] sm:$0xff]  ;;  %vm268_vm8 = vmor %vm266_vm7, %vm267_vm6 }
 0x13f   :  { %v263_v15 = vsub.f32 1.0, %v262_v13  ;;  %v299_v16 = vadd.f32 %v253_v42, %v212_v14 }
 0x141   :  { %v264_v20 = vmul.f32 %v687_v12, %v263_v15  ;;  %v658_v22 = vmul.f32 -1.442695, %v299_v16 }
 0x143   :  { %v265_v23 = vadd.f32 %v687_v12, %v264_v20  ;;  %688 = vpow2.f32 %v658_v22 }
 0x145   :  { %v269_v26 = vsel %vm268_vm8, %v687_v12, %v265_v23 }
 0x146   :  { %v274_v27 = vsel %vm271_vm9, %v273_v25, %v269_v26 }
 0x147   :  { %v284_v28 = vmul.f32 %v282_v24, %v274_v27  ;;  %v291_v55 = vsub.f32 1.0, %v274_v27  ;;  %v297_v58 = vmul.f32 0.0, %v274_v27  ;;  %v350_v24 = vld [vmem:[#allocation2 + $0x20] sm:$0xff] }
 0x149   :  { %v689_v31 = vpop.eup %688  ;;  %286 = vrot.lane.b32.xlu1 %v284_v28, %s720_s25 }
 0x14a   :  { %v303_v32 = vadd.f32 1.0, %v689_v31 }
 0x14c   :  { %690 = vrcp.f32 %v303_v32  ;;  %v315_v36 = vand.u32 2147483648, %v303_v32  ;;  %vm309_vm10 = vweird.f32 %v303_v32  ;;  %v313_v38 = vand.u32 2147483647, %v303_v32 }
 0x14e   :  { %v316_v41 = vor.u32 1.1754944e-38, %v315_v36  ;;  %vm314_vm13 = vcmp.eq.f32.partialorder %v313_v38, 8.507059e+37 }
 0x151   :  { %207 = vperm.xlu1 %671, %v205_v47  }
 0x152   :  { %v691_v33 = vpop.eup %690 }
 0x153   :  { %v305_v35 = vmul.f32 %v691_v33, %v303_v32  ;;  %vm310_vm11 = vweird.f32 %v691_v33 }
 0x154   :  { %vm311_vm12 = vmor %vm309_vm10, %vm310_vm11 }
 0x155   :  { %v306_v37 = vsub.f32 1.0, %v305_v35 }
 0x157   :  { %v307_v40 = vmul.f32 %v691_v33, %v306_v37 }
 0x159   :  { %v308_v42 = vadd.f32 %v691_v33, %v307_v40 }
 0x15b   :  { %v312_v44 = vsel %vm311_vm12, %v691_v33, %v308_v42 }
 0x15c   :  { %v317_v45 = vsel %vm314_vm13, %v316_v41, %v312_v44 }
 0x15d   :  { %v327_v46 = vmul.f32 %v325_v43, %v317_v45  ;;  %v334_v62 = vsub.f32 1.0, %v317_v45  ;;  %v340_v0 = vmul.f32 0.0, %v317_v45 }
 0x15f   :  { %329 = vrot.lane.b32.xlu2 %v327_v46, %s720_s25 }
 0x1b9   :  { %v330_v51 = vpop.permute.xlu2 %329 }
 0x1ba   :  { %v332_v52 = vadd.f32 %v330_v51, %v212_v14 }
 0x1bb   :  { %v287_v49 = vpop.permute.xlu1 %286 }
 0x1bc   :  { %v289_v50 = vadd.f32 %v287_v49, %v906_v3 }
 0x1be   :  { %692 = vtanh.f32 %v289_v50 }
 0x1bf   :  { %694 = vtanh.f32 %v332_v52 }
 0x1c3   :  { %v921_v56 = vpop.permute.xlu1 %207 }
 0x1c4   :  { %v693_v53 = vpop.eup %692  ;;  %vm342_vm14 = vcmp.gt.s32.totalorder %v921_v56, 0  ;;  %vm344_vm15 = vcmp.gt.s32.totalorder %v921_v56, 2  ;;  %vm481_vm9 = vcmp.gt.s32.totalorder %v921_v56, 1 }
 0x1c5   :  { %293 = vrot.lane.b32.xlu0 %v693_v53, %s723_s2  ;;  %v695_v54 = vpop.eup %694 }
 0x1cd   :  { %336 = vrot.lane.b32.xlu0 %v695_v54, %s723_s2 }
 0x237   :  { %v294_v57 = vpop.permute.xlu0 %293 }
 0x238   :  { %v296_v59 = vmul.f32 %v294_v57, %v291_v55 }
 0x23a   :  { %v298_v60 = vadd.f32 %v297_v58, %v296_v59 }
 0x23c   :  { %v926_v61 = vsel %vm342_vm14, %v298_v60, 0.0 }
 0x23d   :  { %352 = vrot.lane.b32.xlu2 %v926_v61, %s723_s2 }
 0x23f   :  { %v337_v63 = vpop.permute.xlu0 %336 }
 0x240   :  { %v339_v1 = vmul.f32 %v337_v63, %v334_v62 }
 0x242   :  { %v341_v2 = vadd.f32 %v340_v0, %v339_v1 }
 0x244   :  { %v933_v3 = vsel %vm344_vm15, %v341_v2, 0.0 }
 0x245   :  { %377 = vrot.lane.b32.xlu1 %v933_v3, %s723_s2 }
 0x297   :  { %v353_v4 = vpop.permute.xlu2 %352 }
 0x298   :  { %659 = vmatmul.msk.f32.vlgmr.msra.gmra.mxu3 %vm109_vm2, %v353_v4 }
 0x2b7   :  { %v378_v5 = vpop.permute.xlu1 %377 }
 0x2b8   :  { %660 = vmatmul.msk.f32.vlgmr.msrb.gmra.mxu1 %vm109_vm2, %v378_v5 }
 0x31b   :  { %v373_v6 = vpop.f32.mrf.mxu3 }
 0x31c   :  { %v421_v7 = vadd.f32 %v373_v6, %v884_v34  ;;  %v401_v11 = vadd.f32 %v373_v6, %v347_v10 }
 0x31e   :  { %423 = vrot.lane.b32.xlu2 %v421_v7, %s720_s25  ;;  %v661_v12 = vmul.f32 -1.442695, %v401_v11 }
 0x320   :  { %696 = vpow2.f32 %v661_v12  ;;  %v488_v12 = vld [vmem:[#allocation2 + $0x18] sm:$0xff] }
 0x326   :  { %v697_v13 = vpop.eup %696 }
 0x327   :  { %v405_v14 = vadd.f32 1.0, %v697_v13 }
 0x329   :  { %698 = vrcp.f32 %v405_v14  ;;  %v417_v20 = vand.u32 2147483648, %v405_v14  ;;  %vm411_vm1 = vweird.f32 %v405_v14  ;;  %v415_v21 = vand.u32 2147483647, %v405_v14 }
 0x32b   :  { %v418_v23 = vor.u32 1.1754944e-38, %v417_v20  ;;  %vm416_vm4 = vcmp.eq.f32.partialorder %v415_v21, 8.507059e+37 }
 0x32f   :  { %v699_v15 = vpop.eup %698 }
 0x330   :  { %v407_v16 = vmul.f32 %v699_v15, %v405_v14  ;;  %vm412_vm0 = vweird.f32 %v699_v15 }
 0x331   :  { %vm413_vm3 = vmor %vm411_vm1, %vm412_vm0 }
 0x332   :  { %v408_v17 = vsub.f32 1.0, %v407_v16 }
 0x334   :  { %v409_v18 = vmul.f32 %v699_v15, %v408_v17 }
 0x335   :  { %v398_v8 = vpop.f32.mrf.mxu1 }
 0x336   :  { %v461_v9 = vadd.f32 %v398_v8, %v888_v39  ;;  %v410_v19 = vadd.f32 %v699_v15, %v409_v18  ;;  %v441_v27 = vadd.f32 %v398_v8, %v350_v24 }
 0x338   :  { %463 = vrot.lane.b32.xlu0 %v461_v9, %s720_s25  ;;  %v414_v22 = vsel %vm413_vm3, %v699_v15, %v410_v19  ;;  %v662_v29 = vmul.f32 -1.442695, %v441_v27 }
 0x339   :  { %v419_v26 = vsel %vm416_vm4, %v418_v23, %v414_v22 }
 0x33a   :  { %700 = vpow2.f32 %v662_v29  ;;  %v433_v52 = vsub.f32 1.0, %v419_v26  ;;  %v439_v54 = vmul.f32 %v419_v26, %v926_v61 }
 0x340   :  { %v701_v30 = vpop.eup %700 }
 0x341   :  { %v445_v31 = vadd.f32 1.0, %v701_v30 }
 0x343   :  { %702 = vrcp.f32 %v445_v31  ;;  %v457_v38 = vand.u32 2147483648, %v445_v31  ;;  %vm451_vm6 = vweird.f32 %v445_v31  ;;  %v455_v40 = vand.u32 2147483647, %v445_v31 }
 0x345   :  { %v458_v42 = vor.u32 1.1754944e-38, %v457_v38  ;;  %vm456_vm8 = vcmp.eq.f32.partialorder %v455_v40, 8.507059e+37 }
 0x349   :  { %v703_v32 = vpop.eup %702 }
 0x34a   :  { %v447_v33 = vmul.f32 %v703_v32, %v445_v31  ;;  %vm452_vm5 = vweird.f32 %v703_v32 }
 0x34b   :  { %vm453_vm7 = vmor %vm451_vm6, %vm452_vm5  ;;  %vm626_vm5 = vcmask 523520  }
 0x34c   :  { %v448_v35 = vsub.f32 1.0, %v447_v33 }
 0x34e   :  { %v449_v36 = vmul.f32 %v703_v32, %v448_v35 }
 0x350   :  { %v450_v37 = vadd.f32 %v703_v32, %v449_v36 }
 0x352   :  { %v454_v41 = vsel %vm453_vm7, %v703_v32, %v450_v37 }
 0x353   :  { %v459_v44 = vsel %vm456_vm8, %v458_v42, %v454_v41 }
 0x354   :  { %v473_v59 = vsub.f32 1.0, %v459_v44  ;;  %v479_v62 = vmul.f32 %v459_v44, %v933_v3 }
 0x378   :  { %v424_v25 = vpop.permute.xlu2 %423 }
 0x379   :  { %v426_v28 = vmul.f32 %v424_v25, %v419_v26 }
 0x37b   :  { %428 = vrot.lane.b32.xlu1 %v426_v28, %s720_s25 }
 0x3aa   :  { %v464_v43 = vpop.permute.xlu0 %463 }
 0x3ab   :  { %v466_v45 = vmul.f32 %v464_v43, %v459_v44 }
 0x3ad   :  { %468 = vrot.lane.b32.xlu2 %v466_v45, %s720_s25 }
 0x3ed   :  { %v429_v46 = vpop.permute.xlu1 %428 }
 0x3ee   :  { %v431_v47 = vadd.f32 %v429_v46, %v347_v10 }
 0x3f0   :  { %704 = vtanh.f32 %v431_v47 }
 0x3f6   :  { %v705_v48 = vpop.eup %704 }
 0x3f7   :  { %435 = vrot.lane.b32.xlu0 %v705_v48, %s723_s2 }
 0x407   :  { %v469_v49 = vpop.permute.xlu2 %468 }
 0x408   :  { %v471_v50 = vadd.f32 %v469_v49, %v350_v24 }
 0x40a   :  { %706 = vtanh.f32 %v471_v50 }
 0x410   :  { %v707_v51 = vpop.eup %706 }
 0x411   :  { %475 = vrot.lane.b32.xlu1 %v707_v51, %s723_s2 }
 0x469   :  { %v436_v53 = vpop.permute.xlu0 %435 }
 0x46a   :  { %v438_v55 = vmul.f32 %v436_v53, %v433_v52 }
 0x46c   :  { %v440_v57 = vadd.f32 %v439_v54, %v438_v55 }
 0x46e   :  { %v950_v58 = vsel %vm481_vm9, %v440_v57, %v926_v61 }
 0x46f   :  { %490 = vrot.lane.b32.xlu2 %v950_v58, %s723_s2 }
 0x483   :  { %v476_v60 = vpop.permute.xlu1 %475 }
 0x484   :  { %v478_v63 = vmul.f32 %v476_v60, %v473_v59 }
 0x486   :  { %v480_v0 = vadd.f32 %v479_v62, %v478_v63 }
 0x488   :  { %v956_v1 = vsel %vm481_vm9, %v480_v0, %v933_v3  ;;  %v485_v3 = vld [vmem:[#allocation2 + $0x10] sm:$0xff] }
 0x489   :  { %515 = vrot.lane.b32.xlu0 %v956_v1, %s723_s2 }
 0x4c9   :  { %v491_v2 = vpop.permute.xlu2 %490 }
 0x4ca   :  { %663 = vmatmul.msk.f32.vlgmr.msrb.gmra.mxu2 %vm109_vm2, %v491_v2 }
 0x4fb   :  { %v516_v61 = vpop.permute.xlu0 %515 }
 0x4fc   :  { %664 = vmatmul.msk.f32.vlgmr.msrb.gmra.mxu3 %vm109_vm2, %v516_v61 }
 0x54d   :  { %v511_v4 = vpop.f32.mrf.mxu2 }
 0x54e   :  { %v559_v5 = vadd.f32 %v511_v4, %v884_v34  ;;  %v539_v8 = vadd.f32 %v511_v4, %v485_v3 }
 0x550   :  { %561 = vrot.lane.b32.xlu1 %v559_v5, %s720_s25  ;;  %v665_v9 = vmul.f32 -1.442695, %v539_v8 }
 0x552   :  { %708 = vpow2.f32 %v665_v9 }
 0x558   :  { %v709_v10 = vpop.eup %708 }
 0x559   :  { %v543_v11 = vadd.f32 1.0, %v709_v10 }
 0x55b   :  { %710 = vrcp.f32 %v543_v11  ;;  %v555_v20 = vand.u32 2147483648, %v543_v11  ;;  %vm549_vm11 = vweird.f32 %v543_v11  ;;  %v553_v21 = vand.u32 2147483647, %v543_v11 }
 0x55d   :  { %v556_v23 = vor.u32 1.1754944e-38, %v555_v20  ;;  %vm554_vm13 = vcmp.eq.f32.partialorder %v553_v21, 8.507059e+37 }
 0x561   :  { %v711_v14 = vpop.eup %710 }
 0x562   :  { %v545_v16 = vmul.f32 %v711_v14, %v543_v11  ;;  %vm550_vm10 = vweird.f32 %v711_v14 }
 0x563   :  { %vm551_vm12 = vmor %vm549_vm11, %vm550_vm10 }
 0x564   :  { %v546_v34 = vsub.f32 1.0, %v545_v16 }
 0x566   :  { %v547_v17 = vmul.f32 %v711_v14, %v546_v34 }
 0x568   :  { %v548_v19 = vadd.f32 %v711_v14, %v547_v17 }
 0x56a   :  { %v552_v22 = vsel %vm551_vm12, %v711_v14, %v548_v19 }
 0x56b   :  { %v557_v24 = vsel %vm554_vm13, %v556_v23, %v552_v22 }
 0x56c   :  { %v571_v47 = vsub.f32 1.0, %v557_v24  ;;  %v577_v49 = vmul.f32 %v557_v24, %v950_v58 }
 0x57f   :  { %v536_v6 = vpop.f32.mrf.mxu3 }
 0x580   :  { %v599_v7 = vadd.f32 %v536_v6, %v888_v39  ;;  %v579_v13 = vadd.f32 %v536_v6, %v488_v12 }
 0x582   :  { %601 = vrot.lane.b32.xlu2 %v599_v7, %s720_s25  ;;  %v666_v15 = vmul.f32 -1.442695, %v579_v13 }
 0x584   :  { %712 = vpow2.f32 %v666_v15 }
 0x58a   :  { %v713_v18 = vpop.eup %712 }
 0x58b   :  { %v583_v39 = vadd.f32 1.0, %v713_v18 }
 0x58d   :  { %714 = vrcp.f32 %v583_v39  ;;  %v595_v32 = vand.u32 2147483648, %v583_v39  ;;  %vm589_vm1 = vweird.f32 %v583_v39  ;;  %v593_v33 = vand.u32 2147483647, %v583_v39 }
 0x58f   :  { %v596_v36 = vor.u32 1.1754944e-38, %v595_v32  ;;  %vm594_vm4 = vcmp.eq.f32.partialorder %v593_v33, 8.507059e+37 }
 0x593   :  { %v715_v27 = vpop.eup %714 }
 0x594   :  { %v585_v28 = vmul.f32 %v715_v27, %v583_v39  ;;  %vm590_vm0 = vweird.f32 %v715_v27 }
 0x595   :  { %vm591_vm3 = vmor %vm589_vm1, %vm590_vm0 }
 0x596   :  { %v586_v29 = vsub.f32 1.0, %v585_v28 }
 0x598   :  { %v587_v30 = vmul.f32 %v715_v27, %v586_v29 }
 0x59a   :  { %v588_v31 = vadd.f32 %v715_v27, %v587_v30 }
 0x59c   :  { %v592_v35 = vsel %vm591_vm3, %v715_v27, %v588_v31 }
 0x59d   :  { %v597_v38 = vsel %vm594_vm4, %v596_v36, %v592_v35 }
 0x59e   :  { %v611_v54 = vsub.f32 1.0, %v597_v38  ;;  %v617_v57 = vmul.f32 %v597_v38, %v956_v1 }
 0x5c2   :  { %v562_v25 = vpop.permute.xlu1 %561 }
 0x5c3   :  { %v564_v26 = vmul.f32 %v562_v25, %v557_v24 }
 0x5c5   :  { %566 = vrot.lane.b32.xlu0 %v564_v26, %s720_s25 }
 0x5dc   :  { %v602_v37 = vpop.permute.xlu2 %601 }
 0x5dd   :  { %v604_v40 = vmul.f32 %v602_v37, %v597_v38 }
 0x5df   :  { %606 = vrot.lane.b32.xlu1 %v604_v40, %s720_s25 }
 0x637   :  { %v567_v41 = vpop.permute.xlu0 %566 }
 0x638   :  { %v569_v42 = vadd.f32 %v567_v41, %v485_v3 }
 0x63a   :  { %716 = vtanh.f32 %v569_v42 }
 0x640   :  { %v717_v43 = vpop.eup %716 }
 0x641   :  { %573 = vrot.lane.b32.xlu2 %v717_v43, %s723_s2 }
 0x651   :  { %v607_v44 = vpop.permute.xlu1 %606 }
 0x652   :  { %v609_v45 = vadd.f32 %v607_v44, %v488_v12 }
 0x654   :  { %718 = vtanh.f32 %v609_v45 }
 0x65a   :  { %v719_v46 = vpop.eup %718 }
 0x65b   :  { %613 = vrot.lane.b32.xlu0 %v719_v46, %s723_s2 }
 0x69b   :  { %v574_v48 = vpop.permute.xlu2 %573 }
 0x69c   :  { %v576_v50 = vmul.f32 %v574_v48, %v571_v47 }
 0x69e   :  { %v578_v51 = vadd.f32 %v577_v49, %v576_v50 }
 0x6a0   :  { %v619_v52 = vsel %vm344_vm15, %v578_v51, %v950_v58 }
 0x6a1   :  { %622 = vrot.lane.b32.xlu1 %v619_v52, %s723_s2 }
 0x6cd   :  { %v614_v53 = vpop.permute.xlu0 %613 }
 0x6ce   :  { %v616_v55 = vmul.f32 %v614_v53, %v611_v54 }
 0x6d0   :  { %v618_v59 = vadd.f32 %v617_v57, %v616_v55 }
 0x6d2   :  { %v620_v62 = vsel %vm342_vm14, %v618_v59, %v956_v1 }
 0x713   :  { %v623_v60 = vpop.permute.xlu1 %622 }
 0x714   :  { %625 = vst.msk [vmem:[%s994_s8] sm:$0xff] %vm109_vm2, %v623_v60 }
 0x715   :  { %627 = vst.msk [vmem:[%s994_s8] sm:$0xff] %vm626_vm5, %v620_v62 }

// kernel: sden_forward.7
= control target key start
LH: loop header
LB: loop body
LE: loop exit
PB: predicated region body
PF: predicated region fallthrough
CT: control target
= control target key end

     0   :  { %vm37_vm0 = vcmask 130048   ;;  %v1471_v9 = vmov 0.0   ;;  %s1472_s15 = smov 32   ;;  %vm103_vm1 = vcmask 392192   ;;  %v1474_v57 = vmov 0   ;;  %s1887_s2 = inlined_call_operand.vmem [shape: f32[2,16,48], index: 2, kind: input, shape index: {}]   ;;  %s1888_s3 = inlined_call_operand.vmem [shape: f32[2,16,48], index: 3, kind: input, shape index: {}]   ;;  %s1889_s0 = inlined_call_operand.vmem [shape: f32[64,16], index: 0, kind: input, shape index: {}]   ;;  %s1890_s5 = inlined_call_operand.vmem [shape: f32[2,1,16], index: 5, kind: input, shape index: {}]   ;;  %s1891_s4 = inlined_call_operand.vmem [shape: f32[2,1,48], index: 4, kind: input, shape index: {}]   ;;  %s1892_s1 = inlined_call_operand.vmem [shape: s32[8,1], index: 1, kind: input, shape index: {}]   ;;  %s1893_s6 = inlined_call_operand.vmem [shape: f32[8,32], index: 6, kind: output, shape index: {}]  }
   0x1   :  { %v32_v0 = vld [vmem:[%s1887_s2 + $0x8] sm:$0xff]  ;;  %v31_v2 = vld [vmem:[%s1887_s2] sm:$0xff]  ;;  %v1534_v5 = vld [vmem:[%s1888_s3 + $0x18] sm:$0xff]  ;;  %1364 = vset.pattern.permute.xlu1 %v1474_v57  ;;  %1365 = vset.pattern.permute.xlu0 %v1474_v57 }
   0x2   :  { %v1517_v1 = vld [vmem:[%s1888_s3 + $0x8] sm:$0xff]  ;;  %76 = vmatpush.msra.mxu0 %v32_v0  ;;  %v1526_v3 = vld [vmem:[%s1888_s3] sm:$0xff]  ;;  %227 = vmatpush.msra.mxu3 %v1534_v5  ;;  %v1540_v6 = vld [vmem:[%s1888_s3 + $0x10] sm:$0xff] }
   0x3   :  { %207 = vmatpush.msra.mxu2 %v1517_v1  ;;  %v23_v4 = vld [vmem:[%s1889_s0] sm:$0xff]  ;;  %v1316_v8 = vld [vmem:[%s1887_s2 + $0x18] sm:$0xff]  ;;  %v1315_v10 = vld [vmem:[%s1887_s2 + $0x10] sm:$0xff] }
   0x4   :  { %v1366_v7 = vld [vmem:[%s1890_s5] ss:$0 sm:$0xff]  ;;  %77 = vmatpush.msra.mxu0 %v31_v2  ;;  %228 = vmatpush.msra.mxu3 %v1540_v6  ;;  %v1367_v11 = vld [vmem:[%s1890_s5 + $0x1] ss:$0 sm:$0xff]  ;;  %v24_v12 = vld [vmem:[%s1889_s0 + $0x8] sm:$0xff] }
   0x5   :  { %208 = vmatpush.msra.mxu2 %v1526_v3  ;;  %1307 = vmatmul.msk.f32.vlgmr.msra.gmra.mxu0 %vm37_vm0, %v23_v4  ;;  %v25_v13 = vld [vmem:[%s1889_s0 + $0x10] sm:$0xff]  ;;  %v26_v14 = vld [vmem:[%s1889_s0 + $0x18] sm:$0xff]  ;;  %v27_v15 = vld [vmem:[%s1889_s0 + $0x20] sm:$0xff] }
   0x6   :  { %209 = vmatmul.f32.vlgmr.msra.gmra.mxu2 %v1471_v9  ;;  %253 = vrot.lane.b32.xlu0 %v1366_v7, %s1472_s15  ;;  %v28_v16 = vld [vmem:[%s1889_s0 + $0x28] sm:$0xff]  ;;  %v29_v17 = vld [vmem:[%s1889_s0 + $0x30] sm:$0xff]  ;;  %v30_v18 = vld [vmem:[%s1889_s0 + $0x38] sm:$0xff]  ;;  %s1473_s0 = smov 96  }
   0x7   :  { %229 = vmatmul.f32.vlgmr.msra.gmra.mxu3 %v1471_v9  ;;  %134 = vmatpush.msra.mxu1 %v1316_v8  ;;  %v1606_v19 = vld [vmem:[%s1891_s4] ss:$0 sm:$0xff]  ;;  %v1369_v23 = vld [vmem:[%s1891_s4 + $0x1] ss:$0 sm:$0xff] }
   0x8   :  { %372 = vmatpush.msrb.mxu3 %v1534_v5  ;;  %347 = vmatpush.msrb.mxu2 %v1517_v1  ;;  %v182_v56 = vld [vmem:[%s1892_s1] sm:$0xff]  ;;  %s1475_s1 = smov 112  }
   0x9   :  { %135 = vmatpush.msra.mxu1 %v1315_v10 }
   0xa   :  { %1318 = vmatmul.msk.f32.vlgmr.msra.gmra.mxu1 %vm37_vm0, %v23_v4  ;;  %373 = vmatpush.msrb.mxu3 %v1540_v6 }
   0xb   :  { %348 = vmatpush.msrb.mxu2 %v1526_v3 }
   0xc   :  { %511 = vmatpush.msra.mxu3 %v1534_v5 }
   0xd   :  { %486 = vmatpush.msra.mxu2 %v1517_v1  ;;  %1308 = vmatmul.msk.f32.gmra.mxu0 %vm37_vm0, %v24_v12 }
   0xe   :  { %512 = vmatpush.msra.mxu3 %v1540_v6  ;;  %296 = vrot.lane.b32.xlu0 %v1367_v11, %s1472_s15 }
   0xf   :  { %487 = vmatpush.msra.mxu2 %v1526_v3 }
  0x12   :  { %1319 = vmatmul.msk.f32.gmra.mxu1 %vm37_vm0, %v24_v12 }
  0x15   :  { %1309 = vmatmul.msk.f32.gmra.mxu0 %vm37_vm0, %v25_v13 }
  0x1a   :  { %1320 = vmatmul.msk.f32.gmra.mxu1 %vm37_vm0, %v25_v13 }
  0x1d   :  { %1310 = vmatmul.msk.f32.gmra.mxu0 %vm37_vm0, %v26_v14 }
  0x22   :  { %1321 = vmatmul.msk.f32.gmra.mxu1 %vm37_vm0, %v26_v14 }
  0x25   :  { %1311 = vmatmul.msk.f32.gmra.mxu0 %vm37_vm0, %v27_v15 }
  0x2a   :  { %1322 = vmatmul.msk.f32.gmra.mxu1 %vm37_vm0, %v27_v15 }
  0x2d   :  { %1312 = vmatmul.msk.f32.gmra.mxu0 %vm37_vm0, %v28_v16 }
  0x32   :  { %1323 = vmatmul.msk.f32.gmra.mxu1 %vm37_vm0, %v28_v16 }
  0x35   :  { %1313 = vmatmul.msk.f32.gmra.mxu0 %vm37_vm0, %v29_v17 }
  0x3a   :  { %1324 = vmatmul.msk.f32.gmra.mxu1 %vm37_vm0, %v29_v17 }
  0x3d   :  { %1314 = vmatmul.msk.f32.gmra.mxu0 %vm37_vm0, %v30_v18 }
  0x42   :  { %1325 = vmatmul.msk.f32.gmra.mxu1 %vm37_vm0, %v30_v18 }
  0x78   :  { %v1608_v21 = vpop.permute.xlu0 %253 }
  0x80   :  { %v1618_v28 = vpop.permute.xlu0 %296 }
  0x82   :  { %v79_v20 = vpop.f32.mrf.mxu0 }
  0x83   :  { %v80_v22 = vadd.f32 %v1606_v19, %v79_v20 }
  0x85   :  { %104 = vst.msk [vmem:[#allocation2] sm:$0xff] %vm103_vm1, %v80_v22 }
  0x87   :  { %v137_v24 = vpop.f32.mrf.mxu1 }
  0x88   :  { %v138_v26 = vadd.f32 %v1369_v23, %v137_v24 }
  0x89   :  { %v210_v25 = vpop.f32.mrf.mxu2 }
  0x8a   :  { %v256_v27 = vadd.f32 %v1608_v21, %v210_v25  ;;  %162 = vst.msk [vmem:[#allocation2 + $0x40] sm:$0xff] %vm103_vm1, %v138_v26  ;;  %v230_v29 = vpop.f32.mrf.mxu3 }
  0x8b   :  { %v299_v30 = vadd.f32 %v1618_v28, %v230_v29 }
  0x8c   :  { %258 = vrot.lane.b32.xlu1 %v256_v27, %s1473_s0  ;;  %v186_v45 = vld [vmem:[#allocation2] sm:$0xff] }
  0x8d   :  { %v233_v46 = vadd.f32 %v210_v25, %v186_v45 }
  0x8f   :  { %v140_v31 = vpop.f32.mrf.mxu1  ;;  %v1329_v48 = vmul.f32 -1.442695, %v233_v46 }
  0x90   :  { %v141_v32 = vadd.f32 %v1369_v23, %v140_v31 }
  0x91   :  { %1370 = vpow2.f32 %v1329_v48 }
  0x92   :  { %163 = vst.msk [vmem:[#allocation2 + $0x48] sm:$0xff] %vm103_vm1, %v141_v32 }
  0x94   :  { %301 = vrot.lane.b32.xlu1 %v299_v30, %s1473_s0 }
  0x97   :  { %v143_v33 = vpop.f32.mrf.mxu1  ;;  %v1371_v51 = vpop.eup %1370 }
  0x98   :  { %v144_v34 = vadd.f32 %v1369_v23, %v143_v33  ;;  %v237_v52 = vadd.f32 1.0, %v1371_v51 }
  0x9a   :  { %164 = vst.msk [vmem:[#allocation2 + $0x50] sm:$0xff] %vm103_vm1, %v144_v34  ;;  %v249_v2 = vand.u32 2147483648, %v237_v52  ;;  %vm243_vm3 = vweird.f32 %v237_v52  ;;  %v247_v4 = vand.u32 2147483647, %v237_v52 }
  0x9c   :  { %184 = vperm.xlu1 %1364, %v182_v56   ;;  %v250_v9 = vor.u32 1.1754944e-38, %v249_v2  ;;  %vm248_vm7 = vcmp.eq.f32.partialorder %v247_v4, 8.507059e+37 }
  0x9f   :  { %v146_v35 = vpop.f32.mrf.mxu1 }
  0xa0   :  { %v147_v36 = vadd.f32 %v1369_v23, %v146_v35 }
  0xa2   :  { %165 = vst.msk [vmem:[#allocation2 + $0x58] sm:$0xff] %vm103_vm1, %v147_v36 }
  0xa7   :  { %v149_v37 = vpop.f32.mrf.mxu1 }
  0xa8   :  { %v150_v38 = vadd.f32 %v1369_v23, %v149_v37 }
  0xaa   :  { %166 = vst.msk [vmem:[#allocation2 + $0x60] sm:$0xff] %vm103_vm1, %v150_v38 }
  0xaf   :  { %v152_v39 = vpop.f32.mrf.mxu1 }
  0xb0   :  { %v153_v40 = vadd.f32 %v1369_v23, %v152_v39 }
  0xb2   :  { %167 = vst.msk [vmem:[#allocation2 + $0x68] sm:$0xff] %vm103_vm1, %v153_v40 }
  0xb7   :  { %v155_v41 = vpop.f32.mrf.mxu1 }
  0xb8   :  { %v156_v42 = vadd.f32 %v1369_v23, %v155_v41 }
  0xba   :  { %168 = vst.msk [vmem:[#allocation2 + $0x70] sm:$0xff] %vm103_vm1, %v156_v42 }
  0xbf   :  { %v158_v43 = vpop.f32.mrf.mxu1 }
  0xc0   :  { %v159_v44 = vadd.f32 %v1369_v23, %v158_v43 }
  0xc2   :  { %169 = vst.msk [vmem:[#allocation2 + $0x78] sm:$0xff] %vm103_vm1, %v159_v44 }
  0xc9   :  { %v189_v47 = vld [vmem:[#allocation2 + $0x78] sm:$0xff] }
  0xca   :  { %v276_v49 = vadd.f32 %v230_v29, %v189_v47 }
  0xcc   :  { %v1330_v50 = vmul.f32 -1.442695, %v276_v49 }
  0xce   :  { %1372 = vpow2.f32 %v1330_v50 }
  0xcf   :  { %1374 = vrcp.f32 %v237_v52 }
  0xd4   :  { %v1373_v53 = vpop.eup %1372 }
  0xd5   :  { %v280_v54 = vadd.f32 1.0, %v1373_v53  ;;  %v1375_v55 = vpop.eup %1374 }
  0xd6   :  { %v239_v58 = vmul.f32 %v1375_v55, %v237_v52  ;;  %vm244_vm2 = vweird.f32 %v1375_v55 }
  0xd7   :  { %1376 = vrcp.f32 %v280_v54  ;;  %vm245_vm4 = vmor %vm243_vm3, %vm244_vm2  ;;  %vm286_vm5 = vweird.f32 %v280_v54  ;;  %v292_v10 = vand.u32 2147483648, %v280_v54  ;;  %v290_v12 = vand.u32 2147483647, %v280_v54 }
  0xd8   :  { %v240_v60 = vsub.f32 1.0, %v239_v58 }
  0xd9   :  { %v293_v16 = vor.u32 1.1754944e-38, %v292_v10  ;;  %vm291_vm9 = vcmp.eq.f32.partialorder %v290_v12, 8.507059e+37 }
  0xda   :  { %v241_v62 = vmul.f32 %v1375_v55, %v240_v60 }
  0xdc   :  { %v242_v0 = vadd.f32 %v1375_v55, %v241_v62 }
  0xdd   :  { %v1377_v59 = vpop.eup %1376 }
  0xde   :  { %v282_v61 = vmul.f32 %v1377_v59, %v280_v54  ;;  %v246_v8 = vsel %vm245_vm4, %v1375_v55, %v242_v0  ;;  %vm287_vm6 = vweird.f32 %v1377_v59  ;;  %v327_v54 = vld [vmem:[#allocation2 + $0x70] sm:$0xff] }
  0xdf   :  { %v251_v14 = vsel %vm248_vm7, %v250_v9, %v246_v8  ;;  %vm288_vm8 = vmor %vm286_vm5, %vm287_vm6 }
  0xe0   :  { %v283_v63 = vsub.f32 1.0, %v282_v61  ;;  %v268_v37 = vsub.f32 1.0, %v251_v14  ;;  %v274_v39 = vmul.f32 0.0, %v251_v14 }
  0xe2   :  { %v284_v7 = vmul.f32 %v1377_v59, %v283_v63 }
  0xe4   :  { %v285_v11 = vadd.f32 %v1377_v59, %v284_v7 }
  0xe6   :  { %v289_v17 = vsel %vm288_vm8, %v1377_v59, %v285_v11 }
  0xe7   :  { %v294_v18 = vsel %vm291_vm9, %v293_v16, %v289_v17 }
  0xe8   :  { %v311_v30 = vsub.f32 1.0, %v294_v18  ;;  %v317_v33 = vmul.f32 0.0, %v294_v18 }
  0xfe   :  { %v259_v13 = vpop.permute.xlu1 %258 }
  0xff   :  { %v261_v15 = vmul.f32 %v259_v13, %v251_v14 }
 0x101   :  { %263 = vrot.lane.b32.xlu2 %v261_v15, %s1472_s15 }
 0x106   :  { %v302_v20 = vpop.permute.xlu1 %301 }
 0x107   :  { %v304_v22 = vmul.f32 %v302_v20, %v294_v18 }
 0x109   :  { %306 = vrot.lane.b32.xlu2 %v304_v22, %s1472_s15 }
 0x10e   :  { %v1636_v31 = vpop.permute.xlu1 %184 }
 0x10f   :  { %vm1895_vm10 = vcmp.gt.s32.totalorder %v1636_v31, 7  ;;  %vm1894_vm11 = vcmp.gt.s32.totalorder %v1636_v31, 0  ;;  %vm460_vm6 = vcmp.gt.s32.totalorder %v1636_v31, 6  ;;  %vm458_vm7 = vcmp.gt.s32.totalorder %v1636_v31, 1 }
 0x15b   :  { %v264_v23 = vpop.permute.xlu2 %263 }
 0x15c   :  { %v266_v24 = vadd.f32 %v264_v23, %v186_v45  ;;  %v82_v45 = vpop.f32.mrf.mxu0 }
 0x15d   :  { %v83_v46 = vadd.f32 %v1606_v19, %v82_v45 }
 0x15e   :  { %1378 = vtanh.f32 %v266_v24 }
 0x15f   :  { %105 = vst.msk [vmem:[#allocation2 + $0x8] sm:$0xff] %vm103_vm1, %v83_v46 }
 0x163   :  { %v307_v25 = vpop.permute.xlu2 %306 }
 0x164   :  { %v1379_v26 = vpop.eup %1378  ;;  %v309_v27 = vadd.f32 %v307_v25, %v189_v47 }
 0x165   :  { %270 = vrot.lane.b32.xlu0 %v1379_v26, %s1475_s1 }
 0x166   :  { %1380 = vtanh.f32 %v309_v27  ;;  %v324_v51 = vld [vmem:[#allocation2 + $0x8] sm:$0xff] }
 0x16c   :  { %v1381_v29 = vpop.eup %1380 }
 0x16d   :  { %313 = vrot.lane.b32.xlu2 %v1381_v29, %s1475_s1 }
 0x1c7   :  { %v314_v32 = vpop.permute.xlu2 %313 }
 0x1c8   :  { %v316_v34 = vmul.f32 %v314_v32, %v311_v30 }
 0x1ca   :  { %v318_v35 = vadd.f32 %v317_v33, %v316_v34 }
 0x1cc   :  { %v1641_v36 = vsel %vm1895_vm10, %v318_v35, 0.0 }
 0x1cd   :  { %354 = vrot.lane.b32.xlu1 %v1641_v36, %s1475_s1 }
 0x1d7   :  { %v271_v38 = vpop.permute.xlu0 %270 }
 0x1d8   :  { %v273_v40 = vmul.f32 %v271_v38, %v268_v37 }
 0x1da   :  { %v275_v41 = vadd.f32 %v274_v39, %v273_v40 }
 0x1dc   :  { %v1648_v42 = vsel %vm1894_vm11, %v275_v41, 0.0 }
 0x1dd   :  { %329 = vrot.lane.b32.xlu0 %v1648_v42, %s1475_s1 }
 0x23f   :  { %v355_v43 = vpop.permute.xlu1 %354 }
 0x240   :  { %1332 = vmatmul.msk.f32.vlgmr.msrb.gmra.mxu3 %vm37_vm0, %v355_v43 }
 0x241   :  { %650 = vmatpush.msrb.mxu3 %v1534_v5 }
 0x243   :  { %651 = vmatpush.msrb.mxu3 %v1540_v6 }
 0x24f   :  { %v330_v44 = vpop.permute.xlu0 %329 }
 0x250   :  { %1331 = vmatmul.msk.f32.vlgmr.msrb.gmra.mxu2 %vm37_vm0, %v330_v44 }
 0x251   :  { %625 = vmatpush.msrb.mxu2 %v1517_v1 }
 0x253   :  { %626 = vmatpush.msrb.mxu2 %v1526_v3 }
 0x2c3   :  { %v375_v47 = vpop.f32.mrf.mxu3 }
 0x2c4   :  { %v438_v48 = vadd.f32 %v375_v47, %v1618_v28  ;;  %v418_v55 = vadd.f32 %v375_v47, %v327_v54 }
 0x2c6   :  { %440 = vrot.lane.b32.xlu0 %v438_v48, %s1473_s0  ;;  %v1334_v56 = vmul.f32 -1.442695, %v418_v55  ;;  %v466_v55 = vld [vmem:[#allocation2 + $0x68] sm:$0xff] }
 0x2d3   :  { %v350_v49 = vpop.f32.mrf.mxu2 }
 0x2d4   :  { %v398_v50 = vadd.f32 %v350_v49, %v1608_v21  ;;  %v378_v52 = vadd.f32 %v350_v49, %v324_v51 }
 0x2d6   :  { %400 = vrot.lane.b32.xlu2 %v398_v50, %s1473_s0  ;;  %v1333_v53 = vmul.f32 -1.442695, %v378_v52 }
 0x2d8   :  { %1382 = vpow2.f32 %v1333_v53 }
 0x2d9   :  { %1384 = vpow2.f32 %v1334_v56 }
 0x2de   :  { %v1383_v57 = vpop.eup %1382 }
 0x2df   :  { %v382_v58 = vadd.f32 1.0, %v1383_v57  ;;  %v1385_v59 = vpop.eup %1384 }
 0x2e0   :  { %v422_v60 = vadd.f32 1.0, %v1385_v59 }
 0x2e1   :  { %1386 = vrcp.f32 %v382_v58  ;;  %v394_v9 = vand.u32 2147483648, %v382_v58  ;;  %vm388_vm13 = vweird.f32 %v382_v58  ;;  %v392_v10 = vand.u32 2147483647, %v382_v58 }
 0x2e2   :  { %1388 = vrcp.f32 %v422_v60  ;;  %v434_v18 = vand.u32 2147483648, %v422_v60  ;;  %vm428_vm3 = vweird.f32 %v422_v60  ;;  %v432_v20 = vand.u32 2147483647, %v422_v60 }
 0x2e3   :  { %v395_v13 = vor.u32 1.1754944e-38, %v394_v9  ;;  %vm393_vm15 = vcmp.eq.f32.partialorder %v392_v10, 8.507059e+37 }
 0x2e4   :  { %v435_v23 = vor.u32 1.1754944e-38, %v434_v18  ;;  %vm433_vm5 = vcmp.eq.f32.partialorder %v432_v20, 8.507059e+37 }
 0x2e7   :  { %v1387_v61 = vpop.eup %1386 }
 0x2e8   :  { %v384_v62 = vmul.f32 %v1387_v61, %v382_v58  ;;  %v1389_v0 = vpop.eup %1388  ;;  %vm389_vm12 = vweird.f32 %v1387_v61 }
 0x2e9   :  { %v424_v4 = vmul.f32 %v1389_v0, %v422_v60  ;;  %vm390_vm14 = vmor %vm388_vm13, %vm389_vm12  ;;  %vm429_vm2 = vweird.f32 %v1389_v0 }
 0x2ea   :  { %v385_v63 = vsub.f32 1.0, %v384_v62  ;;  %vm430_vm4 = vmor %vm428_vm3, %vm429_vm2 }
 0x2eb   :  { %v425_v8 = vsub.f32 1.0, %v424_v4 }
 0x2ec   :  { %v386_v2 = vmul.f32 %v1387_v61, %v385_v63 }
 0x2ed   :  { %v426_v12 = vmul.f32 %v1389_v0, %v425_v8 }
 0x2ee   :  { %v387_v7 = vadd.f32 %v1387_v61, %v386_v2 }
 0x2ef   :  { %v427_v17 = vadd.f32 %v1389_v0, %v426_v12 }
 0x2f0   :  { %v391_v11 = vsel %vm390_vm14, %v1387_v61, %v387_v7 }
 0x2f1   :  { %v396_v14 = vsel %vm393_vm15, %v395_v13, %v391_v11  ;;  %v431_v22 = vsel %vm430_vm4, %v1389_v0, %v427_v17  ;;  %vm597_vm4 = vcmp.gt.s32.totalorder %v1636_v31, 2 }
 0x2f2   :  { %v436_v25 = vsel %vm433_vm5, %v435_v23, %v431_v22  ;;  %v410_v43 = vsub.f32 1.0, %v396_v14  ;;  %v416_v45 = vmul.f32 %v396_v14, %v1648_v42  ;;  %vm599_vm5 = vcmp.gt.s32.totalorder %v1636_v31, 5 }
 0x2f3   :  { %v450_v35 = vsub.f32 1.0, %v436_v25  ;;  %v456_v38 = vmul.f32 %v436_v25, %v1641_v36 }
 0x330   :  { %v401_v15 = vpop.permute.xlu2 %400 }
 0x331   :  { %v403_v16 = vmul.f32 %v401_v15, %v396_v14 }
 0x333   :  { %405 = vrot.lane.b32.xlu1 %v403_v16, %s1472_s15 }
 0x338   :  { %v441_v24 = vpop.permute.xlu0 %440 }
 0x339   :  { %v443_v26 = vmul.f32 %v441_v24, %v436_v25 }
 0x33b   :  { %445 = vrot.lane.b32.xlu2 %v443_v26, %s1472_s15 }
 0x395   :  { %v446_v27 = vpop.permute.xlu2 %445 }
 0x396   :  { %v448_v29 = vadd.f32 %v446_v27, %v327_v54 }
 0x398   :  { %1390 = vtanh.f32 %v448_v29 }
 0x39e   :  { %v1391_v30 = vpop.eup %1390 }
 0x39f   :  { %452 = vrot.lane.b32.xlu1 %v1391_v30, %s1475_s1 }
 0x3a5   :  { %v406_v32 = vpop.permute.xlu1 %405 }
 0x3a6   :  { %v408_v33 = vadd.f32 %v406_v32, %v324_v51 }
 0x3a8   :  { %1392 = vtanh.f32 %v408_v33 }
 0x3ae   :  { %v1393_v34 = vpop.eup %1392 }
 0x3af   :  { %412 = vrot.lane.b32.xlu0 %v1393_v34, %s1475_s1 }
 0x411   :  { %v453_v37 = vpop.permute.xlu1 %452 }
 0x412   :  { %v455_v39 = vmul.f32 %v453_v37, %v450_v35 }
 0x414   :  { %v457_v40 = vadd.f32 %v456_v38, %v455_v39 }
 0x416   :  { %v1673_v41 = vsel %vm460_vm6, %v457_v40, %v1641_v36  ;;  %v85_v36 = vpop.f32.mrf.mxu0 }
 0x417   :  { %493 = vrot.lane.b32.xlu0 %v1673_v41, %s1475_s1  ;;  %v86_v49 = vadd.f32 %v1606_v19, %v85_v36 }
 0x419   :  { %106 = vst.msk [vmem:[#allocation2 + $0x10] sm:$0xff] %vm103_vm1, %v86_v49 }
 0x420   :  { %v463_v58 = vld [vmem:[#allocation2 + $0x10] sm:$0xff] }
 0x421   :  { %v413_v44 = vpop.permute.xlu0 %412 }
 0x422   :  { %v415_v46 = vmul.f32 %v413_v44, %v410_v43 }
 0x424   :  { %v417_v47 = vadd.f32 %v416_v45, %v415_v46 }
 0x426   :  { %v1682_v48 = vsel %vm458_vm7, %v417_v47, %v1648_v42 }
 0x427   :  { %468 = vrot.lane.b32.xlu2 %v1682_v48, %s1475_s1 }
 0x481   :  { %v469_v50 = vpop.permute.xlu2 %468 }
 0x482   :  { %1335 = vmatmul.msk.f32.vlgmr.msra.gmra.mxu2 %vm37_vm0, %v469_v50 }
 0x483   :  { %764 = vmatpush.msra.mxu2 %v1517_v1 }
 0x485   :  { %765 = vmatpush.msra.mxu2 %v1526_v3 }
 0x489   :  { %v494_v51 = vpop.permute.xlu0 %493 }
 0x48a   :  { %1336 = vmatmul.msk.f32.vlgmr.msra.gmra.mxu3 %vm37_vm0, %v494_v51 }
 0x48b   :  { %789 = vmatpush.msra.mxu3 %v1534_v5 }
 0x48d   :  { %790 = vmatpush.msra.mxu3 %v1540_v6 }
 0x505   :  { %v489_v42 = vpop.f32.mrf.mxu2 }
 0x506   :  { %v537_v52 = vadd.f32 %v489_v42, %v1608_v21  ;;  %v517_v60 = vadd.f32 %v489_v42, %v463_v58 }
 0x508   :  { %539 = vrot.lane.b32.xlu1 %v537_v52, %s1473_s0  ;;  %v1337_v62 = vmul.f32 -1.442695, %v517_v60 }
 0x50d   :  { %v514_v53 = vpop.f32.mrf.mxu3 }
 0x50e   :  { %v577_v54 = vadd.f32 %v514_v53, %v1618_v28  ;;  %v557_v56 = vadd.f32 %v514_v53, %v466_v55 }
 0x510   :  { %579 = vrot.lane.b32.xlu2 %v577_v54, %s1473_s0  ;;  %v1338_v57 = vmul.f32 -1.442695, %v557_v56  ;;  %v88_v54 = vpop.f32.mrf.mxu0 }
 0x512   :  { %1394 = vpow2.f32 %v1338_v57 }
 0x518   :  { %v1395_v59 = vpop.eup %1394 }
 0x519   :  { %v561_v61 = vadd.f32 1.0, %v1395_v59  ;;  %v605_v59 = vld [vmem:[#allocation2 + $0x60] sm:$0xff] }
 0x51b   :  { %1396 = vrcp.f32 %v561_v61  ;;  %v573_v11 = vand.u32 2147483648, %v561_v61  ;;  %vm567_vm9 = vweird.f32 %v561_v61  ;;  %v571_v12 = vand.u32 2147483647, %v561_v61 }
 0x51c   :  { %1398 = vpow2.f32 %v1337_v62 }
 0x51d   :  { %v574_v15 = vor.u32 1.1754944e-38, %v573_v11  ;;  %vm572_vm13 = vcmp.eq.f32.partialorder %v571_v12, 8.507059e+37 }
 0x521   :  { %v1397_v63 = vpop.eup %1396 }
 0x522   :  { %v1399_v0 = vpop.eup %1398  ;;  %v563_v2 = vmul.f32 %v1397_v63, %v561_v61  ;;  %vm568_vm8 = vweird.f32 %v1397_v63 }
 0x523   :  { %v521_v4 = vadd.f32 1.0, %v1399_v0  ;;  %vm569_vm12 = vmor %vm567_vm9, %vm568_vm8 }
 0x524   :  { %v564_v7 = vsub.f32 1.0, %v563_v2 }
 0x525   :  { %1400 = vrcp.f32 %v521_v4  ;;  %v533_v24 = vand.u32 2147483648, %v521_v4  ;;  %vm527_vm15 = vweird.f32 %v521_v4  ;;  %v531_v25 = vand.u32 2147483647, %v521_v4 }
 0x526   :  { %v565_v8 = vmul.f32 %v1397_v63, %v564_v7 }
 0x527   :  { %v534_v27 = vor.u32 1.1754944e-38, %v533_v24  ;;  %vm532_vm3 = vcmp.eq.f32.partialorder %v531_v25, 8.507059e+37 }
 0x528   :  { %v566_v9 = vadd.f32 %v1397_v63, %v565_v8 }
 0x52a   :  { %v570_v13 = vsel %vm569_vm12, %v1397_v63, %v566_v9 }
 0x52b   :  { %v1401_v10 = vpop.eup %1400  ;;  %v575_v16 = vsel %vm572_vm13, %v574_v15, %v570_v13 }
 0x52c   :  { %v523_v14 = vmul.f32 %v1401_v10, %v521_v4  ;;  %vm528_vm14 = vweird.f32 %v1401_v10  ;;  %v589_v36 = vsub.f32 1.0, %v575_v16  ;;  %v595_v50 = vmul.f32 %v575_v16, %v1673_v41 }
 0x52d   :  { %vm529_vm2 = vmor %vm527_vm15, %vm528_vm14 }
 0x52e   :  { %v524_v20 = vsub.f32 1.0, %v523_v14 }
 0x530   :  { %v525_v22 = vmul.f32 %v1401_v10, %v524_v20 }
 0x532   :  { %v526_v23 = vadd.f32 %v1401_v10, %v525_v22 }
 0x534   :  { %v530_v26 = vsel %vm529_vm2, %v1401_v10, %v526_v23 }
 0x535   :  { %v535_v30 = vsel %vm532_vm3, %v534_v27, %v530_v26 }
 0x536   :  { %v549_v40 = vsub.f32 1.0, %v535_v30  ;;  %v555_v44 = vmul.f32 %v535_v30, %v1682_v48 }
 0x56a   :  { %v580_v17 = vpop.permute.xlu2 %579 }
 0x56b   :  { %v582_v18 = vmul.f32 %v580_v17, %v575_v16 }
 0x56d   :  { %584 = vrot.lane.b32.xlu1 %v582_v18, %s1472_s15 }
 0x57a   :  { %v540_v29 = vpop.permute.xlu1 %539 }
 0x57b   :  { %v542_v32 = vmul.f32 %v540_v29, %v535_v30 }
 0x57d   :  { %544 = vrot.lane.b32.xlu0 %v542_v32, %s1472_s15 }
 0x5df   :  { %v585_v33 = vpop.permute.xlu1 %584 }
 0x5e0   :  { %v587_v34 = vadd.f32 %v585_v33, %v466_v55 }
 0x5e2   :  { %1402 = vtanh.f32 %v587_v34 }
 0x5e8   :  { %v1403_v35 = vpop.eup %1402 }
 0x5e9   :  { %591 = vrot.lane.b32.xlu0 %v1403_v35, %s1475_s1 }
 0x5ef   :  { %v545_v37 = vpop.permute.xlu0 %544 }
 0x5f0   :  { %v547_v38 = vadd.f32 %v545_v37, %v463_v58 }
 0x5f2   :  { %1404 = vtanh.f32 %v547_v38 }
 0x5f8   :  { %v1405_v39 = vpop.eup %1404 }
 0x5f9   :  { %551 = vrot.lane.b32.xlu2 %v1405_v39, %s1475_s1 }
 0x653   :  { %v552_v43 = vpop.permute.xlu2 %551 }
 0x654   :  { %v554_v45 = vmul.f32 %v552_v43, %v549_v40 }
 0x656   :  { %v556_v46 = vadd.f32 %v555_v44, %v554_v45 }
 0x658   :  { %v1707_v47 = vsel %vm597_vm4, %v556_v46, %v1682_v48 }
 0x659   :  { %607 = vrot.lane.b32.xlu1 %v1707_v47, %s1475_s1 }
 0x65b   :  { %v592_v49 = vpop.permute.xlu0 %591 }
 0x65c   :  { %v594_v51 = vmul.f32 %v592_v49, %v589_v36 }
 0x65e   :  { %v596_v42 = vadd.f32 %v595_v50, %v594_v51 }
 0x660   :  { %v1716_v52 = vsel %vm599_vm5, %v596_v42, %v1673_v41  ;;  %v89_v41 = vadd.f32 %v1606_v19, %v88_v54 }
 0x661   :  { %632 = vrot.lane.b32.xlu2 %v1716_v52, %s1475_s1 }
 0x662   :  { %107 = vst.msk [vmem:[#allocation2 + $0x18] sm:$0xff] %vm103_vm1, %v89_v41 }
 0x669   :  { %v602_v62 = vld [vmem:[#allocation2 + $0x18] sm:$0xff] }
 0x6bb   :  { %v633_v48 = vpop.permute.xlu2 %632 }
 0x6bc   :  { %1340 = vmatmul.msk.f32.vlgmr.msrb.gmra.mxu3 %vm37_vm0, %v633_v48 }
 0x6bd   :  { %926 = vmatpush.msrb.mxu3 %v1534_v5 }
 0x6bf   :  { %927 = vmatpush.msrb.mxu3 %v1540_v6 }
 0x6cb   :  { %v608_v53 = vpop.permute.xlu1 %607 }
 0x6cc   :  { %1339 = vmatmul.msk.f32.vlgmr.msrb.gmra.mxu2 %vm37_vm0, %v608_v53 }
 0x6cd   :  { %901 = vmatpush.msrb.mxu2 %v1517_v1 }
 0x6cf   :  { %902 = vmatpush.msrb.mxu2 %v1526_v3 }
 0x73f   :  { %v653_v55 = vpop.f32.mrf.mxu3 }
 0x740   :  { %v716_v56 = vadd.f32 %v653_v55, %v1618_v28  ;;  %v696_v60 = vadd.f32 %v653_v55, %v605_v59 }
 0x742   :  { %718 = vrot.lane.b32.xlu1 %v716_v56, %s1473_s0  ;;  %v1342_v61 = vmul.f32 -1.442695, %v696_v60 }
 0x744   :  { %1406 = vpow2.f32 %v1342_v61 }
 0x74a   :  { %v1407_v63 = vpop.eup %1406 }
 0x74b   :  { %v700_v2 = vadd.f32 1.0, %v1407_v63  ;;  %v744_v63 = vld [vmem:[#allocation2 + $0x58] sm:$0xff] }
 0x74d   :  { %1408 = vrcp.f32 %v700_v2  ;;  %v712_v15 = vand.u32 2147483648, %v700_v2  ;;  %vm706_vm9 = vweird.f32 %v700_v2  ;;  %v710_v16 = vand.u32 2147483647, %v700_v2 }
 0x74f   :  { %v628_v57 = vpop.f32.mrf.mxu2  ;;  %v713_v20 = vor.u32 1.1754944e-38, %v712_v15  ;;  %vm711_vm13 = vcmp.eq.f32.partialorder %v710_v16, 8.507059e+37 }
 0x750   :  { %v676_v58 = vadd.f32 %v628_v57, %v1608_v21  ;;  %v656_v0 = vadd.f32 %v628_v57, %v602_v62 }
 0x752   :  { %678 = vrot.lane.b32.xlu0 %v676_v58, %s1473_s0  ;;  %v1341_v4 = vmul.f32 -1.442695, %v656_v0  ;;  %v91_v58 = vpop.f32.mrf.mxu0 }
 0x753   :  { %v1409_v7 = vpop.eup %1408 }
 0x754   :  { %1410 = vpow2.f32 %v1341_v4  ;;  %v702_v9 = vmul.f32 %v1409_v7, %v700_v2  ;;  %vm707_vm8 = vweird.f32 %v1409_v7 }
 0x755   :  { %vm708_vm12 = vmor %vm706_vm9, %vm707_vm8  ;;  %vm738_vm8 = vcmp.gt.s32.totalorder %v1636_v31, 4  ;;  %vm736_vm9 = vcmp.gt.s32.totalorder %v1636_v31, 3 }
 0x756   :  { %v703_v11 = vsub.f32 1.0, %v702_v9 }
 0x758   :  { %v704_v12 = vmul.f32 %v1409_v7, %v703_v11 }
 0x75a   :  { %v1411_v8 = vpop.eup %1410  ;;  %v705_v13 = vadd.f32 %v1409_v7, %v704_v12 }
 0x75b   :  { %v660_v10 = vadd.f32 1.0, %v1411_v8 }
 0x75c   :  { %v709_v17 = vsel %vm708_vm12, %v1409_v7, %v705_v13 }
 0x75d   :  { %1412 = vrcp.f32 %v660_v10  ;;  %v714_v23 = vsel %vm711_vm13, %v713_v20, %v709_v17  ;;  %v672_v29 = vand.u32 2147483648, %v660_v10  ;;  %vm666_vm15 = vweird.f32 %v660_v10 }
 0x75e   :  { %v670_v30 = vand.u32 2147483647, %v660_v10  ;;  %v728_v46 = vsub.f32 1.0, %v714_v23  ;;  %v734_v49 = vmul.f32 %v714_v23, %v1716_v52 }
 0x75f   :  { %v673_v33 = vor.u32 1.1754944e-38, %v672_v29 }
 0x760   :  { %vm671_vm3 = vcmp.eq.f32.partialorder %v670_v30, 8.507059e+37 }
 0x763   :  { %v1413_v14 = vpop.eup %1412 }
 0x764   :  { %v662_v18 = vmul.f32 %v1413_v14, %v660_v10  ;;  %vm667_vm14 = vweird.f32 %v1413_v14 }
 0x765   :  { %vm668_vm2 = vmor %vm666_vm15, %vm667_vm14 }
 0x766   :  { %v663_v25 = vsub.f32 1.0, %v662_v18 }
 0x768   :  { %v664_v26 = vmul.f32 %v1413_v14, %v663_v25 }
 0x76a   :  { %v665_v27 = vadd.f32 %v1413_v14, %v664_v26 }
 0x76c   :  { %v669_v32 = vsel %vm668_vm2, %v1413_v14, %v665_v27 }
 0x76d   :  { %v674_v35 = vsel %vm671_vm3, %v673_v33, %v669_v32 }
 0x76e   :  { %v688_v48 = vsub.f32 1.0, %v674_v35  ;;  %v694_v54 = vmul.f32 %v674_v35, %v1707_v47 }
 0x7b4   :  { %v719_v22 = vpop.permute.xlu1 %718 }
 0x7b5   :  { %v721_v24 = vmul.f32 %v719_v22, %v714_v23 }
 0x7b7   :  { %723 = vrot.lane.b32.xlu0 %v721_v24, %s1472_s15 }
 0x7c4   :  { %v679_v34 = vpop.permute.xlu0 %678 }
 0x7c5   :  { %v681_v37 = vmul.f32 %v679_v34, %v674_v35 }
 0x7c7   :  { %683 = vrot.lane.b32.xlu2 %v681_v37, %s1472_s15 }
 0x821   :  { %v684_v38 = vpop.permute.xlu2 %683 }
 0x822   :  { %v686_v39 = vadd.f32 %v684_v38, %v602_v62 }
 0x824   :  { %1414 = vtanh.f32 %v686_v39 }
 0x829   :  { %v724_v40 = vpop.permute.xlu0 %723 }
 0x82a   :  { %v1415_v43 = vpop.eup %1414  ;;  %v726_v44 = vadd.f32 %v724_v40, %v605_v59 }
 0x82b   :  { %690 = vrot.lane.b32.xlu1 %v1415_v43, %s1475_s1 }
 0x82c   :  { %1416 = vtanh.f32 %v726_v44 }
 0x832   :  { %v1417_v45 = vpop.eup %1416 }
 0x833   :  { %730 = vrot.lane.b32.xlu2 %v1417_v45, %s1475_s1 }
 0x88d   :  { %v731_v36 = vpop.permute.xlu2 %730 }
 0x88e   :  { %v733_v50 = vmul.f32 %v731_v36, %v728_v46 }
 0x890   :  { %v735_v51 = vadd.f32 %v734_v49, %v733_v50 }
 0x892   :  { %v1741_v42 = vsel %vm738_vm8, %v735_v51, %v1716_v52 }
 0x893   :  { %771 = vrot.lane.b32.xlu1 %v1741_v42, %s1475_s1 }
 0x89d   :  { %v691_v53 = vpop.permute.xlu1 %690 }
 0x89e   :  { %v693_v41 = vmul.f32 %v691_v53, %v688_v48 }
 0x8a0   :  { %v695_v55 = vadd.f32 %v694_v54, %v693_v41 }
 0x8a2   :  { %v1750_v56 = vsel %vm736_vm9, %v695_v55, %v1707_v47  ;;  %v92_v47 = vadd.f32 %v1606_v19, %v91_v58  ;;  %v94_v58 = vpop.f32.mrf.mxu0 }
 0x8a3   :  { %746 = vrot.lane.b32.xlu0 %v1750_v56, %s1475_s1 }
 0x8a4   :  { %108 = vst.msk [vmem:[#allocation2 + $0x20] sm:$0xff] %vm103_vm1, %v92_v47 }
 0x8ab   :  { %v741_v61 = vld [vmem:[#allocation2 + $0x20] sm:$0xff] }
 0x905   :  { %v772_v52 = vpop.permute.xlu1 %771 }
 0x906   :  { %1344 = vmatmul.msk.f32.vlgmr.msra.gmra.mxu3 %vm37_vm0, %v772_v52 }
 0x907   :  { %1063 = vmatpush.msra.mxu3 %v1534_v5 }
 0x909   :  { %1064 = vmatpush.msra.mxu3 %v1540_v6 }
 0x915   :  { %v747_v57 = vpop.permute.xlu0 %746 }
 0x916   :  { %1343 = vmatmul.msk.f32.vlgmr.msra.gmra.mxu2 %vm37_vm0, %v747_v57 }
 0x917   :  { %1038 = vmatpush.msra.mxu2 %v1517_v1 }
 0x919   :  { %1039 = vmatpush.msra.mxu2 %v1526_v3 }
 0x989   :  { %v792_v59 = vpop.f32.mrf.mxu3 }
 0x98a   :  { %v855_v60 = vadd.f32 %v792_v59, %v1618_v28  ;;  %v835_v3 = vadd.f32 %v792_v59, %v744_v63  ;;  %v1466_v59 = vld [vmem:[%s1888_s3 + $0x8] sm:$0xff] }
 0x98c   :  { %857 = vrot.lane.b32.xlu0 %v855_v60, %s1473_s0  ;;  %v1346_v0 = vmul.f32 -1.442695, %v835_v3 }
 0x999   :  { %v767_v5 = vpop.f32.mrf.mxu2 }
 0x99a   :  { %v815_v6 = vadd.f32 %v767_v5, %v1608_v21  ;;  %v795_v62 = vadd.f32 %v767_v5, %v741_v61  ;;  %v1469_v5 = vld [vmem:[%s1888_s3 + $0x10] sm:$0xff] }
 0x99c   :  { %817 = vrot.lane.b32.xlu2 %v815_v6, %s1473_s0  ;;  %v1345_v1 = vmul.f32 -1.442695, %v795_v62 }
 0x99e   :  { %1418 = vpow2.f32 %v1345_v1 }
 0x99f   :  { %1420 = vpow2.f32 %v1346_v0 }
 0x9a4   :  { %v1419_v2 = vpop.eup %1418 }
 0x9a5   :  { %v799_v4 = vadd.f32 1.0, %v1419_v2  ;;  %v1421_v7 = vpop.eup %1420 }
 0x9a6   :  { %v839_v8 = vadd.f32 1.0, %v1421_v7 }
 0x9a7   :  { %1422 = vrcp.f32 %v799_v4  ;;  %v811_v17 = vand.u32 2147483648, %v799_v4  ;;  %vm805_vm13 = vweird.f32 %v799_v4  ;;  %v809_v18 = vand.u32 2147483647, %v799_v4 }
 0x9a8   :  { %1424 = vrcp.f32 %v839_v8  ;;  %v851_v29 = vand.u32 2147483648, %v839_v8  ;;  %vm845_vm3 = vweird.f32 %v839_v8  ;;  %v849_v30 = vand.u32 2147483647, %v839_v8 }
 0x9a9   :  { %v812_v23 = vor.u32 1.1754944e-38, %v811_v17  ;;  %vm810_vm15 = vcmp.eq.f32.partialorder %v809_v18, 8.507059e+37 }
 0x9aa   :  { %v852_v33 = vor.u32 1.1754944e-38, %v851_v29  ;;  %vm850_vm10 = vcmp.eq.f32.partialorder %v849_v30, 8.507059e+37 }
 0x9ad   :  { %v1423_v9 = vpop.eup %1422 }
 0x9ae   :  { %v801_v10 = vmul.f32 %v1423_v9, %v799_v4  ;;  %v1425_v12 = vpop.eup %1424  ;;  %vm806_vm12 = vweird.f32 %v1423_v9 }
 0x9af   :  { %v841_v14 = vmul.f32 %v1425_v12, %v839_v8  ;;  %vm807_vm14 = vmor %vm805_vm13, %vm806_vm12  ;;  %vm846_vm2 = vweird.f32 %v1425_v12 }
 0x9b0   :  { %v802_v11 = vsub.f32 1.0, %v801_v10  ;;  %vm847_vm11 = vmor %vm845_vm3, %vm846_vm2 }
 0x9b1   :  { %v842_v16 = vsub.f32 1.0, %v841_v14 }
 0x9b2   :  { %v803_v13 = vmul.f32 %v1423_v9, %v802_v11 }
 0x9b3   :  { %v843_v22 = vmul.f32 %v1425_v12, %v842_v16 }
 0x9b4   :  { %v804_v15 = vadd.f32 %v1423_v9, %v803_v13 }
 0x9b5   :  { %v844_v27 = vadd.f32 %v1425_v12, %v843_v22 }
 0x9b6   :  { %v808_v20 = vsel %vm807_vm14, %v1423_v9, %v804_v15 }
 0x9b7   :  { %v813_v24 = vsel %vm810_vm15, %v812_v23, %v808_v20  ;;  %v848_v32 = vsel %vm847_vm11, %v1425_v12, %v844_v27 }
 0x9b8   :  { %v853_v35 = vsel %vm850_vm10, %v852_v33, %v848_v32  ;;  %v827_v53 = vsub.f32 1.0, %v813_v24  ;;  %v833_v41 = vmul.f32 %v813_v24, %v1750_v56 }
 0x9b9   :  { %v867_v46 = vsub.f32 1.0, %v853_v35  ;;  %v873_v49 = vmul.f32 %v853_v35, %v1741_v42 }
 0x9f6   :  { %v818_v25 = vpop.permute.xlu2 %817 }
 0x9f7   :  { %v820_v26 = vmul.f32 %v818_v25, %v813_v24 }
 0x9f9   :  { %822 = vrot.lane.b32.xlu1 %v820_v26, %s1472_s15 }
 0x9fe   :  { %v858_v34 = vpop.permute.xlu0 %857 }
 0x9ff   :  { %v860_v37 = vmul.f32 %v858_v34, %v853_v35 }
 0xa01   :  { %862 = vrot.lane.b32.xlu2 %v860_v37, %s1472_s15 }
 0xa5b   :  { %v863_v38 = vpop.permute.xlu2 %862 }
 0xa5c   :  { %v865_v39 = vadd.f32 %v863_v38, %v744_v63  ;;  %v881_v63 = vld [vmem:[#allocation2 + $0x50] sm:$0xff] }
 0xa5e   :  { %1426 = vtanh.f32 %v865_v39 }
 0xa64   :  { %v1427_v40 = vpop.eup %1426 }
 0xa65   :  { %869 = vrot.lane.b32.xlu1 %v1427_v40, %s1475_s1 }
 0xa6b   :  { %v823_v43 = vpop.permute.xlu1 %822 }
 0xa6c   :  { %v825_v44 = vadd.f32 %v823_v43, %v741_v61 }
 0xa6e   :  { %1428 = vtanh.f32 %v825_v44 }
 0xa74   :  { %v1429_v45 = vpop.eup %1428 }
 0xa75   :  { %829 = vrot.lane.b32.xlu0 %v1429_v45, %s1475_s1 }
 0xad7   :  { %v870_v36 = vpop.permute.xlu1 %869 }
 0xad8   :  { %v872_v50 = vmul.f32 %v870_v36, %v867_v46 }
 0xada   :  { %v874_v51 = vadd.f32 %v873_v49, %v872_v50 }
 0xadc   :  { %v1774_v48 = vsel %vm736_vm9, %v874_v51, %v1741_v42  ;;  %v95_v42 = vadd.f32 %v1606_v19, %v94_v58  ;;  %v1468_v19 = vld [vmem:[%s1888_s3 + $0x18] sm:$0xff] }
 0xadd   :  { %908 = vrot.lane.b32.xlu0 %v1774_v48, %s1475_s1 }
 0xade   :  { %109 = vst.msk [vmem:[#allocation2 + $0x28] sm:$0xff] %vm103_vm1, %v95_v42 }
 0xae5   :  { %v878_v2 = vld [vmem:[#allocation2 + $0x28] sm:$0xff] }
 0xae7   :  { %v830_v54 = vpop.permute.xlu0 %829 }
 0xae8   :  { %v832_v55 = vmul.f32 %v830_v54, %v827_v53 }
 0xaea   :  { %v834_v52 = vadd.f32 %v833_v41, %v832_v55 }
 0xaec   :  { %v1782_v57 = vsel %vm738_vm8, %v834_v52, %v1750_v56  ;;  %v1467_v56 = vld [vmem:[%s1888_s3] sm:$0xff] }
 0xaed   :  { %883 = vrot.lane.b32.xlu2 %v1782_v57, %s1475_s1 }
 0xb47   :  { %v884_v47 = vpop.permute.xlu2 %883 }
 0xb48   :  { %1347 = vmatmul.msk.f32.vlgmr.msrb.gmra.mxu2 %vm37_vm0, %v884_v47 }
 0xb49   :  { %1175 = vmatpush.msrb.mxu2 %v1466_v59 }
 0xb4b   :  { %1176 = vmatpush.msrb.mxu2 %v1467_v56 }
 0xb4f   :  { %v909_v60 = vpop.permute.xlu0 %908 }
 0xb50   :  { %1348 = vmatmul.msk.f32.vlgmr.msrb.gmra.mxu3 %vm37_vm0, %v909_v60 }
 0xb51   :  { %1200 = vmatpush.msrb.mxu3 %v1468_v19  ;;  %v97_v19 = vpop.f32.mrf.mxu0 }
 0xb53   :  { %1201 = vmatpush.msrb.mxu3 %v1469_v5  ;;  %v1831_v5 = vld [vmem:[%s1891_s4] ss:$0 sm:$0xff] }
 0xbcb   :  { %v904_v6 = vpop.f32.mrf.mxu2 }
 0xbcc   :  { %v952_v61 = vadd.f32 %v904_v6, %v1608_v21  ;;  %v932_v7 = vadd.f32 %v904_v6, %v878_v2  ;;  %v98_v6 = vadd.f32 %v1831_v5, %v97_v19 }
 0xbce   :  { %954 = vrot.lane.b32.xlu1 %v952_v61, %s1473_s0  ;;  %v1349_v9 = vmul.f32 -1.442695, %v932_v7  ;;  %110 = vst.msk [vmem:[#allocation2 + $0x30] sm:$0xff] %vm103_vm1, %v98_v6  ;;  %v100_v6 = vpop.f32.mrf.mxu0 }
 0xbd3   :  { %v929_v62 = vpop.f32.mrf.mxu3 }
 0xbd4   :  { %v992_v1 = vadd.f32 %v929_v62, %v1618_v28  ;;  %v972_v3 = vadd.f32 %v929_v62, %v881_v63 }
 0xbd6   :  { %994 = vrot.lane.b32.xlu2 %v992_v1, %s1473_s0  ;;  %v1350_v0 = vmul.f32 -1.442695, %v972_v3 }
 0xbd8   :  { %1430 = vpow2.f32 %v1350_v0 }
 0xbde   :  { %v1431_v4 = vpop.eup %1430 }
 0xbdf   :  { %v976_v8 = vadd.f32 1.0, %v1431_v4 }
 0xbe1   :  { %1432 = vrcp.f32 %v976_v8  ;;  %v988_v18 = vand.u32 2147483648, %v976_v8  ;;  %vm982_vm11 = vweird.f32 %v976_v8  ;;  %v986_v20 = vand.u32 2147483647, %v976_v8 }
 0xbe2   :  { %1434 = vpow2.f32 %v1349_v9 }
 0xbe3   :  { %v989_v24 = vor.u32 1.1754944e-38, %v988_v18  ;;  %vm987_vm9 = vcmp.eq.f32.partialorder %v986_v20, 8.507059e+37 }
 0xbe7   :  { %v1433_v10 = vpop.eup %1432 }
 0xbe8   :  { %v1435_v11 = vpop.eup %1434  ;;  %v978_v12 = vmul.f32 %v1433_v10, %v976_v8  ;;  %vm983_vm10 = vweird.f32 %v1433_v10 }
 0xbe9   :  { %v936_v13 = vadd.f32 1.0, %v1435_v11  ;;  %vm984_vm8 = vmor %vm982_vm11, %vm983_vm10 }
 0xbea   :  { %v979_v14 = vsub.f32 1.0, %v978_v12 }
 0xbeb   :  { %1436 = vrcp.f32 %v936_v13  ;;  %v948_v33 = vand.u32 2147483648, %v936_v13  ;;  %vm942_vm13 = vweird.f32 %v936_v13  ;;  %v946_v34 = vand.u32 2147483647, %v936_v13 }
 0xbec   :  { %v980_v15 = vmul.f32 %v1433_v10, %v979_v14 }
 0xbed   :  { %v949_v37 = vor.u32 1.1754944e-38, %v948_v33  ;;  %vm947_vm15 = vcmp.eq.f32.partialorder %v946_v34, 8.507059e+37 }
 0xbee   :  { %v981_v16 = vadd.f32 %v1433_v10, %v980_v15 }
 0xbf0   :  { %v985_v22 = vsel %vm984_vm8, %v1433_v10, %v981_v16 }
 0xbf1   :  { %v1437_v17 = vpop.eup %1436  ;;  %v990_v25 = vsel %vm987_vm9, %v989_v24, %v985_v22 }
 0xbf2   :  { %v938_v23 = vmul.f32 %v1437_v17, %v936_v13  ;;  %vm943_vm12 = vweird.f32 %v1437_v17  ;;  %v1004_v52 = vsub.f32 1.0, %v990_v25  ;;  %v1010_v42 = vmul.f32 %v990_v25, %v1774_v48 }
 0xbf3   :  { %vm944_vm14 = vmor %vm942_vm13, %vm943_vm12 }
 0xbf4   :  { %v939_v29 = vsub.f32 1.0, %v938_v23 }
 0xbf6   :  { %v940_v30 = vmul.f32 %v1437_v17, %v939_v29 }
 0xbf8   :  { %v941_v32 = vadd.f32 %v1437_v17, %v940_v30 }
 0xbfa   :  { %v945_v35 = vsel %vm944_vm14, %v1437_v17, %v941_v32 }
 0xbfb   :  { %v950_v39 = vsel %vm947_vm15, %v949_v37, %v945_v35 }
 0xbfc   :  { %v964_v50 = vsub.f32 1.0, %v950_v39  ;;  %v970_v53 = vmul.f32 %v950_v39, %v1782_v57 }
 0xc30   :  { %v995_v26 = vpop.permute.xlu2 %994 }
 0xc31   :  { %v997_v27 = vmul.f32 %v995_v26, %v990_v25 }
 0xc33   :  { %999 = vrot.lane.b32.xlu1 %v997_v27, %s1472_s15 }
 0xc40   :  { %v955_v38 = vpop.permute.xlu1 %954 }
 0xc41   :  { %v957_v40 = vmul.f32 %v955_v38, %v950_v39 }
 0xc43   :  { %959 = vrot.lane.b32.xlu0 %v957_v40, %s1472_s15 }
 0xca5   :  { %v1000_v43 = vpop.permute.xlu1 %999 }
 0xca6   :  { %v1002_v44 = vadd.f32 %v1000_v43, %v881_v63  ;;  %v1018_v63 = vld [vmem:[#allocation2 + $0x48] sm:$0xff] }
 0xca8   :  { %1438 = vtanh.f32 %v1002_v44 }
 0xcae   :  { %v1439_v45 = vpop.eup %1438 }
 0xcaf   :  { %1006 = vrot.lane.b32.xlu0 %v1439_v45, %s1475_s1 }
 0xcb5   :  { %v960_v46 = vpop.permute.xlu0 %959 }
 0xcb6   :  { %v962_v36 = vadd.f32 %v960_v46, %v878_v2  ;;  %v1015_v2 = vld [vmem:[#allocation2 + $0x30] sm:$0xff] }
 0xcb8   :  { %1440 = vtanh.f32 %v962_v36 }
 0xcbe   :  { %v1441_v49 = vpop.eup %1440 }
 0xcbf   :  { %966 = vrot.lane.b32.xlu2 %v1441_v49, %s1475_s1 }
 0xd19   :  { %v967_v51 = vpop.permute.xlu2 %966 }
 0xd1a   :  { %v969_v54 = vmul.f32 %v967_v51, %v964_v50 }
 0xd1c   :  { %v971_v41 = vadd.f32 %v970_v53, %v969_v54 }
 0xd1e   :  { %v1814_v55 = vsel %vm599_vm5, %v971_v41, %v1782_v57 }
 0xd1f   :  { %1020 = vrot.lane.b32.xlu1 %v1814_v55, %s1475_s1 }
 0xd21   :  { %v1007_v58 = vpop.permute.xlu0 %1006 }
 0xd22   :  { %v1009_v47 = vmul.f32 %v1007_v58, %v1004_v52 }
 0xd24   :  { %v1011_v59 = vadd.f32 %v1010_v42, %v1009_v47 }
 0xd26   :  { %v1822_v56 = vsel %vm597_vm4, %v1011_v59, %v1774_v48 }
 0xd27   :  { %1045 = vrot.lane.b32.xlu2 %v1822_v56, %s1475_s1 }
 0xd81   :  { %v1046_v60 = vpop.permute.xlu2 %1045 }
 0xd82   :  { %1352 = vmatmul.msk.f32.vlgmr.msra.gmra.mxu3 %vm37_vm0, %v1046_v60 }
 0xd91   :  { %v1021_v57 = vpop.permute.xlu1 %1020 }
 0xd92   :  { %1351 = vmatmul.msk.f32.vlgmr.msra.gmra.mxu2 %vm37_vm0, %v1021_v57 }
 0xe05   :  { %v1066_v48 = vpop.f32.mrf.mxu3 }
 0xe06   :  { %v1129_v61 = vadd.f32 %v1066_v48, %v1618_v28  ;;  %v1109_v3 = vadd.f32 %v1066_v48, %v1018_v63  ;;  %v101_v48 = vadd.f32 %v1831_v5, %v100_v6 }
 0xe08   :  { %1131 = vrot.lane.b32.xlu1 %v1129_v61, %s1473_s0  ;;  %v1354_v0 = vmul.f32 -1.442695, %v1109_v3  ;;  %111 = vst.msk [vmem:[#allocation2 + $0x38] sm:$0xff] %vm103_vm1, %v101_v48 }
 0xe0a   :  { %1442 = vpow2.f32 %v1354_v0 }
 0xe10   :  { %v1443_v4 = vpop.eup %1442 }
 0xe11   :  { %v1113_v8 = vadd.f32 1.0, %v1443_v4 }
 0xe13   :  { %1444 = vrcp.f32 %v1113_v8  ;;  %v1125_v18 = vand.u32 2147483648, %v1113_v8  ;;  %vm1119_vm5 = vweird.f32 %v1113_v8  ;;  %v1123_v20 = vand.u32 2147483647, %v1113_v8 }
 0xe15   :  { %v1041_v62 = vpop.f32.mrf.mxu2  ;;  %v1126_v24 = vor.u32 1.1754944e-38, %v1125_v18  ;;  %vm1124_vm3 = vcmp.eq.f32.partialorder %v1123_v20, 8.507059e+37 }
 0xe16   :  { %v1089_v1 = vadd.f32 %v1041_v62, %v1608_v21  ;;  %v1069_v7 = vadd.f32 %v1041_v62, %v1015_v2 }
 0xe18   :  { %1091 = vrot.lane.b32.xlu0 %v1089_v1, %s1473_s0  ;;  %v1353_v9 = vmul.f32 -1.442695, %v1069_v7 }
 0xe19   :  { %v1445_v10 = vpop.eup %1444 }
 0xe1a   :  { %1446 = vpow2.f32 %v1353_v9  ;;  %v1115_v12 = vmul.f32 %v1445_v10, %v1113_v8  ;;  %vm1120_vm4 = vweird.f32 %v1445_v10 }
 0xe1b   :  { %vm1121_vm2 = vmor %vm1119_vm5, %vm1120_vm4  ;;  %vm1896_vm5 = vcmp.gt.s32.totalorder %v1636_v31, 7 }
 0xe1c   :  { %v1116_v14 = vsub.f32 1.0, %v1115_v12 }
 0xe1e   :  { %v1117_v15 = vmul.f32 %v1445_v10, %v1116_v14 }
 0xe20   :  { %v1447_v11 = vpop.eup %1446  ;;  %v1118_v16 = vadd.f32 %v1445_v10, %v1117_v15 }
 0xe21   :  { %v1073_v13 = vadd.f32 1.0, %v1447_v11 }
 0xe22   :  { %v1122_v22 = vsel %vm1121_vm2, %v1445_v10, %v1118_v16  ;;  %vm1293_vm2 = vcmask 261248  }
 0xe23   :  { %1448 = vrcp.f32 %v1073_v13  ;;  %v1127_v26 = vsel %vm1124_vm3, %v1126_v24, %v1122_v22  ;;  %v1085_v33 = vand.u32 2147483648, %v1073_v13  ;;  %vm1079_vm11 = vweird.f32 %v1073_v13 }
 0xe24   :  { %v1083_v34 = vand.u32 2147483647, %v1073_v13  ;;  %v1141_v50 = vsub.f32 1.0, %v1127_v26  ;;  %v1147_v53 = vmul.f32 %v1127_v26, %v1822_v56  ;;  %vm1897_vm3 = vcmp.gt.s32.totalorder %v1636_v31, 0 }
 0xe25   :  { %v1086_v37 = vor.u32 1.1754944e-38, %v1085_v33 }
 0xe26   :  { %vm1084_vm9 = vcmp.eq.f32.partialorder %v1083_v34, 8.507059e+37 }
 0xe29   :  { %v1449_v17 = vpop.eup %1448 }
 0xe2a   :  { %v1075_v23 = vmul.f32 %v1449_v17, %v1073_v13  ;;  %vm1080_vm10 = vweird.f32 %v1449_v17 }
 0xe2b   :  { %vm1081_vm8 = vmor %vm1079_vm11, %vm1080_vm10 }
 0xe2c   :  { %v1076_v29 = vsub.f32 1.0, %v1075_v23 }
 0xe2e   :  { %v1077_v30 = vmul.f32 %v1449_v17, %v1076_v29 }
 0xe30   :  { %v1078_v32 = vadd.f32 %v1449_v17, %v1077_v30 }
 0xe32   :  { %v1082_v35 = vsel %vm1081_vm8, %v1449_v17, %v1078_v32 }
 0xe33   :  { %v1087_v39 = vsel %vm1084_vm9, %v1086_v37, %v1082_v35 }
 0xe34   :  { %v1101_v58 = vsub.f32 1.0, %v1087_v39  ;;  %v1107_v47 = vmul.f32 %v1087_v39, %v1814_v55 }
 0xe7a   :  { %v1132_v25 = vpop.permute.xlu1 %1131 }
 0xe7b   :  { %v1134_v27 = vmul.f32 %v1132_v25, %v1127_v26 }
 0xe7d   :  { %1136 = vrot.lane.b32.xlu0 %v1134_v27, %s1472_s15 }
 0xe8a   :  { %v1092_v38 = vpop.permute.xlu0 %1091 }
 0xe8b   :  { %v1094_v40 = vmul.f32 %v1092_v38, %v1087_v39 }
 0xe8d   :  { %1096 = vrot.lane.b32.xlu2 %v1094_v40, %s1472_s15 }
 0xee7   :  { %v1097_v43 = vpop.permute.xlu2 %1096 }
 0xee8   :  { %v1099_v44 = vadd.f32 %v1097_v43, %v1015_v2  ;;  %v1155_v2 = vld [vmem:[#allocation2 + $0x40] sm:$0xff] }
 0xeea   :  { %1450 = vtanh.f32 %v1099_v44 }
 0xeef   :  { %v1137_v45 = vpop.permute.xlu0 %1136 }
 0xef0   :  { %v1451_v46 = vpop.eup %1450  ;;  %v1139_v36 = vadd.f32 %v1137_v45, %v1018_v63  ;;  %v1152_v63 = vld [vmem:[#allocation2 + $0x38] sm:$0xff] }
 0xef1   :  { %1103 = vrot.lane.b32.xlu1 %v1451_v46, %s1475_s1 }
 0xef2   :  { %1452 = vtanh.f32 %v1139_v36 }
 0xef8   :  { %v1453_v49 = vpop.eup %1452 }
 0xef9   :  { %1143 = vrot.lane.b32.xlu2 %v1453_v49, %s1475_s1 }
 0xf53   :  { %v1144_v51 = vpop.permute.xlu2 %1143 }
 0xf54   :  { %v1146_v54 = vmul.f32 %v1144_v51, %v1141_v50 }
 0xf56   :  { %v1148_v41 = vadd.f32 %v1147_v53, %v1146_v54 }
 0xf58   :  { %v1847_v52 = vsel %vm458_vm7, %v1148_v41, %v1822_v56 }
 0xf59   :  { %1182 = vrot.lane.b32.xlu1 %v1847_v52, %s1475_s1 }
 0xf63   :  { %v1104_v42 = vpop.permute.xlu1 %1103 }
 0xf64   :  { %v1106_v59 = vmul.f32 %v1104_v42, %v1101_v58 }
 0xf66   :  { %v1108_v60 = vadd.f32 %v1107_v47, %v1106_v59 }
 0xf68   :  { %v1855_v57 = vsel %vm460_vm6, %v1108_v60, %v1814_v55 }
 0xf69   :  { %1157 = vrot.lane.b32.xlu0 %v1855_v57, %s1475_s1 }
 0xfcb   :  { %v1183_v19 = vpop.permute.xlu1 %1182 }
 0xfcc   :  { %1356 = vmatmul.msk.f32.vlgmr.msrb.gmra.mxu3 %vm37_vm0, %v1183_v19 }
 0xfdb   :  { %v1158_v56 = vpop.permute.xlu0 %1157 }
 0xfdc   :  { %1355 = vmatmul.msk.f32.vlgmr.msrb.gmra.mxu2 %vm37_vm0, %v1158_v56 }
0x104f   :  { %v1203_v61 = vpop.f32.mrf.mxu3 }
0x1050   :  { %v1266_v62 = vadd.f32 %v1203_v61, %v1618_v28  ;;  %v1246_v4 = vadd.f32 %v1203_v61, %v1155_v2 }
0x1052   :  { %1268 = vrot.lane.b32.xlu0 %v1266_v62, %s1473_s0  ;;  %v1358_v7 = vmul.f32 -1.442695, %v1246_v4 }
0x105f   :  { %v1178_v55 = vpop.f32.mrf.mxu2 }
0x1060   :  { %v1226_v1 = vadd.f32 %v1178_v55, %v1608_v21  ;;  %v1206_v3 = vadd.f32 %v1178_v55, %v1152_v63 }
0x1062   :  { %1228 = vrot.lane.b32.xlu2 %v1226_v1, %s1473_s0  ;;  %v1357_v0 = vmul.f32 -1.442695, %v1206_v3 }
0x1064   :  { %1454 = vpow2.f32 %v1357_v0 }
0x1065   :  { %1456 = vpow2.f32 %v1358_v7 }
0x106a   :  { %v1455_v5 = vpop.eup %1454 }
0x106b   :  { %v1210_v8 = vadd.f32 1.0, %v1455_v5  ;;  %v1457_v9 = vpop.eup %1456 }
0x106c   :  { %v1250_v28 = vadd.f32 1.0, %v1457_v9 }
0x106d   :  { %1458 = vrcp.f32 %v1210_v8  ;;  %v1222_v17 = vand.u32 2147483648, %v1210_v8  ;;  %vm1216_vm6 = vweird.f32 %v1210_v8  ;;  %v1220_v18 = vand.u32 2147483647, %v1210_v8 }
0x106e   :  { %1460 = vrcp.f32 %v1250_v28  ;;  %v1262_v29 = vand.u32 2147483648, %v1250_v28  ;;  %vm1256_vm14 = vweird.f32 %v1250_v28  ;;  %v1260_v30 = vand.u32 2147483647, %v1250_v28 }
0x106f   :  { %v1223_v23 = vor.u32 1.1754944e-38, %v1222_v17  ;;  %vm1221_vm12 = vcmp.eq.f32.partialorder %v1220_v18, 8.507059e+37 }
0x1070   :  { %v1263_v33 = vor.u32 1.1754944e-38, %v1262_v29  ;;  %vm1261_vm4 = vcmp.eq.f32.partialorder %v1260_v30, 8.507059e+37 }
0x1073   :  { %v1459_v10 = vpop.eup %1458 }
0x1074   :  { %v1212_v11 = vmul.f32 %v1459_v10, %v1210_v8  ;;  %v1461_v21 = vpop.eup %1460  ;;  %vm1217_vm1 = vweird.f32 %v1459_v10 }
0x1075   :  { %v1252_v14 = vmul.f32 %v1461_v21, %v1250_v28  ;;  %vm1218_vm7 = vmor %vm1216_vm6, %vm1217_vm1  ;;  %vm1257_vm13 = vweird.f32 %v1461_v21 }
0x1076   :  { %v1213_v12 = vsub.f32 1.0, %v1212_v11  ;;  %vm1258_vm15 = vmor %vm1256_vm14, %vm1257_vm13 }
0x1077   :  { %v1253_v16 = vsub.f32 1.0, %v1252_v14 }
0x1078   :  { %v1214_v13 = vmul.f32 %v1459_v10, %v1213_v12 }
0x1079   :  { %v1254_v22 = vmul.f32 %v1461_v21, %v1253_v16 }
0x107a   :  { %v1215_v15 = vadd.f32 %v1459_v10, %v1214_v13 }
0x107b   :  { %v1255_v27 = vadd.f32 %v1461_v21, %v1254_v22 }
0x107c   :  { %v1219_v20 = vsel %vm1218_vm7, %v1459_v10, %v1215_v15 }
0x107d   :  { %v1224_v24 = vsel %vm1221_vm12, %v1223_v23, %v1219_v20  ;;  %v1259_v32 = vsel %vm1258_vm15, %v1461_v21, %v1255_v27 }
0x107e   :  { %v1264_v35 = vsel %vm1261_vm4, %v1263_v33, %v1259_v32  ;;  %v1238_v46 = vsub.f32 1.0, %v1224_v24  ;;  %v1244_v49 = vmul.f32 %v1224_v24, %v1855_v57 }
0x107f   :  { %v1278_v41 = vsub.f32 1.0, %v1264_v35  ;;  %v1284_v42 = vmul.f32 %v1264_v35, %v1847_v52 }
0x10bc   :  { %v1229_v25 = vpop.permute.xlu2 %1228 }
0x10bd   :  { %v1231_v26 = vmul.f32 %v1229_v25, %v1224_v24 }
0x10bf   :  { %1233 = vrot.lane.b32.xlu1 %v1231_v26, %s1472_s15 }
0x10c4   :  { %v1269_v34 = vpop.permute.xlu0 %1268 }
0x10c5   :  { %v1271_v37 = vmul.f32 %v1269_v34, %v1264_v35 }
0x10c7   :  { %1273 = vrot.lane.b32.xlu2 %v1271_v37, %s1472_s15 }
0x1121   :  { %v1274_v38 = vpop.permute.xlu2 %1273 }
0x1122   :  { %v1276_v39 = vadd.f32 %v1274_v38, %v1155_v2 }
0x1124   :  { %1462 = vtanh.f32 %v1276_v39 }
0x112a   :  { %v1463_v40 = vpop.eup %1462 }
0x112b   :  { %1280 = vrot.lane.b32.xlu1 %v1463_v40, %s1475_s1 }
0x1131   :  { %v1234_v43 = vpop.permute.xlu1 %1233 }
0x1132   :  { %v1236_v44 = vadd.f32 %v1234_v43, %v1152_v63 }
0x1134   :  { %1464 = vtanh.f32 %v1236_v44 }
0x113a   :  { %v1465_v45 = vpop.eup %1464 }
0x113b   :  { %1240 = vrot.lane.b32.xlu0 %v1465_v45, %s1475_s1 }
0x119d   :  { %v1281_v54 = vpop.permute.xlu1 %1280 }
0x119e   :  { %v1283_v58 = vmul.f32 %v1281_v54, %v1278_v41 }
0x11a0   :  { %v1285_v47 = vadd.f32 %v1284_v42, %v1283_v58 }
0x11a2   :  { %v1287_v60 = vsel %vm1897_vm3, %v1285_v47, %v1847_v52 }
0x11ad   :  { %v1241_v36 = vpop.permute.xlu0 %1240 }
0x11ae   :  { %v1243_v50 = vmul.f32 %v1241_v36, %v1238_v46 }
0x11b0   :  { %v1245_v51 = vadd.f32 %v1244_v49, %v1243_v50 }
0x11b2   :  { %v1286_v53 = vsel %vm1896_vm5, %v1245_v51, %v1855_v57 }
0x11b3   :  { %1289 = vrot.lane.b32.xlu2 %v1286_v53, %s1475_s1 }
0x120d   :  { %v1290_v59 = vpop.permute.xlu2 %1289 }
0x120e   :  { %1292 = vst.msk [vmem:[%s1893_s6] sm:$0xff] %vm37_vm0, %v1290_v59 }
0x120f   :  { %1294 = vst.msk [vmem:[%s1893_s6] sm:$0xff] %vm1293_vm2, %v1287_v60 }

// kernel: sden_forward.10
= control target key start
LH: loop header
LB: loop body
LE: loop exit
PB: predicated region body
PF: predicated region fallthrough
CT: control target
= control target key end

     0   :  { %s1581_s30 = smov 96   ;;  %vm201_vm0 = vcmask 261120   ;;  %vm45_vm1 = vcmask 523264   ;;  %s1582_s21 = smov 64   ;;  %v1583_v58 = vmov 0   ;;  %s2299_s3 = inlined_call_operand.vmem [shape: f32[2,64,128], index: 3, kind: input, shape index: {}]   ;;  %s2300_s2 = inlined_call_operand.vmem [shape: f32[8,64], index: 2, kind: input, shape index: {}]   ;;  %s2301_s4 = inlined_call_operand.vmem [shape: f32[2,32,128], index: 4, kind: input, shape index: {}]   ;;  %s2302_s5 = inlined_call_operand.vmem [shape: f32[2,1,128], index: 5, kind: input, shape index: {}]   ;;  %s2303_s0 = inlined_call_operand.vmem [shape: f32[64,64], index: 0, kind: input, shape index: {}]   ;;  %s2304_s1 = inlined_call_operand.vmem [shape: s32[8,1], index: 1, kind: input, shape index: {}]   ;;  %s2305_s6 = inlined_call_operand.vmem [shape: f32[8,8,64], index: 6, kind: output, shape index: {0}]   ;;  %s2306_s7 = inlined_call_operand.vmem [shape: f32[8,64], index: 7, kind: output, shape index: {1}]  }
   0x1   :  { %v40_v0 = vld [vmem:[%s2299_s3 + $0x38] sm:$0xff]  ;;  %v1631_v1 = vld [vmem:[%s2300_s2] sm:$0xff]  ;;  %v39_v2 = vld [vmem:[%s2299_s3 + $0x30] sm:$0xff]  ;;  %1441 = vset.pattern.permute.xlu0 %v1583_v58 }
   0x2   :  { %78 = vmatpush.msra.mxu0 %v40_v0  ;;  %225 = vrot.lane.b32.xlu0 %v1631_v1, %s1581_s30  ;;  %v1640_v3 = vld [vmem:[%s2301_s4 + $0x18] sm:$0xff]  ;;  %v38_v4 = vld [vmem:[%s2299_s3 + $0x28] sm:$0xff]  ;;  %v1649_v5 = vld [vmem:[%s2301_s4 + $0x10] sm:$0xff] }
   0x3   :  { %217 = vmatpush.msra.mxu2 %v1640_v3  ;;  %v1654_v6 = vld [vmem:[%s2301_s4 + $0x8] sm:$0xff]  ;;  %v37_v7 = vld [vmem:[%s2299_s3 + $0x20] sm:$0xff]  ;;  %v1377_v8 = vld [vmem:[%s2299_s3 + $0x78] sm:$0xff] }
   0x4   :  { %79 = vmatpush.msra.mxu0 %v39_v2  ;;  %v1666_v9 = vld [vmem:[%s2301_s4] sm:$0xff]  ;;  %141 = vmatpush.msra.mxu1 %v1377_v8  ;;  %v1376_v10 = vld [vmem:[%s2299_s3 + $0x70] sm:$0xff]  ;;  %v36_v11 = vld [vmem:[%s2299_s3 + $0x18] sm:$0xff] }
   0x5   :  { %218 = vmatpush.msra.mxu2 %v1649_v5  ;;  %v1375_v12 = vld [vmem:[%s2299_s3 + $0x68] sm:$0xff]  ;;  %v35_v13 = vld [vmem:[%s2299_s3 + $0x10] sm:$0xff]  ;;  %v1374_v14 = vld [vmem:[%s2299_s3 + $0x60] sm:$0xff] }
   0x6   :  { %80 = vmatpush.msra.mxu0 %v38_v4  ;;  %142 = vmatpush.msra.mxu1 %v1376_v10  ;;  %v34_v15 = vld [vmem:[%s2299_s3 + $0x8] sm:$0xff]  ;;  %v1373_v16 = vld [vmem:[%s2299_s3 + $0x58] sm:$0xff]  ;;  %v33_v17 = vld [vmem:[%s2299_s3] sm:$0xff] }
   0x7   :  { %219 = vmatpush.msra.mxu2 %v1654_v6  ;;  %v25_v18 = vld [vmem:[%s2303_s0] sm:$0xff]  ;;  %v1372_v19 = vld [vmem:[%s2299_s3 + $0x50] sm:$0xff]  ;;  %v1371_v20 = vld [vmem:[%s2299_s3 + $0x48] sm:$0xff] }
   0x8   :  { %81 = vmatpush.msra.mxu0 %v37_v7  ;;  %143 = vmatpush.msra.mxu1 %v1375_v12  ;;  %v1370_v21 = vld [vmem:[%s2299_s3 + $0x40] sm:$0xff]  ;;  %v26_v22 = vld [vmem:[%s2303_s0 + $0x8] sm:$0xff]  ;;  %v1726_v23 = vld [vmem:[%s2301_s4 + $0x38] sm:$0xff] }
   0x9   :  { %220 = vmatpush.msra.mxu2 %v1666_v9  ;;  %v1731_v24 = vld [vmem:[%s2301_s4 + $0x30] sm:$0xff]  ;;  %241 = vmatpush.msra.mxu3 %v1726_v23  ;;  %v1743_v26 = vld [vmem:[%s2301_s4 + $0x28] sm:$0xff]  ;;  %v1748_v27 = vld [vmem:[%s2301_s4 + $0x20] sm:$0xff] }
   0xa   :  { %82 = vmatpush.msra.mxu0 %v36_v11  ;;  %1391 = vmatmul.msk.f32.vlgmr.msra.gmra.mxu2 %vm201_vm0, %v1631_v1  ;;  %v27_v25 = vld [vmem:[%s2303_s0 + $0x10] sm:$0xff]  ;;  %v28_v28 = vld [vmem:[%s2303_s0 + $0x18] sm:$0xff]  ;;  %v29_v29 = vld [vmem:[%s2303_s0 + $0x20] sm:$0xff] }
   0xb   :  { %366 = vmatpush.msrb.mxu2 %v1640_v3  ;;  %144 = vmatpush.msra.mxu1 %v1374_v14  ;;  %v30_v30 = vld [vmem:[%s2303_s0 + $0x28] sm:$0xff]  ;;  %v31_v31 = vld [vmem:[%s2303_s0 + $0x30] sm:$0xff]  ;;  %v32_v32 = vld [vmem:[%s2303_s0 + $0x38] sm:$0xff] }
   0xc   :  { %83 = vmatpush.msra.mxu0 %v35_v13  ;;  %242 = vmatpush.msra.mxu3 %v1731_v24  ;;  %v1792_v34 = vld [vmem:[%s2302_s5] ss:$0 sm:$0xff]  ;;  %v1443_v38 = vld [vmem:[%s2302_s5 + $0x1] ss:$0 sm:$0xff] }
   0xd   :  { %367 = vmatpush.msrb.mxu2 %v1649_v5  ;;  %145 = vmatpush.msra.mxu1 %v1373_v16  ;;  %v192_v59 = vld [vmem:[%s2304_s1] sm:$0xff]  ;;  %s1584_s1 = smov 32  }
   0xe   :  { %84 = vmatpush.msra.mxu0 %v34_v15  ;;  %243 = vmatpush.msra.mxu3 %v1743_v26 }
   0xf   :  { %368 = vmatpush.msrb.mxu2 %v1654_v6  ;;  %146 = vmatpush.msra.mxu1 %v1372_v19 }
  0x10   :  { %85 = vmatpush.msra.mxu0 %v33_v17  ;;  %244 = vmatpush.msra.mxu3 %v1748_v27 }
  0x11   :  { %1362 = vmatmul.msk.f32.vlgmr.msra.gmra.mxu0 %vm45_vm1, %v25_v18  ;;  %369 = vmatpush.msrb.mxu2 %v1666_v9 }
  0x12   :  { %147 = vmatpush.msra.mxu1 %v1371_v20  ;;  %390 = vmatpush.msrb.mxu3 %v1726_v23 }
  0x13   :  { %511 = vmatpush.msra.mxu2 %v1640_v3 }
  0x14   :  { %148 = vmatpush.msra.mxu1 %v1370_v21  ;;  %391 = vmatpush.msrb.mxu3 %v1731_v24 }
  0x15   :  { %512 = vmatpush.msra.mxu2 %v1649_v5  ;;  %1379 = vmatmul.msk.f32.vlgmr.msra.gmra.mxu1 %vm45_vm1, %v25_v18 }
  0x16   :  { %392 = vmatpush.msrb.mxu3 %v1743_v26 }
  0x17   :  { %513 = vmatpush.msra.mxu2 %v1654_v6 }
  0x18   :  { %393 = vmatpush.msrb.mxu3 %v1748_v27 }
  0x19   :  { %1363 = vmatmul.msk.f32.gmra.mxu0 %vm45_vm1, %v26_v22  ;;  %514 = vmatpush.msra.mxu2 %v1666_v9 }
  0x1d   :  { %1380 = vmatmul.msk.f32.gmra.mxu1 %vm45_vm1, %v26_v22 }
  0x21   :  { %1364 = vmatmul.msk.f32.gmra.mxu0 %vm45_vm1, %v27_v25 }
  0x25   :  { %1381 = vmatmul.msk.f32.gmra.mxu1 %vm45_vm1, %v27_v25 }
  0x29   :  { %1365 = vmatmul.msk.f32.gmra.mxu0 %vm45_vm1, %v28_v28 }
  0x2d   :  { %1382 = vmatmul.msk.f32.gmra.mxu1 %vm45_vm1, %v28_v28 }
  0x31   :  { %1366 = vmatmul.msk.f32.gmra.mxu0 %vm45_vm1, %v29_v29 }
  0x35   :  { %1383 = vmatmul.msk.f32.gmra.mxu1 %vm45_vm1, %v29_v29 }
  0x39   :  { %1367 = vmatmul.msk.f32.gmra.mxu0 %vm45_vm1, %v30_v30 }
  0x3d   :  { %1384 = vmatmul.msk.f32.gmra.mxu1 %vm45_vm1, %v30_v30 }
  0x41   :  { %1368 = vmatmul.msk.f32.gmra.mxu0 %vm45_vm1, %v31_v31 }
  0x45   :  { %1385 = vmatmul.msk.f32.gmra.mxu1 %vm45_vm1, %v31_v31 }
  0x49   :  { %1369 = vmatmul.msk.f32.gmra.mxu0 %vm45_vm1, %v32_v32 }
  0x4d   :  { %1386 = vmatmul.msk.f32.gmra.mxu1 %vm45_vm1, %v32_v32 }
  0x74   :  { %v1781_v33 = vpop.permute.xlu0 %225 }
  0x75   :  { %1392 = vmatmul.msk.f32.vlgmr.msra.gmra.mxu3 %vm201_vm0, %v1781_v33 }
  0x76   :  { %535 = vmatpush.msra.mxu3 %v1726_v23 }
  0x78   :  { %536 = vmatpush.msra.mxu3 %v1731_v24 }
  0x7a   :  { %537 = vmatpush.msra.mxu3 %v1743_v26 }
  0x7c   :  { %538 = vmatpush.msra.mxu3 %v1748_v27 }
  0x8d   :  { %v222_v36 = vpop.f32.mrf.mxu2 }
  0x8e   :  { %v87_v35 = vpop.f32.mrf.mxu0 }
  0x8f   :  { %v88_v37 = vadd.f32 %v1792_v34, %v87_v35 }
  0x91   :  { %v249_v39 = vadd.f32 %v222_v36, %v88_v37 }
  0x92   :  { %v150_v40 = vpop.f32.mrf.mxu1 }
  0x93   :  { %1444 = vtanh.f32 %v249_v39  ;;  %v1798_v41 = vadd.f32 %v1443_v38, %v150_v40  ;;  %v1393_v55 = vmul.f32 -1.442695, %v249_v39 }
  0x95   :  { %1446 = vpow2.f32 %v1393_v55 }
  0x99   :  { %v1445_v42 = vpop.eup %1444 }
  0x9a   :  { %272 = vrot.lane.b32.xlu0 %v1445_v42, %s1582_s21  ;;  %v153_v43 = vpop.f32.mrf.mxu1 }
  0x9b   :  { %v1801_v44 = vadd.f32 %v1443_v38, %v153_v43  ;;  %v1447_v56 = vpop.eup %1446 }
  0x9c   :  { %v253_v57 = vadd.f32 1.0, %v1447_v56 }
  0x9e   :  { %1448 = vrcp.f32 %v253_v57  ;;  %vm259_vm2 = vweird.f32 %v253_v57  ;;  %v265_v10 = vand.u32 2147483648, %v253_v57  ;;  %v263_v12 = vand.u32 2147483647, %v253_v57 }
  0xa0   :  { %v266_v13 = vor.u32 1.1754944e-38, %v265_v10  ;;  %vm264_vm5 = vcmp.eq.f32.partialorder %v263_v12, 8.507059e+37 }
  0xa2   :  { %v156_v45 = vpop.f32.mrf.mxu1  ;;  %194 = vperm.xlu0 %1441, %v192_v59  }
  0xa3   :  { %v1803_v46 = vadd.f32 %v1443_v38, %v156_v45 }
  0xa4   :  { %v1449_v62 = vpop.eup %1448 }
  0xa5   :  { %v255_v2 = vmul.f32 %v1449_v62, %v253_v57  ;;  %vm260_vm3 = vweird.f32 %v1449_v62 }
  0xa6   :  { %vm261_vm4 = vmor %vm259_vm2, %vm260_vm3 }
  0xa7   :  { %v256_v4 = vsub.f32 1.0, %v255_v2 }
  0xa9   :  { %v257_v8 = vmul.f32 %v1449_v62, %v256_v4 }
  0xaa   :  { %v159_v47 = vpop.f32.mrf.mxu1 }
  0xab   :  { %v1805_v48 = vadd.f32 %v1443_v38, %v159_v47  ;;  %v258_v11 = vadd.f32 %v1449_v62, %v257_v8 }
  0xad   :  { %v262_v14 = vsel %vm261_vm4, %v1449_v62, %v258_v11  ;;  %v90_v62 = vpop.f32.mrf.mxu0 }
  0xae   :  { %v267_v16 = vsel %vm264_vm5, %v266_v13, %v262_v14 }
  0xaf   :  { %v270_v39 = vmul.f32 0.0, %v267_v16 }
  0xb2   :  { %v162_v49 = vpop.f32.mrf.mxu1 }
  0xb3   :  { %v1807_v50 = vadd.f32 %v1443_v38, %v162_v49 }
  0xba   :  { %v165_v51 = vpop.f32.mrf.mxu1 }
  0xbb   :  { %v1809_v52 = vadd.f32 %v1443_v38, %v165_v51 }
  0xc2   :  { %v168_v53 = vpop.f32.mrf.mxu1 }
  0xc3   :  { %v1811_v54 = vadd.f32 %v1443_v38, %v168_v53 }
  0xca   :  { %v171_v60 = vpop.f32.mrf.mxu1 }
  0xcb   :  { %v172_v61 = vadd.f32 %v1443_v38, %v171_v60 }
  0xf8   :  { %v246_v63 = vpop.f32.mrf.mxu3 }
  0xf9   :  { %v287_v0 = vadd.f32 %v246_v63, %v172_v61  ;;  %v91_v63 = vadd.f32 %v1792_v34, %v90_v62 }
  0xfb   :  { %1450 = vtanh.f32 %v287_v0  ;;  %v1394_v18 = vmul.f32 -1.442695, %v287_v0 }
  0xfd   :  { %1452 = vpow2.f32 %v1394_v18 }
 0x101   :  { %v1451_v7 = vpop.eup %1450 }
 0x102   :  { %310 = vrot.lane.b32.xlu1 %v1451_v7, %s1582_s21 }
 0x103   :  { %v1453_v19 = vpop.eup %1452 }
 0x104   :  { %v291_v20 = vadd.f32 1.0, %v1453_v19 }
 0x106   :  { %1454 = vrcp.f32 %v291_v20  ;;  %v303_v30 = vand.u32 2147483648, %v291_v20  ;;  %vm297_vm7 = vweird.f32 %v291_v20  ;;  %v301_v31 = vand.u32 2147483647, %v291_v20 }
 0x108   :  { %v304_v35 = vor.u32 1.1754944e-38, %v303_v30  ;;  %vm302_vm9 = vcmp.eq.f32.partialorder %v301_v31, 8.507059e+37 }
 0x10c   :  { %v273_v15 = vpop.permute.xlu0 %272  ;;  %v1455_v21 = vpop.eup %1454 }
 0x10d   :  { %v275_v17 = vmul.f32 %v273_v15, %v267_v16  ;;  %v293_v22 = vmul.f32 %v1455_v21, %v291_v20  ;;  %vm298_vm6 = vweird.f32 %v1455_v21 }
 0x10e   :  { %vm299_vm8 = vmor %vm297_vm7, %vm298_vm6 }
 0x10f   :  { %277 = vrot.lane.b32.xlu1 %v275_v17, %s1584_s1  ;;  %v294_v25 = vsub.f32 1.0, %v293_v22 }
 0x111   :  { %v295_v28 = vmul.f32 %v1455_v21, %v294_v25 }
 0x113   :  { %v296_v29 = vadd.f32 %v1455_v21, %v295_v28 }
 0x114   :  { %v1829_v53 = vpop.permute.xlu0 %194 }
 0x115   :  { %v300_v32 = vsel %vm299_vm8, %v1455_v21, %v296_v29  ;;  %vm325_vm10 = vcmp.gt.s32.totalorder %v1829_v53, 0  ;;  %vm326_vm11 = vcmp.gt.s32.totalorder %v1829_v53, 7  ;;  %vm474_vm5 = vcmp.gt.s32.totalorder %v1829_v53, 1 }
 0x116   :  { %v305_v37 = vsel %vm302_vm9, %v304_v35, %v300_v32  ;;  %vm475_vm6 = vcmp.gt.s32.totalorder %v1829_v53, 6 }
 0x117   :  { %v308_v45 = vmul.f32 0.0, %v305_v37 }
 0x174   :  { %v311_v36 = vpop.permute.xlu1 %310 }
 0x175   :  { %v313_v38 = vmul.f32 %v311_v36, %v305_v37 }
 0x177   :  { %315 = vrot.lane.b32.xlu2 %v313_v38, %s1584_s1 }
 0x181   :  { %v278_v40 = vpop.permute.xlu1 %277 }
 0x182   :  { %v1819_v42 = vadd.f32 %v278_v40, %v270_v39 }
 0x184   :  { %1456 = vtanh.f32 %v1819_v42 }
 0x18a   :  { %v1457_v43 = vpop.eup %1456 }
 0x18b   :  { %283 = vrot.lane.b32.xlu2 %v1457_v43, %s1582_s21 }
 0x193   :  { %330 = vrot.lane.b32.xlu2 %v1631_v1, %s1582_s21 }
 0x1d1   :  { %v316_v47 = vpop.permute.xlu2 %315 }
 0x1d2   :  { %v1825_v49 = vadd.f32 %v316_v47, %v308_v45 }
 0x1d4   :  { %1458 = vtanh.f32 %v1825_v49 }
 0x1da   :  { %v1459_v51 = vpop.eup %1458 }
 0x1db   :  { %321 = vrot.lane.b32.xlu1 %v1459_v51, %s1582_s21 }
 0x1e5   :  { %v284_v55 = vpop.permute.xlu2 %283 }
 0x1e6   :  { %v286_v56 = vmul.f32 %v284_v55, %v267_v16 }
 0x1e8   :  { %v1835_v57 = vsel %vm325_vm10, %v286_v56, %v1781_v33  ;;  %v1869_v56 = vsel %vm325_vm10, %v1819_v42, 0.0 }
 0x1e9   :  { %336 = vrot.lane.b32.xlu1 %v1835_v57, %s1584_s1 }
 0x1ed   :  { %v331_v58 = vpop.permute.xlu2 %330 }
 0x24d   :  { %v322_v1 = vpop.permute.xlu1 %321 }
 0x24e   :  { %v324_v59 = vmul.f32 %v322_v1, %v305_v37 }
 0x250   :  { %v1842_v60 = vsel %vm326_vm11, %v324_v59, %v331_v58 }
 0x251   :  { %374 = vrot.lane.b32.xlu2 %v1842_v60, %s1584_s1 }
 0x25b   :  { %v337_v61 = vpop.permute.xlu1 %336 }
 0x25c   :  { %339 = vst.msk [vmem:[%s2305_s6] sm:$0xff] %vm201_vm0, %v337_v61  ;;  %1396 = vmatmul.msk.f32.vlgmr.msrb.gmra.mxu2 %vm201_vm0, %v337_v61 }
 0x25d   :  { %656 = vmatpush.msrb.mxu2 %v1640_v3 }
 0x25f   :  { %657 = vmatpush.msrb.mxu2 %v1649_v5 }
 0x261   :  { %658 = vmatpush.msrb.mxu2 %v1654_v6 }
 0x263   :  { %659 = vmatpush.msrb.mxu2 %v1666_v9 }
 0x2ab   :  { %v375_v33 = vpop.permute.xlu2 %374 }
 0x2ac   :  { %1397 = vmatmul.msk.f32.vlgmr.msrb.gmra.mxu3 %vm201_vm0, %v375_v33  ;;  %v1879_v33 = vsel %vm326_vm11, %v1825_v49, 0.0 }
 0x2ad   :  { %680 = vmatpush.msrb.mxu3 %v1726_v23 }
 0x2af   :  { %681 = vmatpush.msrb.mxu3 %v1731_v24 }
 0x2b1   :  { %682 = vmatpush.msrb.mxu3 %v1743_v26 }
 0x2b3   :  { %683 = vmatpush.msrb.mxu3 %v1748_v27 }
 0x2df   :  { %v371_v0 = vpop.f32.mrf.mxu2 }
 0x2e0   :  { %v398_v2 = vadd.f32 %v371_v0, %v91_v63 }
 0x2e2   :  { %1460 = vtanh.f32 %v398_v2  ;;  %v1398_v7 = vmul.f32 -1.442695, %v398_v2 }
 0x2e4   :  { %1462 = vpow2.f32 %v1398_v7 }
 0x2e8   :  { %v1461_v4 = vpop.eup %1460 }
 0x2e9   :  { %421 = vrot.lane.b32.xlu0 %v1461_v4, %s1582_s21 }
 0x2ea   :  { %v1463_v11 = vpop.eup %1462 }
 0x2eb   :  { %v402_v13 = vadd.f32 1.0, %v1463_v11 }
 0x2ed   :  { %v414_v19 = vand.u32 2147483648, %v402_v13  ;;  %vm408_vm13 = vweird.f32 %v402_v13  ;;  %v412_v20 = vand.u32 2147483647, %v402_v13 }
 0x2ef   :  { %vm413_vm15 = vcmp.eq.f32.partialorder %v412_v20, 8.507059e+37 }
 0x32f   :  { %v395_v8 = vpop.f32.mrf.mxu3 }
 0x330   :  { %v436_v10 = vadd.f32 %v395_v8, %v1811_v54  ;;  %v415_v54 = vor.u32 1.1754944e-38, %v414_v19 }
 0x332   :  { %1464 = vtanh.f32 %v436_v10  ;;  %v1399_v29 = vmul.f32 -1.442695, %v436_v10 }
 0x333   :  { %1466 = vrcp.f32 %v402_v13 }
 0x334   :  { %1468 = vpow2.f32 %v1399_v29 }
 0x338   :  { %v1465_v12 = vpop.eup %1464 }
 0x339   :  { %459 = vrot.lane.b32.xlu1 %v1465_v12, %s1582_s21  ;;  %v1467_v14 = vpop.eup %1466  ;;  %v93_v12 = vpop.f32.mrf.mxu0 }
 0x33a   :  { %v404_v15 = vmul.f32 %v1467_v14, %v402_v13  ;;  %vm409_vm12 = vweird.f32 %v1467_v14  ;;  %v1469_v30 = vpop.eup %1468  ;;  %v94_v13 = vadd.f32 %v1792_v34, %v93_v12 }
 0x33b   :  { %vm410_vm14 = vmor %vm408_vm13, %vm409_vm12  ;;  %v440_v31 = vadd.f32 1.0, %v1469_v30 }
 0x33c   :  { %v405_v16 = vsub.f32 1.0, %v404_v15 }
 0x33d   :  { %1470 = vrcp.f32 %v440_v31  ;;  %v452_v39 = vand.u32 2147483648, %v440_v31  ;;  %vm446_vm2 = vweird.f32 %v440_v31  ;;  %v450_v40 = vand.u32 2147483647, %v440_v31 }
 0x33e   :  { %v406_v17 = vmul.f32 %v1467_v14, %v405_v16 }
 0x33f   :  { %v453_v45 = vor.u32 1.1754944e-38, %v452_v39  ;;  %vm451_vm4 = vcmp.eq.f32.partialorder %v450_v40, 8.507059e+37 }
 0x340   :  { %v407_v18 = vadd.f32 %v1467_v14, %v406_v17 }
 0x342   :  { %v411_v21 = vsel %vm410_vm14, %v1467_v14, %v407_v18 }
 0x343   :  { %v416_v25 = vsel %vm413_vm15, %v415_v54, %v411_v21  ;;  %v1471_v32 = vpop.eup %1470 }
 0x344   :  { %v442_v35 = vmul.f32 %v1471_v32, %v440_v31  ;;  %vm447_vm1 = vweird.f32 %v1471_v32  ;;  %v419_v1 = vmul.f32 %v416_v25, %v1869_v56 }
 0x345   :  { %vm448_vm3 = vmor %vm446_vm2, %vm447_vm1  ;;  %vm619_vm2 = vcmp.gt.s32.totalorder %v1829_v53, 2 }
 0x346   :  { %v443_v36 = vsub.f32 1.0, %v442_v35 }
 0x348   :  { %v444_v37 = vmul.f32 %v1471_v32, %v443_v36 }
 0x34a   :  { %v445_v38 = vadd.f32 %v1471_v32, %v444_v37 }
 0x34c   :  { %v449_v43 = vsel %vm448_vm3, %v1471_v32, %v445_v38  ;;  %vm620_vm3 = vcmp.gt.s32.totalorder %v1829_v53, 5 }
 0x34d   :  { %v454_v51 = vsel %vm451_vm4, %v453_v45, %v449_v43 }
 0x34e   :  { %v457_v62 = vmul.f32 %v454_v51, %v1879_v33 }
 0x35b   :  { %v422_v22 = vpop.permute.xlu0 %421 }
 0x35c   :  { %v424_v28 = vmul.f32 %v422_v22, %v416_v25 }
 0x35e   :  { %426 = vrot.lane.b32.xlu2 %v424_v28, %s1584_s1 }
 0x3ab   :  { %v460_v47 = vpop.permute.xlu1 %459 }
 0x3ac   :  { %v462_v55 = vmul.f32 %v460_v47, %v454_v51 }
 0x3ae   :  { %464 = vrot.lane.b32.xlu0 %v462_v55, %s1584_s1 }
 0x3b8   :  { %v427_v58 = vpop.permute.xlu2 %426 }
 0x3b9   :  { %v1872_v59 = vadd.f32 %v427_v58, %v419_v1 }
 0x3bb   :  { %1472 = vtanh.f32 %v1872_v59 }
 0x3c1   :  { %v1473_v61 = vpop.eup %1472 }
 0x3c2   :  { %432 = vrot.lane.b32.xlu1 %v1473_v61, %s1582_s21 }
 0x420   :  { %v465_v63 = vpop.permute.xlu0 %464 }
 0x421   :  { %v1882_v42 = vadd.f32 %v465_v63, %v457_v62 }
 0x423   :  { %1474 = vtanh.f32 %v1882_v42 }
 0x429   :  { %v1475_v0 = vpop.eup %1474 }
 0x42a   :  { %470 = vrot.lane.b32.xlu2 %v1475_v0, %s1582_s21 }
 0x434   :  { %v433_v2 = vpop.permute.xlu1 %432 }
 0x435   :  { %v435_v4 = vmul.f32 %v433_v2, %v416_v25 }
 0x437   :  { %v1890_v7 = vsel %vm474_vm5, %v435_v4, %v1835_v57 }
 0x438   :  { %481 = vrot.lane.b32.xlu0 %v1890_v7, %s1584_s1 }
 0x484   :  { %v471_v49 = vpop.permute.xlu2 %470 }
 0x485   :  { %v473_v8 = vmul.f32 %v471_v49, %v454_v51  ;;  %v1926_v49 = vsel %vm474_vm5, %v1872_v59, %v1869_v56 }
 0x487   :  { %v1898_v10 = vsel %vm475_vm6, %v473_v8, %v1842_v60 }
 0x488   :  { %519 = vrot.lane.b32.xlu1 %v1898_v10, %s1584_s1 }
 0x4aa   :  { %v482_v11 = vpop.permute.xlu0 %481 }
 0x4ab   :  { %1400 = vst.msk [vmem:[%s2305_s6 + $0x8] sm:$0xff] %vm201_vm0, %v482_v11  ;;  %1402 = vmatmul.msk.f32.vlgmr.msra.gmra.mxu2 %vm201_vm0, %v482_v11 }
 0x4ac   :  { %801 = vmatpush.msra.mxu2 %v1640_v3 }
 0x4ae   :  { %802 = vmatpush.msra.mxu2 %v1649_v5 }
 0x4b0   :  { %803 = vmatpush.msra.mxu2 %v1654_v6 }
 0x4b2   :  { %804 = vmatpush.msra.mxu2 %v1666_v9 }
 0x4fa   :  { %v520_v57 = vpop.permute.xlu1 %519 }
 0x4fb   :  { %1403 = vmatmul.msk.f32.vlgmr.msra.gmra.mxu3 %vm201_vm0, %v520_v57 }
 0x4fc   :  { %825 = vmatpush.msra.mxu3 %v1726_v23 }
 0x4fe   :  { %826 = vmatpush.msra.mxu3 %v1731_v24 }
 0x500   :  { %827 = vmatpush.msra.mxu3 %v1743_v26 }
 0x502   :  { %828 = vmatpush.msra.mxu3 %v1748_v27 }
 0x52e   :  { %v516_v14 = vpop.f32.mrf.mxu2 }
 0x52f   :  { %v543_v15 = vadd.f32 %v516_v14, %v94_v13  ;;  %v1937_v13 = vsel %vm475_vm6, %v1882_v42, %v1879_v33 }
 0x531   :  { %1476 = vtanh.f32 %v543_v15  ;;  %v1404_v17 = vmul.f32 -1.442695, %v543_v15 }
 0x533   :  { %1478 = vpow2.f32 %v1404_v17 }
 0x537   :  { %v1477_v16 = vpop.eup %1476 }
 0x538   :  { %566 = vrot.lane.b32.xlu2 %v1477_v16, %s1582_s21 }
 0x539   :  { %v1479_v18 = vpop.eup %1478 }
 0x53a   :  { %v547_v19 = vadd.f32 1.0, %v1479_v18 }
 0x53c   :  { %1480 = vrcp.f32 %v547_v19  ;;  %v559_v31 = vand.u32 2147483648, %v547_v19  ;;  %vm553_vm8 = vweird.f32 %v547_v19  ;;  %v557_v32 = vand.u32 2147483647, %v547_v19 }
 0x53e   :  { %v560_v36 = vor.u32 1.1754944e-38, %v559_v31  ;;  %vm558_vm12 = vcmp.eq.f32.partialorder %v557_v32, 8.507059e+37 }
 0x542   :  { %v1481_v20 = vpop.eup %1480 }
 0x543   :  { %v549_v22 = vmul.f32 %v1481_v20, %v547_v19  ;;  %vm554_vm7 = vweird.f32 %v1481_v20 }
 0x544   :  { %vm555_vm9 = vmor %vm553_vm8, %vm554_vm7 }
 0x545   :  { %v550_v25 = vsub.f32 1.0, %v549_v22 }
 0x547   :  { %v551_v29 = vmul.f32 %v1481_v20, %v550_v25 }
 0x549   :  { %v552_v30 = vadd.f32 %v1481_v20, %v551_v29 }
 0x54b   :  { %v556_v35 = vsel %vm555_vm9, %v1481_v20, %v552_v30 }
 0x54c   :  { %v561_v37 = vsel %vm558_vm12, %v560_v36, %v556_v35 }
 0x54d   :  { %v564_v8 = vmul.f32 %v561_v37, %v1926_v49 }
 0x57e   :  { %v540_v21 = vpop.f32.mrf.mxu3 }
 0x57f   :  { %v581_v54 = vadd.f32 %v540_v21, %v1809_v52  ;;  %v96_v21 = vpop.f32.mrf.mxu0 }
 0x581   :  { %1482 = vtanh.f32 %v581_v54  ;;  %v1405_v52 = vmul.f32 -1.442695, %v581_v54  ;;  %v97_v54 = vadd.f32 %v1792_v34, %v96_v21 }
 0x583   :  { %1484 = vpow2.f32 %v1405_v52 }
 0x587   :  { %v1483_v28 = vpop.eup %1482 }
 0x588   :  { %604 = vrot.lane.b32.xlu0 %v1483_v28, %s1582_s21 }
 0x589   :  { %v1485_v40 = vpop.eup %1484 }
 0x58a   :  { %v585_v43 = vadd.f32 1.0, %v1485_v40 }
 0x58c   :  { %1486 = vrcp.f32 %v585_v43  ;;  %v597_v58 = vand.u32 2147483648, %v585_v43  ;;  %vm591_vm14 = vweird.f32 %v585_v43  ;;  %v595_v61 = vand.u32 2147483647, %v585_v43 }
 0x58e   :  { %v598_v63 = vor.u32 1.1754944e-38, %v597_v58  ;;  %vm596_vm1 = vcmp.eq.f32.partialorder %v595_v61, 8.507059e+37 }
 0x592   :  { %v567_v38 = vpop.permute.xlu2 %566  ;;  %v1487_v45 = vpop.eup %1486 }
 0x593   :  { %v569_v39 = vmul.f32 %v567_v38, %v561_v37  ;;  %v587_v47 = vmul.f32 %v1487_v45, %v585_v43  ;;  %vm592_vm13 = vweird.f32 %v1487_v45 }
 0x594   :  { %vm593_vm15 = vmor %vm591_vm14, %vm592_vm13 }
 0x595   :  { %571 = vrot.lane.b32.xlu1 %v569_v39, %s1584_s1  ;;  %v588_v51 = vsub.f32 1.0, %v587_v47 }
 0x597   :  { %v589_v55 = vmul.f32 %v1487_v45, %v588_v51 }
 0x599   :  { %v590_v1 = vadd.f32 %v1487_v45, %v589_v55 }
 0x59b   :  { %v594_v62 = vsel %vm593_vm15, %v1487_v45, %v590_v1 }
 0x59c   :  { %v599_v2 = vsel %vm596_vm1, %v598_v63, %v594_v62  ;;  %vm764_vm1 = vcmp.gt.s32.totalorder %v1829_v53, 3 }
 0x59d   :  { %v602_v14 = vmul.f32 %v599_v2, %v1937_v13 }
 0x5fa   :  { %v605_v0 = vpop.permute.xlu0 %604 }
 0x5fb   :  { %v607_v4 = vmul.f32 %v605_v0, %v599_v2 }
 0x5fd   :  { %609 = vrot.lane.b32.xlu2 %v607_v4, %s1584_s1 }
 0x607   :  { %v572_v11 = vpop.permute.xlu1 %571 }
 0x608   :  { %v1929_v57 = vadd.f32 %v572_v11, %v564_v8 }
 0x60a   :  { %1488 = vtanh.f32 %v1929_v57 }
 0x610   :  { %v1489_v12 = vpop.eup %1488 }
 0x611   :  { %577 = vrot.lane.b32.xlu0 %v1489_v12, %s1582_s21 }
 0x657   :  { %v610_v56 = vpop.permute.xlu2 %609 }
 0x658   :  { %v1940_v59 = vadd.f32 %v610_v56, %v602_v14 }
 0x65a   :  { %1490 = vtanh.f32 %v1940_v59 }
 0x660   :  { %v1491_v15 = vpop.eup %1490 }
 0x661   :  { %615 = vrot.lane.b32.xlu1 %v1491_v15, %s1582_s21 }
 0x683   :  { %v578_v16 = vpop.permute.xlu0 %577 }
 0x684   :  { %v580_v17 = vmul.f32 %v578_v16, %v561_v37 }
 0x686   :  { %v1948_v18 = vsel %vm619_vm2, %v580_v17, %v1890_v7 }
 0x687   :  { %626 = vrot.lane.b32.xlu2 %v1948_v18, %s1584_s1 }
 0x6d3   :  { %v616_v33 = vpop.permute.xlu1 %615 }
 0x6d4   :  { %v618_v42 = vmul.f32 %v616_v33, %v599_v2  ;;  %v1984_v33 = vsel %vm619_vm2, %v1929_v57, %v1926_v49 }
 0x6d6   :  { %v1956_v19 = vsel %vm620_vm3, %v618_v42, %v1898_v10 }
 0x6d7   :  { %664 = vrot.lane.b32.xlu0 %v1956_v19, %s1584_s1 }
 0x6e1   :  { %v627_v20 = vpop.permute.xlu2 %626 }
 0x6e2   :  { %1406 = vst.msk [vmem:[%s2305_s6 + $0x10] sm:$0xff] %vm201_vm0, %v627_v20  ;;  %1408 = vmatmul.msk.f32.vlgmr.msrb.gmra.mxu2 %vm201_vm0, %v627_v20 }
 0x6e3   :  { %942 = vmatpush.msrb.mxu2 %v1640_v3 }
 0x6e5   :  { %943 = vmatpush.msrb.mxu2 %v1649_v5 }
 0x6e7   :  { %944 = vmatpush.msrb.mxu2 %v1654_v6 }
 0x6e9   :  { %945 = vmatpush.msrb.mxu2 %v1666_v9 }
 0x749   :  { %v665_v7 = vpop.permute.xlu0 %664 }
 0x74a   :  { %1409 = vmatmul.msk.f32.vlgmr.msrb.gmra.mxu3 %vm201_vm0, %v665_v7 }
 0x74b   :  { %966 = vmatpush.msrb.mxu3 %v1726_v23 }
 0x74d   :  { %967 = vmatpush.msrb.mxu3 %v1731_v24 }
 0x74f   :  { %968 = vmatpush.msrb.mxu3 %v1743_v26 }
 0x751   :  { %969 = vmatpush.msrb.mxu3 %v1748_v27 }
 0x765   :  { %v661_v22 = vpop.f32.mrf.mxu2 }
 0x766   :  { %v688_v25 = vadd.f32 %v661_v22, %v97_v54  ;;  %v1995_v54 = vsel %vm620_vm3, %v1940_v59, %v1937_v13 }
 0x768   :  { %1492 = vtanh.f32 %v688_v25  ;;  %v1410_v29 = vmul.f32 -1.442695, %v688_v25 }
 0x76a   :  { %1494 = vpow2.f32 %v1410_v29 }
 0x76e   :  { %v1493_v28 = vpop.eup %1492 }
 0x76f   :  { %711 = vrot.lane.b32.xlu1 %v1493_v28, %s1582_s21 }
 0x770   :  { %v1495_v30 = vpop.eup %1494 }
 0x771   :  { %v692_v31 = vadd.f32 1.0, %v1495_v30 }
 0x773   :  { %1496 = vrcp.f32 %v692_v31  ;;  %v704_v43 = vand.u32 2147483648, %v692_v31  ;;  %vm698_vm7 = vweird.f32 %v692_v31  ;;  %v702_v45 = vand.u32 2147483647, %v692_v31 }
 0x775   :  { %v705_v51 = vor.u32 1.1754944e-38, %v704_v43  ;;  %vm703_vm9 = vcmp.eq.f32.partialorder %v702_v45, 8.507059e+37 }
 0x779   :  { %v1497_v32 = vpop.eup %1496 }
 0x77a   :  { %v694_v37 = vmul.f32 %v1497_v32, %v692_v31  ;;  %vm699_vm4 = vweird.f32 %v1497_v32 }
 0x77b   :  { %vm700_vm8 = vmor %vm698_vm7, %vm699_vm4  ;;  %vm765_vm4 = vcmp.gt.s32.totalorder %v1829_v53, 4 }
 0x77c   :  { %v695_v38 = vsub.f32 1.0, %v694_v37 }
 0x77e   :  { %v696_v52 = vmul.f32 %v1497_v32, %v695_v38 }
 0x780   :  { %v697_v40 = vadd.f32 %v1497_v32, %v696_v52 }
 0x782   :  { %v701_v47 = vsel %vm700_vm8, %v1497_v32, %v697_v40 }
 0x783   :  { %v706_v1 = vsel %vm703_vm9, %v705_v51, %v701_v47 }
 0x784   :  { %v709_v42 = vmul.f32 %v706_v1, %v1984_v33 }
 0x7cd   :  { %v685_v35 = vpop.f32.mrf.mxu3 }
 0x7ce   :  { %v726_v36 = vadd.f32 %v685_v35, %v1807_v50  ;;  %v99_v35 = vpop.f32.mrf.mxu0 }
 0x7d0   :  { %1498 = vtanh.f32 %v726_v36  ;;  %v1411_v50 = vmul.f32 -1.442695, %v726_v36 }
 0x7d2   :  { %1500 = vpow2.f32 %v1411_v50 }
 0x7d6   :  { %v1499_v39 = vpop.eup %1498 }
 0x7d7   :  { %749 = vrot.lane.b32.xlu2 %v1499_v39, %s1582_s21 }
 0x7d8   :  { %v1501_v61 = vpop.eup %1500 }
 0x7d9   :  { %v730_v62 = vadd.f32 1.0, %v1501_v61 }
 0x7db   :  { %1502 = vrcp.f32 %v730_v62  ;;  %v742_v11 = vand.u32 2147483648, %v730_v62  ;;  %vm736_vm13 = vweird.f32 %v730_v62  ;;  %v740_v12 = vand.u32 2147483647, %v730_v62 }
 0x7dd   :  { %v743_v56 = vor.u32 1.1754944e-38, %v742_v11  ;;  %vm741_vm15 = vcmp.eq.f32.partialorder %v740_v12, 8.507059e+37 }
 0x7e1   :  { %v712_v55 = vpop.permute.xlu1 %711  ;;  %v1503_v63 = vpop.eup %1502 }
 0x7e2   :  { %v714_v58 = vmul.f32 %v712_v55, %v706_v1  ;;  %v732_v0 = vmul.f32 %v1503_v63, %v730_v62  ;;  %vm737_vm12 = vweird.f32 %v1503_v63 }
 0x7e3   :  { %vm738_vm14 = vmor %vm736_vm13, %vm737_vm12 }
 0x7e4   :  { %716 = vrot.lane.b32.xlu0 %v714_v58, %s1584_s1  ;;  %v733_v2 = vsub.f32 1.0, %v732_v0 }
 0x7e6   :  { %v734_v4 = vmul.f32 %v1503_v63, %v733_v2 }
 0x7e8   :  { %v735_v8 = vadd.f32 %v1503_v63, %v734_v4 }
 0x7ea   :  { %v739_v14 = vsel %vm738_vm14, %v1503_v63, %v735_v8 }
 0x7eb   :  { %v744_v15 = vsel %vm741_vm15, %v743_v56, %v739_v14 }
 0x7ec   :  { %v747_v22 = vmul.f32 %v744_v15, %v1995_v54 }
 0x831   :  { %v750_v16 = vpop.permute.xlu2 %749 }
 0x832   :  { %v752_v17 = vmul.f32 %v750_v16, %v744_v15 }
 0x834   :  { %754 = vrot.lane.b32.xlu1 %v752_v17, %s1584_s1 }
 0x856   :  { %v717_v20 = vpop.permute.xlu0 %716 }
 0x857   :  { %v1987_v7 = vadd.f32 %v717_v20, %v709_v42 }
 0x859   :  { %1504 = vtanh.f32 %v1987_v7  ;;  %v2042_v42 = vsel %vm764_vm1, %v1987_v7, %v1984_v33 }
 0x85f   :  { %v1505_v21 = vpop.eup %1504 }
 0x860   :  { %722 = vrot.lane.b32.xlu2 %v1505_v21, %s1582_s21 }
 0x8a6   :  { %v755_v49 = vpop.permute.xlu1 %754 }
 0x8a7   :  { %v1998_v57 = vadd.f32 %v755_v49, %v747_v22 }
 0x8a9   :  { %1506 = vtanh.f32 %v1998_v57 }
 0x8af   :  { %v1507_v25 = vpop.eup %1506 }
 0x8b0   :  { %760 = vrot.lane.b32.xlu0 %v1507_v25, %s1582_s21  ;;  %v2053_v25 = vsel %vm765_vm4, %v1998_v57, %v1995_v54 }
 0x8ba   :  { %v723_v28 = vpop.permute.xlu2 %722 }
 0x8bb   :  { %v725_v29 = vmul.f32 %v723_v28, %v706_v1 }
 0x8bd   :  { %v2006_v30 = vsel %vm764_vm1, %v725_v29, %v1948_v18 }
 0x8be   :  { %771 = vrot.lane.b32.xlu1 %v2006_v30, %s1584_s1 }
 0x922   :  { %v761_v13 = vpop.permute.xlu0 %760 }
 0x923   :  { %v763_v59 = vmul.f32 %v761_v13, %v744_v15 }
 0x925   :  { %v2014_v31 = vsel %vm765_vm4, %v763_v59, %v1956_v19 }
 0x926   :  { %809 = vrot.lane.b32.xlu2 %v2014_v31, %s1584_s1 }
 0x930   :  { %v772_v32 = vpop.permute.xlu1 %771 }
 0x931   :  { %1412 = vst.msk [vmem:[%s2305_s6 + $0x18] sm:$0xff] %vm201_vm0, %v772_v32  ;;  %1414 = vmatmul.msk.f32.vlgmr.msra.gmra.mxu2 %vm201_vm0, %v772_v32 }
 0x932   :  { %1083 = vmatpush.msra.mxu2 %v1640_v3  ;;  %v100_v3 = vadd.f32 %v1792_v34, %v99_v35 }
 0x934   :  { %1084 = vmatpush.msra.mxu2 %v1649_v5 }
 0x936   :  { %1085 = vmatpush.msra.mxu2 %v1654_v6 }
 0x938   :  { %1086 = vmatpush.msra.mxu2 %v1666_v9 }
 0x980   :  { %v810_v18 = vpop.permute.xlu2 %809 }
 0x981   :  { %1415 = vmatmul.msk.f32.vlgmr.msra.gmra.mxu3 %vm201_vm0, %v810_v18 }
 0x982   :  { %1107 = vmatpush.msra.mxu3 %v1726_v23 }
 0x984   :  { %1108 = vmatpush.msra.mxu3 %v1731_v24 }
 0x986   :  { %1109 = vmatpush.msra.mxu3 %v1743_v26 }
 0x988   :  { %1110 = vmatpush.msra.mxu3 %v1748_v27 }
 0x9b4   :  { %v806_v36 = vpop.f32.mrf.mxu2 }
 0x9b5   :  { %v833_v5 = vadd.f32 %v806_v36, %v100_v3  ;;  %v1573_v3 = vld [vmem:[%s2301_s4 + $0x10] sm:$0xff]  ;;  %v1574_v36 = vld [vmem:[%s2301_s4 + $0x8] sm:$0xff] }
 0x9b7   :  { %1508 = vtanh.f32 %v833_v5  ;;  %v1416_v9 = vmul.f32 -1.442695, %v833_v5  ;;  %v1575_v5 = vld [vmem:[%s2301_s4] sm:$0xff] }
 0x9b9   :  { %1510 = vpow2.f32 %v1416_v9  ;;  %v1576_v9 = vld [vmem:[%s2301_s4 + $0x38] sm:$0xff] }
 0x9bd   :  { %v1509_v6 = vpop.eup %1508 }
 0x9be   :  { %856 = vrot.lane.b32.xlu0 %v1509_v6, %s1582_s21 }
 0x9bf   :  { %v1511_v23 = vpop.eup %1510 }
 0x9c0   :  { %v837_v26 = vadd.f32 1.0, %v1511_v23  ;;  %v1579_v23 = vld [vmem:[%s2301_s4 + $0x20] sm:$0xff] }
 0x9c2   :  { %v849_v45 = vand.u32 2147483648, %v837_v26  ;;  %vm843_vm8 = vweird.f32 %v837_v26  ;;  %v847_v47 = vand.u32 2147483647, %v837_v26 }
 0x9c4   :  { %vm848_vm12 = vcmp.eq.f32.partialorder %v847_v47, 8.507059e+37 }
 0xa04   :  { %v830_v37 = vpop.f32.mrf.mxu3 }
 0xa05   :  { %v871_v38 = vadd.f32 %v830_v37, %v1805_v48  ;;  %v850_v48 = vor.u32 1.1754944e-38, %v849_v45  ;;  %v1577_v37 = vld [vmem:[%s2301_s4 + $0x30] sm:$0xff] }
 0xa07   :  { %1512 = vtanh.f32 %v871_v38  ;;  %v1417_v50 = vmul.f32 -1.442695, %v871_v38  ;;  %v1578_v38 = vld [vmem:[%s2301_s4 + $0x28] sm:$0xff] }
 0xa08   :  { %1514 = vrcp.f32 %v837_v26 }
 0xa09   :  { %1516 = vpow2.f32 %v1417_v50 }
 0xa0d   :  { %v1513_v24 = vpop.eup %1512 }
 0xa0e   :  { %894 = vrot.lane.b32.xlu1 %v1513_v24, %s1582_s21  ;;  %v1515_v27 = vpop.eup %1514  ;;  %v102_v24 = vpop.f32.mrf.mxu0 }
 0xa0f   :  { %v839_v39 = vmul.f32 %v1515_v27, %v837_v26  ;;  %vm844_vm7 = vweird.f32 %v1515_v27  ;;  %v1517_v61 = vpop.eup %1516  ;;  %v103_v26 = vadd.f32 %v1792_v34, %v102_v24 }
 0xa10   :  { %vm845_vm9 = vmor %vm843_vm8, %vm844_vm7  ;;  %v875_v62 = vadd.f32 1.0, %v1517_v61 }
 0xa11   :  { %v840_v52 = vsub.f32 1.0, %v839_v39 }
 0xa12   :  { %1518 = vrcp.f32 %v875_v62  ;;  %v887_v11 = vand.u32 2147483648, %v875_v62  ;;  %vm881_vm14 = vweird.f32 %v875_v62  ;;  %v885_v12 = vand.u32 2147483647, %v875_v62 }
 0xa13   :  { %v841_v40 = vmul.f32 %v1515_v27, %v840_v52 }
 0xa14   :  { %v888_v56 = vor.u32 1.1754944e-38, %v887_v11  ;;  %vm886_vm7 = vcmp.eq.f32.partialorder %v885_v12, 8.507059e+37 }
 0xa15   :  { %v842_v43 = vadd.f32 %v1515_v27, %v841_v40 }
 0xa17   :  { %v846_v51 = vsel %vm845_vm9, %v1515_v27, %v842_v43 }
 0xa18   :  { %v851_v1 = vsel %vm848_vm12, %v850_v48, %v846_v51  ;;  %v1519_v63 = vpop.eup %1518 }
 0xa19   :  { %v877_v0 = vmul.f32 %v1519_v63, %v875_v62  ;;  %vm882_vm13 = vweird.f32 %v1519_v63  ;;  %v854_v20 = vmul.f32 %v851_v1, %v2042_v42 }
 0xa1a   :  { %vm883_vm15 = vmor %vm881_vm14, %vm882_vm13 }
 0xa1b   :  { %v878_v2 = vsub.f32 1.0, %v877_v0 }
 0xa1d   :  { %v879_v4 = vmul.f32 %v1519_v63, %v878_v2 }
 0xa1f   :  { %v880_v8 = vadd.f32 %v1519_v63, %v879_v4 }
 0xa21   :  { %v884_v14 = vsel %vm883_vm15, %v1519_v63, %v880_v8 }
 0xa22   :  { %v889_v16 = vsel %vm886_vm7, %v888_v56, %v884_v14 }
 0xa23   :  { %v892_v28 = vmul.f32 %v889_v16, %v2053_v25 }
 0xa30   :  { %v857_v55 = vpop.permute.xlu0 %856 }
 0xa31   :  { %v859_v58 = vmul.f32 %v857_v55, %v851_v1 }
 0xa33   :  { %861 = vrot.lane.b32.xlu2 %v859_v58, %s1584_s1 }
 0xa80   :  { %v895_v15 = vpop.permute.xlu1 %894 }
 0xa81   :  { %v897_v17 = vmul.f32 %v895_v15, %v889_v16 }
 0xa83   :  { %899 = vrot.lane.b32.xlu0 %v897_v17, %s1584_s1 }
 0xa8d   :  { %v862_v21 = vpop.permute.xlu2 %861 }
 0xa8e   :  { %v2045_v22 = vadd.f32 %v862_v21, %v854_v20 }
 0xa90   :  { %1520 = vtanh.f32 %v2045_v22 }
 0xa96   :  { %v1521_v49 = vpop.eup %1520 }
 0xa97   :  { %867 = vrot.lane.b32.xlu1 %v1521_v49, %s1582_s21 }
 0xaf5   :  { %v900_v33 = vpop.permute.xlu0 %899 }
 0xaf6   :  { %v2056_v7 = vadd.f32 %v900_v33, %v892_v28 }
 0xaf8   :  { %1522 = vtanh.f32 %v2056_v7 }
 0xafe   :  { %v1523_v29 = vpop.eup %1522 }
 0xaff   :  { %905 = vrot.lane.b32.xlu2 %v1523_v29, %s1582_s21 }
 0xb09   :  { %v868_v13 = vpop.permute.xlu1 %867 }
 0xb0a   :  { %v870_v59 = vmul.f32 %v868_v13, %v851_v1 }
 0xb0c   :  { %v2063_v32 = vsel %vm765_vm4, %v870_v59, %v2006_v30  ;;  %v1572_v30 = vld [vmem:[%s2301_s4 + $0x18] sm:$0xff]  ;;  %v2113_v59 = vsel %vm765_vm4, %v2045_v22, %v2042_v42 }
 0xb0d   :  { %914 = vrot.lane.b32.xlu0 %v2063_v32, %s1584_s1 }
 0xb59   :  { %v906_v54 = vpop.permute.xlu2 %905 }
 0xb5a   :  { %v908_v57 = vmul.f32 %v906_v54, %v889_v16 }
 0xb5c   :  { %v2070_v18 = vsel %vm764_vm1, %v908_v57, %v2014_v31 }
 0xb5d   :  { %950 = vrot.lane.b32.xlu1 %v2070_v18, %s1584_s1 }
 0xb7f   :  { %v2074_v35 = vpop.permute.xlu0 %914 }
 0xb80   :  { %1420 = vmatmul.msk.f32.vlgmr.msrb.gmra.mxu2 %vm201_vm0, %v2074_v35 }
 0xb81   :  { %1224 = vmatpush.msrb.mxu2 %v1572_v30 }
 0xb83   :  { %1225 = vmatpush.msrb.mxu2 %v1573_v3 }
 0xb85   :  { %1226 = vmatpush.msrb.mxu2 %v1574_v36  ;;  %v2124_v36 = vsel %vm764_vm1, %v2056_v7, %v2053_v25 }
 0xb87   :  { %1227 = vmatpush.msrb.mxu2 %v1575_v5 }
 0xbcf   :  { %v951_v6 = vpop.permute.xlu1 %950 }
 0xbd0   :  { %1421 = vmatmul.msk.f32.vlgmr.msrb.gmra.mxu3 %vm201_vm0, %v951_v6 }
 0xbd1   :  { %1248 = vmatpush.msrb.mxu3 %v1576_v9 }
 0xbd3   :  { %1249 = vmatpush.msrb.mxu3 %v1577_v37 }
 0xbd5   :  { %1250 = vmatpush.msrb.mxu3 %v1578_v38 }
 0xbd7   :  { %1251 = vmatpush.msrb.mxu3 %v1579_v23 }
 0xc03   :  { %v947_v27 = vpop.f32.mrf.mxu2 }
 0xc04   :  { %v974_v39 = vadd.f32 %v947_v27, %v103_v26  ;;  %v105_v26 = vpop.f32.mrf.mxu0  ;;  %v2153_v27 = vld [vmem:[%s2302_s5] ss:$0 sm:$0xff] }
 0xc06   :  { %1524 = vtanh.f32 %v974_v39  ;;  %v1422_v40 = vmul.f32 -1.442695, %v974_v39  ;;  %v106_v39 = vadd.f32 %v2153_v27, %v105_v26 }
 0xc08   :  { %1526 = vpow2.f32 %v1422_v40 }
 0xc0c   :  { %v1525_v52 = vpop.eup %1524 }
 0xc0d   :  { %997 = vrot.lane.b32.xlu2 %v1525_v52, %s1582_s21 }
 0xc0e   :  { %v1527_v43 = vpop.eup %1526 }
 0xc0f   :  { %v978_v45 = vadd.f32 1.0, %v1527_v43 }
 0xc11   :  { %1528 = vrcp.f32 %v978_v45  ;;  %v990_v61 = vand.u32 2147483648, %v978_v45  ;;  %vm984_vm9 = vweird.f32 %v978_v45  ;;  %v988_v62 = vand.u32 2147483647, %v978_v45 }
 0xc13   :  { %v991_v0 = vor.u32 1.1754944e-38, %v990_v61  ;;  %vm989_vm13 = vcmp.eq.f32.partialorder %v988_v62, 8.507059e+37 }
 0xc17   :  { %v1529_v47 = vpop.eup %1528 }
 0xc18   :  { %v980_v55 = vmul.f32 %v1529_v47, %v978_v45  ;;  %vm985_vm8 = vweird.f32 %v1529_v47 }
 0xc19   :  { %vm986_vm12 = vmor %vm984_vm9, %vm985_vm8 }
 0xc1a   :  { %v981_v1 = vsub.f32 1.0, %v980_v55 }
 0xc1c   :  { %v982_v34 = vmul.f32 %v1529_v47, %v981_v1 }
 0xc1e   :  { %v983_v50 = vadd.f32 %v1529_v47, %v982_v34 }
 0xc20   :  { %v987_v63 = vsel %vm986_vm12, %v1529_v47, %v983_v50 }
 0xc21   :  { %v992_v2 = vsel %vm989_vm13, %v991_v0, %v987_v63 }
 0xc22   :  { %v995_v54 = vmul.f32 %v992_v2, %v2113_v59 }
 0xc53   :  { %v971_v51 = vpop.f32.mrf.mxu3 }
 0xc54   :  { %v1012_v48 = vadd.f32 %v971_v51, %v1803_v46 }
 0xc56   :  { %1530 = vtanh.f32 %v1012_v48  ;;  %v1423_v46 = vmul.f32 -1.442695, %v1012_v48 }
 0xc58   :  { %1532 = vpow2.f32 %v1423_v46 }
 0xc5c   :  { %v1531_v58 = vpop.eup %1530 }
 0xc5d   :  { %1035 = vrot.lane.b32.xlu0 %v1531_v58, %s1582_s21 }
 0xc5e   :  { %v1533_v11 = vpop.eup %1532 }
 0xc5f   :  { %v1016_v12 = vadd.f32 1.0, %v1533_v11 }
 0xc61   :  { %1534 = vrcp.f32 %v1016_v12  ;;  %v1028_v20 = vand.u32 2147483648, %v1016_v12  ;;  %vm1022_vm15 = vweird.f32 %v1016_v12  ;;  %v1026_v21 = vand.u32 2147483647, %v1016_v12 }
 0xc63   :  { %v1029_v28 = vor.u32 1.1754944e-38, %v1028_v20  ;;  %vm1027_vm8 = vcmp.eq.f32.partialorder %v1026_v21, 8.507059e+37 }
 0xc67   :  { %v998_v4 = vpop.permute.xlu2 %997  ;;  %v1535_v14 = vpop.eup %1534 }
 0xc68   :  { %v1000_v8 = vmul.f32 %v998_v4, %v992_v2  ;;  %v1018_v56 = vmul.f32 %v1535_v14, %v1016_v12  ;;  %vm1023_vm14 = vweird.f32 %v1535_v14 }
 0xc69   :  { %vm1024_vm7 = vmor %vm1022_vm15, %vm1023_vm14 }
 0xc6a   :  { %1002 = vrot.lane.b32.xlu1 %v1000_v8, %s1584_s1  ;;  %v1019_v15 = vsub.f32 1.0, %v1018_v56 }
 0xc6c   :  { %v1020_v16 = vmul.f32 %v1535_v14, %v1019_v15 }
 0xc6e   :  { %v1021_v17 = vadd.f32 %v1535_v14, %v1020_v16 }
 0xc70   :  { %v1025_v49 = vsel %vm1024_vm7, %v1535_v14, %v1021_v17 }
 0xc71   :  { %v1030_v29 = vsel %vm1027_vm8, %v1029_v28, %v1025_v49 }
 0xc72   :  { %v1033_v5 = vmul.f32 %v1030_v29, %v2124_v36 }
 0xccf   :  { %v1036_v33 = vpop.permute.xlu0 %1035 }
 0xcd0   :  { %v1038_v13 = vmul.f32 %v1036_v33, %v1030_v29 }
 0xcd2   :  { %1040 = vrot.lane.b32.xlu2 %v1038_v13, %s1584_s1 }
 0xcdc   :  { %v1003_v57 = vpop.permute.xlu1 %1002 }
 0xcdd   :  { %v2116_v30 = vadd.f32 %v1003_v57, %v995_v54 }
 0xcdf   :  { %1536 = vtanh.f32 %v2116_v30  ;;  %v2165_v57 = vsel %vm620_vm3, %v2116_v30, %v2113_v59 }
 0xce5   :  { %v1537_v3 = vpop.eup %1536 }
 0xce6   :  { %1008 = vrot.lane.b32.xlu0 %v1537_v3, %s1582_s21 }
 0xd2c   :  { %v1041_v42 = vpop.permute.xlu2 %1040 }
 0xd2d   :  { %v2127_v22 = vadd.f32 %v1041_v42, %v1033_v5 }
 0xd2f   :  { %1538 = vtanh.f32 %v2127_v22 }
 0xd35   :  { %v1539_v6 = vpop.eup %1538 }
 0xd36   :  { %1046 = vrot.lane.b32.xlu1 %v1539_v6, %s1582_s21 }
 0xd58   :  { %v1009_v9 = vpop.permute.xlu0 %1008 }
 0xd59   :  { %v1011_v37 = vmul.f32 %v1009_v9, %v992_v2  ;;  %v2176_v9 = vsel %vm619_vm2, %v2127_v22, %v2124_v36 }
 0xd5b   :  { %v2134_v38 = vsel %vm620_vm3, %v1011_v37, %v2063_v32 }
 0xd5c   :  { %1055 = vrot.lane.b32.xlu2 %v2134_v38, %s1584_s1 }
 0xda8   :  { %v1047_v25 = vpop.permute.xlu1 %1046 }
 0xda9   :  { %v1049_v7 = vmul.f32 %v1047_v25, %v1030_v29 }
 0xdab   :  { %v2141_v23 = vsel %vm619_vm2, %v1049_v7, %v2070_v18 }
 0xdac   :  { %1091 = vrot.lane.b32.xlu0 %v2141_v23, %s1584_s1 }
 0xdb6   :  { %v2145_v24 = vpop.permute.xlu2 %1055 }
 0xdb7   :  { %1426 = vmatmul.msk.f32.vlgmr.msra.gmra.mxu2 %vm201_vm0, %v2145_v24 }
 0xe1e   :  { %v1092_v32 = vpop.permute.xlu0 %1091 }
 0xe1f   :  { %1427 = vmatmul.msk.f32.vlgmr.msra.gmra.mxu3 %vm201_vm0, %v1092_v32 }
 0xe3a   :  { %v1088_v52 = vpop.f32.mrf.mxu2 }
 0xe3b   :  { %v1115_v40 = vadd.f32 %v1088_v52, %v106_v39 }
 0xe3d   :  { %1540 = vtanh.f32 %v1115_v40  ;;  %v1428_v45 = vmul.f32 -1.442695, %v1115_v40  ;;  %v108_v40 = vpop.f32.mrf.mxu0 }
 0xe3f   :  { %1542 = vpow2.f32 %v1428_v45 }
 0xe43   :  { %v1541_v43 = vpop.eup %1540 }
 0xe44   :  { %1138 = vrot.lane.b32.xlu1 %v1541_v43, %s1582_s21  ;;  %v109_v43 = vadd.f32 %v2153_v27, %v108_v40 }
 0xe45   :  { %v1543_v47 = vpop.eup %1542 }
 0xe46   :  { %v1119_v51 = vadd.f32 1.0, %v1543_v47 }
 0xe48   :  { %1544 = vrcp.f32 %v1119_v51  ;;  %v1131_v63 = vand.u32 2147483648, %v1119_v51  ;;  %vm1125_vm4 = vweird.f32 %v1119_v51  ;;  %v1129_v0 = vand.u32 2147483647, %v1119_v51 }
 0xe4a   :  { %v1132_v4 = vor.u32 1.1754944e-38, %v1131_v63  ;;  %vm1130_vm12 = vcmp.eq.f32.partialorder %v1129_v0, 8.507059e+37 }
 0xe4e   :  { %v1545_v48 = vpop.eup %1544 }
 0xe4f   :  { %v1121_v58 = vmul.f32 %v1545_v48, %v1119_v51  ;;  %vm1126_vm1 = vweird.f32 %v1545_v48 }
 0xe50   :  { %vm1127_vm9 = vmor %vm1125_vm4, %vm1126_vm1 }
 0xe51   :  { %v1122_v34 = vsub.f32 1.0, %v1121_v58 }
 0xe53   :  { %v1123_v61 = vmul.f32 %v1545_v48, %v1122_v34 }
 0xe55   :  { %v1124_v62 = vadd.f32 %v1545_v48, %v1123_v61 }
 0xe57   :  { %v1128_v2 = vsel %vm1127_vm9, %v1545_v48, %v1124_v62 }
 0xe58   :  { %v1133_v46 = vsel %vm1130_vm12, %v1132_v4, %v1128_v2 }
 0xe59   :  { %v1136_v3 = vmul.f32 %v1133_v46, %v2165_v57 }
 0xea2   :  { %v1112_v55 = vpop.f32.mrf.mxu3 }
 0xea3   :  { %v1153_v1 = vadd.f32 %v1112_v55, %v1801_v44 }
 0xea5   :  { %1546 = vtanh.f32 %v1153_v1  ;;  %v1429_v44 = vmul.f32 -1.442695, %v1153_v1 }
 0xea7   :  { %1548 = vpow2.f32 %v1429_v44 }
 0xeab   :  { %v1547_v50 = vpop.eup %1546 }
 0xeac   :  { %1176 = vrot.lane.b32.xlu2 %v1547_v50, %s1582_s21 }
 0xead   :  { %v1549_v12 = vpop.eup %1548 }
 0xeae   :  { %v1157_v14 = vadd.f32 1.0, %v1549_v12 }
 0xeb0   :  { %1550 = vrcp.f32 %v1157_v14  ;;  %v1169_v21 = vand.u32 2147483648, %v1157_v14  ;;  %vm1163_vm14 = vweird.f32 %v1157_v14  ;;  %v1167_v49 = vand.u32 2147483647, %v1157_v14 }
 0xeb2   :  { %v1170_v33 = vor.u32 1.1754944e-38, %v1169_v21  ;;  %vm1168_vm7 = vcmp.eq.f32.partialorder %v1167_v49, 8.507059e+37 }
 0xeb6   :  { %v1139_v8 = vpop.permute.xlu1 %1138  ;;  %v1551_v56 = vpop.eup %1550 }
 0xeb7   :  { %v1141_v11 = vmul.f32 %v1139_v8, %v1133_v46  ;;  %v1159_v15 = vmul.f32 %v1551_v56, %v1157_v14  ;;  %vm1164_vm13 = vweird.f32 %v1551_v56 }
 0xeb8   :  { %vm1165_vm15 = vmor %vm1163_vm14, %vm1164_vm13 }
 0xeb9   :  { %1143 = vrot.lane.b32.xlu0 %v1141_v11, %s1584_s1  ;;  %v1160_v16 = vsub.f32 1.0, %v1159_v15 }
 0xebb   :  { %v1161_v17 = vmul.f32 %v1551_v56, %v1160_v16 }
 0xebd   :  { %v1162_v20 = vadd.f32 %v1551_v56, %v1161_v17 }
 0xebf   :  { %v1166_v28 = vsel %vm1165_vm15, %v1551_v56, %v1162_v20 }
 0xec0   :  { %v1171_v29 = vsel %vm1168_vm7, %v1170_v33, %v1166_v28 }
 0xec1   :  { %v1174_v37 = vmul.f32 %v1171_v29, %v2176_v9 }
 0xf06   :  { %v1177_v13 = vpop.permute.xlu2 %1176 }
 0xf07   :  { %v1179_v54 = vmul.f32 %v1177_v13, %v1171_v29 }
 0xf09   :  { %1181 = vrot.lane.b32.xlu1 %v1179_v54, %s1584_s1 }
 0xf2b   :  { %v1144_v5 = vpop.permute.xlu0 %1143 }
 0xf2c   :  { %v2168_v42 = vadd.f32 %v1144_v5, %v1136_v3 }
 0xf2e   :  { %1552 = vtanh.f32 %v2168_v42  ;;  %v1192_v5 = vsel %vm475_vm6, %v2168_v42, %v2165_v57 }
 0xf34   :  { %v1553_v6 = vpop.eup %1552 }
 0xf35   :  { %1149 = vrot.lane.b32.xlu2 %v1553_v6, %s1582_s21 }
 0xf7b   :  { %v1182_v59 = vpop.permute.xlu1 %1181 }
 0xf7c   :  { %v2179_v30 = vadd.f32 %v1182_v59, %v1174_v37 }
 0xf7e   :  { %1554 = vtanh.f32 %v2179_v30 }
 0xf84   :  { %v1555_v25 = vpop.eup %1554 }
 0xf85   :  { %1187 = vrot.lane.b32.xlu0 %v1555_v25, %s1582_s21 }
 0xf8f   :  { %v1150_v7 = vpop.permute.xlu2 %1149 }
 0xf90   :  { %v1152_v32 = vmul.f32 %v1150_v7, %v1133_v46 }
 0xf92   :  { %v2186_v26 = vsel %vm475_vm6, %v1152_v32, %v2134_v38  ;;  %vm345_vm6 = vcmask 523520  }
 0xf93   :  { %1196 = vrot.lane.b32.xlu1 %v2186_v26, %s1584_s1 }
 0xff7   :  { %v1188_v36 = vpop.permute.xlu0 %1187 }
 0xff8   :  { %v1190_v22 = vmul.f32 %v1188_v36, %v1171_v29 }
 0xffa   :  { %v2193_v39 = vsel %vm474_vm5, %v1190_v22, %v2141_v23 }
 0xffb   :  { %1232 = vrot.lane.b32.xlu2 %v2193_v39, %s1584_s1 }
0x1005   :  { %v2197_v52 = vpop.permute.xlu1 %1196 }
0x1006   :  { %1432 = vmatmul.msk.f32.vlgmr.msrb.gmra.mxu2 %vm201_vm0, %v2197_v52 }
0x1055   :  { %v1233_v38 = vpop.permute.xlu2 %1232 }
0x1056   :  { %1433 = vmatmul.msk.f32.vlgmr.msrb.gmra.mxu3 %vm201_vm0, %v1233_v38 }
0x1089   :  { %v1229_v45 = vpop.f32.mrf.mxu2 }
0x108a   :  { %v1256_v47 = vadd.f32 %v1229_v45, %v109_v43 }
0x108c   :  { %1556 = vtanh.f32 %v1256_v47  ;;  %v1434_v48 = vmul.f32 -1.442695, %v1256_v47 }
0x108e   :  { %1558 = vpow2.f32 %v1434_v48 }
0x1092   :  { %v1557_v51 = vpop.eup %1556 }
0x1093   :  { %1279 = vrot.lane.b32.xlu0 %v1557_v51, %s1582_s21 }
0x1094   :  { %v1559_v58 = vpop.eup %1558 }
0x1095   :  { %v1260_v50 = vadd.f32 1.0, %v1559_v58 }
0x1097   :  { %v1272_v2 = vand.u32 2147483648, %v1260_v50  ;;  %vm1266_vm3 = vweird.f32 %v1260_v50  ;;  %v1270_v4 = vand.u32 2147483647, %v1260_v50 }
0x1099   :  { %vm1271_vm1 = vcmp.eq.f32.partialorder %v1270_v4, 8.507059e+37 }
0x10d9   :  { %v1253_v55 = vpop.f32.mrf.mxu3 }
0x10da   :  { %v1294_v1 = vadd.f32 %v1253_v55, %v1798_v41  ;;  %v1273_v41 = vor.u32 1.1754944e-38, %v1272_v2 }
0x10dc   :  { %1560 = vtanh.f32 %v1294_v1  ;;  %v1435_v12 = vmul.f32 -1.442695, %v1294_v1 }
0x10dd   :  { %1562 = vrcp.f32 %v1260_v50 }
0x10de   :  { %1564 = vpow2.f32 %v1435_v12 }
0x10e2   :  { %v1561_v34 = vpop.eup %1560 }
0x10e3   :  { %1317 = vrot.lane.b32.xlu1 %v1561_v34, %s1582_s21  ;;  %v1563_v61 = vpop.eup %1562 }
0x10e4   :  { %v1262_v27 = vmul.f32 %v1563_v61, %v1260_v50  ;;  %vm1267_vm2 = vweird.f32 %v1563_v61  ;;  %v1565_v14 = vpop.eup %1564 }
0x10e5   :  { %vm1268_vm8 = vmor %vm1266_vm3, %vm1267_vm2  ;;  %v1298_v56 = vadd.f32 1.0, %v1565_v14 }
0x10e6   :  { %v1263_v62 = vsub.f32 1.0, %v1262_v27 }
0x10e7   :  { %1566 = vrcp.f32 %v1298_v56  ;;  %v1310_v49 = vand.u32 2147483648, %v1298_v56  ;;  %vm1304_vm9 = vweird.f32 %v1298_v56  ;;  %v1308_v28 = vand.u32 2147483647, %v1298_v56 }
0x10e8   :  { %v1264_v63 = vmul.f32 %v1563_v61, %v1263_v62 }
0x10e9   :  { %v1311_v29 = vor.u32 1.1754944e-38, %v1310_v49  ;;  %vm1309_vm13 = vcmp.eq.f32.partialorder %v1308_v28, 8.507059e+37 }
0x10ea   :  { %v1265_v0 = vadd.f32 %v1563_v61, %v1264_v63 }
0x10ec   :  { %v1269_v8 = vsel %vm1268_vm8, %v1563_v61, %v1265_v0 }
0x10ed   :  { %v1274_v11 = vsel %vm1271_vm1, %v1273_v41, %v1269_v8  ;;  %v1567_v15 = vpop.eup %1566 }
0x10ee   :  { %v1300_v16 = vmul.f32 %v1567_v15, %v1298_v56  ;;  %vm1305_vm4 = vweird.f32 %v1567_v15  ;;  %v1277_v6 = vmul.f32 %v1274_v11, %v1192_v5 }
0x10ef   :  { %vm1306_vm12 = vmor %vm1304_vm9, %vm1305_vm4 }
0x10f0   :  { %v1301_v17 = vsub.f32 1.0, %v1300_v16 }
0x10f2   :  { %v1302_v20 = vmul.f32 %v1567_v15, %v1301_v17 }
0x10f4   :  { %v1303_v21 = vadd.f32 %v1567_v15, %v1302_v20 }
0x10f6   :  { %v1307_v33 = vsel %vm1306_vm12, %v1567_v15, %v1303_v21 }
0x10f7   :  { %v1312_v54 = vsel %vm1309_vm13, %v1311_v29, %v1307_v33 }
0x1105   :  { %v1280_v46 = vpop.permute.xlu0 %1279 }
0x1106   :  { %v1282_v44 = vmul.f32 %v1280_v46, %v1274_v11 }
0x1108   :  { %1284 = vrot.lane.b32.xlu2 %v1282_v44, %s1584_s1 }
0x1155   :  { %v1318_v13 = vpop.permute.xlu1 %1317 }
0x1156   :  { %v1320_v3 = vmul.f32 %v1318_v13, %v1312_v54 }
0x1158   :  { %1322 = vrot.lane.b32.xlu0 %v1320_v3, %s1584_s1 }
0x1160   :  { %341 = vrot.lane.b32.xlu0 %v1842_v60, %s1582_s21  ;;  %v1194_v60 = vsel %vm474_vm5, %v2179_v30, %v2176_v9 }
0x1161   :  { %v1315_v57 = vmul.f32 %v1312_v54, %v1194_v60 }
0x1162   :  { %v1285_v37 = vpop.permute.xlu2 %1284 }
0x1163   :  { %v1287_v59 = vadd.f32 %v1285_v37, %v1277_v6 }
0x1165   :  { %1568 = vtanh.f32 %v1287_v59 }
0x1168   :  { %777 = vrot.lane.b32.xlu0 %v2014_v31, %s1582_s21 }
0x116b   :  { %v1569_v25 = vpop.eup %1568 }
0x116c   :  { %1290 = vrot.lane.b32.xlu1 %v1569_v25, %s1582_s21 }
0x1170   :  { %1060 = vrot.lane.b32.xlu0 %v2141_v23, %s1582_s21 }
0x1174   :  { %487 = vrot.lane.b32.xlu1 %v1898_v10, %s1582_s21 }
0x11ca   :  { %v1323_v42 = vpop.permute.xlu0 %1322 }
0x11cb   :  { %v1325_v7 = vadd.f32 %v1323_v42, %v1315_v57 }
0x11cd   :  { %1570 = vtanh.f32 %v1325_v7 }
0x11d2   :  { %v342_v31 = vpop.permute.xlu0 %341 }
0x11d3   :  { %v1571_v32 = vpop.eup %1570  ;;  %1395 = vst.msk [vmem:[%s2305_s6 + $0x38] sm:$0xff] %vm345_vm6, %v342_v31 }
0x11d4   :  { %1328 = vrot.lane.b32.xlu2 %v1571_v32, %s1582_s21 }
0x11da   :  { %v778_v10 = vpop.permute.xlu0 %777 }
0x11db   :  { %1413 = vst.msk [vmem:[%s2305_s6 + $0x20] sm:$0xff] %vm345_vm6, %v778_v10 }
0x11dc   :  { %1418 = vst.msk [vmem:[%s2305_s6 + $0x20] sm:$0xff] %vm201_vm0, %v2074_v35  ;;  %632 = vrot.lane.b32.xlu2 %v1956_v19, %s1582_s21 }
0x11de   :  { %v1291_v23 = vpop.permute.xlu1 %1290 }
0x11df   :  { %v1293_v9 = vmul.f32 %v1291_v23, %v1274_v11 }
0x11e1   :  { %v1332_v30 = vsel %vm326_vm11, %v1293_v9, %v2186_v26 }
0x11e2   :  { %v1061_v36 = vpop.permute.xlu0 %1060  ;;  %1335 = vrot.lane.b32.xlu1 %v1332_v30, %s1584_s1 }
0x11e3   :  { %1425 = vst.msk [vmem:[%s2305_s6 + $0x10] sm:$0xff] %vm345_vm6, %v1061_v36 }
0x11e4   :  { %919 = vrot.lane.b32.xlu2 %v2070_v18, %s1582_s21 }
0x11e6   :  { %v488_v35 = vpop.permute.xlu1 %487 }
0x11e7   :  { %1401 = vst.msk [vmem:[%s2305_s6 + $0x30] sm:$0xff] %vm345_vm6, %v488_v35 }
0x11e8   :  { %1430 = vst.msk [vmem:[%s2305_s6 + $0x30] sm:$0xff] %vm201_vm0, %v2197_v52 }
0x11ea   :  { %1201 = vrot.lane.b32.xlu1 %v2193_v39, %s1582_s21 }
0x122e   :  { %v1329_v19 = vpop.permute.xlu2 %1328 }
0x122f   :  { %v1331_v26 = vmul.f32 %v1329_v19, %v1312_v54 }
0x1231   :  { %v1333_v18 = vsel %vm325_vm10, %v1331_v26, %v2193_v39 }
0x1232   :  { %1340 = vrot.lane.b32.xlu2 %v1333_v18, %s1582_s21 }
0x1236   :  { %v633_v22 = vpop.permute.xlu2 %632 }
0x1237   :  { %1407 = vst.msk [vmem:[%s2305_s6 + $0x28] sm:$0xff] %vm345_vm6, %v633_v22 }
0x1238   :  { %1424 = vst.msk [vmem:[%s2305_s6 + $0x28] sm:$0xff] %vm201_vm0, %v2145_v24 }
0x123e   :  { %v920_v52 = vpop.permute.xlu2 %919 }
0x123f   :  { %1419 = vst.msk [vmem:[%s2305_s6 + $0x18] sm:$0xff] %vm345_vm6, %v920_v52 }
0x1254   :  { %v1336_v53 = vpop.permute.xlu1 %1335 }
0x1255   :  { %1436 = vst.msk [vmem:[%s2305_s6 + $0x38] sm:$0xff] %vm201_vm0, %v1336_v53 }
0x1256   :  { %1344 = vst.msk [vmem:[%s2306_s7] sm:$0xff] %vm201_vm0, %v1336_v53 }
0x125c   :  { %v1202_v39 = vpop.permute.xlu1 %1201 }
0x125d   :  { %1431 = vst.msk [vmem:[%s2305_s6 + $0x8] sm:$0xff] %vm345_vm6, %v1202_v39 }
0x128c   :  { %v1341_v24 = vpop.permute.xlu2 %1340 }
0x128d   :  { %1343 = vst.msk [vmem:[%s2305_s6] sm:$0xff] %vm345_vm6, %v1341_v24 }
0x128e   :  { %1345 = vst.msk [vmem:[%s2306_s7] sm:$0xff] %vm345_vm6, %v1341_v24 }

// kernel: sden_forward.9
= control target key start
LH: loop header
LB: loop body
LE: loop exit
PB: predicated region body
PF: predicated region fallthrough
CT: control target
= control target key end

     0   :  { %vm40_vm0 = vcmask 130048   ;;  %s1571_s27 = smov 64   ;;  %s2121_s0 = inlined_call_operand.vmem [shape: f32[64,16], index: 0, kind: input, shape index: {}]   ;;  %s2122_s1 = inlined_call_operand.vmem [shape: s32[8,1], index: 1, kind: input, shape index: {}]   ;;  %s2123_s2 = inlined_call_operand.vmem [shape: f32[2,16,96], index: 2, kind: input, shape index: {}]   ;;  %s2124_s3 = inlined_call_operand.vmem [shape: f32[2,32,96], index: 3, kind: input, shape index: {}]   ;;  %s2125_s4 = inlined_call_operand.vmem [shape: f32[2,1,96], index: 4, kind: input, shape index: {}]   ;;  %s2126_s5 = inlined_call_operand.vmem [shape: f32[2,1,32], index: 5, kind: input, shape index: {}]   ;;  %s2127_s6 = inlined_call_operand.vmem [shape: f32[8,8,64], index: 6, kind: output, shape index: {0}]   ;;  %s2128_s7 = inlined_call_operand.hbm [shape: f32[8,64], index: 7, kind: output, shape index: {1}]  }
   0x1   :  { %v35_v0 = vld [vmem:[%s2123_s2 + $0x8] sm:$0xff]  ;;  %v1622_v1 = vld [vmem:[%s2124_s3 + $0x18] sm:$0xff]  ;;  %v34_v2 = vld [vmem:[%s2123_s2] sm:$0xff] }
   0x2   :  { %79 = vmatpush.msra.mxu0 %v35_v0  ;;  %213 = vmatpush.msra.mxu2 %v1622_v1  ;;  %v1631_v3 = vld [vmem:[%s2124_s3 + $0x10] sm:$0xff]  ;;  %v26_v4 = vld [vmem:[%s2121_s0] sm:$0xff]  ;;  %v1639_v5 = vld [vmem:[%s2124_s3 + $0x8] sm:$0xff] }
   0x3   :  { %v1644_v6 = vld [vmem:[%s2124_s3 + $0x38] sm:$0xff]  ;;  %v1650_v7 = vld [vmem:[%s2124_s3 + $0x30] sm:$0xff]  ;;  %v1656_v8 = vld [vmem:[%s2124_s3] sm:$0xff] }
   0x4   :  { %80 = vmatpush.msra.mxu0 %v34_v2  ;;  %214 = vmatpush.msra.mxu2 %v1631_v3  ;;  %v1436_v9 = vld [vmem:[%s2126_s5] ss:$0 sm:$0xff]  ;;  %v1666_v10 = vld [vmem:[%s2124_s3 + $0x28] sm:$0xff]  ;;  %v1370_v11 = vld [vmem:[%s2123_s2 + $0x18] sm:$0xff] }
   0x5   :  { %1361 = vmatmul.msk.f32.vlgmr.msra.gmra.mxu0 %vm40_vm0, %v26_v4  ;;  %233 = vmatpush.msra.mxu3 %v1644_v6  ;;  %v1675_v12 = vld [vmem:[%s2124_s3 + $0x20] sm:$0xff]  ;;  %v1369_v13 = vld [vmem:[%s2123_s2 + $0x10] sm:$0xff] }
   0x6   :  { %215 = vmatpush.msra.mxu2 %v1639_v5  ;;  %261 = vrot.lane.b32.xlu0 %v1436_v9, %s1571_s27 }
   0x7   :  { %234 = vmatpush.msra.mxu3 %v1650_v7  ;;  %137 = vmatpush.msra.mxu1 %v1370_v11 }
   0x8   :  { %216 = vmatpush.msra.mxu2 %v1656_v8 }
   0x9   :  { %13 = vsyncpa [#allocation4], 0  ;;  %v1572_v14 = vmov 0.0   ;;  %235 = vmatpush.msra.mxu3 %v1666_v10  ;;  %138 = vmatpush.msra.mxu1 %v1369_v13  ;;  %v1437_v15 = vld [vmem:[%s2126_s5 + $0x1] ss:$0 sm:$0xff]  ;;  %v27_v16 = vld [vmem:[%s2121_s0 + $0x8] sm:$0xff] }
   0xa   :  { %217 = vmatmul.f32.vlgmr.msra.gmra.mxu2 %v1572_v14  ;;  %1372 = vmatmul.msk.f32.vlgmr.msra.gmra.mxu1 %vm40_vm0, %v26_v4  ;;  %v28_v17 = vld [vmem:[%s2121_s0 + $0x10] sm:$0xff]  ;;  %v29_v18 = vld [vmem:[%s2121_s0 + $0x18] sm:$0xff]  ;;  %v30_v19 = vld [vmem:[%s2121_s0 + $0x20] sm:$0xff]  ;;  %vm106_vm1 = vcmask 785408   ;;  %v1573_v61 = vmov 0   ;;  %vm337_vm11 = vcmask 523520  }
   0xb   :  { %358 = vmatpush.msrb.mxu2 %v1622_v1  ;;  %236 = vmatpush.msra.mxu3 %v1675_v12  ;;  %v31_v20 = vld [vmem:[%s2121_s0 + $0x28] sm:$0xff]  ;;  %v32_v21 = vld [vmem:[%s2121_s0 + $0x30] sm:$0xff]  ;;  %v33_v22 = vld [vmem:[%s2121_s0 + $0x38] sm:$0xff]  ;;  %vm197_vm13 = vcmask 261120   ;;  %s1575_s22 = smov [#allocation3]   ;;  %s1342_s25 = sshll.u32 %s2128_s7, 4  ;;  %s1343_s25 = int_to_ptr.hbm [resolvable:$true] %s1342_s25 }
   0xc   :  { %237 = vmatmul.f32.vlgmr.msra.gmra.mxu3 %v1572_v14  ;;  %v1743_v23 = vld [vmem:[%s2125_s4] ss:$0 sm:$0xff]  ;;  %v1439_v27 = vld [vmem:[%s2125_s4 + $0x1] ss:$0 sm:$0xff]  ;;  %1434 = vset.pattern.permute.xlu1 %v1573_v61  ;;  %s1340_s23 = sshll.u32 %s1575_s22, 4  ;;  %s1341_s23 = int_to_ptr.vmem [resolvable:$true] %s1340_s23 }
   0xd   :  { %359 = vmatpush.msrb.mxu2 %v1631_v3  ;;  %383 = vmatpush.msrb.mxu3 %v1644_v6  ;;  %v189_v60 = vld [vmem:[%s2122_s1] sm:$0xff]  ;;  %s1574_s1 = smov 96  }
   0xe   :  { %1362 = vmatmul.msk.f32.gmra.mxu0 %vm40_vm0, %v27_v16  ;;  %304 = vrot.lane.b32.xlu0 %v1437_v15, %s1571_s27 }
   0xf   :  { %360 = vmatpush.msrb.mxu2 %v1639_v5  ;;  %384 = vmatpush.msrb.mxu3 %v1650_v7 }
  0x10   :  { %1435 = vset.pattern.permute.xlu0 %v1573_v61 }
  0x11   :  { %361 = vmatpush.msrb.mxu2 %v1656_v8  ;;  %385 = vmatpush.msrb.mxu3 %v1666_v10 }
  0x12   :  { %1373 = vmatmul.msk.f32.gmra.mxu1 %vm40_vm0, %v27_v16 }
  0x13   :  { %502 = vmatpush.msra.mxu2 %v1622_v1  ;;  %386 = vmatpush.msrb.mxu3 %v1675_v12 }
  0x15   :  { %503 = vmatpush.msra.mxu2 %v1631_v3  ;;  %527 = vmatpush.msra.mxu3 %v1644_v6 }
  0x16   :  { %1363 = vmatmul.msk.f32.gmra.mxu0 %vm40_vm0, %v28_v17 }
  0x17   :  { %504 = vmatpush.msra.mxu2 %v1639_v5  ;;  %528 = vmatpush.msra.mxu3 %v1650_v7 }
  0x19   :  { %505 = vmatpush.msra.mxu2 %v1656_v8  ;;  %529 = vmatpush.msra.mxu3 %v1666_v10 }
  0x1a   :  { %1374 = vmatmul.msk.f32.gmra.mxu1 %vm40_vm0, %v28_v17 }
  0x1b   :  { %530 = vmatpush.msra.mxu3 %v1675_v12 }
  0x1e   :  { %1364 = vmatmul.msk.f32.gmra.mxu0 %vm40_vm0, %v29_v18 }
  0x22   :  { %1375 = vmatmul.msk.f32.gmra.mxu1 %vm40_vm0, %v29_v18 }
  0x26   :  { %1365 = vmatmul.msk.f32.gmra.mxu0 %vm40_vm0, %v30_v19 }
  0x2a   :  { %1376 = vmatmul.msk.f32.gmra.mxu1 %vm40_vm0, %v30_v19 }
  0x2e   :  { %1366 = vmatmul.msk.f32.gmra.mxu0 %vm40_vm0, %v31_v20 }
  0x32   :  { %1377 = vmatmul.msk.f32.gmra.mxu1 %vm40_vm0, %v31_v20 }
  0x36   :  { %1367 = vmatmul.msk.f32.gmra.mxu0 %vm40_vm0, %v32_v21 }
  0x3a   :  { %1378 = vmatmul.msk.f32.gmra.mxu1 %vm40_vm0, %v32_v21 }
  0x3e   :  { %1368 = vmatmul.msk.f32.gmra.mxu0 %vm40_vm0, %v33_v22 }
  0x42   :  { %1379 = vmatmul.msk.f32.gmra.mxu1 %vm40_vm0, %v33_v22 }
  0x78   :  { %v1747_v26 = vpop.permute.xlu0 %261 }
  0x80   :  { %v1755_v32 = vpop.permute.xlu0 %304 }
  0x82   :  { %v82_v24 = vpop.f32.mrf.mxu0 }
  0x83   :  { %v83_v25 = vadd.f32 %v1743_v23, %v82_v24 }
  0x85   :  { %107 = vst.msk [vmem:[#allocation2] sm:$0xff] %vm106_vm1, %v83_v25 }
  0x87   :  { %v140_v28 = vpop.f32.mrf.mxu1 }
  0x88   :  { %v141_v29 = vadd.f32 %v1439_v27, %v140_v28 }
  0x8a   :  { %165 = vst.msk [vmem:[#allocation2 + $0x40] sm:$0xff] %vm106_vm1, %v141_v29 }
  0x8c   :  { %v193_v49 = vld [vmem:[#allocation2] sm:$0xff] }
  0x8d   :  { %v218_v30 = vpop.f32.mrf.mxu2 }
  0x8e   :  { %v264_v31 = vadd.f32 %v1747_v26, %v218_v30  ;;  %v241_v50 = vadd.f32 %v218_v30, %v193_v49 }
  0x8f   :  { %v238_v33 = vpop.f32.mrf.mxu3  ;;  %v143_v34 = vpop.f32.mrf.mxu1 }
  0x90   :  { %266 = vrot.lane.b32.xlu1 %v264_v31, %s1571_s27  ;;  %v144_v35 = vadd.f32 %v1439_v27, %v143_v34  ;;  %v307_v36 = vadd.f32 %v1755_v32, %v238_v33  ;;  %v1385_v52 = vmul.f32 -1.442695, %v241_v50 }
  0x92   :  { %166 = vst.msk [vmem:[#allocation2 + $0x48] sm:$0xff] %vm106_vm1, %v144_v35  ;;  %1440 = vpow2.f32 %v1385_v52 }
  0x97   :  { %v146_v37 = vpop.f32.mrf.mxu1 }
  0x98   :  { %309 = vrot.lane.b32.xlu1 %v307_v36, %s1571_s27  ;;  %v147_v38 = vadd.f32 %v1439_v27, %v146_v37  ;;  %v1441_v55 = vpop.eup %1440 }
  0x99   :  { %v245_v56 = vadd.f32 1.0, %v1441_v55 }
  0x9a   :  { %167 = vst.msk [vmem:[#allocation2 + $0x50] sm:$0xff] %vm106_vm1, %v147_v38 }
  0x9b   :  { %v257_v13 = vand.u32 2147483648, %v245_v56  ;;  %vm251_vm3 = vweird.f32 %v245_v56  ;;  %v255_v14 = vand.u32 2147483647, %v245_v56 }
  0x9d   :  { %v258_v17 = vor.u32 1.1754944e-38, %v257_v13  ;;  %vm256_vm7 = vcmp.eq.f32.partialorder %v255_v14, 8.507059e+37 }
  0x9f   :  { %v149_v39 = vpop.f32.mrf.mxu1 }
  0xa0   :  { %v150_v40 = vadd.f32 %v1439_v27, %v149_v39  ;;  %191 = vperm.xlu1 %1434, %v189_v60  }
  0xa2   :  { %168 = vst.msk [vmem:[#allocation2 + $0x58] sm:$0xff] %vm106_vm1, %v150_v40 }
  0xa7   :  { %v152_v41 = vpop.f32.mrf.mxu1 }
  0xa8   :  { %v153_v42 = vadd.f32 %v1439_v27, %v152_v41 }
  0xaa   :  { %169 = vst.msk [vmem:[#allocation2 + $0x60] sm:$0xff] %vm106_vm1, %v153_v42 }
  0xaf   :  { %v155_v43 = vpop.f32.mrf.mxu1 }
  0xb0   :  { %v156_v44 = vadd.f32 %v1439_v27, %v155_v43 }
  0xb2   :  { %170 = vst.msk [vmem:[#allocation2 + $0x68] sm:$0xff] %vm106_vm1, %v156_v44 }
  0xb7   :  { %v158_v45 = vpop.f32.mrf.mxu1 }
  0xb8   :  { %v159_v46 = vadd.f32 %v1439_v27, %v158_v45 }
  0xba   :  { %171 = vst.msk [vmem:[#allocation2 + $0x70] sm:$0xff] %vm106_vm1, %v159_v46 }
  0xbf   :  { %v161_v47 = vpop.f32.mrf.mxu1 }
  0xc0   :  { %v162_v48 = vadd.f32 %v1439_v27, %v161_v47 }
  0xc2   :  { %172 = vst.msk [vmem:[#allocation2 + $0x78] sm:$0xff] %vm106_vm1, %v162_v48 }
  0xc9   :  { %v196_v51 = vld [vmem:[#allocation2 + $0x78] sm:$0xff] }
  0xca   :  { %v284_v53 = vadd.f32 %v238_v33, %v196_v51 }
  0xcc   :  { %v1386_v54 = vmul.f32 -1.442695, %v284_v53  ;;  %v85_v53 = vpop.f32.mrf.mxu0 }
  0xce   :  { %1442 = vpow2.f32 %v1386_v54  ;;  %v86_v54 = vadd.f32 %v1743_v23, %v85_v53 }
  0xcf   :  { %1444 = vrcp.f32 %v245_v56 }
  0xd0   :  { %108 = vst.msk [vmem:[#allocation2 + $0x8] sm:$0xff] %vm106_vm1, %v86_v54 }
  0xd4   :  { %v1443_v57 = vpop.eup %1442 }
  0xd5   :  { %v288_v58 = vadd.f32 1.0, %v1443_v57  ;;  %v1445_v59 = vpop.eup %1444 }
  0xd6   :  { %v247_v62 = vmul.f32 %v1445_v59, %v245_v56  ;;  %vm252_vm2 = vweird.f32 %v1445_v59 }
  0xd7   :  { %1446 = vrcp.f32 %v288_v58  ;;  %vm253_vm4 = vmor %vm251_vm3, %vm252_vm2  ;;  %vm294_vm5 = vweird.f32 %v288_v58  ;;  %v300_v18 = vand.u32 2147483648, %v288_v58  ;;  %v298_v20 = vand.u32 2147483647, %v288_v58 }
  0xd8   :  { %v248_v0 = vsub.f32 1.0, %v247_v62  ;;  %v343_v62 = vld [vmem:[#allocation2 + $0x70] sm:$0xff] }
  0xd9   :  { %v301_v25 = vor.u32 1.1754944e-38, %v300_v18  ;;  %vm299_vm9 = vcmp.eq.f32.partialorder %v298_v20, 8.507059e+37 }
  0xda   :  { %v249_v4 = vmul.f32 %v1445_v59, %v248_v0 }
  0xdc   :  { %v250_v11 = vadd.f32 %v1445_v59, %v249_v4 }
  0xdd   :  { %v1447_v63 = vpop.eup %1446 }
  0xde   :  { %v290_v2 = vmul.f32 %v1447_v63, %v288_v58  ;;  %v254_v16 = vsel %vm253_vm4, %v1445_v59, %v250_v11  ;;  %vm295_vm6 = vweird.f32 %v1447_v63  ;;  %v340_v59 = vld [vmem:[#allocation2 + $0x8] sm:$0xff] }
  0xdf   :  { %v259_v22 = vsel %vm256_vm7, %v258_v17, %v254_v16  ;;  %vm296_vm8 = vmor %vm294_vm5, %vm295_vm6 }
  0xe0   :  { %v291_v9 = vsub.f32 1.0, %v290_v2  ;;  %v276_v45 = vsub.f32 1.0, %v259_v22  ;;  %v282_v47 = vmul.f32 0.0, %v259_v22 }
  0xe2   :  { %v292_v15 = vmul.f32 %v1447_v63, %v291_v9 }
  0xe4   :  { %v293_v19 = vadd.f32 %v1447_v63, %v292_v15 }
  0xe6   :  { %v297_v27 = vsel %vm296_vm8, %v1447_v63, %v293_v19 }
  0xe7   :  { %v302_v28 = vsel %vm299_vm9, %v301_v25, %v297_v27 }
  0xe8   :  { %v319_v38 = vsub.f32 1.0, %v302_v28  ;;  %v325_v41 = vmul.f32 0.0, %v302_v28 }
 0x102   :  { %v267_v21 = vpop.permute.xlu1 %266 }
 0x103   :  { %v269_v24 = vmul.f32 %v267_v21, %v259_v22 }
 0x105   :  { %271 = vrot.lane.b32.xlu2 %v269_v24, %s1571_s27 }
 0x10a   :  { %v310_v29 = vpop.permute.xlu1 %309 }
 0x10b   :  { %v312_v30 = vmul.f32 %v310_v29, %v302_v28 }
 0x10d   :  { %314 = vrot.lane.b32.xlu2 %v312_v30, %s1571_s27 }
 0x112   :  { %v1773_v39 = vpop.permute.xlu1 %191 }
 0x113   :  { %vm2129_vm10 = vcmp.gt.s32.totalorder %v1773_v39, 7  ;;  %vm2130_vm12 = vcmp.gt.s32.totalorder %v1773_v39, 0  ;;  %vm2131_vm7 = vcmp.gt.s32.totalorder %v1773_v39, 6  ;;  %vm471_vm8 = vcmp.gt.s32.totalorder %v1773_v39, 1 }
 0x15f   :  { %v272_v31 = vpop.permute.xlu2 %271 }
 0x160   :  { %v274_v33 = vadd.f32 %v272_v31, %v193_v49 }
 0x162   :  { %1448 = vtanh.f32 %v274_v33 }
 0x167   :  { %v315_v34 = vpop.permute.xlu2 %314 }
 0x168   :  { %v1449_v35 = vpop.eup %1448  ;;  %v317_v36 = vadd.f32 %v315_v34, %v196_v51 }
 0x169   :  { %278 = vrot.lane.b32.xlu0 %v1449_v35, %s1574_s1 }
 0x16a   :  { %1450 = vtanh.f32 %v317_v36 }
 0x170   :  { %v1451_v37 = vpop.eup %1450 }
 0x171   :  { %321 = vrot.lane.b32.xlu2 %v1451_v37, %s1574_s1 }
 0x1cb   :  { %v322_v40 = vpop.permute.xlu2 %321 }
 0x1cc   :  { %v324_v42 = vmul.f32 %v322_v40, %v319_v38 }
 0x1ce   :  { %v326_v43 = vadd.f32 %v325_v41, %v324_v42 }
 0x1d0   :  { %v1778_v44 = vsel %vm2129_vm10, %v326_v43, 0.0 }
 0x1d1   :  { %367 = vrot.lane.b32.xlu1 %v1778_v44, %s1574_s1  ;;  %1387 = vst.msk [vmem:[%s2127_s6 + $0x38] sm:$0xff] %vm337_vm11, %v1778_v44 }
 0x1db   :  { %v279_v46 = vpop.permute.xlu0 %278 }
 0x1dc   :  { %v281_v48 = vmul.f32 %v279_v46, %v276_v45 }
 0x1de   :  { %v283_v49 = vadd.f32 %v282_v47, %v281_v48 }
 0x1e0   :  { %v1790_v50 = vsel %vm2130_vm12, %v283_v49, 0.0 }
 0x1e1   :  { %332 = vrot.lane.b32.xlu0 %v1790_v50, %s1574_s1 }
 0x243   :  { %v368_v51 = vpop.permute.xlu1 %367 }
 0x244   :  { %1389 = vmatmul.msk.f32.vlgmr.msrb.gmra.mxu3 %vm197_vm13, %v368_v51 }
 0x245   :  { %671 = vmatpush.msrb.mxu3 %v1644_v6 }
 0x247   :  { %672 = vmatpush.msrb.mxu3 %v1650_v7 }
 0x249   :  { %673 = vmatpush.msrb.mxu3 %v1666_v10 }
 0x24b   :  { %674 = vmatpush.msrb.mxu3 %v1675_v12 }
 0x253   :  { %v333_v52 = vpop.permute.xlu0 %332 }
 0x254   :  { %335 = vst.msk [vmem:[%s2127_s6] sm:$0xff] %vm197_vm13, %v333_v52  ;;  %1388 = vmatmul.msk.f32.vlgmr.msrb.gmra.mxu2 %vm197_vm13, %v333_v52 }
 0x255   :  { %646 = vmatpush.msrb.mxu2 %v1622_v1 }
 0x257   :  { %647 = vmatpush.msrb.mxu2 %v1631_v3 }
 0x259   :  { %648 = vmatpush.msrb.mxu2 %v1639_v5 }
 0x25b   :  { %649 = vmatpush.msrb.mxu2 %v1656_v8 }
 0x2c7   :  { %v388_v55 = vpop.f32.mrf.mxu3 }
 0x2c8   :  { %v451_v56 = vadd.f32 %v388_v55, %v1755_v32  ;;  %v431_v63 = vadd.f32 %v388_v55, %v343_v62 }
 0x2ca   :  { %453 = vrot.lane.b32.xlu0 %v451_v56, %s1571_s27  ;;  %v1391_v0 = vmul.f32 -1.442695, %v431_v63 }
 0x2d7   :  { %v363_v57 = vpop.f32.mrf.mxu2 }
 0x2d8   :  { %v411_v58 = vadd.f32 %v363_v57, %v1747_v26  ;;  %v391_v60 = vadd.f32 %v363_v57, %v340_v59 }
 0x2da   :  { %413 = vrot.lane.b32.xlu2 %v411_v58, %s1571_s27  ;;  %v1390_v61 = vmul.f32 -1.442695, %v391_v60  ;;  %v88_v60 = vpop.f32.mrf.mxu0 }
 0x2dc   :  { %1452 = vpow2.f32 %v1390_v61  ;;  %v89_v61 = vadd.f32 %v1743_v23, %v88_v60 }
 0x2dd   :  { %1454 = vpow2.f32 %v1391_v0 }
 0x2de   :  { %109 = vst.msk [vmem:[#allocation2 + $0x10] sm:$0xff] %vm106_vm1, %v89_v61 }
 0x2e2   :  { %v1453_v2 = vpop.eup %1452 }
 0x2e3   :  { %v395_v4 = vadd.f32 1.0, %v1453_v2  ;;  %v1455_v9 = vpop.eup %1454 }
 0x2e4   :  { %v435_v11 = vadd.f32 1.0, %v1455_v9  ;;  %v487_v9 = vld [vmem:[#allocation2 + $0x68] sm:$0xff] }
 0x2e5   :  { %1456 = vrcp.f32 %v395_v4  ;;  %v407_v21 = vand.u32 2147483648, %v395_v4  ;;  %vm401_vm15 = vweird.f32 %v395_v4  ;;  %v405_v22 = vand.u32 2147483647, %v395_v4 }
 0x2e6   :  { %1458 = vrcp.f32 %v435_v11  ;;  %v447_v33 = vand.u32 2147483648, %v435_v11  ;;  %vm441_vm4 = vweird.f32 %v435_v11  ;;  %v445_v34 = vand.u32 2147483647, %v435_v11 }
 0x2e7   :  { %v408_v27 = vor.u32 1.1754944e-38, %v407_v21  ;;  %vm406_vm2 = vcmp.eq.f32.partialorder %v405_v22, 8.507059e+37 }
 0x2e8   :  { %v448_v36 = vor.u32 1.1754944e-38, %v447_v33  ;;  %vm446_vm6 = vcmp.eq.f32.partialorder %v445_v34, 8.507059e+37 }
 0x2eb   :  { %v1457_v13 = vpop.eup %1456 }
 0x2ec   :  { %v397_v14 = vmul.f32 %v1457_v13, %v395_v4  ;;  %v1459_v16 = vpop.eup %1458  ;;  %vm402_vm14 = vweird.f32 %v1457_v13 }
 0x2ed   :  { %v437_v18 = vmul.f32 %v1459_v16, %v435_v11  ;;  %vm403_vm0 = vmor %vm401_vm15, %vm402_vm14  ;;  %vm442_vm3 = vweird.f32 %v1459_v16 }
 0x2ee   :  { %v398_v15 = vsub.f32 1.0, %v397_v14  ;;  %vm443_vm5 = vmor %vm441_vm4, %vm442_vm3  ;;  %v484_v14 = vld [vmem:[#allocation2 + $0x10] sm:$0xff] }
 0x2ef   :  { %v438_v20 = vsub.f32 1.0, %v437_v18 }
 0x2f0   :  { %v399_v17 = vmul.f32 %v1457_v13, %v398_v15 }
 0x2f1   :  { %v439_v25 = vmul.f32 %v1459_v16, %v438_v20 }
 0x2f2   :  { %v400_v19 = vadd.f32 %v1457_v13, %v399_v17 }
 0x2f3   :  { %v440_v31 = vadd.f32 %v1459_v16, %v439_v25 }
 0x2f4   :  { %v404_v24 = vsel %vm403_vm0, %v1457_v13, %v400_v19 }
 0x2f5   :  { %v409_v28 = vsel %vm406_vm2, %v408_v27, %v404_v24  ;;  %v444_v35 = vsel %vm443_vm5, %v1459_v16, %v440_v31 }
 0x2f6   :  { %v449_v38 = vsel %vm446_vm6, %v448_v36, %v444_v35  ;;  %v423_v55 = vsub.f32 1.0, %v409_v28  ;;  %v429_v57 = vmul.f32 %v409_v28, %v1790_v50  ;;  %vm615_vm6 = vcmp.gt.s32.totalorder %v1773_v39, 2 }
 0x2f7   :  { %v463_v48 = vsub.f32 1.0, %v449_v38  ;;  %v469_v51 = vmul.f32 %v449_v38, %v1778_v44 }
 0x334   :  { %v414_v29 = vpop.permute.xlu2 %413 }
 0x335   :  { %v416_v30 = vmul.f32 %v414_v29, %v409_v28 }
 0x337   :  { %418 = vrot.lane.b32.xlu1 %v416_v30, %s1571_s27 }
 0x33c   :  { %v454_v37 = vpop.permute.xlu0 %453 }
 0x33d   :  { %v456_v40 = vmul.f32 %v454_v37, %v449_v38 }
 0x33f   :  { %458 = vrot.lane.b32.xlu2 %v456_v40, %s1571_s27 }
 0x399   :  { %v459_v41 = vpop.permute.xlu2 %458 }
 0x39a   :  { %v461_v42 = vadd.f32 %v459_v41, %v343_v62 }
 0x39c   :  { %1460 = vtanh.f32 %v461_v42 }
 0x3a2   :  { %v1461_v43 = vpop.eup %1460 }
 0x3a3   :  { %465 = vrot.lane.b32.xlu1 %v1461_v43, %s1574_s1 }
 0x3a9   :  { %v419_v45 = vpop.permute.xlu1 %418 }
 0x3aa   :  { %v421_v46 = vadd.f32 %v419_v45, %v340_v59 }
 0x3ac   :  { %1462 = vtanh.f32 %v421_v46 }
 0x3b2   :  { %v1463_v47 = vpop.eup %1462 }
 0x3b3   :  { %425 = vrot.lane.b32.xlu0 %v1463_v47, %s1574_s1 }
 0x415   :  { %v466_v49 = vpop.permute.xlu1 %465 }
 0x416   :  { %v468_v52 = vmul.f32 %v466_v49, %v463_v48 }
 0x418   :  { %v470_v53 = vadd.f32 %v469_v51, %v468_v52 }
 0x41a   :  { %v1823_v54 = vsel %vm2131_vm7, %v470_v53, %v1778_v44 }
 0x41b   :  { %511 = vrot.lane.b32.xlu0 %v1823_v54, %s1574_s1  ;;  %1393 = vst.msk [vmem:[%s2127_s6 + $0x30] sm:$0xff] %vm337_vm11, %v1823_v54 }
 0x425   :  { %v426_v56 = vpop.permute.xlu0 %425 }
 0x426   :  { %v428_v58 = vmul.f32 %v426_v56, %v423_v55 }
 0x428   :  { %v430_v59 = vadd.f32 %v429_v57, %v428_v58 }
 0x42a   :  { %v1837_v44 = vsel %vm471_vm8, %v430_v59, %v1790_v50 }
 0x42b   :  { %476 = vrot.lane.b32.xlu2 %v1837_v44, %s1574_s1 }
 0x485   :  { %v477_v62 = vpop.permute.xlu2 %476 }
 0x486   :  { %1392 = vst.msk [vmem:[%s2127_s6 + $0x8] sm:$0xff] %vm197_vm13, %v477_v62  ;;  %1394 = vmatmul.msk.f32.vlgmr.msra.gmra.mxu2 %vm197_vm13, %v477_v62 }
 0x487   :  { %790 = vmatpush.msra.mxu2 %v1622_v1 }
 0x489   :  { %791 = vmatpush.msra.mxu2 %v1631_v3 }
 0x48b   :  { %792 = vmatpush.msra.mxu2 %v1639_v5 }
 0x48d   :  { %v512_v50 = vpop.permute.xlu0 %511  ;;  %793 = vmatpush.msra.mxu2 %v1656_v8 }
 0x48e   :  { %1395 = vmatmul.msk.f32.vlgmr.msra.gmra.mxu3 %vm197_vm13, %v512_v50 }
 0x48f   :  { %815 = vmatpush.msra.mxu3 %v1644_v6 }
 0x491   :  { %816 = vmatpush.msra.mxu3 %v1650_v7 }
 0x493   :  { %817 = vmatpush.msra.mxu3 %v1666_v10 }
 0x495   :  { %818 = vmatpush.msra.mxu3 %v1675_v12 }
 0x509   :  { %v507_v63 = vpop.f32.mrf.mxu2 }
 0x50a   :  { %v555_v0 = vadd.f32 %v507_v63, %v1747_v26  ;;  %v535_v16 = vadd.f32 %v507_v63, %v484_v14 }
 0x50c   :  { %557 = vrot.lane.b32.xlu1 %v555_v0, %s1571_s27  ;;  %v1396_v18 = vmul.f32 -1.442695, %v535_v16 }
 0x511   :  { %v532_v2 = vpop.f32.mrf.mxu3 }
 0x512   :  { %v595_v4 = vadd.f32 %v532_v2, %v1755_v32  ;;  %v575_v11 = vadd.f32 %v532_v2, %v487_v9 }
 0x514   :  { %597 = vrot.lane.b32.xlu2 %v595_v4, %s1571_s27  ;;  %v1397_v13 = vmul.f32 -1.442695, %v575_v11 }
 0x516   :  { %1464 = vpow2.f32 %v1397_v13  ;;  %v91_v13 = vpop.f32.mrf.mxu0 }
 0x51c   :  { %v1465_v15 = vpop.eup %1464 }
 0x51d   :  { %v579_v17 = vadd.f32 1.0, %v1465_v15 }
 0x51f   :  { %1466 = vrcp.f32 %v579_v17  ;;  %v591_v29 = vand.u32 2147483648, %v579_v17  ;;  %vm585_vm14 = vweird.f32 %v579_v17  ;;  %v589_v30 = vand.u32 2147483647, %v579_v17 }
 0x520   :  { %1468 = vpow2.f32 %v1396_v18 }
 0x521   :  { %v592_v34 = vor.u32 1.1754944e-38, %v591_v29  ;;  %vm590_vm0 = vcmp.eq.f32.partialorder %v589_v30, 8.507059e+37 }
 0x525   :  { %v1467_v19 = vpop.eup %1466 }
 0x526   :  { %v1469_v20 = vpop.eup %1468  ;;  %v581_v21 = vmul.f32 %v1467_v19, %v579_v17  ;;  %vm586_vm9 = vweird.f32 %v1467_v19 }
 0x527   :  { %v539_v22 = vadd.f32 1.0, %v1469_v20  ;;  %vm587_vm15 = vmor %vm585_vm14, %vm586_vm9  ;;  %vm617_vm9 = vcmp.gt.s32.totalorder %v1773_v39, 5 }
 0x528   :  { %v582_v24 = vsub.f32 1.0, %v581_v21 }
 0x529   :  { %1470 = vrcp.f32 %v539_v22  ;;  %v551_v42 = vand.u32 2147483648, %v539_v22  ;;  %vm545_vm3 = vweird.f32 %v539_v22  ;;  %v549_v43 = vand.u32 2147483647, %v539_v22 }
 0x52a   :  { %v583_v25 = vmul.f32 %v1467_v19, %v582_v24 }
 0x52b   :  { %v552_v46 = vor.u32 1.1754944e-38, %v551_v42  ;;  %vm550_vm5 = vcmp.eq.f32.partialorder %v549_v43, 8.507059e+37 }
 0x52c   :  { %v584_v27 = vadd.f32 %v1467_v19, %v583_v25 }
 0x52e   :  { %v588_v31 = vsel %vm587_vm15, %v1467_v19, %v584_v27  ;;  %v631_v19 = vld [vmem:[#allocation2 + $0x60] sm:$0xff] }
 0x52f   :  { %v1471_v28 = vpop.eup %1470  ;;  %v593_v35 = vsel %vm590_vm0, %v592_v34, %v588_v31 }
 0x530   :  { %v541_v33 = vmul.f32 %v1471_v28, %v539_v22  ;;  %vm546_vm2 = vweird.f32 %v1471_v28  ;;  %v607_v63 = vsub.f32 1.0, %v593_v35  ;;  %v613_v2 = vmul.f32 %v593_v35, %v1823_v54 }
 0x531   :  { %vm547_vm4 = vmor %vm545_vm3, %vm546_vm2 }
 0x532   :  { %v542_v38 = vsub.f32 1.0, %v541_v33 }
 0x534   :  { %v543_v40 = vmul.f32 %v1471_v28, %v542_v38 }
 0x536   :  { %v544_v41 = vadd.f32 %v1471_v28, %v543_v40 }
 0x538   :  { %v548_v45 = vsel %vm547_vm4, %v1471_v28, %v544_v41 }
 0x539   :  { %v553_v48 = vsel %vm550_vm5, %v552_v46, %v548_v45 }
 0x53a   :  { %v567_v58 = vsub.f32 1.0, %v553_v48  ;;  %v573_v60 = vmul.f32 %v553_v48, %v1837_v44 }
 0x56e   :  { %v598_v36 = vpop.permute.xlu2 %597 }
 0x56f   :  { %v600_v37 = vmul.f32 %v598_v36, %v593_v35 }
 0x571   :  { %602 = vrot.lane.b32.xlu1 %v600_v37, %s1571_s27 }
 0x57e   :  { %v558_v47 = vpop.permute.xlu1 %557 }
 0x57f   :  { %v560_v49 = vmul.f32 %v558_v47, %v553_v48 }
 0x581   :  { %562 = vrot.lane.b32.xlu0 %v560_v49, %s1571_s27 }
 0x5e3   :  { %v603_v51 = vpop.permute.xlu1 %602 }
 0x5e4   :  { %v605_v52 = vadd.f32 %v603_v51, %v487_v9 }
 0x5e6   :  { %1472 = vtanh.f32 %v605_v52 }
 0x5ec   :  { %v1473_v53 = vpop.eup %1472 }
 0x5ed   :  { %609 = vrot.lane.b32.xlu0 %v1473_v53, %s1574_s1 }
 0x5f3   :  { %v563_v55 = vpop.permute.xlu0 %562 }
 0x5f4   :  { %v565_v56 = vadd.f32 %v563_v55, %v484_v14  ;;  %v92_v14 = vadd.f32 %v1743_v23, %v91_v13 }
 0x5f6   :  { %1474 = vtanh.f32 %v565_v56  ;;  %110 = vst.msk [vmem:[#allocation2 + $0x18] sm:$0xff] %vm106_vm1, %v92_v14 }
 0x5fc   :  { %v1475_v57 = vpop.eup %1474 }
 0x5fd   :  { %569 = vrot.lane.b32.xlu2 %v1475_v57, %s1574_s1  ;;  %v628_v22 = vld [vmem:[#allocation2 + $0x18] sm:$0xff] }
 0x657   :  { %v570_v59 = vpop.permute.xlu2 %569 }
 0x658   :  { %v572_v61 = vmul.f32 %v570_v59, %v567_v58 }
 0x65a   :  { %v574_v62 = vadd.f32 %v573_v60, %v572_v61 }
 0x65c   :  { %v1870_v50 = vsel %vm615_vm6, %v574_v62, %v1837_v44 }
 0x65d   :  { %620 = vrot.lane.b32.xlu1 %v1870_v50, %s1574_s1 }
 0x65f   :  { %v610_v0 = vpop.permute.xlu0 %609 }
 0x660   :  { %v612_v4 = vmul.f32 %v610_v0, %v607_v63 }
 0x662   :  { %v614_v9 = vadd.f32 %v613_v2, %v612_v4 }
 0x664   :  { %v1879_v11 = vsel %vm617_vm9, %v614_v9, %v1823_v54 }
 0x665   :  { %655 = vrot.lane.b32.xlu2 %v1879_v11, %s1574_s1  ;;  %1399 = vst.msk [vmem:[%s2127_s6 + $0x28] sm:$0xff] %vm337_vm11, %v1879_v11 }
 0x6bf   :  { %v656_v44 = vpop.permute.xlu2 %655 }
 0x6c0   :  { %1401 = vmatmul.msk.f32.vlgmr.msrb.gmra.mxu3 %vm197_vm13, %v656_v44 }
 0x6c1   :  { %955 = vmatpush.msrb.mxu3 %v1644_v6 }
 0x6c3   :  { %956 = vmatpush.msrb.mxu3 %v1650_v7 }
 0x6c5   :  { %957 = vmatpush.msrb.mxu3 %v1666_v10 }
 0x6c7   :  { %958 = vmatpush.msrb.mxu3 %v1675_v12 }
 0x6cf   :  { %v621_v54 = vpop.permute.xlu1 %620 }
 0x6d0   :  { %1398 = vst.msk [vmem:[%s2127_s6 + $0x10] sm:$0xff] %vm197_vm13, %v621_v54  ;;  %1400 = vmatmul.msk.f32.vlgmr.msrb.gmra.mxu2 %vm197_vm13, %v621_v54 }
 0x6d1   :  { %930 = vmatpush.msrb.mxu2 %v1622_v1 }
 0x6d3   :  { %931 = vmatpush.msrb.mxu2 %v1631_v3 }
 0x6d5   :  { %932 = vmatpush.msrb.mxu2 %v1639_v5 }
 0x6d7   :  { %933 = vmatpush.msrb.mxu2 %v1656_v8 }
 0x743   :  { %v676_v15 = vpop.f32.mrf.mxu3 }
 0x744   :  { %v739_v16 = vadd.f32 %v676_v15, %v1755_v32  ;;  %v719_v20 = vadd.f32 %v676_v15, %v631_v19 }
 0x746   :  { %741 = vrot.lane.b32.xlu1 %v739_v16, %s1571_s27  ;;  %v1403_v21 = vmul.f32 -1.442695, %v719_v20 }
 0x748   :  { %1476 = vpow2.f32 %v1403_v21 }
 0x74e   :  { %v1477_v24 = vpop.eup %1476 }
 0x74f   :  { %v723_v27 = vadd.f32 1.0, %v1477_v24  ;;  %v775_v24 = vld [vmem:[#allocation2 + $0x58] sm:$0xff] }
 0x751   :  { %1478 = vrcp.f32 %v723_v27  ;;  %v735_v38 = vand.u32 2147483648, %v723_v27  ;;  %vm729_vm15 = vweird.f32 %v723_v27  ;;  %v733_v40 = vand.u32 2147483647, %v723_v27 }
 0x753   :  { %v651_v17 = vpop.f32.mrf.mxu2  ;;  %v736_v43 = vor.u32 1.1754944e-38, %v735_v38  ;;  %vm734_vm2 = vcmp.eq.f32.partialorder %v733_v40, 8.507059e+37 }
 0x754   :  { %v699_v18 = vadd.f32 %v651_v17, %v1747_v26  ;;  %v679_v25 = vadd.f32 %v651_v17, %v628_v22 }
 0x756   :  { %701 = vrot.lane.b32.xlu0 %v699_v18, %s1571_s27  ;;  %v1402_v28 = vmul.f32 -1.442695, %v679_v25 }
 0x757   :  { %v1479_v29 = vpop.eup %1478 }
 0x758   :  { %1480 = vpow2.f32 %v1402_v28  ;;  %v725_v31 = vmul.f32 %v1479_v29, %v723_v27  ;;  %vm730_vm14 = vweird.f32 %v1479_v29 }
 0x759   :  { %vm731_vm0 = vmor %vm729_vm15, %vm730_vm14  ;;  %vm761_vm15 = vcmp.gt.s32.totalorder %v1773_v39, 4 }
 0x75a   :  { %v726_v34 = vsub.f32 1.0, %v725_v31 }
 0x75c   :  { %v727_v35 = vmul.f32 %v1479_v29, %v726_v34 }
 0x75e   :  { %v1481_v30 = vpop.eup %1480  ;;  %v728_v36 = vadd.f32 %v1479_v29, %v727_v35 }
 0x75f   :  { %v683_v33 = vadd.f32 1.0, %v1481_v30 }
 0x760   :  { %v732_v41 = vsel %vm731_vm0, %v1479_v29, %v728_v36  ;;  %vm759_vm0 = vcmp.gt.s32.totalorder %v1773_v39, 3 }
 0x761   :  { %1482 = vrcp.f32 %v683_v33  ;;  %v737_v46 = vsel %vm734_vm2, %v736_v43, %v732_v41  ;;  %v695_v52 = vand.u32 2147483648, %v683_v33  ;;  %vm689_vm4 = vweird.f32 %v683_v33 }
 0x762   :  { %v693_v53 = vand.u32 2147483647, %v683_v33  ;;  %v751_v4 = vsub.f32 1.0, %v737_v46  ;;  %v757_v44 = vmul.f32 %v737_v46, %v1879_v11 }
 0x763   :  { %v696_v56 = vor.u32 1.1754944e-38, %v695_v52 }
 0x764   :  { %vm694_vm14 = vcmp.eq.f32.partialorder %v693_v53, 8.507059e+37 }
 0x767   :  { %v1483_v37 = vpop.eup %1482 }
 0x768   :  { %v685_v42 = vmul.f32 %v1483_v37, %v683_v33  ;;  %vm690_vm3 = vweird.f32 %v1483_v37 }
 0x769   :  { %vm691_vm5 = vmor %vm689_vm4, %vm690_vm3 }
 0x76a   :  { %v686_v48 = vsub.f32 1.0, %v685_v42 }
 0x76c   :  { %v687_v49 = vmul.f32 %v1483_v37, %v686_v48 }
 0x76e   :  { %v688_v51 = vadd.f32 %v1483_v37, %v687_v49 }
 0x770   :  { %v692_v55 = vsel %vm691_vm5, %v1483_v37, %v688_v51 }
 0x771   :  { %v697_v58 = vsel %vm694_vm14, %v696_v56, %v692_v55 }
 0x772   :  { %v711_v15 = vsub.f32 1.0, %v697_v58  ;;  %v717_v17 = vmul.f32 %v697_v58, %v1870_v50 }
 0x7b8   :  { %v742_v45 = vpop.permute.xlu1 %741 }
 0x7b9   :  { %v744_v47 = vmul.f32 %v742_v45, %v737_v46 }
 0x7bb   :  { %746 = vrot.lane.b32.xlu0 %v744_v47, %s1571_s27 }
 0x7c8   :  { %v702_v57 = vpop.permute.xlu0 %701 }
 0x7c9   :  { %v704_v59 = vmul.f32 %v702_v57, %v697_v58 }
 0x7cb   :  { %706 = vrot.lane.b32.xlu2 %v704_v59, %s1571_s27 }
 0x825   :  { %v707_v60 = vpop.permute.xlu2 %706 }
 0x826   :  { %v709_v61 = vadd.f32 %v707_v60, %v628_v22 }
 0x828   :  { %1484 = vtanh.f32 %v709_v61 }
 0x82d   :  { %v747_v62 = vpop.permute.xlu0 %746 }
 0x82e   :  { %v1485_v63 = vpop.eup %1484  ;;  %v749_v0 = vadd.f32 %v747_v62, %v631_v19 }
 0x82f   :  { %713 = vrot.lane.b32.xlu1 %v1485_v63, %s1574_s1 }
 0x830   :  { %1486 = vtanh.f32 %v749_v0 }
 0x836   :  { %v1487_v2 = vpop.eup %1486 }
 0x837   :  { %753 = vrot.lane.b32.xlu2 %v1487_v2, %s1574_s1 }
 0x891   :  { %v754_v9 = vpop.permute.xlu2 %753 }
 0x892   :  { %v756_v54 = vmul.f32 %v754_v9, %v751_v4 }
 0x894   :  { %v758_v13 = vadd.f32 %v757_v44, %v756_v54 }
 0x896   :  { %v1917_v14 = vsel %vm761_vm15, %v758_v13, %v1879_v11 }
 0x897   :  { %799 = vrot.lane.b32.xlu1 %v1917_v14, %s1574_s1  ;;  %1405 = vst.msk [vmem:[%s2127_s6 + $0x20] sm:$0xff] %vm337_vm11, %v1917_v14 }
 0x8a1   :  { %v714_v16 = vpop.permute.xlu1 %713 }
 0x8a2   :  { %v716_v18 = vmul.f32 %v714_v16, %v711_v15 }
 0x8a4   :  { %v718_v19 = vadd.f32 %v717_v17, %v716_v18 }
 0x8a6   :  { %v1931_v11 = vsel %vm759_vm0, %v718_v19, %v1870_v50 }
 0x8a7   :  { %764 = vrot.lane.b32.xlu0 %v1931_v11, %s1574_s1 }
 0x909   :  { %v800_v20 = vpop.permute.xlu1 %799 }
 0x90a   :  { %1407 = vmatmul.msk.f32.vlgmr.msra.gmra.mxu3 %vm197_vm13, %v800_v20 }
 0x90b   :  { %1095 = vmatpush.msra.mxu3 %v1644_v6  ;;  %v94_v6 = vpop.f32.mrf.mxu0 }
 0x90d   :  { %1096 = vmatpush.msra.mxu3 %v1650_v7  ;;  %v95_v7 = vadd.f32 %v1743_v23, %v94_v6 }
 0x90f   :  { %1097 = vmatpush.msra.mxu3 %v1666_v10  ;;  %111 = vst.msk [vmem:[#allocation2 + $0x20] sm:$0xff] %vm106_vm1, %v95_v7 }
 0x911   :  { %1098 = vmatpush.msra.mxu3 %v1675_v12 }
 0x919   :  { %v765_v21 = vpop.permute.xlu0 %764 }
 0x91a   :  { %1404 = vst.msk [vmem:[%s2127_s6 + $0x18] sm:$0xff] %vm197_vm13, %v765_v21  ;;  %1406 = vmatmul.msk.f32.vlgmr.msra.gmra.mxu2 %vm197_vm13, %v765_v21  ;;  %v97_v21 = vpop.f32.mrf.mxu0 }
 0x91b   :  { %1070 = vmatpush.msra.mxu2 %v1622_v1  ;;  %v772_v1 = vld [vmem:[#allocation2 + $0x20] sm:$0xff]  ;;  %v98_v6 = vadd.f32 %v1743_v23, %v97_v21  ;;  %v1538_v23 = vld [vmem:[%s2124_s3 + $0x8] sm:$0xff] }
 0x91d   :  { %1071 = vmatpush.msra.mxu2 %v1631_v3  ;;  %112 = vst.msk [vmem:[#allocation2 + $0x28] sm:$0xff] %vm106_vm1, %v98_v6 }
 0x91f   :  { %1072 = vmatpush.msra.mxu2 %v1639_v5 }
 0x921   :  { %1073 = vmatpush.msra.mxu2 %v1656_v8 }
 0x98d   :  { %v820_v10 = vpop.f32.mrf.mxu3 }
 0x98e   :  { %v883_v12 = vadd.f32 %v820_v10, %v1755_v32  ;;  %v863_v8 = vadd.f32 %v820_v10, %v775_v24  ;;  %v1537_v10 = vld [vmem:[%s2124_s3 + $0x10] sm:$0xff] }
 0x990   :  { %885 = vrot.lane.b32.xlu0 %v883_v12, %s1571_s27  ;;  %v1409_v25 = vmul.f32 -1.442695, %v863_v8 }
 0x99d   :  { %v795_v50 = vpop.f32.mrf.mxu2 }
 0x99e   :  { %v843_v22 = vadd.f32 %v795_v50, %v1747_v26  ;;  %v823_v3 = vadd.f32 %v795_v50, %v772_v1  ;;  %v1539_v50 = vld [vmem:[%s2124_s3] sm:$0xff] }
 0x9a0   :  { %845 = vrot.lane.b32.xlu2 %v843_v22, %s1571_s27  ;;  %v1408_v5 = vmul.f32 -1.442695, %v823_v3  ;;  %v1540_v22 = vld [vmem:[%s2124_s3 + $0x38] sm:$0xff]  ;;  %v1542_v3 = vld [vmem:[%s2124_s3 + $0x28] sm:$0xff] }
 0x9a2   :  { %1488 = vpow2.f32 %v1408_v5  ;;  %v1543_v5 = vld [vmem:[%s2124_s3 + $0x20] sm:$0xff] }
 0x9a3   :  { %1490 = vpow2.f32 %v1409_v25 }
 0x9a8   :  { %v1489_v27 = vpop.eup %1488 }
 0x9a9   :  { %v827_v28 = vadd.f32 1.0, %v1489_v27  ;;  %v1491_v29 = vpop.eup %1490 }
 0x9aa   :  { %v867_v30 = vadd.f32 1.0, %v1491_v29 }
 0x9ab   :  { %1492 = vrcp.f32 %v827_v28  ;;  %v839_v41 = vand.u32 2147483648, %v827_v28  ;;  %vm833_vm3 = vweird.f32 %v827_v28  ;;  %v837_v42 = vand.u32 2147483647, %v827_v28 }
 0x9ac   :  { %1494 = vrcp.f32 %v867_v30  ;;  %v879_v52 = vand.u32 2147483648, %v867_v30  ;;  %vm873_vm10 = vweird.f32 %v867_v30  ;;  %v877_v53 = vand.u32 2147483647, %v867_v30 }
 0x9ad   :  { %v840_v46 = vor.u32 1.1754944e-38, %v839_v41  ;;  %vm838_vm5 = vcmp.eq.f32.partialorder %v837_v42, 8.507059e+37 }
 0x9ae   :  { %v880_v56 = vor.u32 1.1754944e-38, %v879_v52  ;;  %vm878_vm7 = vcmp.eq.f32.partialorder %v877_v53, 8.507059e+37 }
 0x9b1   :  { %v1493_v31 = vpop.eup %1492 }
 0x9b2   :  { %v829_v33 = vmul.f32 %v1493_v31, %v827_v28  ;;  %v1495_v35 = vpop.eup %1494  ;;  %vm834_vm2 = vweird.f32 %v1493_v31  ;;  %v915_v28 = vld [vmem:[#allocation2 + $0x50] sm:$0xff] }
 0x9b3   :  { %v869_v37 = vmul.f32 %v1495_v35, %v867_v30  ;;  %vm835_vm4 = vmor %vm833_vm3, %vm834_vm2  ;;  %vm874_vm14 = vweird.f32 %v1495_v35 }
 0x9b4   :  { %v830_v34 = vsub.f32 1.0, %v829_v33  ;;  %vm875_vm12 = vmor %vm873_vm10, %vm874_vm14 }
 0x9b5   :  { %v870_v40 = vsub.f32 1.0, %v869_v37 }
 0x9b6   :  { %v831_v36 = vmul.f32 %v1493_v31, %v830_v34 }
 0x9b7   :  { %v871_v45 = vmul.f32 %v1495_v35, %v870_v40 }
 0x9b8   :  { %v832_v38 = vadd.f32 %v1493_v31, %v831_v36 }
 0x9b9   :  { %v872_v51 = vadd.f32 %v1495_v35, %v871_v45 }
 0x9ba   :  { %v836_v43 = vsel %vm835_vm4, %v1493_v31, %v832_v38  ;;  %v912_v31 = vld [vmem:[#allocation2 + $0x28] sm:$0xff] }
 0x9bb   :  { %v841_v47 = vsel %vm838_vm5, %v840_v46, %v836_v43  ;;  %v876_v55 = vsel %vm875_vm12, %v1495_v35, %v872_v51 }
 0x9bc   :  { %v881_v58 = vsel %vm878_vm7, %v880_v56, %v876_v55  ;;  %v855_v16 = vsub.f32 1.0, %v841_v47  ;;  %v861_v18 = vmul.f32 %v841_v47, %v1931_v11 }
 0x9bd   :  { %v895_v4 = vsub.f32 1.0, %v881_v58  ;;  %v901_v44 = vmul.f32 %v881_v58, %v1917_v14 }
 0x9fa   :  { %v846_v48 = vpop.permute.xlu2 %845 }
 0x9fb   :  { %v848_v49 = vmul.f32 %v846_v48, %v841_v47 }
 0x9fd   :  { %850 = vrot.lane.b32.xlu1 %v848_v49, %s1571_s27 }
 0xa02   :  { %v886_v57 = vpop.permute.xlu0 %885 }
 0xa03   :  { %v888_v59 = vmul.f32 %v886_v57, %v881_v58 }
 0xa05   :  { %890 = vrot.lane.b32.xlu2 %v888_v59, %s1571_s27 }
 0xa5f   :  { %v891_v60 = vpop.permute.xlu2 %890 }
 0xa60   :  { %v893_v61 = vadd.f32 %v891_v60, %v775_v24 }
 0xa62   :  { %1496 = vtanh.f32 %v893_v61 }
 0xa68   :  { %v1497_v62 = vpop.eup %1496 }
 0xa69   :  { %897 = vrot.lane.b32.xlu1 %v1497_v62, %s1574_s1 }
 0xa6f   :  { %v851_v63 = vpop.permute.xlu1 %850 }
 0xa70   :  { %v853_v0 = vadd.f32 %v851_v63, %v772_v1  ;;  %v1541_v1 = vld [vmem:[%s2124_s3 + $0x30] sm:$0xff] }
 0xa72   :  { %1498 = vtanh.f32 %v853_v0 }
 0xa78   :  { %v1499_v2 = vpop.eup %1498 }
 0xa79   :  { %857 = vrot.lane.b32.xlu0 %v1499_v2, %s1574_s1 }
 0xadb   :  { %v898_v9 = vpop.permute.xlu1 %897 }
 0xadc   :  { %v900_v54 = vmul.f32 %v898_v9, %v895_v4 }
 0xade   :  { %v902_v13 = vadd.f32 %v901_v44, %v900_v54 }
 0xae0   :  { %v1963_v15 = vsel %vm759_vm0, %v902_v13, %v1917_v14 }
 0xae1   :  { %939 = vrot.lane.b32.xlu0 %v1963_v15, %s1574_s1  ;;  %1411 = vst.msk [vmem:[%s2127_s6 + $0x18] sm:$0xff] %vm337_vm11, %v1963_v15 }
 0xaeb   :  { %v858_v17 = vpop.permute.xlu0 %857 }
 0xaec   :  { %v860_v19 = vmul.f32 %v858_v17, %v855_v16 }
 0xaee   :  { %v862_v20 = vadd.f32 %v861_v18, %v860_v19 }
 0xaf0   :  { %v1976_v14 = vsel %vm761_vm15, %v862_v20, %v1931_v11  ;;  %v1536_v11 = vld [vmem:[%s2124_s3 + $0x18] sm:$0xff] }
 0xaf1   :  { %906 = vrot.lane.b32.xlu2 %v1976_v14, %s1574_s1 }
 0xb4b   :  { %v907_v7 = vpop.permute.xlu2 %906 }
 0xb4c   :  { %1410 = vst.msk [vmem:[%s2127_s6 + $0x20] sm:$0xff] %vm197_vm13, %v907_v7  ;;  %1412 = vmatmul.msk.f32.vlgmr.msrb.gmra.mxu2 %vm197_vm13, %v907_v7 }
 0xb4d   :  { %1210 = vmatpush.msrb.mxu2 %v1536_v11 }
 0xb4f   :  { %1211 = vmatpush.msrb.mxu2 %v1537_v10 }
 0xb51   :  { %1212 = vmatpush.msrb.mxu2 %v1538_v23 }
 0xb53   :  { %v940_v12 = vpop.permute.xlu0 %939  ;;  %1213 = vmatpush.msrb.mxu2 %v1539_v50 }
 0xb54   :  { %1413 = vmatmul.msk.f32.vlgmr.msrb.gmra.mxu3 %vm197_vm13, %v940_v12 }
 0xb55   :  { %1235 = vmatpush.msrb.mxu3 %v1540_v22 }
 0xb57   :  { %1236 = vmatpush.msrb.mxu3 %v1541_v1 }
 0xb59   :  { %1237 = vmatpush.msrb.mxu3 %v1542_v3  ;;  %v2050_v3 = vld [vmem:[%s2125_s4] ss:$0 sm:$0xff] }
 0xb5b   :  { %1238 = vmatpush.msrb.mxu3 %v1543_v5 }
 0xbcf   :  { %v935_v24 = vpop.f32.mrf.mxu2 }
 0xbd0   :  { %v983_v8 = vadd.f32 %v935_v24, %v1747_v26  ;;  %v963_v34 = vadd.f32 %v935_v24, %v912_v31 }
 0xbd2   :  { %985 = vrot.lane.b32.xlu1 %v983_v8, %s1571_s27  ;;  %v1414_v36 = vmul.f32 -1.442695, %v963_v34 }
 0xbd7   :  { %v960_v25 = vpop.f32.mrf.mxu3 }
 0xbd8   :  { %v1023_v27 = vadd.f32 %v960_v25, %v1755_v32  ;;  %v1003_v29 = vadd.f32 %v960_v25, %v915_v28 }
 0xbda   :  { %1025 = vrot.lane.b32.xlu2 %v1023_v27, %s1571_s27  ;;  %v1415_v30 = vmul.f32 -1.442695, %v1003_v29 }
 0xbdc   :  { %1500 = vpow2.f32 %v1415_v30 }
 0xbe2   :  { %v1501_v33 = vpop.eup %1500 }
 0xbe3   :  { %v1007_v35 = vadd.f32 1.0, %v1501_v33 }
 0xbe5   :  { %1502 = vrcp.f32 %v1007_v35  ;;  %v1019_v47 = vand.u32 2147483648, %v1007_v35  ;;  %vm1013_vm12 = vweird.f32 %v1007_v35  ;;  %v1017_v48 = vand.u32 2147483647, %v1007_v35 }
 0xbe6   :  { %1504 = vpow2.f32 %v1414_v36 }
 0xbe7   :  { %v1020_v52 = vor.u32 1.1754944e-38, %v1019_v47  ;;  %vm1018_vm15 = vcmp.eq.f32.partialorder %v1017_v48, 8.507059e+37 }
 0xbeb   :  { %v1503_v37 = vpop.eup %1502 }
 0xbec   :  { %v1505_v38 = vpop.eup %1504  ;;  %v1009_v40 = vmul.f32 %v1503_v37, %v1007_v35  ;;  %vm1014_vm10 = vweird.f32 %v1503_v37 }
 0xbed   :  { %v967_v41 = vadd.f32 1.0, %v1505_v38  ;;  %vm1015_vm7 = vmor %vm1013_vm12, %vm1014_vm10 }
 0xbee   :  { %v1010_v42 = vsub.f32 1.0, %v1009_v40 }
 0xbef   :  { %1506 = vrcp.f32 %v967_v41  ;;  %v979_v60 = vand.u32 2147483648, %v967_v41  ;;  %vm973_vm2 = vweird.f32 %v967_v41  ;;  %v977_v61 = vand.u32 2147483647, %v967_v41 }
 0xbf0   :  { %v1011_v43 = vmul.f32 %v1503_v37, %v1010_v42 }
 0xbf1   :  { %v980_v63 = vor.u32 1.1754944e-38, %v979_v60  ;;  %vm978_vm4 = vcmp.eq.f32.partialorder %v977_v61, 8.507059e+37 }
 0xbf2   :  { %v1012_v45 = vadd.f32 %v1503_v37, %v1011_v43 }
 0xbf4   :  { %v1016_v49 = vsel %vm1015_vm7, %v1503_v37, %v1012_v45 }
 0xbf5   :  { %v1507_v46 = vpop.eup %1506  ;;  %v1021_v53 = vsel %vm1018_vm15, %v1020_v52, %v1016_v49 }
 0xbf6   :  { %v969_v51 = vmul.f32 %v1507_v46, %v967_v41  ;;  %vm974_vm0 = vweird.f32 %v1507_v46  ;;  %v1035_v11 = vsub.f32 1.0, %v1021_v53  ;;  %v1041_v23 = vmul.f32 %v1021_v53, %v1963_v15 }
 0xbf7   :  { %vm975_vm3 = vmor %vm973_vm2, %vm974_vm0  ;;  %vm2132_vm0 = vcmp.gt.s32.totalorder %v1773_v39, 6 }
 0xbf8   :  { %v970_v57 = vsub.f32 1.0, %v969_v51 }
 0xbfa   :  { %v971_v58 = vmul.f32 %v1507_v46, %v970_v57 }
 0xbfc   :  { %v972_v59 = vadd.f32 %v1507_v46, %v971_v58 }
 0xbfe   :  { %v976_v62 = vsel %vm975_vm3, %v1507_v46, %v972_v59 }
 0xbff   :  { %v981_v2 = vsel %vm978_vm4, %v980_v63, %v976_v62 }
 0xc00   :  { %v995_v18 = vsub.f32 1.0, %v981_v2  ;;  %v1001_v20 = vmul.f32 %v981_v2, %v1976_v14 }
 0xc34   :  { %v1026_v55 = vpop.permute.xlu2 %1025 }
 0xc35   :  { %v1028_v56 = vmul.f32 %v1026_v55, %v1021_v53 }
 0xc37   :  { %1030 = vrot.lane.b32.xlu1 %v1028_v56, %s1571_s27 }
 0xc44   :  { %v986_v0 = vpop.permute.xlu1 %985 }
 0xc45   :  { %v988_v4 = vmul.f32 %v986_v0, %v981_v2 }
 0xc47   :  { %990 = vrot.lane.b32.xlu0 %v988_v4, %s1571_s27 }
 0xca9   :  { %v1031_v9 = vpop.permute.xlu1 %1030 }
 0xcaa   :  { %v1033_v44 = vadd.f32 %v1031_v9, %v915_v28  ;;  %v1055_v28 = vld [vmem:[#allocation2 + $0x48] sm:$0xff] }
 0xcac   :  { %1508 = vtanh.f32 %v1033_v44 }
 0xcb2   :  { %v1509_v54 = vpop.eup %1508 }
 0xcb3   :  { %1037 = vrot.lane.b32.xlu0 %v1509_v54, %s1574_s1 }
 0xcb9   :  { %v991_v13 = vpop.permute.xlu0 %990 }
 0xcba   :  { %v993_v16 = vadd.f32 %v991_v13, %v912_v31 }
 0xcbc   :  { %1510 = vtanh.f32 %v993_v16 }
 0xcc2   :  { %v1511_v17 = vpop.eup %1510 }
 0xcc3   :  { %997 = vrot.lane.b32.xlu2 %v1511_v17, %s1574_s1 }
 0xd1d   :  { %v998_v19 = vpop.permute.xlu2 %997 }
 0xd1e   :  { %v1000_v21 = vmul.f32 %v998_v19, %v995_v18 }
 0xd20   :  { %v1002_v6 = vadd.f32 %v1001_v20, %v1000_v21 }
 0xd22   :  { %v2024_v7 = vsel %vm617_vm9, %v1002_v6, %v1976_v14 }
 0xd23   :  { %1046 = vrot.lane.b32.xlu1 %v2024_v7, %s1574_s1 }
 0xd25   :  { %v1038_v10 = vpop.permute.xlu0 %1037 }
 0xd26   :  { %v1040_v12 = vmul.f32 %v1038_v10, %v1035_v11 }
 0xd28   :  { %v1042_v50 = vadd.f32 %v1041_v23, %v1040_v12 }
 0xd2a   :  { %v2032_v22 = vsel %vm615_vm6, %v1042_v50, %v1963_v15  ;;  %v100_v15 = vpop.f32.mrf.mxu0 }
 0xd2b   :  { %1079 = vrot.lane.b32.xlu2 %v2032_v22, %s1574_s1  ;;  %1417 = vst.msk [vmem:[%s2127_s6 + $0x10] sm:$0xff] %vm337_vm11, %v2032_v22  ;;  %v101_v5 = vadd.f32 %v2050_v3, %v100_v15 }
 0xd2d   :  { %113 = vst.msk [vmem:[#allocation2 + $0x30] sm:$0xff] %vm106_vm1, %v101_v5 }
 0xd32   :  { %v103_v5 = vpop.f32.mrf.mxu0 }
 0xd34   :  { %v1052_v31 = vld [vmem:[#allocation2 + $0x30] sm:$0xff] }
 0xd85   :  { %v1080_v14 = vpop.permute.xlu2 %1079 }
 0xd86   :  { %1419 = vmatmul.msk.f32.vlgmr.msra.gmra.mxu3 %vm197_vm13, %v1080_v14 }
 0xd95   :  { %v1047_v1 = vpop.permute.xlu1 %1046 }
 0xd96   :  { %1416 = vst.msk [vmem:[%s2127_s6 + $0x28] sm:$0xff] %vm197_vm13, %v1047_v1  ;;  %1418 = vmatmul.msk.f32.vlgmr.msra.gmra.mxu2 %vm197_vm13, %v1047_v1 }
 0xe09   :  { %v1100_v24 = vpop.f32.mrf.mxu3 }
 0xe0a   :  { %v1163_v8 = vadd.f32 %v1100_v24, %v1755_v32  ;;  %v1143_v29 = vadd.f32 %v1100_v24, %v1055_v28  ;;  %v104_v24 = vadd.f32 %v2050_v3, %v103_v5 }
 0xe0c   :  { %1165 = vrot.lane.b32.xlu1 %v1163_v8, %s1571_s27  ;;  %v1421_v30 = vmul.f32 -1.442695, %v1143_v29  ;;  %114 = vst.msk [vmem:[#allocation2 + $0x38] sm:$0xff] %vm106_vm1, %v104_v24 }
 0xe0e   :  { %1512 = vpow2.f32 %v1421_v30 }
 0xe14   :  { %v1513_v33 = vpop.eup %1512 }
 0xe15   :  { %v1147_v35 = vadd.f32 1.0, %v1513_v33 }
 0xe17   :  { %1514 = vrcp.f32 %v1147_v35  ;;  %v1159_v47 = vand.u32 2147483648, %v1147_v35  ;;  %vm1153_vm9 = vweird.f32 %v1147_v35  ;;  %v1157_v48 = vand.u32 2147483647, %v1147_v35 }
 0xe19   :  { %v1075_v25 = vpop.f32.mrf.mxu2  ;;  %v1160_v52 = vor.u32 1.1754944e-38, %v1159_v47  ;;  %vm1158_vm14 = vcmp.eq.f32.partialorder %v1157_v48, 8.507059e+37 }
 0xe1a   :  { %v1123_v27 = vadd.f32 %v1075_v25, %v1747_v26  ;;  %v1103_v34 = vadd.f32 %v1075_v25, %v1052_v31 }
 0xe1c   :  { %1125 = vrot.lane.b32.xlu0 %v1123_v27, %s1571_s27  ;;  %v1420_v36 = vmul.f32 -1.442695, %v1103_v34 }
 0xe1d   :  { %v1515_v37 = vpop.eup %1514 }
 0xe1e   :  { %1516 = vpow2.f32 %v1420_v36  ;;  %v1149_v40 = vmul.f32 %v1515_v37, %v1147_v35  ;;  %vm1154_vm6 = vweird.f32 %v1515_v37 }
 0xe1f   :  { %vm1155_vm5 = vmor %vm1153_vm9, %vm1154_vm6 }
 0xe20   :  { %v1150_v42 = vsub.f32 1.0, %v1149_v40 }
 0xe22   :  { %v1151_v43 = vmul.f32 %v1515_v37, %v1150_v42 }
 0xe24   :  { %v1517_v38 = vpop.eup %1516  ;;  %v1152_v45 = vadd.f32 %v1515_v37, %v1151_v43 }
 0xe25   :  { %v1107_v41 = vadd.f32 1.0, %v1517_v38 }
 0xe26   :  { %v1156_v49 = vsel %vm1155_vm5, %v1515_v37, %v1152_v45 }
 0xe27   :  { %1518 = vrcp.f32 %v1107_v41  ;;  %v1161_v55 = vsel %vm1158_vm14, %v1160_v52, %v1156_v49  ;;  %v1119_v60 = vand.u32 2147483648, %v1107_v41  ;;  %vm1113_vm12 = vweird.f32 %v1107_v41 }
 0xe28   :  { %v1117_v61 = vand.u32 2147483647, %v1107_v41  ;;  %v1175_v18 = vsub.f32 1.0, %v1161_v55  ;;  %v1181_v20 = vmul.f32 %v1161_v55, %v2032_v22  ;;  %vm2133_vm14 = vcmp.gt.s32.totalorder %v1773_v39, 0 }
 0xe29   :  { %v1120_v63 = vor.u32 1.1754944e-38, %v1119_v60 }
 0xe2a   :  { %vm1118_vm15 = vcmp.eq.f32.partialorder %v1117_v61, 8.507059e+37 }
 0xe2d   :  { %v1519_v46 = vpop.eup %1518 }
 0xe2e   :  { %v1109_v51 = vmul.f32 %v1519_v46, %v1107_v41  ;;  %vm1114_vm10 = vweird.f32 %v1519_v46 }
 0xe2f   :  { %vm1115_vm7 = vmor %vm1113_vm12, %vm1114_vm10  ;;  %vm2134_vm10 = vcmp.gt.s32.totalorder %v1773_v39, 7 }
 0xe30   :  { %v1110_v57 = vsub.f32 1.0, %v1109_v51 }
 0xe32   :  { %v1111_v58 = vmul.f32 %v1519_v46, %v1110_v57 }
 0xe34   :  { %v1112_v59 = vadd.f32 %v1519_v46, %v1111_v58 }
 0xe36   :  { %v1116_v62 = vsel %vm1115_vm7, %v1519_v46, %v1112_v59 }
 0xe37   :  { %v1121_v2 = vsel %vm1118_vm15, %v1120_v63, %v1116_v62 }
 0xe38   :  { %v1135_v10 = vsub.f32 1.0, %v1121_v2  ;;  %v1141_v12 = vmul.f32 %v1121_v2, %v2024_v7 }
 0xe7e   :  { %v1166_v53 = vpop.permute.xlu1 %1165 }
 0xe7f   :  { %v1168_v56 = vmul.f32 %v1166_v53, %v1161_v55 }
 0xe81   :  { %1170 = vrot.lane.b32.xlu0 %v1168_v56, %s1571_s27 }
 0xe8e   :  { %v1126_v0 = vpop.permute.xlu0 %1125 }
 0xe8f   :  { %v1128_v4 = vmul.f32 %v1126_v0, %v1121_v2 }
 0xe91   :  { %1130 = vrot.lane.b32.xlu2 %v1128_v4, %s1571_s27 }
 0xeeb   :  { %v1131_v9 = vpop.permute.xlu2 %1130 }
 0xeec   :  { %v1133_v44 = vadd.f32 %v1131_v9, %v1052_v31  ;;  %v1195_v31 = vld [vmem:[#allocation2 + $0x40] sm:$0xff] }
 0xeee   :  { %1520 = vtanh.f32 %v1133_v44 }
 0xef3   :  { %v1171_v54 = vpop.permute.xlu0 %1170 }
 0xef4   :  { %v1521_v13 = vpop.eup %1520  ;;  %v1173_v16 = vadd.f32 %v1171_v54, %v1055_v28  ;;  %v1192_v28 = vld [vmem:[#allocation2 + $0x38] sm:$0xff] }
 0xef5   :  { %1137 = vrot.lane.b32.xlu1 %v1521_v13, %s1574_s1 }
 0xef6   :  { %1522 = vtanh.f32 %v1173_v16 }
 0xefc   :  { %v1523_v17 = vpop.eup %1522 }
 0xefd   :  { %1177 = vrot.lane.b32.xlu2 %v1523_v17, %s1574_s1 }
 0xf57   :  { %v1178_v19 = vpop.permute.xlu2 %1177 }
 0xf58   :  { %v1180_v21 = vmul.f32 %v1178_v19, %v1175_v18 }
 0xf5a   :  { %v1182_v6 = vadd.f32 %v1181_v20, %v1180_v21 }
 0xf5c   :  { %v2066_v11 = vsel %vm471_vm8, %v1182_v6, %v2032_v22 }
 0xf5d   :  { %1219 = vrot.lane.b32.xlu1 %v2066_v11, %s1574_s1  ;;  %1423 = vst.msk [vmem:[%s2127_s6 + $0x8] sm:$0xff] %vm337_vm11, %v2066_v11 }
 0xf67   :  { %v1138_v23 = vpop.permute.xlu1 %1137 }
 0xf68   :  { %v1140_v50 = vmul.f32 %v1138_v23, %v1135_v10 }
 0xf6a   :  { %v1142_v14 = vadd.f32 %v1141_v12, %v1140_v50 }
 0xf6c   :  { %v2079_v22 = vsel %vm2132_vm0, %v1142_v14, %v2024_v7 }
 0xf6d   :  { %1186 = vrot.lane.b32.xlu0 %v2079_v22, %s1574_s1 }
 0xfcf   :  { %v1220_v1 = vpop.permute.xlu1 %1219 }
 0xfd0   :  { %1425 = vmatmul.msk.f32.vlgmr.msrb.gmra.mxu3 %vm197_vm13, %v1220_v1 }
 0xfdf   :  { %v1187_v15 = vpop.permute.xlu0 %1186 }
 0xfe0   :  { %1422 = vst.msk [vmem:[%s2127_s6 + $0x30] sm:$0xff] %vm197_vm13, %v1187_v15  ;;  %1424 = vmatmul.msk.f32.vlgmr.msrb.gmra.mxu2 %vm197_vm13, %v1187_v15 }
0x1053   :  { %v1240_v7 = vpop.f32.mrf.mxu3 }
0x1054   :  { %v1303_v8 = vadd.f32 %v1240_v7, %v1755_v32  ;;  %v1283_v33 = vadd.f32 %v1240_v7, %v1195_v31 }
0x1056   :  { %1305 = vrot.lane.b32.xlu0 %v1303_v8, %s1571_s27  ;;  %v1427_v34 = vmul.f32 -1.442695, %v1283_v33 }
0x1063   :  { %v1215_v25 = vpop.f32.mrf.mxu2 }
0x1064   :  { %v1263_v27 = vadd.f32 %v1215_v25, %v1747_v26  ;;  %v1243_v29 = vadd.f32 %v1215_v25, %v1192_v28 }
0x1066   :  { %1265 = vrot.lane.b32.xlu2 %v1263_v27, %s1571_s27  ;;  %v1426_v30 = vmul.f32 -1.442695, %v1243_v29 }
0x1068   :  { %1524 = vpow2.f32 %v1426_v30 }
0x1069   :  { %1526 = vpow2.f32 %v1427_v34 }
0x106e   :  { %v1525_v3 = vpop.eup %1524 }
0x106f   :  { %v1247_v35 = vadd.f32 1.0, %v1525_v3  ;;  %v1527_v36 = vpop.eup %1526 }
0x1070   :  { %v1287_v32 = vadd.f32 1.0, %v1527_v36 }
0x1071   :  { %1528 = vrcp.f32 %v1247_v35  ;;  %v1259_v46 = vand.u32 2147483648, %v1247_v35  ;;  %vm1253_vm8 = vweird.f32 %v1247_v35  ;;  %v1257_v47 = vand.u32 2147483647, %v1247_v35 }
0x1072   :  { %1530 = vrcp.f32 %v1287_v32  ;;  %v1299_v57 = vand.u32 2147483648, %v1287_v32  ;;  %vm1293_vm6 = vweird.f32 %v1287_v32  ;;  %v1297_v58 = vand.u32 2147483647, %v1287_v32 }
0x1073   :  { %v1260_v51 = vor.u32 1.1754944e-38, %v1259_v46  ;;  %vm1258_vm3 = vcmp.eq.f32.partialorder %v1257_v47, 8.507059e+37 }
0x1074   :  { %v1300_v60 = vor.u32 1.1754944e-38, %v1299_v57  ;;  %vm1298_vm5 = vcmp.eq.f32.partialorder %v1297_v58, 8.507059e+37 }
0x1077   :  { %v1529_v37 = vpop.eup %1528 }
0x1078   :  { %v1249_v38 = vmul.f32 %v1529_v37, %v1247_v35  ;;  %v1531_v26 = vpop.eup %1530  ;;  %vm1254_vm1 = vweird.f32 %v1529_v37 }
0x1079   :  { %v1289_v42 = vmul.f32 %v1531_v26, %v1287_v32  ;;  %vm1255_vm2 = vmor %vm1253_vm8, %vm1254_vm1  ;;  %vm1294_vm4 = vweird.f32 %v1531_v26 }
0x107a   :  { %v1250_v40 = vsub.f32 1.0, %v1249_v38  ;;  %vm1295_vm9 = vmor %vm1293_vm6, %vm1294_vm4 }
0x107b   :  { %v1290_v45 = vsub.f32 1.0, %v1289_v42 }
0x107c   :  { %v1251_v41 = vmul.f32 %v1529_v37, %v1250_v40 }
0x107d   :  { %v1291_v49 = vmul.f32 %v1531_v26, %v1290_v45 }
0x107e   :  { %v1252_v43 = vadd.f32 %v1529_v37, %v1251_v41 }
0x107f   :  { %v1292_v56 = vadd.f32 %v1531_v26, %v1291_v49 }
0x1080   :  { %v1256_v48 = vsel %vm1255_vm2, %v1529_v37, %v1252_v43 }
0x1081   :  { %v1261_v52 = vsel %vm1258_vm3, %v1260_v51, %v1256_v48  ;;  %v1296_v59 = vsel %vm1295_vm9, %v1531_v26, %v1292_v56 }
0x1082   :  { %v1301_v62 = vsel %vm1298_vm5, %v1300_v60, %v1296_v59  ;;  %v1275_v21 = vsub.f32 1.0, %v1261_v52  ;;  %v1281_v10 = vmul.f32 %v1261_v52, %v2079_v22 }
0x1083   :  { %v1315_v13 = vsub.f32 1.0, %v1301_v62  ;;  %v1321_v17 = vmul.f32 %v1301_v62, %v2066_v11 }
0x10c0   :  { %v1266_v53 = vpop.permute.xlu2 %1265 }
0x10c1   :  { %v1268_v55 = vmul.f32 %v1266_v53, %v1261_v52 }
0x10c3   :  { %1270 = vrot.lane.b32.xlu1 %v1268_v55, %s1571_s27 }
0x10c8   :  { %v1306_v61 = vpop.permute.xlu0 %1305 }
0x10c9   :  { %v1308_v63 = vmul.f32 %v1306_v61, %v1301_v62 }
0x10cb   :  { %1310 = vrot.lane.b32.xlu2 %v1308_v63, %s1571_s27 }
0x1125   :  { %v1311_v0 = vpop.permute.xlu2 %1310 }
0x1126   :  { %v1313_v2 = vadd.f32 %v1311_v0, %v1195_v31 }
0x1128   :  { %1532 = vtanh.f32 %v1313_v2 }
0x112e   :  { %v1533_v4 = vpop.eup %1532 }
0x112f   :  { %1317 = vrot.lane.b32.xlu1 %v1533_v4, %s1574_s1 }
0x1135   :  { %v1271_v9 = vpop.permute.xlu1 %1270 }
0x1136   :  { %v1273_v44 = vadd.f32 %v1271_v9, %v1192_v28 }
0x1138   :  { %1534 = vtanh.f32 %v1273_v44 }
0x113e   :  { %v1535_v54 = vpop.eup %1534 }
0x113f   :  { %1277 = vrot.lane.b32.xlu0 %v1535_v54, %s1574_s1 }
0x11a1   :  { %v1318_v16 = vpop.permute.xlu1 %1317 }
0x11a2   :  { %v1320_v18 = vmul.f32 %v1318_v16, %v1315_v13 }
0x11a4   :  { %v1322_v19 = vadd.f32 %v1321_v17, %v1320_v18 }
0x11a6   :  { %v1324_v20 = vsel %vm2133_vm14, %v1322_v19, %v2066_v11 }
0x11a7   :  { %1330 = vst.msk [vmem:[%s2127_s6] sm:$0xff] %vm337_vm11, %v1324_v20 }
0x11b1   :  { %v1278_v6 = vpop.permute.xlu0 %1277 }
0x11b2   :  { %v1280_v23 = vmul.f32 %v1278_v6, %v1275_v21 }
0x11b4   :  { %v1282_v12 = vadd.f32 %v1281_v10, %v1280_v23 }
0x11b6   :  { %v1323_v50 = vsel %vm2134_vm10, %v1282_v12, %v2079_v22 }
0x11b7   :  { %1326 = vrot.lane.b32.xlu2 %v1323_v50, %s1574_s1 }
0x1211   :  { %v1327_v11 = vpop.permute.xlu2 %1326 }
0x1212   :  { %1428 = vst.msk [vmem:[%s2127_s6 + $0x38] sm:$0xff] %vm197_vm13, %v1327_v11 }
0x1213   :  { %1331 = vst.msk [vmem:[#allocation3] sm:$0xff] %vm197_vm13, %v1327_v11 }
0x1214   :  { %1332 = vst.msk [vmem:[#allocation3] sm:$0xff] %vm337_vm11, %v1324_v20 }
0x1215   :  { %1345 = dma.vmem_to_hbm [thread:$0]  %s1341_s23, 128, %s1343_s25, [#allocation4]  }
0x1216   :  { %1569 = dma.done.wait [#allocation4], 128  }
0x1217   :  { %1570 = vsyncadd [#allocation4], 4294967168 }
0x1218   :  { %1352 = vsyncpa [#allocation4], 1 }

// kernel: sden_forward.11
= control target key start
LH: loop header
LB: loop body
LE: loop exit
PB: predicated region body
PF: predicated region fallthrough
CT: control target
= control target key end

     0   :  { %s282_s0 = inlined_call_operand.vmem [shape: f32[16,64], index: 0, kind: input, shape index: {}]   ;;  %s283_s1 = inlined_call_operand.vmem [shape: f32[2,64], index: 1, kind: input, shape index: {}]   ;;  %s284_s2 = inlined_call_operand.vmem [shape: f32[64,128], index: 2, kind: input, shape index: {}]   ;;  %s285_s3 = inlined_call_operand.vmem [shape: f32[1,128], index: 3, kind: input, shape index: {}]   ;;  %s286_s4 = inlined_call_operand.vmem [shape: f32[64,128], index: 4, kind: input, shape index: {}]   ;;  %s287_s5 = inlined_call_operand.vmem [shape: f32[1,128], index: 5, kind: input, shape index: {}]   ;;  %s288_s6 = inlined_call_operand.vmem [shape: f32[16,128], index: 6, kind: output, shape index: {0}]   ;;  %s289_s7 = inlined_call_operand.hbm [shape: f32[2,128], index: 7, kind: output, shape index: {1}]  }
   0x1   :  { %v35_v0 = vld [vmem:[%s284_s2 + $0x38] sm:$0xff]  ;;  %v34_v1 = vld [vmem:[%s284_s2 + $0x30] sm:$0xff]  ;;  %v33_v4 = vld [vmem:[%s284_s2 + $0x28] sm:$0xff] }
   0x2   :  { %132 = vmatpush.msra.mxu2 %v35_v0  ;;  %v80_v2 = vld [vmem:[%s286_s4 + $0x38] sm:$0xff]  ;;  %55 = vmatpush.msra.mxu0 %v35_v0  ;;  %v79_v3 = vld [vmem:[%s286_s4 + $0x30] sm:$0xff]  ;;  %v78_v5 = vld [vmem:[%s286_s4 + $0x28] sm:$0xff] }
   0x3   :  { %96 = vmatpush.msra.mxu1 %v80_v2  ;;  %v32_v6 = vld [vmem:[%s284_s2 + $0x20] sm:$0xff]  ;;  %v31_v8 = vld [vmem:[%s284_s2 + $0x18] sm:$0xff] }
   0x4   :  { %133 = vmatpush.msra.mxu2 %v34_v1  ;;  %56 = vmatpush.msra.mxu0 %v34_v1  ;;  %v77_v7 = vld [vmem:[%s286_s4 + $0x20] sm:$0xff]  ;;  %v76_v9 = vld [vmem:[%s286_s4 + $0x18] sm:$0xff] }
   0x5   :  { %97 = vmatpush.msra.mxu1 %v79_v3 }
   0x6   :  { %134 = vmatpush.msra.mxu2 %v33_v4  ;;  %57 = vmatpush.msra.mxu0 %v33_v4 }
   0x7   :  { %98 = vmatpush.msra.mxu1 %v78_v5 }
   0x8   :  { %135 = vmatpush.msra.mxu2 %v32_v6  ;;  %58 = vmatpush.msra.mxu0 %v32_v6 }
   0x9   :  { %13 = vsyncpa [#allocation3], 0  ;;  %v30_v10 = vld [vmem:[%s284_s2 + $0x10] sm:$0xff]  ;;  %99 = vmatpush.msra.mxu1 %v77_v7  ;;  %v29_v12 = vld [vmem:[%s284_s2 + $0x8] sm:$0xff]  ;;  %vm40_vm0 = vcmask 523264   ;;  %s169_s18 = smov [#allocation2]  }
   0xa   :  { %136 = vmatpush.msra.mxu2 %v31_v8  ;;  %59 = vmatpush.msra.mxu0 %v31_v8  ;;  %v75_v11 = vld [vmem:[%s286_s4 + $0x10] sm:$0xff]  ;;  %v74_v13 = vld [vmem:[%s286_s4 + $0x8] sm:$0xff]  ;;  %v28_v14 = vld [vmem:[%s284_s2] sm:$0xff] }
   0xb   :  { %100 = vmatpush.msra.mxu1 %v76_v9  ;;  %v27_v15 = vld [vmem:[%s282_s0 + $0x8] sm:$0xff]  ;;  %v73_v16 = vld [vmem:[%s286_s4] sm:$0xff] }
   0xc   :  { %137 = vmatpush.msra.mxu2 %v30_v10  ;;  %60 = vmatpush.msra.mxu0 %v30_v10  ;;  %v72_v17 = vld [vmem:[%s283_s1] sm:$0x3]  ;;  %s116_s1 = sshll.u32 %s169_s18, 4  ;;  %s117_s1 = int_to_ptr.vmem [resolvable:$true] %s116_s1 }
   0xd   :  { %101 = vmatpush.msra.mxu1 %v75_v11  ;;  %v26_v18 = vld [vmem:[%s282_s0] sm:$0xff]  ;;  %s118_s0 = sshll.u32 %s289_s7, 4  ;;  %s119_s0 = int_to_ptr.hbm [resolvable:$true] %s118_s0 }
   0xe   :  { %138 = vmatpush.msra.mxu2 %v29_v12  ;;  %61 = vmatpush.msra.mxu0 %v29_v12  ;;  %v141_v19 = vld [vmem:[%s287_s5] ss:$0 sm:$0xff] }
   0xf   :  { %102 = vmatpush.msra.mxu1 %v74_v13  ;;  %v142_v20 = vld [vmem:[%s285_s3] ss:$0 sm:$0xff] }
  0x10   :  { %139 = vmatpush.msra.mxu2 %v28_v14  ;;  %62 = vmatpush.msra.mxu0 %v28_v14 }
  0x11   :  { %130 = vmatmul.msk.f32.vlgmr.msra.gmra.mxu2 %vm40_vm0, %v27_v15  ;;  %103 = vmatpush.msra.mxu1 %v73_v16 }
  0x12   :  { %131 = vmatmul.msk.f32.vlgmr.msra.gmra.mxu1 %vm40_vm0, %v72_v17  ;;  %129 = vmatmul.msk.f32.vlgmr.msra.gmra.mxu0 %vm40_vm0, %v26_v18 }
  0x8f   :  { %v105_v21 = vpop.f32.mrf.mxu1  ;;  %v64_v22 = vpop.f32.mrf.mxu0 }
  0x90   :  { %v106_v23 = vadd.f32 %v141_v19, %v105_v21  ;;  %v65_v24 = vadd.f32 %v142_v20, %v64_v22 }
  0x92   :  { %108 = vst [vmem:[#allocation2] sm:$0x3] %v106_v23 }
  0x93   :  { %70 = vst [vmem:[%s288_s6] sm:$0xff] %v65_v24  ;;  %121 = dma.vmem_to_hbm [thread:$0]  %s117_s1, 32, %s119_s0, [#allocation3]  }
  0x94   :  { %v67_v25 = vpop.f32.mrf.mxu2 }
  0x95   :  { %v68_v26 = vadd.f32 %v142_v20, %v67_v25 }
  0x97   :  { %71 = vst [vmem:[%s288_s6 + $0x8] sm:$0xff] %v68_v26 }
  0x98   :  { %167 = dma.done.wait [#allocation3], 32  }
  0x99   :  { %168 = vsyncadd [#allocation3], 4294967264 }
  0x9a   :  { %128 = vsyncpa [#allocation3], 1 }

</bundles_post_ra>
